<compile_context>
chip_gen: v7x
topology: tpu7x:2x2x1
jax: 0.10.0
libtpu: 0.0.40
codegen_flags: <defaults>
</compile_context>

<pallas_src>
import numpy as np

import jax
import jax.numpy as jnp
from jax.experimental import pallas as pl
from jax.experimental.pallas import tpu as pltpu


# ---------------------------------------------------------------------------
# One-time weight packing (outside the forward path)
# ---------------------------------------------------------------------------
def prepare_params(params):
    """Pack weights once:
       - conv weights -> block-Toeplitz mats T[kh]: (W*Cin, W*Cout), output columns
         ordered [even j | odd j] so pooling along W is an aligned lane-slice max;
       - conv biases  -> per-output-column rows (1, W*Cout) in the same ordering;
       - fc1 rows permuted from PyTorch's NCHW flatten order to our (h, w, c) order and
         reshaped to (4, 256, 64) so the head needs no in-kernel flatten relayout;
       - all matmul weights pre-cast to bf16 (MXU operands); biases stay f32."""

    def toeplitz(w_hwio, W):
        KH, KW, Cin, Cout = w_hwio.shape
        Wo = W // 2
        w = np.asarray(w_hwio, np.float32)
        T = np.zeros((KH, W * Cin, W * Cout), np.float32)
        for j in range(W):                                    # output column
            q0 = ((j % 2) * Wo + (j // 2)) * Cout             # [even j | odd j] ordering
            for kw in range(KW):
                j_in = j + kw - 2                             # padding = 2
                if 0 <= j_in < W:
                    T[:, j_in * Cin:(j_in + 1) * Cin, q0:q0 + Cout] = w[:, kw]
        return jnp.asarray(T, dtype=jnp.bfloat16)

    def bias_row(b, W):
        # column q = (block*Wo + m)*Cout + o  ->  bias[o] = bias[q % Cout]
        return jnp.asarray(np.tile(np.asarray(b, np.float32), W)[None, :])

    packed = {}
    for idx, (name, W) in enumerate((("conv1", 32), ("conv2", 16), ("conv3", 8)), start=1):
        w, b = params[name]
        packed[f"t{idx}"] = toeplitz(w, W)
        packed[f"b{idx}"] = bias_row(b, W)

    # fc1: PyTorch flatten order is (c, h, w); our in-kernel flatten order is (h, w, c).
    fw1, fb1 = params["fc1"]
    Ho, Wo, C = 4, 4, 64
    p = np.arange(Ho * Wo * C)
    h_i, w_i, c_i = p // (Wo * C), (p // C) % Wo, p % C
    fw1_perm = np.asarray(fw1, np.float32)[c_i * (Ho * Wo) + h_i * Wo + w_i]   # (1024, 64)
    packed["fc1w"] = jnp.asarray(fw1_perm.reshape(Ho, Wo * C, fw1.shape[1]), jnp.bfloat16)
    packed["fc1b"] = jnp.asarray(np.asarray(fb1, np.float32)[None, :])

    fw2, fb2 = params["fc2"]
    packed["fc2w"] = jnp.asarray(np.asarray(fw2, np.float32), jnp.bfloat16)
    packed["fc2b"] = jnp.asarray(np.asarray(fb2, np.float32)[None, :])
    return packed


# ---------------------------------------------------------------------------
# The fused kernel
# ---------------------------------------------------------------------------
def _conv_stage(pad_ref, t_ref, brow_ref, H, W, Cout):
    """Conv5x5(pad=2) + bias + ReLU + MaxPool2x2 on one (H, W*Cin)-laid-out image.

    pad_ref : (H+4, W*Cin) f32 scratch; rows 0-1 and H+2..H+3 are zero padding.
    t_ref   : (5, W*Cin, W*Cout) bf16 block-Toeplitz weights ([even j | odd j] columns).
    brow_ref: (1, W*Cout) f32 per-column bias.
    returns : (H//2, (W//2)*Cout) f32 pooled activation in (h, (w, c)) layout.
    """
    N = W * Cout
    acc = jnp.zeros((H, N), dtype=jnp.float32)
    for kh in range(5):                                   # 5 deep MXU matmuls, K = W*Cin
        lhs = pad_ref[pl.ds(kh, H), :].astype(jnp.bfloat16)
        acc = acc + jnp.dot(lhs, t_ref[kh], preferred_element_type=jnp.float32)
    y = jnp.maximum(acc + brow_ref[...], 0.0)             # bias + ReLU (f32 VPU)
    half = (W // 2) * Cout                                 # multiple of 128 for every stage
    y = jnp.maximum(y[:, :half], y[:, half:])             # pool along W (aligned lane slices)
    y = y.reshape(H // 2, 2, half)
    return jnp.maximum(y[:, 0, :], y[:, 1, :])            # pool along H


def _fused_forward_kernel(x_ref, t1_ref, b1_ref, t2_ref, b2_ref, t3_ref, b3_ref,
                          fc1w_ref, fc1b_ref, fc2w_ref, fc2b_ref,
                          o_ref, p1_ref, p2_ref, p3_ref):
    # Pad scratches are re-zeroed every grid step so the kernel stays correct when the
    # "parallel" batch axis is split across TensorCores (scratch is per-core).
    # Stage 1: 32x32x3 -> 16x16x32
    p1_ref[...] = jnp.zeros(p1_ref.shape, p1_ref.dtype)
    p1_ref[pl.ds(2, 32), :] = x_ref[0]
    y = _conv_stage(p1_ref, t1_ref, b1_ref, H=32, W=32, Cout=32)      # (16, 512)

    # Stage 2: 16x16x32 -> 8x8x32
    p2_ref[...] = jnp.zeros(p2_ref.shape, p2_ref.dtype)
    p2_ref[pl.ds(2, 16), :] = y
    y = _conv_stage(p2_ref, t2_ref, b2_ref, H=16, W=16, Cout=32)      # (8, 256)

    # Stage 3: 8x8x32 -> 4x4x64
    p3_ref[...] = jnp.zeros(p3_ref.shape, p3_ref.dtype)
    p3_ref[pl.ds(2, 8), :] = y
    y = _conv_stage(p3_ref, t3_ref, b3_ref, H=8, W=8, Cout=64)        # (4, 256)

    # Head: Flatten -> Linear(1024,64) -> ReLU -> Linear(64,10), fused (no relayout:
    # fc1 is applied as 4 row-block matmuls against the (4, 256, 64) permuted weight).
    feat = y.astype(jnp.bfloat16)                                      # rows=h, cols=(w,c)
    acc = jnp.zeros((1, 64), dtype=jnp.float32)
    for hh in range(4):
        acc = acc + jnp.dot(feat[hh:hh + 1, :], fc1w_ref[hh],
                            preferred_element_type=jnp.float32)
    hidden = jnp.maximum(acc + fc1b_ref[...], 0.0).astype(jnp.bfloat16)
    logits = jnp.dot(hidden, fc2w_ref[...],
                     preferred_element_type=jnp.float32) + fc2b_ref[...]
    o_ref[0] = logits.astype(o_ref.dtype)


def my_module_forward(packed, x_nchw):
    """Forward pass of MyModule.  x_nchw: (B, 3, 32, 32) f32 -> (B, 10) f32."""
    B, C, H, W = x_nchw.shape
    assert (C, H, W) == (3, 32, 32), "architecture fixes the input at 3x32x32"
    # NCHW -> (B, H, W*Cin): one image row per sublane row, (w, c) packed along lanes.
    x = jnp.transpose(x_nchw, (0, 2, 3, 1)).reshape(B, H, W * C).astype(jnp.float32)

    def full(a):                      # whole-array block, resident across all grid steps
        return pl.BlockSpec(a.shape, lambda b, _nd=a.ndim: (0,) * _nd)

    out = pl.pallas_call(
        _fused_forward_kernel,
        out_shape=jax.ShapeDtypeStruct((B, 1, 10), jnp.float32),
        grid=(B,),
        in_specs=[
            pl.BlockSpec((1, H, W * C), lambda b: (b, 0, 0)),
            full(packed["t1"]), full(packed["b1"]),
            full(packed["t2"]), full(packed["b2"]),
            full(packed["t3"]), full(packed["b3"]),
            full(packed["fc1w"]), full(packed["fc1b"]),
            full(packed["fc2w"]), full(packed["fc2b"]),
        ],
        out_specs=pl.BlockSpec((1, 1, 10), lambda b: (b, 0, 0)),
        scratch_shapes=[
            pltpu.VMEM((36, 96), jnp.float32),    # stage-1 padded input (Hp, W*Cin)
            pltpu.VMEM((20, 512), jnp.float32),   # stage-2 padded input
            pltpu.VMEM((12, 256), jnp.float32),   # stage-3 padded input
        ],
        compiler_params=pltpu.CompilerParams(
            dimension_semantics=("parallel",),        # one image per core on v7x megacore
            vmem_limit_bytes=32 * 1024 * 1024,        # ~5 MiB resident bf16 weights, x2 bufs
        ),
    )(x, packed["t1"], packed["b1"], packed["t2"], packed["b2"],
      packed["t3"], packed["b3"], packed["fc1w"], packed["fc1b"],
      packed["fc2w"], packed["fc2b"])
    return out.reshape(B, 10)


# ---------------------------------------------------------------------------
# Parameters + pure-JAX reference
# ---------------------------------------------------------------------------
def init_params(key):
    # Conv weights are HWIO (a PyTorch OIHW weight would need a (2,3,1,0) permute);
    # fc weights are (in_features, out_features) with fc1 rows in PyTorch's NCHW
    # flatten order (c*16 + h*4 + w), exactly like nn.Linear(64*4*4, 64).
    ks = jax.random.split(key, 10)
    s = 0.05
    return {
        "conv1": (s * jax.random.normal(ks[0], (5, 5, 3, 32), jnp.float32),
                  s * jax.random.normal(ks[1], (32,), jnp.float32)),
        "conv2": (s * jax.random.normal(ks[2], (5, 5, 32, 32), jnp.float32),
                  s * jax.random.normal(ks[3], (32,), jnp.float32)),
        "conv3": (s * jax.random.normal(ks[4], (5, 5, 32, 64), jnp.float32),
                  s * jax.random.normal(ks[5], (64,), jnp.float32)),
        "fc1": (s * jax.random.normal(ks[6], (64 * 4 * 4, 64), jnp.float32),
                s * jax.random.normal(ks[7], (64,), jnp.float32)),
        "fc2": (s * jax.random.normal(ks[8], (64, 10), jnp.float32),
                s * jax.random.normal(ks[9], (10,), jnp.float32)),
    }


def my_module_reference(params, x_nchw):
    hi = jax.lax.Precision.HIGHEST
    x = jnp.transpose(x_nchw, (0, 2, 3, 1))
    for name in ("conv1", "conv2", "conv3"):
        w, b = params[name]
        x = jax.lax.conv_general_dilated(
            x, w, window_strides=(1, 1), padding="SAME",
            dimension_numbers=("NHWC", "HWIO", "NHWC"), precision=hi)
        x = jnp.maximum(x + b, 0.0)
        x = jax.lax.reduce_window(x, -jnp.inf, jax.lax.max,
                                  (1, 2, 2, 1), (1, 2, 2, 1), "VALID")
    B = x.shape[0]
    feat = jnp.transpose(x, (0, 3, 1, 2)).reshape(B, -1)   # PyTorch NCHW flatten
    w1, b1 = params["fc1"]
    w2, b2 = params["fc2"]
    h = jnp.maximum(jnp.dot(feat, w1, precision=hi) + b1, 0.0)
    return jnp.dot(h, w2, precision=hi) + b2


# ---------------------------------------------------------------------------
if __name__ == "__main__":
    key = jax.random.PRNGKey(0)
    pkey, xkey = jax.random.split(key)
    params = init_params(pkey)
    packed = prepare_params(params)      # one-time weight packing, outside the forward path

    # Spatial size 32x32 is fixed by Flatten -> Linear(64*4*4, 64); batch kept small.
    x = jax.random.normal(xkey, (2, 3, 32, 32), jnp.float32)

    fwd = jax.jit(my_module_forward)
    out = jax.block_until_ready(fwd(packed, x))
    assert out.shape == (2, 10), out.shape
    assert out.dtype == jnp.float32, out.dtype

    ref = jax.block_until_ready(my_module_reference(params, x))
    max_err = float(jnp.max(jnp.abs(out - ref)))
    # bf16 MXU operands (with f32 accumulation/epilogue) vs the f32 HIGHEST reference.
    assert jnp.allclose(out, ref, rtol=2e-2, atol=2e-2), f"max_err={max_err}"

    print("KERNEL_OK")
</pallas_src>

<mosaic_0001>
module attributes {stable_mosaic.version = 11 : i64} {
  func.func @_fused_forward_kernel(%arg0: i32, %arg1: memref<1x32x96xf32, #tpu.memory_space<vmem>>, %arg2: memref<5x96x1024xbf16, #tpu.memory_space<vmem>>, %arg3: memref<1x1024xf32, #tpu.memory_space<vmem>>, %arg4: memref<5x512x512xbf16, #tpu.memory_space<vmem>>, %arg5: memref<1x512xf32, #tpu.memory_space<vmem>>, %arg6: memref<5x256x512xbf16, #tpu.memory_space<vmem>>, %arg7: memref<1x512xf32, #tpu.memory_space<vmem>>, %arg8: memref<4x256x64xbf16, #tpu.memory_space<vmem>>, %arg9: memref<1x64xf32, #tpu.memory_space<vmem>>, %arg10: memref<64x10xbf16, #tpu.memory_space<vmem>>, %arg11: memref<1x10xf32, #tpu.memory_space<vmem>>, %arg12: memref<1x1x10xf32, #tpu.memory_space<vmem>>, %arg13: memref<36x96xf32, #tpu.memory_space<vmem>>, %arg14: memref<20x512xf32, #tpu.memory_space<vmem>>, %arg15: memref<12x256xf32, #tpu.memory_space<vmem>>) attributes {dimension_semantics = [#tpu.dimension_semantics<parallel>], iteration_bounds = array<i64: 2>, scalar_prefetch = 0 : i64, scratch_operands = 3 : i64, tpu.core_type = #tpu.core_type<tc>, window_params = [{transform_indices = @transform_0, window_bounds = array<i64: 1, 32, 96>}, {pipeline_mode = #tpu.pipeline_mode<synchronous>, transform_indices = @transform_1, window_bounds = array<i64: 5, 96, 1024>}, {pipeline_mode = #tpu.pipeline_mode<synchronous>, transform_indices = @transform_2, window_bounds = array<i64: 1, 1024>}, {pipeline_mode = #tpu.pipeline_mode<synchronous>, transform_indices = @transform_3, window_bounds = array<i64: 5, 512, 512>}, {pipeline_mode = #tpu.pipeline_mode<synchronous>, transform_indices = @transform_4, window_bounds = array<i64: 1, 512>}, {pipeline_mode = #tpu.pipeline_mode<synchronous>, transform_indices = @transform_5, window_bounds = array<i64: 5, 256, 512>}, {pipeline_mode = #tpu.pipeline_mode<synchronous>, transform_indices = @transform_6, window_bounds = array<i64: 1, 512>}, {pipeline_mode = #tpu.pipeline_mode<synchronous>, transform_indices = @transform_7, window_bounds = array<i64: 4, 256, 64>}, {pipeline_mode = #tpu.pipeline_mode<synchronous>, transform_indices = @transform_8, window_bounds = array<i64: 1, 64>}, {pipeline_mode = #tpu.pipeline_mode<synchronous>, transform_indices = @transform_9, window_bounds = array<i64: 64, 10>}, {pipeline_mode = #tpu.pipeline_mode<synchronous>, transform_indices = @transform_10, window_bounds = array<i64: 1, 10>}, {transform_indices = @transform_11, window_bounds = array<i64: 1, 1, 10>}]} {
    %cst = arith.constant 0.000000e+00 : f32
    %0 = vector.broadcast %cst : f32 to vector<36x96xf32>
    %c0 = arith.constant 0 : index
    %c0_0 = arith.constant 0 : index
    %1 = vector.load %arg13[%c0, %c0_0] : memref<36x96xf32, #tpu.memory_space<vmem>>, vector<36x96xf32>
    tpu.vector_store %arg13[%c0, %c0_0], %0 {strides = array<i32>} : memref<36x96xf32, #tpu.memory_space<vmem>>, vector<36x96xf32>,
    %c0_1 = arith.constant 0 : index
    %c0_2 = arith.constant 0 : index
    %c0_3 = arith.constant 0 : index
    %2 = vector.load %arg1[%c0_1, %c0_2, %c0_3] : memref<1x32x96xf32, #tpu.memory_space<vmem>>, vector<1x32x96xf32>
    %3 = vector.shape_cast %2 : vector<1x32x96xf32> to vector<32x96xf32>
    %c2 = arith.constant 2 : index
    %c0_4 = arith.constant 0 : index
    %4 = vector.load %arg13[%c2, %c0_4] : memref<36x96xf32, #tpu.memory_space<vmem>>, vector<32x96xf32>
    tpu.vector_store %arg13[%c2, %c0_4], %3 {strides = array<i32>} : memref<36x96xf32, #tpu.memory_space<vmem>>, vector<32x96xf32>,
    %cst_5 = arith.constant 0.000000e+00 : f32
    %5 = vector.broadcast %cst_5 : f32 to vector<32x1024xf32>
    %c0_6 = arith.constant 0 : index
    %c0_7 = arith.constant 0 : index
    %6 = vector.load %arg13[%c0_6, %c0_7] : memref<36x96xf32, #tpu.memory_space<vmem>>, vector<32x96xf32>
    %7 = arith.truncf %6 : vector<32x96xf32> to vector<32x96xbf16>
    %c0_8 = arith.constant 0 : index
    %c0_9 = arith.constant 0 : index
    %c0_10 = arith.constant 0 : index
    %8 = vector.load %arg2[%c0_8, %c0_9, %c0_10] : memref<5x96x1024xbf16, #tpu.memory_space<vmem>>, vector<1x96x1024xbf16>
    %9 = vector.shape_cast %8 : vector<1x96x1024xbf16> to vector<96x1024xbf16>
    %cst_11 = arith.constant dense<0.000000e+00> : vector<32x1024xf32>
    %10 = tpu.matmul %7, %9, %cst_11 {dimension_numbers = #tpu.dot_dimension_numbers<[1], [0], [0], [1], [0, 0, 1, 1], [], []>} : vector<32x96xbf16>, vector<96x1024xbf16>, vector<32x1024xf32> -> vector<32x1024xf32>
    %11 = arith.addf %5, %10 : vector<32x1024xf32>
    %c1 = arith.constant 1 : index
    %c0_12 = arith.constant 0 : index
    %12 = vector.load %arg13[%c1, %c0_12] : memref<36x96xf32, #tpu.memory_space<vmem>>, vector<32x96xf32>
    %13 = arith.truncf %12 : vector<32x96xf32> to vector<32x96xbf16>
    %c1_13 = arith.constant 1 : index
    %c0_14 = arith.constant 0 : index
    %c0_15 = arith.constant 0 : index
    %14 = vector.load %arg2[%c1_13, %c0_14, %c0_15] : memref<5x96x1024xbf16, #tpu.memory_space<vmem>>, vector<1x96x1024xbf16>
    %15 = vector.shape_cast %14 : vector<1x96x1024xbf16> to vector<96x1024xbf16>
    %cst_16 = arith.constant dense<0.000000e+00> : vector<32x1024xf32>
    %16 = tpu.matmul %13, %15, %cst_16 {dimension_numbers = #tpu.dot_dimension_numbers<[1], [0], [0], [1], [0, 0, 1, 1], [], []>} : vector<32x96xbf16>, vector<96x1024xbf16>, vector<32x1024xf32> -> vector<32x1024xf32>
    %17 = arith.addf %11, %16 : vector<32x1024xf32>
    %c2_17 = arith.constant 2 : index
    %c0_18 = arith.constant 0 : index
    %18 = vector.load %arg13[%c2_17, %c0_18] : memref<36x96xf32, #tpu.memory_space<vmem>>, vector<32x96xf32>
    %19 = arith.truncf %18 : vector<32x96xf32> to vector<32x96xbf16>
    %c2_19 = arith.constant 2 : index
    %c0_20 = arith.constant 0 : index
    %c0_21 = arith.constant 0 : index
    %20 = vector.load %arg2[%c2_19, %c0_20, %c0_21] : memref<5x96x1024xbf16, #tpu.memory_space<vmem>>, vector<1x96x1024xbf16>
    %21 = vector.shape_cast %20 : vector<1x96x1024xbf16> to vector<96x1024xbf16>
    %cst_22 = arith.constant dense<0.000000e+00> : vector<32x1024xf32>
    %22 = tpu.matmul %19, %21, %cst_22 {dimension_numbers = #tpu.dot_dimension_numbers<[1], [0], [0], [1], [0, 0, 1, 1], [], []>} : vector<32x96xbf16>, vector<96x1024xbf16>, vector<32x1024xf32> -> vector<32x1024xf32>
    %23 = arith.addf %17, %22 : vector<32x1024xf32>
    %c3 = arith.constant 3 : index
    %c0_23 = arith.constant 0 : index
    %24 = vector.load %arg13[%c3, %c0_23] : memref<36x96xf32, #tpu.memory_space<vmem>>, vector<32x96xf32>
    %25 = arith.truncf %24 : vector<32x96xf32> to vector<32x96xbf16>
    %c3_24 = arith.constant 3 : index
    %c0_25 = arith.constant 0 : index
    %c0_26 = arith.constant 0 : index
    %26 = vector.load %arg2[%c3_24, %c0_25, %c0_26] : memref<5x96x1024xbf16, #tpu.memory_space<vmem>>, vector<1x96x1024xbf16>
    %27 = vector.shape_cast %26 : vector<1x96x1024xbf16> to vector<96x1024xbf16>
    %cst_27 = arith.constant dense<0.000000e+00> : vector<32x1024xf32>
    %28 = tpu.matmul %25, %27, %cst_27 {dimension_numbers = #tpu.dot_dimension_numbers<[1], [0], [0], [1], [0, 0, 1, 1], [], []>} : vector<32x96xbf16>, vector<96x1024xbf16>, vector<32x1024xf32> -> vector<32x1024xf32>
    %29 = arith.addf %23, %28 : vector<32x1024xf32>
    %c4 = arith.constant 4 : index
    %c0_28 = arith.constant 0 : index
    %30 = vector.load %arg13[%c4, %c0_28] : memref<36x96xf32, #tpu.memory_space<vmem>>, vector<32x96xf32>
    %31 = arith.truncf %30 : vector<32x96xf32> to vector<32x96xbf16>
    %c4_29 = arith.constant 4 : index
    %c0_30 = arith.constant 0 : index
    %c0_31 = arith.constant 0 : index
    %32 = vector.load %arg2[%c4_29, %c0_30, %c0_31] : memref<5x96x1024xbf16, #tpu.memory_space<vmem>>, vector<1x96x1024xbf16>
    %33 = vector.shape_cast %32 : vector<1x96x1024xbf16> to vector<96x1024xbf16>
    %cst_32 = arith.constant dense<0.000000e+00> : vector<32x1024xf32>
    %34 = tpu.matmul %31, %33, %cst_32 {dimension_numbers = #tpu.dot_dimension_numbers<[1], [0], [0], [1], [0, 0, 1, 1], [], []>} : vector<32x96xbf16>, vector<96x1024xbf16>, vector<32x1024xf32> -> vector<32x1024xf32>
    %35 = arith.addf %29, %34 : vector<32x1024xf32>
    %c0_33 = arith.constant 0 : index
    %c0_34 = arith.constant 0 : index
    %36 = vector.load %arg3[%c0_33, %c0_34] : memref<1x1024xf32, #tpu.memory_space<vmem>>, vector<1x1024xf32>
    %37 = vector.broadcast %36 : vector<1x1024xf32> to vector<32x1024xf32>
    %38 = arith.addf %35, %37 : vector<32x1024xf32>
    %cst_35 = arith.constant 0.000000e+00 : f32
    %39 = vector.broadcast %cst_35 : f32 to vector<32x1024xf32>
    %40 = arith.maximumf %38, %39 : vector<32x1024xf32>
    %41 = vector.extract_strided_slice %40 {offsets = [0, 0], sizes = [32, 512], strides = [1, 1]} : vector<32x1024xf32> to vector<32x512xf32>
    %42 = vector.extract_strided_slice %40 {offsets = [0, 512], sizes = [32, 512], strides = [1, 1]} : vector<32x1024xf32> to vector<32x512xf32>
    %43 = arith.maximumf %41, %42 : vector<32x512xf32>
    %44 = vector.shape_cast %43 : vector<32x512xf32> to vector<16x2x512xf32>
    %45 = vector.extract_strided_slice %44 {offsets = [0, 0, 0], sizes = [16, 1, 512], strides = [1, 1, 1]} : vector<16x2x512xf32> to vector<16x1x512xf32>
    %46 = vector.shape_cast %45 : vector<16x1x512xf32> to vector<16x512xf32>
    %47 = vector.extract_strided_slice %44 {offsets = [0, 1, 0], sizes = [16, 1, 512], strides = [1, 1, 1]} : vector<16x2x512xf32> to vector<16x1x512xf32>
    %48 = vector.shape_cast %47 : vector<16x1x512xf32> to vector<16x512xf32>
    %49 = arith.maximumf %46, %48 : vector<16x512xf32>
    %cst_36 = arith.constant 0.000000e+00 : f32
    %50 = vector.broadcast %cst_36 : f32 to vector<20x512xf32>
    %c0_37 = arith.constant 0 : index
    %c0_38 = arith.constant 0 : index
    %51 = vector.load %arg14[%c0_37, %c0_38] : memref<20x512xf32, #tpu.memory_space<vmem>>, vector<20x512xf32>
    tpu.vector_store %arg14[%c0_37, %c0_38], %50 {strides = array<i32>} : memref<20x512xf32, #tpu.memory_space<vmem>>, vector<20x512xf32>,
    %c2_39 = arith.constant 2 : index
    %c0_40 = arith.constant 0 : index
    %52 = vector.load %arg14[%c2_39, %c0_40] : memref<20x512xf32, #tpu.memory_space<vmem>>, vector<16x512xf32>
    tpu.vector_store %arg14[%c2_39, %c0_40], %49 {strides = array<i32>} : memref<20x512xf32, #tpu.memory_space<vmem>>, vector<16x512xf32>,
    %cst_41 = arith.constant 0.000000e+00 : f32
    %53 = vector.broadcast %cst_41 : f32 to vector<16x512xf32>
    %c0_42 = arith.constant 0 : index
    %c0_43 = arith.constant 0 : index
    %54 = vector.load %arg14[%c0_42, %c0_43] : memref<20x512xf32, #tpu.memory_space<vmem>>, vector<16x512xf32>
    %55 = arith.truncf %54 : vector<16x512xf32> to vector<16x512xbf16>
    %c0_44 = arith.constant 0 : index
    %c0_45 = arith.constant 0 : index
    %c0_46 = arith.constant 0 : index
    %56 = vector.load %arg4[%c0_44, %c0_45, %c0_46] : memref<5x512x512xbf16, #tpu.memory_space<vmem>>, vector<1x512x512xbf16>
    %57 = vector.shape_cast %56 : vector<1x512x512xbf16> to vector<512x512xbf16>
    %cst_47 = arith.constant dense<0.000000e+00> : vector<16x512xf32>
    %58 = tpu.matmul %55, %57, %cst_47 {dimension_numbers = #tpu.dot_dimension_numbers<[1], [0], [0], [1], [0, 0, 1, 1], [], []>} : vector<16x512xbf16>, vector<512x512xbf16>, vector<16x512xf32> -> vector<16x512xf32>
    %59 = arith.addf %53, %58 : vector<16x512xf32>
    %c1_48 = arith.constant 1 : index
    %c0_49 = arith.constant 0 : index
    %60 = vector.load %arg14[%c1_48, %c0_49] : memref<20x512xf32, #tpu.memory_space<vmem>>, vector<16x512xf32>
    %61 = arith.truncf %60 : vector<16x512xf32> to vector<16x512xbf16>
    %c1_50 = arith.constant 1 : index
    %c0_51 = arith.constant 0 : index
    %c0_52 = arith.constant 0 : index
    %62 = vector.load %arg4[%c1_50, %c0_51, %c0_52] : memref<5x512x512xbf16, #tpu.memory_space<vmem>>, vector<1x512x512xbf16>
    %63 = vector.shape_cast %62 : vector<1x512x512xbf16> to vector<512x512xbf16>
    %cst_53 = arith.constant dense<0.000000e+00> : vector<16x512xf32>
    %64 = tpu.matmul %61, %63, %cst_53 {dimension_numbers = #tpu.dot_dimension_numbers<[1], [0], [0], [1], [0, 0, 1, 1], [], []>} : vector<16x512xbf16>, vector<512x512xbf16>, vector<16x512xf32> -> vector<16x512xf32>
    %65 = arith.addf %59, %64 : vector<16x512xf32>
    %c2_54 = arith.constant 2 : index
    %c0_55 = arith.constant 0 : index
    %66 = vector.load %arg14[%c2_54, %c0_55] : memref<20x512xf32, #tpu.memory_space<vmem>>, vector<16x512xf32>
    %67 = arith.truncf %66 : vector<16x512xf32> to vector<16x512xbf16>
    %c2_56 = arith.constant 2 : index
    %c0_57 = arith.constant 0 : index
    %c0_58 = arith.constant 0 : index
    %68 = vector.load %arg4[%c2_56, %c0_57, %c0_58] : memref<5x512x512xbf16, #tpu.memory_space<vmem>>, vector<1x512x512xbf16>
    %69 = vector.shape_cast %68 : vector<1x512x512xbf16> to vector<512x512xbf16>
    %cst_59 = arith.constant dense<0.000000e+00> : vector<16x512xf32>
    %70 = tpu.matmul %67, %69, %cst_59 {dimension_numbers = #tpu.dot_dimension_numbers<[1], [0], [0], [1], [0, 0, 1, 1], [], []>} : vector<16x512xbf16>, vector<512x512xbf16>, vector<16x512xf32> -> vector<16x512xf32>
    %71 = arith.addf %65, %70 : vector<16x512xf32>
    %c3_60 = arith.constant 3 : index
    %c0_61 = arith.constant 0 : index
    %72 = vector.load %arg14[%c3_60, %c0_61] : memref<20x512xf32, #tpu.memory_space<vmem>>, vector<16x512xf32>
    %73 = arith.truncf %72 : vector<16x512xf32> to vector<16x512xbf16>
    %c3_62 = arith.constant 3 : index
    %c0_63 = arith.constant 0 : index
    %c0_64 = arith.constant 0 : index
    %74 = vector.load %arg4[%c3_62, %c0_63, %c0_64] : memref<5x512x512xbf16, #tpu.memory_space<vmem>>, vector<1x512x512xbf16>
    %75 = vector.shape_cast %74 : vector<1x512x512xbf16> to vector<512x512xbf16>
    %cst_65 = arith.constant dense<0.000000e+00> : vector<16x512xf32>
    %76 = tpu.matmul %73, %75, %cst_65 {dimension_numbers = #tpu.dot_dimension_numbers<[1], [0], [0], [1], [0, 0, 1, 1], [], []>} : vector<16x512xbf16>, vector<512x512xbf16>, vector<16x512xf32> -> vector<16x512xf32>
    %77 = arith.addf %71, %76 : vector<16x512xf32>
    %c4_66 = arith.constant 4 : index
    %c0_67 = arith.constant 0 : index
    %78 = vector.load %arg14[%c4_66, %c0_67] : memref<20x512xf32, #tpu.memory_space<vmem>>, vector<16x512xf32>
    %79 = arith.truncf %78 : vector<16x512xf32> to vector<16x512xbf16>
    %c4_68 = arith.constant 4 : index
    %c0_69 = arith.constant 0 : index
    %c0_70 = arith.constant 0 : index
    %80 = vector.load %arg4[%c4_68, %c0_69, %c0_70] : memref<5x512x512xbf16, #tpu.memory_space<vmem>>, vector<1x512x512xbf16>
    %81 = vector.shape_cast %80 : vector<1x512x512xbf16> to vector<512x512xbf16>
    %cst_71 = arith.constant dense<0.000000e+00> : vector<16x512xf32>
    %82 = tpu.matmul %79, %81, %cst_71 {dimension_numbers = #tpu.dot_dimension_numbers<[1], [0], [0], [1], [0, 0, 1, 1], [], []>} : vector<16x512xbf16>, vector<512x512xbf16>, vector<16x512xf32> -> vector<16x512xf32>
    %83 = arith.addf %77, %82 : vector<16x512xf32>
    %c0_72 = arith.constant 0 : index
    %c0_73 = arith.constant 0 : index
    %84 = vector.load %arg5[%c0_72, %c0_73] : memref<1x512xf32, #tpu.memory_space<vmem>>, vector<1x512xf32>
    %85 = vector.broadcast %84 : vector<1x512xf32> to vector<16x512xf32>
    %86 = arith.addf %83, %85 : vector<16x512xf32>
    %cst_74 = arith.constant 0.000000e+00 : f32
    %87 = vector.broadcast %cst_74 : f32 to vector<16x512xf32>
    %88 = arith.maximumf %86, %87 : vector<16x512xf32>
    %89 = vector.extract_strided_slice %88 {offsets = [0, 0], sizes = [16, 256], strides = [1, 1]} : vector<16x512xf32> to vector<16x256xf32>
    %90 = vector.extract_strided_slice %88 {offsets = [0, 256], sizes = [16, 256], strides = [1, 1]} : vector<16x512xf32> to vector<16x256xf32>
    %91 = arith.maximumf %89, %90 : vector<16x256xf32>
    %92 = vector.shape_cast %91 : vector<16x256xf32> to vector<8x2x256xf32>
    %93 = vector.extract_strided_slice %92 {offsets = [0, 0, 0], sizes = [8, 1, 256], strides = [1, 1, 1]} : vector<8x2x256xf32> to vector<8x1x256xf32>
    %94 = vector.shape_cast %93 : vector<8x1x256xf32> to vector<8x256xf32>
    %95 = vector.extract_strided_slice %92 {offsets = [0, 1, 0], sizes = [8, 1, 256], strides = [1, 1, 1]} : vector<8x2x256xf32> to vector<8x1x256xf32>
    %96 = vector.shape_cast %95 : vector<8x1x256xf32> to vector<8x256xf32>
    %97 = arith.maximumf %94, %96 : vector<8x256xf32>
    %cst_75 = arith.constant 0.000000e+00 : f32
    %98 = vector.broadcast %cst_75 : f32 to vector<12x256xf32>
    %c0_76 = arith.constant 0 : index
    %c0_77 = arith.constant 0 : index
    %99 = vector.load %arg15[%c0_76, %c0_77] : memref<12x256xf32, #tpu.memory_space<vmem>>, vector<12x256xf32>
    tpu.vector_store %arg15[%c0_76, %c0_77], %98 {strides = array<i32>} : memref<12x256xf32, #tpu.memory_space<vmem>>, vector<12x256xf32>,
    %c2_78 = arith.constant 2 : index
    %c0_79 = arith.constant 0 : index
    %100 = vector.load %arg15[%c2_78, %c0_79] : memref<12x256xf32, #tpu.memory_space<vmem>>, vector<8x256xf32>
    tpu.vector_store %arg15[%c2_78, %c0_79], %97 {strides = array<i32>} : memref<12x256xf32, #tpu.memory_space<vmem>>, vector<8x256xf32>,
    %cst_80 = arith.constant 0.000000e+00 : f32
    %101 = vector.broadcast %cst_80 : f32 to vector<8x512xf32>
    %c0_81 = arith.constant 0 : index
    %c0_82 = arith.constant 0 : index
    %102 = vector.load %arg15[%c0_81, %c0_82] : memref<12x256xf32, #tpu.memory_space<vmem>>, vector<8x256xf32>
    %103 = arith.truncf %102 : vector<8x256xf32> to vector<8x256xbf16>
    %c0_83 = arith.constant 0 : index
    %c0_84 = arith.constant 0 : index
    %c0_85 = arith.constant 0 : index
    %104 = vector.load %arg6[%c0_83, %c0_84, %c0_85] : memref<5x256x512xbf16, #tpu.memory_space<vmem>>, vector<1x256x512xbf16>
    %105 = vector.shape_cast %104 : vector<1x256x512xbf16> to vector<256x512xbf16>
    %cst_86 = arith.constant dense<0.000000e+00> : vector<8x512xf32>
    %106 = tpu.matmul %103, %105, %cst_86 {dimension_numbers = #tpu.dot_dimension_numbers<[1], [0], [0], [1], [0, 0, 1, 1], [], []>} : vector<8x256xbf16>, vector<256x512xbf16>, vector<8x512xf32> -> vector<8x512xf32>
    %107 = arith.addf %101, %106 : vector<8x512xf32>
    %c1_87 = arith.constant 1 : index
    %c0_88 = arith.constant 0 : index
    %108 = vector.load %arg15[%c1_87, %c0_88] : memref<12x256xf32, #tpu.memory_space<vmem>>, vector<8x256xf32>
    %109 = arith.truncf %108 : vector<8x256xf32> to vector<8x256xbf16>
    %c1_89 = arith.constant 1 : index
    %c0_90 = arith.constant 0 : index
    %c0_91 = arith.constant 0 : index
    %110 = vector.load %arg6[%c1_89, %c0_90, %c0_91] : memref<5x256x512xbf16, #tpu.memory_space<vmem>>, vector<1x256x512xbf16>
    %111 = vector.shape_cast %110 : vector<1x256x512xbf16> to vector<256x512xbf16>
    %cst_92 = arith.constant dense<0.000000e+00> : vector<8x512xf32>
    %112 = tpu.matmul %109, %111, %cst_92 {dimension_numbers = #tpu.dot_dimension_numbers<[1], [0], [0], [1], [0, 0, 1, 1], [], []>} : vector<8x256xbf16>, vector<256x512xbf16>, vector<8x512xf32> -> vector<8x512xf32>
    %113 = arith.addf %107, %112 : vector<8x512xf32>
    %c2_93 = arith.constant 2 : index
    %c0_94 = arith.constant 0 : index
    %114 = vector.load %arg15[%c2_93, %c0_94] : memref<12x256xf32, #tpu.memory_space<vmem>>, vector<8x256xf32>
    %115 = arith.truncf %114 : vector<8x256xf32> to vector<8x256xbf16>
    %c2_95 = arith.constant 2 : index
    %c0_96 = arith.constant 0 : index
    %c0_97 = arith.constant 0 : index
    %116 = vector.load %arg6[%c2_95, %c0_96, %c0_97] : memref<5x256x512xbf16, #tpu.memory_space<vmem>>, vector<1x256x512xbf16>
    %117 = vector.shape_cast %116 : vector<1x256x512xbf16> to vector<256x512xbf16>
    %cst_98 = arith.constant dense<0.000000e+00> : vector<8x512xf32>
    %118 = tpu.matmul %115, %117, %cst_98 {dimension_numbers = #tpu.dot_dimension_numbers<[1], [0], [0], [1], [0, 0, 1, 1], [], []>} : vector<8x256xbf16>, vector<256x512xbf16>, vector<8x512xf32> -> vector<8x512xf32>
    %119 = arith.addf %113, %118 : vector<8x512xf32>
    %c3_99 = arith.constant 3 : index
    %c0_100 = arith.constant 0 : index
    %120 = vector.load %arg15[%c3_99, %c0_100] : memref<12x256xf32, #tpu.memory_space<vmem>>, vector<8x256xf32>
    %121 = arith.truncf %120 : vector<8x256xf32> to vector<8x256xbf16>
    %c3_101 = arith.constant 3 : index
    %c0_102 = arith.constant 0 : index
    %c0_103 = arith.constant 0 : index
    %122 = vector.load %arg6[%c3_101, %c0_102, %c0_103] : memref<5x256x512xbf16, #tpu.memory_space<vmem>>, vector<1x256x512xbf16>
    %123 = vector.shape_cast %122 : vector<1x256x512xbf16> to vector<256x512xbf16>
    %cst_104 = arith.constant dense<0.000000e+00> : vector<8x512xf32>
    %124 = tpu.matmul %121, %123, %cst_104 {dimension_numbers = #tpu.dot_dimension_numbers<[1], [0], [0], [1], [0, 0, 1, 1], [], []>} : vector<8x256xbf16>, vector<256x512xbf16>, vector<8x512xf32> -> vector<8x512xf32>
    %125 = arith.addf %119, %124 : vector<8x512xf32>
    %c4_105 = arith.constant 4 : index
    %c0_106 = arith.constant 0 : index
    %126 = vector.load %arg15[%c4_105, %c0_106] : memref<12x256xf32, #tpu.memory_space<vmem>>, vector<8x256xf32>
    %127 = arith.truncf %126 : vector<8x256xf32> to vector<8x256xbf16>
    %c4_107 = arith.constant 4 : index
    %c0_108 = arith.constant 0 : index
    %c0_109 = arith.constant 0 : index
    %128 = vector.load %arg6[%c4_107, %c0_108, %c0_109] : memref<5x256x512xbf16, #tpu.memory_space<vmem>>, vector<1x256x512xbf16>
    %129 = vector.shape_cast %128 : vector<1x256x512xbf16> to vector<256x512xbf16>
    %cst_110 = arith.constant dense<0.000000e+00> : vector<8x512xf32>
    %130 = tpu.matmul %127, %129, %cst_110 {dimension_numbers = #tpu.dot_dimension_numbers<[1], [0], [0], [1], [0, 0, 1, 1], [], []>} : vector<8x256xbf16>, vector<256x512xbf16>, vector<8x512xf32> -> vector<8x512xf32>
    %131 = arith.addf %125, %130 : vector<8x512xf32>
    %c0_111 = arith.constant 0 : index
    %c0_112 = arith.constant 0 : index
    %132 = vector.load %arg7[%c0_111, %c0_112] : memref<1x512xf32, #tpu.memory_space<vmem>>, vector<1x512xf32>
    %133 = vector.broadcast %132 : vector<1x512xf32> to vector<8x512xf32>
    %134 = arith.addf %131, %133 : vector<8x512xf32>
    %cst_113 = arith.constant 0.000000e+00 : f32
    %135 = vector.broadcast %cst_113 : f32 to vector<8x512xf32>
    %136 = arith.maximumf %134, %135 : vector<8x512xf32>
    %137 = vector.extract_strided_slice %136 {offsets = [0, 0], sizes = [8, 256], strides = [1, 1]} : vector<8x512xf32> to vector<8x256xf32>
    %138 = vector.extract_strided_slice %136 {offsets = [0, 256], sizes = [8, 256], strides = [1, 1]} : vector<8x512xf32> to vector<8x256xf32>
    %139 = arith.maximumf %137, %138 : vector<8x256xf32>
    %140 = vector.shape_cast %139 : vector<8x256xf32> to vector<4x2x256xf32>
    %141 = vector.extract_strided_slice %140 {offsets = [0, 0, 0], sizes = [4, 1, 256], strides = [1, 1, 1]} : vector<4x2x256xf32> to vector<4x1x256xf32>
    %142 = vector.shape_cast %141 : vector<4x1x256xf32> to vector<4x256xf32>
    %143 = vector.extract_strided_slice %140 {offsets = [0, 1, 0], sizes = [4, 1, 256], strides = [1, 1, 1]} : vector<4x2x256xf32> to vector<4x1x256xf32>
    %144 = vector.shape_cast %143 : vector<4x1x256xf32> to vector<4x256xf32>
    %145 = arith.maximumf %142, %144 : vector<4x256xf32>
    %146 = arith.truncf %145 : vector<4x256xf32> to vector<4x256xbf16>
    %cst_114 = arith.constant 0.000000e+00 : f32
    %147 = vector.broadcast %cst_114 : f32 to vector<1x64xf32>
    %148 = vector.extract_strided_slice %146 {offsets = [0, 0], sizes = [1, 256], strides = [1, 1]} : vector<4x256xbf16> to vector<1x256xbf16>
    %c0_115 = arith.constant 0 : index
    %c0_116 = arith.constant 0 : index
    %c0_117 = arith.constant 0 : index
    %149 = vector.load %arg8[%c0_115, %c0_116, %c0_117] : memref<4x256x64xbf16, #tpu.memory_space<vmem>>, vector<1x256x64xbf16>
    %150 = vector.shape_cast %149 : vector<1x256x64xbf16> to vector<256x64xbf16>
    %cst_118 = arith.constant dense<0.000000e+00> : vector<1x64xf32>
    %151 = tpu.matmul %148, %150, %cst_118 {dimension_numbers = #tpu.dot_dimension_numbers<[1], [0], [0], [1], [0, 0, 1, 1], [], []>} : vector<1x256xbf16>, vector<256x64xbf16>, vector<1x64xf32> -> vector<1x64xf32>
    %152 = arith.addf %147, %151 : vector<1x64xf32>
    %153 = vector.extract_strided_slice %146 {offsets = [1, 0], sizes = [1, 256], strides = [1, 1]} : vector<4x256xbf16> to vector<1x256xbf16>
    %c1_119 = arith.constant 1 : index
    %c0_120 = arith.constant 0 : index
    %c0_121 = arith.constant 0 : index
    %154 = vector.load %arg8[%c1_119, %c0_120, %c0_121] : memref<4x256x64xbf16, #tpu.memory_space<vmem>>, vector<1x256x64xbf16>
    %155 = vector.shape_cast %154 : vector<1x256x64xbf16> to vector<256x64xbf16>
    %cst_122 = arith.constant dense<0.000000e+00> : vector<1x64xf32>
    %156 = tpu.matmul %153, %155, %cst_122 {dimension_numbers = #tpu.dot_dimension_numbers<[1], [0], [0], [1], [0, 0, 1, 1], [], []>} : vector<1x256xbf16>, vector<256x64xbf16>, vector<1x64xf32> -> vector<1x64xf32>
    %157 = arith.addf %152, %156 : vector<1x64xf32>
    %158 = vector.extract_strided_slice %146 {offsets = [2, 0], sizes = [1, 256], strides = [1, 1]} : vector<4x256xbf16> to vector<1x256xbf16>
    %c2_123 = arith.constant 2 : index
    %c0_124 = arith.constant 0 : index
    %c0_125 = arith.constant 0 : index
    %159 = vector.load %arg8[%c2_123, %c0_124, %c0_125] : memref<4x256x64xbf16, #tpu.memory_space<vmem>>, vector<1x256x64xbf16>
    %160 = vector.shape_cast %159 : vector<1x256x64xbf16> to vector<256x64xbf16>
    %cst_126 = arith.constant dense<0.000000e+00> : vector<1x64xf32>
    %161 = tpu.matmul %158, %160, %cst_126 {dimension_numbers = #tpu.dot_dimension_numbers<[1], [0], [0], [1], [0, 0, 1, 1], [], []>} : vector<1x256xbf16>, vector<256x64xbf16>, vector<1x64xf32> -> vector<1x64xf32>
    %162 = arith.addf %157, %161 : vector<1x64xf32>
    %163 = vector.extract_strided_slice %146 {offsets = [3, 0], sizes = [1, 256], strides = [1, 1]} : vector<4x256xbf16> to vector<1x256xbf16>
    %c3_127 = arith.constant 3 : index
    %c0_128 = arith.constant 0 : index
    %c0_129 = arith.constant 0 : index
    %164 = vector.load %arg8[%c3_127, %c0_128, %c0_129] : memref<4x256x64xbf16, #tpu.memory_space<vmem>>, vector<1x256x64xbf16>
    %165 = vector.shape_cast %164 : vector<1x256x64xbf16> to vector<256x64xbf16>
    %cst_130 = arith.constant dense<0.000000e+00> : vector<1x64xf32>
    %166 = tpu.matmul %163, %165, %cst_130 {dimension_numbers = #tpu.dot_dimension_numbers<[1], [0], [0], [1], [0, 0, 1, 1], [], []>} : vector<1x256xbf16>, vector<256x64xbf16>, vector<1x64xf32> -> vector<1x64xf32>
    %167 = arith.addf %162, %166 : vector<1x64xf32>
    %c0_131 = arith.constant 0 : index
    %c0_132 = arith.constant 0 : index
    %168 = vector.load %arg9[%c0_131, %c0_132] : memref<1x64xf32, #tpu.memory_space<vmem>>, vector<1x64xf32>
    %169 = arith.addf %167, %168 : vector<1x64xf32>
    %cst_133 = arith.constant 0.000000e+00 : f32
    %170 = vector.broadcast %cst_133 : f32 to vector<1x64xf32>
    %171 = arith.maximumf %169, %170 : vector<1x64xf32>
    %172 = arith.truncf %171 : vector<1x64xf32> to vector<1x64xbf16>
    %c0_134 = arith.constant 0 : index
    %c0_135 = arith.constant 0 : index
    %173 = vector.load %arg10[%c0_134, %c0_135] : memref<64x10xbf16, #tpu.memory_space<vmem>>, vector<64x10xbf16>
    %cst_136 = arith.constant dense<0.000000e+00> : vector<1x10xf32>
    %174 = tpu.matmul %172, %173, %cst_136 {dimension_numbers = #tpu.dot_dimension_numbers<[1], [0], [0], [1], [0, 0, 1, 1], [], []>} : vector<1x64xbf16>, vector<64x10xbf16>, vector<1x10xf32> -> vector<1x10xf32>
    %c0_137 = arith.constant 0 : index
    %c0_138 = arith.constant 0 : index
    %175 = vector.load %arg11[%c0_137, %c0_138] : memref<1x10xf32, #tpu.memory_space<vmem>>, vector<1x10xf32>
    %176 = arith.addf %174, %175 : vector<1x10xf32>
    %c0_139 = arith.constant 0 : index
    %c0_140 = arith.constant 0 : index
    %c0_141 = arith.constant 0 : index
    %177 = vector.load %arg12[%c0_139, %c0_140, %c0_141] : memref<1x1x10xf32, #tpu.memory_space<vmem>>, vector<1x1x10xf32>
    %178 = vector.shape_cast %177 : vector<1x1x10xf32> to vector<1x10xf32>
    %179 = vector.shape_cast %176 : vector<1x10xf32> to vector<1x1x10xf32>
    tpu.vector_store %arg12[%c0_139, %c0_140, %c0_141], %179 {strides = array<i32>} : memref<1x1x10xf32, #tpu.memory_space<vmem>>, vector<1x1x10xf32>,
    return
  }
  func.func @transform_0(%arg0: i32) -> (i32, i32, i32) {
    %c0_i32 = arith.constant 0 : i32
    %c0_i32_0 = arith.constant 0 : i32
    %c0_i32_1 = arith.constant 0 : i32
    return %arg0, %c0_i32, %c0_i32_0 : i32, i32, i32
  }
  func.func @transform_1(%arg0: i32) -> (i32, i32, i32) {
    %c0_i32 = arith.constant 0 : i32
    %c0_i32_0 = arith.constant 0 : i32
    %c0_i32_1 = arith.constant 0 : i32
    %c0_i32_2 = arith.constant 0 : i32
    return %c0_i32, %c0_i32_0, %c0_i32_1 : i32, i32, i32
  }
  func.func @transform_2(%arg0: i32) -> (i32, i32) {
    %c0_i32 = arith.constant 0 : i32
    %c0_i32_0 = arith.constant 0 : i32
    %c0_i32_1 = arith.constant 0 : i32
    return %c0_i32, %c0_i32_0 : i32, i32
  }
  func.func @transform_3(%arg0: i32) -> (i32, i32, i32) {
    %c0_i32 = arith.constant 0 : i32
    %c0_i32_0 = arith.constant 0 : i32
    %c0_i32_1 = arith.constant 0 : i32
    %c0_i32_2 = arith.constant 0 : i32
    return %c0_i32, %c0_i32_0, %c0_i32_1 : i32, i32, i32
  }
  func.func @transform_4(%arg0: i32) -> (i32, i32) {
    %c0_i32 = arith.constant 0 : i32
    %c0_i32_0 = arith.constant 0 : i32
    %c0_i32_1 = arith.constant 0 : i32
    return %c0_i32, %c0_i32_0 : i32, i32
  }
  func.func @transform_5(%arg0: i32) -> (i32, i32, i32) {
    %c0_i32 = arith.constant 0 : i32
    %c0_i32_0 = arith.constant 0 : i32
    %c0_i32_1 = arith.constant 0 : i32
    %c0_i32_2 = arith.constant 0 : i32
    return %c0_i32, %c0_i32_0, %c0_i32_1 : i32, i32, i32
  }
  func.func @transform_6(%arg0: i32) -> (i32, i32) {
    %c0_i32 = arith.constant 0 : i32
    %c0_i32_0 = arith.constant 0 : i32
    %c0_i32_1 = arith.constant 0 : i32
    return %c0_i32, %c0_i32_0 : i32, i32
  }
  func.func @transform_7(%arg0: i32) -> (i32, i32, i32) {
    %c0_i32 = arith.constant 0 : i32
    %c0_i32_0 = arith.constant 0 : i32
    %c0_i32_1 = arith.constant 0 : i32
    %c0_i32_2 = arith.constant 0 : i32
    return %c0_i32, %c0_i32_0, %c0_i32_1 : i32, i32, i32
  }
  func.func @transform_8(%arg0: i32) -> (i32, i32) {
    %c0_i32 = arith.constant 0 : i32
    %c0_i32_0 = arith.constant 0 : i32
    %c0_i32_1 = arith.constant 0 : i32
    return %c0_i32, %c0_i32_0 : i32, i32
  }
  func.func @transform_9(%arg0: i32) -> (i32, i32) {
    %c0_i32 = arith.constant 0 : i32
    %c0_i32_0 = arith.constant 0 : i32
    %c0_i32_1 = arith.constant 0 : i32
    return %c0_i32, %c0_i32_0 : i32, i32
  }
  func.func @transform_10(%arg0: i32) -> (i32, i32) {
    %c0_i32 = arith.constant 0 : i32
    %c0_i32_0 = arith.constant 0 : i32
    %c0_i32_1 = arith.constant 0 : i32
    return %c0_i32, %c0_i32_0 : i32, i32
  }
  func.func @transform_11(%arg0: i32) -> (i32, i32, i32) {
    %c0_i32 = arith.constant 0 : i32
    %c0_i32_0 = arith.constant 0 : i32
    %c0_i32_1 = arith.constant 0 : i32
    return %arg0, %c0_i32, %c0_i32_0 : i32, i32, i32
  }
}

</mosaic_0001>

<bundles_post_ra>
// kernel: my_module_forward.1
= control target key start
LH: loop header
LB: loop body
LE: loop exit
PB: predicated region body
PF: predicated region fallthrough
CT: control target
= control target key end

     0   :  { %s17429_s0 = inlined_call_operand.vmem [shape: f32[2,32,96], index: 0, kind: input, shape index: {}]   ;;  %s17430_s1 = inlined_call_operand.hbm [shape: bf16[5,96,1024], index: 1, kind: input, shape index: {}]   ;;  %s17431_s2 = inlined_call_operand.hbm [shape: f32[1,1024], index: 2, kind: input, shape index: {}]   ;;  %s17432_s3 = inlined_call_operand.hbm [shape: bf16[5,512,512], index: 3, kind: input, shape index: {}]   ;;  %s17433_s4 = inlined_call_operand.hbm [shape: f32[1,512], index: 4, kind: input, shape index: {}]   ;;  %s17434_s5 = inlined_call_operand.hbm [shape: bf16[5,256,512], index: 5, kind: input, shape index: {}]   ;;  %s17435_s6 = inlined_call_operand.hbm [shape: f32[1,512], index: 6, kind: input, shape index: {}]   ;;  %s17436_s7 = inlined_call_operand.vmem [shape: bf16[4,256,64], index: 7, kind: input, shape index: {}]   ;;  %s17437_s8 = inlined_call_operand.hbm [shape: f32[1,64], index: 8, kind: input, shape index: {}]   ;;  %s17438_s9 = inlined_call_operand.vmem [shape: bf16[64,10], index: 9, kind: input, shape index: {}]   ;;  %s17439_s10 = inlined_call_operand.hbm [shape: f32[1,10], index: 10, kind: input, shape index: {}]   ;;  %s17440_s11 = inlined_call_operand.hbm [shape: f32[2,1,10], index: 11, kind: output, shape index: {}]  }
   0x1   :  { %17451 = sst [smem:[#allocation31_spill]] %s17430_s1 }
   0x2   :  { %17452 = sst [smem:[#allocation32_spill]] %s17431_s2 }
   0x3   :  { %17453 = sst [smem:[#allocation33_spill]] %s17433_s4 }
   0x4   :  { %17454 = sst [smem:[#allocation34_spill]] %s17435_s6 }
   0x5   :  { %16 = vsyncpa [#allocation6], 0 }
   0x6   :  { %17 = vsyncpa [#allocation9], 0 }
   0x7   :  { %18 = vsyncpa [#allocation12], 0 }
   0x8   :  { %19 = vsyncpa [#allocation15], 0 }
   0x9   :  { %20 = vsyncpa [#allocation18], 0 }
   0xa   :  { %21 = vsyncpa [#allocation7], 0 }
   0xb   :  { %23 = vsyncpa [#allocation7 + $0x1], 0  ;;  %s16335_s17 = smov 0   ;;  %s16337_s18 = smov 0  }
   0xc   :  { %s16339_s19 = smov 0   ;;  %s16341_s20 = smov 0  }
   0xd LB: > { %17455 = sst [smem:[#allocation26_spill]] %s16244_s17  ;;  %s16356_s21 = sadd.s32 4294967295, %s16256_s20   ;;  %s16256_s20 = sphi %s16341_s20, %s17486_s20   ;;  %s16252_s19 = sphi %s16339_s19, %s17488_s19   ;;  %s16248_s18 = sphi %s16337_s18, %s17490_s18   ;;  %s16244_s17 = sphi %s16335_s17, %s17489_s17  }
   0xe   : > { %17456 = sst [smem:[#allocation27_spill]] %s16252_s19  ;;  %s12545_s22 = sadd.s32 4294967294, %s16256_s20  }
   0xf   : > { %s16360_s23 = sadd.s32 1, %s16256_s20   ;;  %s272_s24 = sadd.s32 1, %s16252_s19 }
  0x10   : > { %17457 = sst [smem:[#allocation28_spill]] %s16360_s23  ;;  %s269_s25 = ssub.s32 %s16256_s20, %s16360_s23 }
  0x11   : > { %p282_p0 = scmp.ne.s32.totalorder %s16252_s19, %s16248_s18  ;;  %p270_p1 = scmp.eq.s32.totalorder %s269_s25, 0 }
  0x12   : > { %p283_p2 = scmp.eq.s32.totalorder %s16356_s21, 1  ;;  %p288_p3 = scmp.ne.s32.totalorder %s16248_s18, %s16244_s17 }
  0x13   : > { %p289_p4 = scmp.eq.s32.totalorder %s12545_s22, 1  ;;  %p12546_p7 = scmp.ge.s32.totalorder %s16256_s20, 1 }
  0x14   : > { %s16371_s26 = scalar_select %p270_p1, %s16252_s19, %s272_s24  }
  0x15   : > { %p16373_p5 = por %p283_p2, %p282_p0  ;;  %p16377_p6 = por %p289_p4, %p288_p3 }
  0x16   : > { %17458 = sst [smem:[#allocation29_spill]] %s16371_s26  ;;  %p296_p8 = scmp.lt.s32.totalorder %s16256_s20, 3 }
  0x17   : > { %s17459_s27 = scalar_select %p16373_p5, 1, 0 }
  0x18   : > { %s17460_s28 = scalar_select %p16377_p6, 1, 0 }
  0x19   : > { %p17444_p9 = scmp.eq.s32.totalorder %s16356_s21, 0  ;;  %p16384_p10 = pnand %p12546_p7, %p296_p8 }
  0x1a   : > { %17461 = sst [smem:[#allocation30_spill]] %s17460_s28  ;;  %s16258_s30 = smov [#allocation8]  }
  0x1b   : > { %s17462_s29 = scalar_select %p16384_p10, 1, 0 }
  0x1c   : > { %s322_s12 = sshll.u32 %s16258_s30, 4  ;;  %p14343_p11 = pneg %p16384_p10  ;;  %s323_s12 = int_to_ptr.vmem [resolvable:$true] %s322_s12 }
  0x1d   : > { %s16259_s13 = smov [#allocation11]   ;;  %s16260_s16 = smov [#allocation14]  }
  0x1e   : > { %s346_s14 = sshll.u32 %s16259_s13, 4  ;;  %p16392_p12 = pnand %p17444_p9, %p14343_p11  ;;  %s16396_s14 = int_to_ptr.vmem [resolvable:$true] %s346_s14 }
  0x1f   : > { %s370_s22 = sshll.u32 %s16260_s16, 4  ;;  %s17464_s2 = sld [smem:[#allocation32_spill]]  ;;  %s16398_s22 = int_to_ptr.vmem [resolvable:$true] %s370_s22 }
  0x20   : > { %p16408_p0 = pneg %p16392_p12 }
  0x25   : > { %s15950_s30 = scalar_lea.hbm %s17464_s2, 128 }
  0x26   : > { %p15951_p13 = scmp.ne.s32.totalorder %s17464_s2, %s15950_s30  ;;  %p15957_p3 = scmp.lt.u32.totalorder %s15950_s30, %s17464_s2 }
  0x28   : > { %p15953_p1 = pnand %p16408_p0, %p15951_p13 }
  0x2a   : > { %p15954_p2 = pneg %p15953_p1 }
  0x2c   : > { %p15959_p4 = pnand %p15957_p3, %p15954_p2 }
  0x2e   : > { %15962 = shalt.err (!%p15959_p4)
}
  0x2f   : > { %s15963_s24 = scalar_lea.vmem %s323_s12, 128  ;;  %p15971_p9 = scmp.lt.s32.totalorder %s323_s12, %s323_s12 }
  0x30   : > { %p15964_p7 = scmp.ne.s32.totalorder %s323_s12, %s15963_s24  ;;  %p15972_p6 = scmp.lt.s32.totalorder %s15963_s24, %s15963_s24 }
  0x32   : > { %p15966_p8 = pnand %p15964_p7, %p16408_p0  ;;  %p15973_p5 = por %p15972_p6, %p15971_p9 }
  0x34   : > { %p15967_p11 = pneg %p15966_p8 }
  0x36   : > { %p15974_p10 = pnand %p15973_p5, %p15967_p11 }
  0x38   : > { %15977 = shalt.err (!%p15974_p10)
}
  0x39   : > { %14349 = dma.hbm_to_vmem [thread:$0]  (!%p16392_p12), %s17464_s2, 128, %s323_s12, [#allocation9]  }
  0x3a   : > { %s17466_s4 = sld [smem:[#allocation33_spill]] }
  0x40   : > { %s15978_s30 = scalar_lea.hbm %s17466_s4, 64 }
  0x41   : > { %p15979_p13 = scmp.ne.s32.totalorder %s17466_s4, %s15978_s30  ;;  %p15985_p5 = scmp.lt.u32.totalorder %s15978_s30, %s17466_s4 }
  0x43   : > { %p15981_p1 = pnand %p15979_p13, %p16408_p0 }
  0x45   : > { %p15982_p6 = pneg %p15981_p1 }
  0x47   : > { %p15987_p9 = pnand %p15985_p5, %p15982_p6 }
  0x49   : > { %15990 = shalt.err (!%p15987_p9)
}
  0x4a   : > { %s15991_s12 = scalar_lea.vmem %s16396_s14, 64  ;;  %p15999_p4 = scmp.lt.s32.totalorder %s16396_s14, %s16396_s14 }
  0x4b   : > { %p15992_p10 = scmp.ne.s32.totalorder %s16396_s14, %s15991_s12  ;;  %p16000_p7 = scmp.lt.s32.totalorder %s15991_s12, %s15991_s12 }
  0x4d   : > { %p15994_p2 = pnand %p15992_p10, %p16408_p0  ;;  %p16001_p8 = por %p16000_p7, %p15999_p4 }
  0x4f   : > { %p15995_p3 = pneg %p15994_p2 }
  0x51   : > { %p16002_p11 = pnand %p16001_p8, %p15995_p3 }
  0x53   : > { %16005 = shalt.err (!%p16002_p11)
}
  0x54   : > { %14355 = dma.hbm_to_vmem [thread:$0]  (!%p16392_p12), %s17466_s4, 64, %s16396_s14, [#allocation12]  }
  0x55   : > { %s17467_s6 = sld [smem:[#allocation34_spill]] }
  0x5b   : > { %s16006_s23 = scalar_lea.hbm %s17467_s6, 64 }
  0x5c   : > { %p16007_p13 = scmp.ne.s32.totalorder %s17467_s6, %s16006_s23  ;;  %p16013_p5 = scmp.lt.u32.totalorder %s16006_s23, %s17467_s6 }
  0x5e   : > { %p16009_p1 = pnand %p16007_p13, %p16408_p0 }
  0x60   : > { %p16010_p6 = pneg %p16009_p1 }
  0x62   : > { %p16015_p9 = pnand %p16013_p5, %p16010_p6 }
  0x64   : > { %16018 = shalt.err (!%p16015_p9)
}
  0x65   : > { %s16019_s14 = scalar_lea.vmem %s16398_s22, 64  ;;  %p16027_p4 = scmp.lt.s32.totalorder %s16398_s22, %s16398_s22 }
  0x66   : > { %p16020_p10 = scmp.ne.s32.totalorder %s16398_s22, %s16019_s14  ;;  %p16028_p7 = scmp.lt.s32.totalorder %s16019_s14, %s16019_s14 }
  0x68   : > { %p16022_p2 = pnand %p16020_p10, %p16408_p0  ;;  %p16029_p8 = por %p16028_p7, %p16027_p4 }
  0x6a   : > { %p16023_p3 = pneg %p16022_p2 }
  0x6c   : > { %p16030_p11 = pnand %p16029_p8, %p16023_p3 }
  0x6e   : > { %16033 = shalt.err (!%p16030_p11)
}
  0x6f   : > { %14361 = dma.hbm_to_vmem [thread:$0]  (!%p16392_p12), %s17467_s6, 64, %s16398_s22, [#allocation15]  }
  0x70   : > { %s16261_s28 = smov [#allocation5]   ;;  %s17468_s1 = sld [smem:[#allocation31_spill]] }
  0x71   : > { %s308_s19 = sshll.u32 %s16261_s28, 4  ;;  %s309_s19 = int_to_ptr.vmem [resolvable:$true] %s308_s19 }
  0x76   : > { %s16034_s25 = scalar_lea.hbm %s17468_s1, 30720 }
  0x77   : > { %p16035_p13 = scmp.ne.s32.totalorder %s17468_s1, %s16034_s25  ;;  %p16041_p5 = scmp.lt.u32.totalorder %s16034_s25, %s17468_s1 }
  0x79   : > { %p16037_p1 = pnand %p16035_p13, %p16408_p0 }
  0x7b   : > { %p16038_p6 = pneg %p16037_p1 }
  0x7d   : > { %p16043_p9 = pnand %p16041_p5, %p16038_p6 }
  0x7f   : > { %16046 = shalt.err (!%p16043_p9)
}
  0x80   : > { %s16047_s22 = scalar_lea.vmem %s309_s19, 30720  ;;  %p16055_p4 = scmp.lt.s32.totalorder %s309_s19, %s309_s19 }
  0x81   : > { %p16048_p10 = scmp.ne.s32.totalorder %s309_s19, %s16047_s22  ;;  %p16056_p7 = scmp.lt.s32.totalorder %s16047_s22, %s16047_s22 }
  0x83   : > { %p16050_p2 = pnand %p16048_p10, %p16408_p0  ;;  %p16057_p8 = por %p16056_p7, %p16055_p4 }
  0x85   : > { %p16051_p3 = pneg %p16050_p2 }
  0x87   : > { %p16058_p11 = pnand %p16057_p8, %p16051_p3 }
  0x89   : > { %16061 = shalt.err (!%p16058_p11)
}
  0x8a   : > { %s16262_s12 = smov 512   ;;  %s16263_s17 = smov 32  }
  0x8b   : > { %14346 = dma.hbm_to_vmem [thread:$0]  (!%p16392_p12), %s17468_s1, 30720, %s309_s19, [#allocation6], %s16262_s12, %s16262_s12, %s16263_s17  }
  0x8c   : > { %s16264_s23 = smov [#allocation10]   ;;  %s16062_s24 = scalar_lea.hbm %s17432_s3, 81920 }
  0x8d   : > { %s332_s25 = sshll.u32 %s16264_s23, 4  ;;  %p16063_p13 = scmp.ne.s32.totalorder %s17432_s3, %s16062_s24  ;;  %s333_s25 = int_to_ptr.vmem [resolvable:$true] %s332_s25 }
  0x8e   : > { %p16069_p5 = scmp.lt.u32.totalorder %s16062_s24, %s17432_s3 }
  0x8f   : > { %p16065_p1 = pnand %p16063_p13, %p16408_p0 }
  0x91   : > { %p16066_p6 = pneg %p16065_p1 }
  0x93   : > { %p16071_p9 = pnand %p16069_p5, %p16066_p6 }
  0x95   : > { %16074 = shalt.err (!%p16071_p9)
}
  0x96   : > { %s16075_s19 = scalar_lea.vmem %s333_s25, 81920  ;;  %p16083_p4 = scmp.lt.s32.totalorder %s333_s25, %s333_s25 }
  0x97   : > { %p16076_p10 = scmp.ne.s32.totalorder %s333_s25, %s16075_s19  ;;  %p16084_p7 = scmp.lt.s32.totalorder %s16075_s19, %s16075_s19 }
  0x99   : > { %p16078_p2 = pnand %p16076_p10, %p16408_p0  ;;  %p16085_p8 = por %p16084_p7, %p16083_p4 }
  0x9b   : > { %p16079_p3 = pneg %p16078_p2 }
  0x9d   : > { %p16086_p11 = pnand %p16085_p8, %p16079_p3 }
  0x9f   : > { %16089 = shalt.err (!%p16086_p11)
}
  0xa0   : > { %s16265_s12 = smov 256   ;;  %s16266_s17 = smov 16  }
  0xa1   : > { %14352 = dma.hbm_to_vmem [thread:$0]  (!%p16392_p12), %s17432_s3, 81920, %s333_s25, [#allocation9], %s16265_s12, %s16265_s12, %s16266_s17  }
  0xa2   : > { %s16267_s28 = smov [#allocation13]   ;;  %s16268_s23 = smov [#allocation16]  }
  0xa3   : > { %s356_s26 = sshll.u32 %s16267_s28, 4  ;;  %s384_s30 = sshll.u32 %s16268_s23, 4  ;;  %s357_s26 = int_to_ptr.vmem [resolvable:$true] %s356_s26  ;;  %s385_s30 = int_to_ptr.vmem [resolvable:$true] %s384_s30 }
  0xa4   : > { %s16090_s14 = scalar_lea.hbm %s17434_s5, 40960 }
  0xa5   : > { %p16091_p13 = scmp.ne.s32.totalorder %s17434_s5, %s16090_s14  ;;  %p16097_p5 = scmp.lt.u32.totalorder %s16090_s14, %s17434_s5 }
  0xa7   : > { %p16093_p1 = pnand %p16091_p13, %p16408_p0 }
  0xa9   : > { %p16094_p6 = pneg %p16093_p1 }
  0xab   : > { %p16099_p9 = pnand %p16097_p5, %p16094_p6 }
  0xad   : > { %16102 = shalt.err (!%p16099_p9)
}
  0xae   : > { %s16103_s25 = scalar_lea.vmem %s357_s26, 40960  ;;  %p16111_p4 = scmp.lt.s32.totalorder %s357_s26, %s357_s26 }
  0xaf   : > { %p16104_p10 = scmp.ne.s32.totalorder %s357_s26, %s16103_s25  ;;  %p16112_p7 = scmp.lt.s32.totalorder %s16103_s25, %s16103_s25 }
  0xb1   : > { %p16106_p2 = pnand %p16104_p10, %p16408_p0  ;;  %p16113_p8 = por %p16112_p7, %p16111_p4 }
  0xb3   : > { %p16107_p3 = pneg %p16106_p2 }
  0xb5   : > { %p16114_p11 = pnand %p16113_p8, %p16107_p3 }
  0xb7   : > { %16117 = shalt.err (!%p16114_p11)
}
  0xb8   : > { %14358 = dma.hbm_to_vmem [thread:$0]  (!%p16392_p12), %s17434_s5, 40960, %s357_s26, [#allocation12], %s16265_s12, %s16265_s12, %s16266_s17  }
  0xb9   : > { %s16118_s28 = scalar_lea.hbm %s17437_s8, 16 }
  0xba   : > { %p16119_p13 = scmp.ne.s32.totalorder %s17437_s8, %s16118_s28  ;;  %p16125_p5 = scmp.lt.u32.totalorder %s16118_s28, %s17437_s8 }
  0xbc   : > { %p16121_p1 = pnand %p16119_p13, %p16408_p0 }
  0xbe   : > { %p16122_p6 = pneg %p16121_p1 }
  0xc0   : > { %p16127_p9 = pnand %p16125_p5, %p16122_p6 }
  0xc2   : > { %16130 = shalt.err (!%p16127_p9)
}
  0xc3   : > { %s16131_s22 = scalar_lea.vmem %s385_s30, 16  ;;  %s16138_s12 = scalar_lea.vmem %s385_s30, 32 }
  0xc4   : > { %p16132_p10 = scmp.ne.s32.totalorder %s385_s30, %s16131_s22  ;;  %p16139_p4 = scmp.lt.s32.totalorder %s385_s30, %s385_s30 }
  0xc5   : > { %p16140_p7 = scmp.lt.s32.totalorder %s16138_s12, %s16131_s22 }
  0xc6   : > { %p16134_p2 = pnand %p16132_p10, %p16408_p0 }
  0xc7   : > { %p16141_p8 = por %p16140_p7, %p16139_p4 }
  0xc8   : > { %p16135_p3 = pneg %p16134_p2 }
  0xca   : > { %p16142_p11 = pnand %p16141_p8, %p16135_p3 }
  0xcc   : > { %16145 = shalt.err (!%p16142_p11)
}
  0xcd   : > { %14364 = dma.hbm_to_vmem [thread:$0]  (!%p16392_p12), %s17437_s8, 16, %s385_s30, [#allocation15]  }
  0xce   : > { %s16269_s19 = smov [#allocation17]   ;;  %s16146_s1 = scalar_lea.hbm %s17439_s10, 16 }
  0xcf   : > { %s398_s25 = sshll.u32 %s16269_s19, 4  ;;  %p16147_p13 = scmp.ne.s32.totalorder %s17439_s10, %s16146_s1  ;;  %s399_s25 = int_to_ptr.vmem [resolvable:$true] %s398_s25 }
  0xd0   : > { %p16153_p5 = scmp.lt.u32.totalorder %s16146_s1, %s17439_s10 }
  0xd1   : > { %p16149_p1 = pnand %p16147_p13, %p16408_p0 }
  0xd3   : > { %p16150_p6 = pneg %p16149_p1 }
  0xd5   : > { %p16155_p9 = pnand %p16153_p5, %p16150_p6 }
  0xd7   : > { %16158 = shalt.err (!%p16155_p9)
}
  0xd8   : > { %s16159_s30 = scalar_lea.vmem %s399_s25, 16  ;;  %s16166_s24 = scalar_lea.vmem %s399_s25, 32 }
  0xd9   : > { %p16160_p10 = scmp.ne.s32.totalorder %s399_s25, %s16159_s30  ;;  %p16167_p4 = scmp.lt.s32.totalorder %s399_s25, %s399_s25 }
  0xda   : > { %p16168_p7 = scmp.lt.s32.totalorder %s16166_s24, %s16159_s30 }
  0xdb   : > { %p16162_p2 = pnand %p16160_p10, %p16408_p0 }
  0xdc   : > { %p16169_p8 = por %p16168_p7, %p16167_p4 }
  0xdd   : > { %p16163_p3 = pneg %p16162_p2 }
  0xdf   : > { %p16170_p11 = pnand %p16169_p8, %p16163_p3 }
  0xe1   : > { %16173 = shalt.err (!%p16170_p11)
}
  0xe2   : > { %14367 = dma.hbm_to_vmem [thread:$0]  (!%p16392_p12), %s17439_s10, 16, %s399_s25, [#allocation18]  }
  0xe3   : > { %p17469_p13 = scmp.ne.s32.totalorder %s17462_s29, 0 }
  0xe4   : > { %p17470_p1 = scmp.eq.s32.totalorder (!%p17469_p13), %s16356_s21, 0 }
  0xe5   : > { %419 = sbr.rel (%p17469_p13) target bundleno = 2598 (0xa26), region = 64 }
  0xec   : > { %16219 = dma.done.wait (%p17470_p1), [#allocation6], 30720   ;;  %p17471_p0 = pmov %p17470_p1 }
  0xee   : > { %16221 = vsyncadd (%p17471_p0), [#allocation6], 4294936576  ;;  %p17472_p6 = pmov %p17471_p0 }
  0xef   : > { %p17473_p5 = pmov %p17471_p0 }
  0xf0   : > { %16223 = dma.done.wait (%p17472_p6), [#allocation9], 82048  }
  0xf1   : > { %16225 = vsyncadd (%p17473_p5), [#allocation9], 4294885248  ;;  %p17474_p9 = pmov %p17471_p0 }
  0xf2   : > { %p17475_p12 = pmov %p17471_p0 }
  0xf3   : > { %16227 = dma.done.wait (%p17474_p9), [#allocation12], 41024  }
  0xf4   : > { %16229 = vsyncadd (%p17475_p12), [#allocation12], 4294926272  ;;  %p17476_p10 = pmov %p17471_p0 }
  0xf5   : > { %p17477_p2 = pmov %p17471_p0 }
  0xf6   : > { %16231 = dma.done.wait (%p17476_p10), [#allocation15], 80  }
  0xf7   : > { %16233 = vsyncadd (%p17477_p2), [#allocation15], 4294967216  ;;  %p17478_p3 = pmov %p17471_p0 }
  0xf8   : > { %p17479_p4 = pmov %p17471_p0 }
  0xf9   : > { %16235 = dma.done.wait (%p17478_p3), [#allocation18], 16  }
  0xfa   : > { %16237 = vsyncadd (%p17479_p4), [#allocation18], 4294967280  ;;  %vm492_vm0 = vcmask 785408   ;;  %v16270_v0 = vmov 0   ;;  %v17449_v1 = vmov 0.0   ;;  %vm497_vm1 = vcmask 781312  }
  0xfb   : > { %894 = vmatprep.mubr.bf16.mxu0 %v16270_v0  ;;  %947 = vmatprep.mubr.bf16.mxu1 %v16270_v0  ;;  %493 = vst.msk [vmem:[#allocation2] sm:$0xff] %vm492_vm0, %v17449_v1  ;;  %494 = vst.msk [vmem:[#allocation2 + $0x8] sm:$0xff] %vm492_vm0, %v17449_v1  ;;  %p486_p7 = scmp.lt.s32.totalorder %s16356_s21, 1  ;;  %v568_v2 = vld [vmem:[#allocation5 + $0x180] sm:$0xff]  ;;  %v569_v4 = vld [vmem:[#allocation5 + $0x188] sm:$0xff]  ;;  %vm3813_vm2 = vcmask 1043459  }
  0xfc   : > { %495 = vst.msk [vmem:[#allocation2 + $0x10] sm:$0xff] %vm492_vm0, %v17449_v1  ;;  %496 = vst.msk [vmem:[#allocation2 + $0x18] sm:$0xff] %vm492_vm0, %v17449_v1  ;;  %v572_v3 = vld [vmem:[#allocation5 + $0x1a0] sm:$0xff]  ;;  %v573_v6 = vld [vmem:[#allocation5 + $0x1a8] sm:$0xff]  ;;  %vm3815_vm3 = vcmask 1044484   ;;  %vm3817_vm4 = vcmask 1045509  }
  0xfd   : > { %3529 = vst [vmem:[#allocation3] sm:$0xff] %v17449_v1  ;;  %3530 = vst [vmem:[#allocation3 + $0x8] sm:$0xff] %v17449_v1  ;;  %s16607_s29 = scalar_select %p486_p7, %s16356_s21, 1  ;;  %v12568_v5 = vcombine.high %v568_v2, %v572_v3  ;;  %v12567_v7 = vcombine.low %v568_v2, %v572_v3  ;;  %v576_v8 = vld [vmem:[#allocation5 + $0x1c0] sm:$0xff]  ;;  %v12570_v10 = vcombine.high %v569_v4, %v573_v6  ;;  %v577_v13 = vld [vmem:[#allocation5 + $0x1c8] sm:$0xff]  ;;  %vm3819_vm5 = vcmask 1046534  }
  0xfe   : > { %3531 = vst [vmem:[#allocation3 + $0x10] sm:$0xff] %v17449_v1  ;;  %3532 = vst [vmem:[#allocation3 + $0x18] sm:$0xff] %v17449_v1  ;;  %v580_v9 = vld [vmem:[#allocation5 + $0x1e0] sm:$0xff]  ;;  %v12569_v11 = vcombine.low %v569_v4, %v573_v6  ;;  %v581_v14 = vld [vmem:[#allocation5 + $0x1e8] sm:$0xff]  ;;  %vm3821_vm6 = vcmask 1047559   ;;  %vm3838_vm7 = vcmask 1041409  }
  0xff   : > { %3537 = vst [vmem:[#allocation3 + $0x40] sm:$0xf] %v17449_v1  ;;  %3538 = vst [vmem:[#allocation3 + $0x48] sm:$0xf] %v17449_v1  ;;  %v12576_v12 = vcombine.high %v576_v8, %v580_v9  ;;  %v584_v15 = vld [vmem:[#allocation5 + $0x200] sm:$0xff]  ;;  %862 = vmatprep.subr.bf16.mxu0 %v12568_v5  ;;  %v12578_v16 = vcombine.high %v577_v13, %v581_v14  ;;  %v585_v18 = vld [vmem:[#allocation5 + $0x208] sm:$0xff]  ;;  %915 = vmatprep.subr.bf16.mxu1 %v12570_v10 }
 0x100   : > { %3539 = vst [vmem:[#allocation3 + $0x50] sm:$0xf] %v17449_v1  ;;  %3540 = vst [vmem:[#allocation3 + $0x58] sm:$0xf] %v17449_v1  ;;  %v588_v17 = vld [vmem:[#allocation5 + $0x220] sm:$0xff]  ;;  %v589_v19 = vld [vmem:[#allocation5 + $0x228] sm:$0xff]  ;;  %863 = vmatpush1.bf16.msra.mxu0 %v12567_v7  ;;  %v12575_v20 = vcombine.low %v576_v8, %v580_v9  ;;  %916 = vmatpush1.bf16.msra.mxu1 %v12569_v11  ;;  %v12577_v21 = vcombine.low %v577_v13, %v581_v14 }
 0x101   : > { %8998 = vst [vmem:[#allocation4] sm:$0xff] %v17449_v1  ;;  %8999 = vst [vmem:[#allocation4 + $0x8] sm:$0xff] %v17449_v1  ;;  %s14003_s15 = sshll.u32 %s16607_s29, 5  ;;  %864 = vmatprep.subr.bf16.mxu0 %v12576_v12  ;;  %v12584_v22 = vcombine.high %v584_v15, %v588_v17  ;;  %917 = vmatprep.subr.bf16.mxu1 %v12578_v16  ;;  %v12586_v23 = vcombine.high %v585_v18, %v589_v19  ;;  %v592_v24 = vld [vmem:[#allocation5 + $0x240] sm:$0xff]  ;;  %v593_v26 = vld [vmem:[#allocation5 + $0x248] sm:$0xff]  ;;  %vm3840_vm8 = vcmask 1042434  }
 0x102   : > { %9000 = vst [vmem:[#allocation4 + $0x10] sm:$0xf] %v17449_v1  ;;  %9001 = vst [vmem:[#allocation4 + $0x18] sm:$0xf] %v17449_v1  ;;  %v596_v25 = vld [vmem:[#allocation5 + $0x260] sm:$0xff]  ;;  %s16613_s17 = scalar_lea.vmem %s17429_s0, %s14003_s15  ;;  %v597_v27 = vld [vmem:[#allocation5 + $0x268] sm:$0xff]  ;;  %v12583_v28 = vcombine.low %v584_v15, %v588_v17  ;;  %v12585_v29 = vcombine.low %v585_v18, %v589_v19 }
 0x103   : > { %498 = vst.msk [vmem:[#allocation2 + $0x20] sm:$0xf] %vm497_vm1, %v17449_v1  ;;  %v12592_v30 = vcombine.high %v592_v24, %v596_v25  ;;  %v499_v31 = vld [vmem:[%s16613_s17] sm:$0xff]  ;;  %v500_v32 = vld [vmem:[%s16613_s17 + $0x8] sm:$0xff]  ;;  %v12594_v33 = vcombine.high %v593_v26, %v597_v27  ;;  %v601_v36 = vld [vmem:[#allocation5 + $0x288] sm:$0xff]  ;;  %v12591_v38 = vcombine.low %v592_v24, %v596_v25  ;;  %v12593_v39 = vcombine.low %v593_v26, %v597_v27  ;;  %s484_s2 = sand.u32 1, %s16248_s18  }
 0x104   : > { %865 = vmatpush1.bf16.msra.mxu0 %v12575_v20  ;;  %918 = vmatpush1.bf16.msra.mxu1 %v12577_v21  ;;  %v600_v34 = vld [vmem:[#allocation5 + $0x280] sm:$0xff]  ;;  %503 = vst.msk [vmem:[#allocation2 + $0x2] sm:$0xff] %vm492_vm0, %v499_v31  ;;  %504 = vst.msk [vmem:[#allocation2 + $0xa] sm:$0xff] %vm492_vm0, %v500_v32  ;;  %v605_v37 = vld [vmem:[#allocation5 + $0x2a8] sm:$0xff]  ;;  %vm4181_vm9 = vsmask.f32 7424 }
 0x105   : > { %866 = vmatprep.subr.bf16.mxu0 %v12584_v22  ;;  %919 = vmatprep.subr.bf16.mxu1 %v12586_v23  ;;  %v604_v35 = vld [vmem:[#allocation5 + $0x2a0] sm:$0xff]  ;;  %v12602_v41 = vcombine.high %v601_v36, %v605_v37  ;;  %v609_v44 = vld [vmem:[#allocation5 + $0x2c8] sm:$0xff]  ;;  %v502_v47 = vld [vmem:[%s16613_s17 + $0x18] sm:$0xff]  ;;  %v12601_v49 = vcombine.low %v601_v36, %v605_v37  ;;  %vm6011_vm10 = vcmask 1046528   ;;  %vm6993_vm11 = vsmask.f32 6400 }
 0x106   : > { %v12600_v40 = vcombine.high %v600_v34, %v604_v35  ;;  %v608_v42 = vld [vmem:[#allocation5 + $0x2c0] sm:$0xff]  ;;  %v613_v45 = vld [vmem:[#allocation5 + $0x2e8] sm:$0xff]  ;;  %v12599_v48 = vcombine.low %v600_v34, %v604_v35  ;;  %506 = vst.msk [vmem:[#allocation2 + $0x1a] sm:$0xff] %vm492_vm0, %v502_v47  ;;  %v570_v52 = vld [vmem:[#allocation5 + $0x190] sm:$0xff]  ;;  %vm8039_vm12 = vcmask 1045504   ;;  %vm16273_vm13 = vmmov 0  }
 0x107   : > { %v612_v43 = vld [vmem:[#allocation5 + $0x2e0] sm:$0xff]  ;;  %v501_v46 = vld [vmem:[%s16613_s17 + $0x10] sm:$0xff]  ;;  %v12610_v51 = vcombine.high %v609_v44, %v613_v45  ;;  %v574_v53 = vld [vmem:[#allocation5 + $0x1b0] sm:$0xff]  ;;  %v12609_v59 = vcombine.low %v609_v44, %v613_v45  ;;  %vm12352_vm14 = vcmask 523264   ;;  %s14000_s4 = sshll.u32 %s16356_s21, 4  ;;  %s485_s1 = scalar_lea.vmem [#allocation19], %s484_s2 }
 0x108   : > { %867 = vmatpush1.bf16.msra.mxu0 %v12583_v28  ;;  %920 = vmatpush1.bf16.msra.mxu1 %v12585_v29  ;;  %505 = vst.msk [vmem:[#allocation2 + $0x12] sm:$0xff] %vm492_vm0, %v501_v46  ;;  %v12608_v50 = vcombine.high %v608_v42, %v612_v43  ;;  %v571_v54 = vld [vmem:[#allocation5 + $0x198] sm:$0xff]  ;;  %v12607_v56 = vcombine.low %v608_v42, %v612_v43  ;;  %v578_v62 = vld [vmem:[#allocation5 + $0x1d0] sm:$0xff]  ;;  %v513_v44 = vld [vmem:[#allocation5] sm:$0xff]  ;;  %s12411_s6 = sshll.u32 %s485_s1, 4  ;;  %vm12396_vm15 = vcmask 73728   ;;  %s17387_s16 = scalar_lea.hbm %s17440_s11, %s14000_s4  ;;  %s17389_s6 = int_to_ptr.vmem [resolvable:$true] %s12411_s6 }
 0x109   : > { %868 = vmatprep.subr.bf16.mxu0 %v12592_v30  ;;  %921 = vmatprep.subr.bf16.mxu1 %v12594_v33  ;;  %v575_v55 = vld [vmem:[#allocation5 + $0x1b8] sm:$0xff]  ;;  %v12572_v60 = vcombine.high %v570_v52, %v574_v53  ;;  %v582_v63 = vld [vmem:[#allocation5 + $0x1f0] sm:$0xff]  ;;  %v12571_v5 = vcombine.low %v570_v52, %v574_v53  ;;  %v517_v45 = vld [vmem:[#allocation5 + $0x20] sm:$0xff]  ;;  %s12399_s21 = scalar_lea.sflag [#allocation7], %s484_s2  ;;  %s16174_s30 = scalar_lea.vmem %s17389_s6, 16 }
 0x10a   : > { %v12574_v61 = vcombine.high %v571_v54, %v575_v55  ;;  %v579_v3 = vld [vmem:[#allocation5 + $0x1d8] sm:$0xff]  ;;  %v12573_v6 = vcombine.low %v571_v54, %v575_v55  ;;  %v12580_v7 = vcombine.high %v578_v62, %v582_v63  ;;  %v586_v9 = vld [vmem:[#allocation5 + $0x210] sm:$0xff]  ;;  %v12579_v13 = vcombine.low %v578_v62, %v582_v63  ;;  %v514_v46 = vld [vmem:[#allocation5 + $0x8] sm:$0xff]  ;;  %p16175_p8 = scmp.ne.s32.totalorder %s17389_s6, %s16174_s30  ;;  %p17482_p11 = scmp.ne.s32.totalorder %s17459_s27, 0 }
 0x10b   : > { %v561_v57 = vld [vmem:[#allocation2 + $0x1] sm:$0xff]  ;;  %v562_v58 = vld [vmem:[#allocation2 + $0x9] sm:$0xff]  ;;  %v590_v10 = vld [vmem:[#allocation5 + $0x230] sm:$0xff]  ;;  %s16274_s24 = smov [#allocation19]  }
 0x10c   : > { %869 = vmatpush1.bf16.msra.mxu0 %v12591_v38  ;;  %922 = vmatpush1.bf16.msra.mxu1 %v12593_v39  ;;  %v16623_v2 = vpack.c.bf16 %v562_v58, %v561_v57  ;;  %v583_v4 = vld [vmem:[#allocation5 + $0x1f8] sm:$0xff]  ;;  %v12588_v17 = vcombine.high %v586_v9, %v590_v10  ;;  %v594_v19 = vld [vmem:[#allocation5 + $0x250] sm:$0xff]  ;;  %v12587_v24 = vcombine.low %v586_v9, %v590_v10  ;;  %v518_v47 = vld [vmem:[#allocation5 + $0x28] sm:$0xff]  ;;  %p16176_p13 = pnand %p16175_p8, %p17482_p11  ;;  %s16178_s14 = sshll.u32 %s16274_s24, 4  ;;  %s16179_s14 = int_to_ptr.vmem [resolvable:$false] %s16178_s14 }
 0x10d   : > { %870 = vmatprep.subr.bf16.mxu0 %v12600_v40  ;;  %923 = vmatprep.subr.bf16.mxu1 %v12602_v41  ;;  %v12582_v8 = vcombine.high %v579_v3, %v583_v4  ;;  %v587_v11 = vld [vmem:[#allocation5 + $0x218] sm:$0xff]  ;;  %v12581_v16 = vcombine.low %v579_v3, %v583_v4  ;;  %v598_v20 = vld [vmem:[#allocation5 + $0x270] sm:$0xff]  ;;  %v521_v52 = vld [vmem:[#allocation5 + $0x40] sm:$0xff]  ;;  %v12625_v57 = vcombine.low %v514_v46, %v518_v47  ;;  %s16180_s22 = scalar_lea.vmem %s16179_s14, 32  ;;  %p16181_p0 = scmp.lt.s32.totalorder %s17389_s6, %s16179_s14 }
 0x10e   : > { %v591_v12 = vld [vmem:[#allocation5 + $0x238] sm:$0xff]  ;;  %v12596_v26 = vcombine.high %v594_v19, %v598_v20  ;;  %v602_v28 = vld [vmem:[#allocation5 + $0x290] sm:$0xff]  ;;  %v12595_v32 = vcombine.low %v594_v19, %v598_v20  ;;  %v525_v53 = vld [vmem:[#allocation5 + $0x60] sm:$0xff]  ;;  %p16177_p1 = pneg %p16176_p13  ;;  %p16182_p6 = scmp.lt.s32.totalorder %s16180_s22, %s16174_s30 }
 0x10f   : > { %v563_v14 = vld [vmem:[#allocation2 + $0x11] sm:$0xff]  ;;  %v564_v15 = vld [vmem:[#allocation2 + $0x19] sm:$0xff]  ;;  %v12590_v18 = vcombine.high %v587_v11, %v591_v12  ;;  %v12589_v25 = vcombine.low %v587_v11, %v591_v12  ;;  %v12632_v58 = vcombine.high %v521_v52, %v525_v53  ;;  %v12631_v3 = vcombine.low %v521_v52, %v525_v53 }
 0x110   : > { %871 = vmatpush1.bf16.msra.mxu0 %v12599_v48  ;;  %924 = vmatpush1.bf16.msra.mxu1 %v12601_v49  ;;  %v595_v21 = vld [vmem:[#allocation5 + $0x258] sm:$0xff]  ;;  %v16631_v23 = vpack.c.bf16 %v564_v15, %v563_v14  ;;  %v606_v29 = vld [vmem:[#allocation5 + $0x2b0] sm:$0xff]  ;;  %v522_v54 = vld [vmem:[#allocation5 + $0x48] sm:$0xff]  ;;  %p16183_p5 = por %p16182_p6, %p16181_p0 }
 0x111   : > { %872 = vmatprep.subr.bf16.mxu0 %v12608_v50  ;;  %925 = vmatprep.subr.bf16.mxu1 %v12610_v51  ;;  %v599_v22 = vld [vmem:[#allocation5 + $0x278] sm:$0xff]  ;;  %v12604_v34 = vcombine.high %v602_v28, %v606_v29  ;;  %v610_v36 = vld [vmem:[#allocation5 + $0x2d0] sm:$0xff]  ;;  %v12603_v40 = vcombine.low %v602_v28, %v606_v29  ;;  %v12624_v50 = vcombine.high %v513_v44, %v517_v45  ;;  %v526_v55 = vld [vmem:[#allocation5 + $0x68] sm:$0xff] }
 0x112   : > { %v12598_v27 = vcombine.high %v595_v21, %v599_v22  ;;  %v603_v30 = vld [vmem:[#allocation5 + $0x298] sm:$0xff]  ;;  %v12597_v33 = vcombine.low %v595_v21, %v599_v22  ;;  %v614_v37 = vld [vmem:[#allocation5 + $0x2f0] sm:$0xff]  ;;  %v12626_v51 = vcombine.high %v514_v46, %v518_v47  ;;  %v530_v62 = vld [vmem:[#allocation5 + $0x88] sm:$0xff]  ;;  %v12633_v4 = vcombine.low %v522_v54, %v526_v55  ;;  %p16184_p9 = pnand %p16183_p5, %p16177_p1 }
 0x113   : > { %v607_v31 = vld [vmem:[#allocation5 + $0x2b8] sm:$0xff]  ;;  %v12612_v42 = vcombine.high %v610_v36, %v614_v37  ;;  %v12611_v48 = vcombine.low %v610_v36, %v614_v37  ;;  %v534_v63 = vld [vmem:[#allocation5 + $0xa8] sm:$0xff]  ;;  %v545_v14 = vld [vmem:[#allocation5 + $0x100] sm:$0xff] }
 0x114   : > { %873 = vmatpush1.bf16.msra.mxu0 %v12607_v56  ;;  %926 = vmatpush1.bf16.msra.mxu1 %v12609_v59  ;;  %v12606_v35 = vcombine.high %v603_v30, %v607_v31  ;;  %v611_v38 = vld [vmem:[#allocation5 + $0x2d8] sm:$0xff]  ;;  %v12605_v41 = vcombine.low %v603_v30, %v607_v31  ;;  %v12623_v56 = vcombine.low %v513_v44, %v517_v45  ;;  %v538_v9 = vld [vmem:[#allocation5 + $0xc8] sm:$0xff]  ;;  %v549_v15 = vld [vmem:[#allocation5 + $0x120] sm:$0xff] }
 0x115   : > { %968 = vmatprep.subr.bf16.mxu0 %v12572_v60  ;;  %1021 = vmatprep.subr.bf16.mxu1 %v12574_v61  ;;  %v615_v39 = vld [vmem:[#allocation5 + $0x2f8] sm:$0xff]  ;;  %v12634_v59 = vcombine.high %v522_v54, %v526_v55  ;;  %v529_v60 = vld [vmem:[#allocation5 + $0x80] sm:$0xff]  ;;  %v542_v10 = vld [vmem:[#allocation5 + $0xe8] sm:$0xff]  ;;  %v12656_v20 = vcombine.high %v545_v14, %v549_v15 }
 0x116   : > { %v12614_v43 = vcombine.high %v611_v38, %v615_v39  ;;  %v12613_v49 = vcombine.low %v611_v38, %v615_v39  ;;  %v533_v61 = vld [vmem:[#allocation5 + $0xa0] sm:$0xff]  ;;  %v12649_v19 = vcombine.low %v538_v9, %v542_v10  ;;  %v515_v30 = vld [vmem:[#allocation5 + $0x10] sm:$0xff]  ;;  %v528_v44 = vld [vmem:[#allocation5 + $0x78] sm:$0xff] }
 0x117   : > { %12615 = vmatmul.mubr.msk.bf16.vlgmr.msra.gmra.mrb[0].mxu0 %vm492_vm0, %v16623_v2  ;;  %12617 = vmatmul.mubr.msk.bf16.vlgmr.msra.gmra.mrb[0].mxu1 %vm492_vm0, %v16623_v2  ;;  %v12639_v11 = vcombine.low %v529_v60, %v533_v61  ;;  %v553_v22 = vld [vmem:[#allocation5 + $0x140] sm:$0xff]  ;;  %v519_v31 = vld [vmem:[#allocation5 + $0x30] sm:$0xff]  ;;  %v509_v53 = vld [vmem:[#allocation2 + $0x10] sm:$0xff] }
 0x118   : > { %969 = vmatpush1.bf16.msra.mxu0 %v12571_v5  ;;  %1022 = vmatpush1.bf16.msra.mxu1 %v12573_v6  ;;  %v12640_v5 = vcombine.high %v529_v60, %v533_v61  ;;  %v12642_v6 = vcombine.high %v530_v62, %v534_v63  ;;  %v508_v36 = vld [vmem:[#allocation2 + $0x8] sm:$0xff]  ;;  %v12628_v38 = vcombine.high %v515_v30, %v519_v31  ;;  %v531_v46 = vld [vmem:[#allocation5 + $0x90] sm:$0xff]  ;;  %v540_v60 = vld [vmem:[#allocation5 + $0xd8] sm:$0xff] }
 0x119   : > { %970 = vmatprep.subr.bf16.mxu0 %v12580_v7  ;;  %1023 = vmatprep.subr.bf16.mxu1 %v12582_v8  ;;  %v537_v7 = vld [vmem:[#allocation5 + $0xc0] sm:$0xff]  ;;  %v12627_v45 = vcombine.low %v515_v30, %v519_v31  ;;  %v510_v54 = vld [vmem:[#allocation2 + $0x18] sm:$0xff]  ;;  %v1548_v31 = vld [vmem:[#allocation5 + $0x348] sm:$0xff] }
 0x11a   : > { %904 = vmatprep.mubr.bf16.mxu0 %v16270_v0  ;;  %957 = vmatprep.mubr.bf16.mxu1 %v16270_v0  ;;  %v541_v8 = vld [vmem:[#allocation5 + $0xe0] sm:$0xff] }
 0x11b   : > { %v12648_v12 = vcombine.high %v537_v7, %v541_v8  ;;  %v1551_v30 = vld [vmem:[#allocation5 + $0x360] sm:$0xff] }
 0x11c   : > { %971 = vmatpush1.bf16.msra.mxu0 %v12579_v13  ;;  %1024 = vmatpush1.bf16.msra.mxu1 %v12581_v16  ;;  %v12650_v13 = vcombine.high %v538_v9, %v542_v10  ;;  %v546_v16 = vld [vmem:[#allocation5 + $0x108] sm:$0xff]  ;;  %v552_v10 = vld [vmem:[#allocation5 + $0x138] sm:$0xff] }
 0x11d   : > { %972 = vmatprep.subr.bf16.mxu0 %v12588_v17  ;;  %1025 = vmatprep.subr.bf16.mxu1 %v12590_v18  ;;  %v550_v17 = vld [vmem:[#allocation5 + $0x128] sm:$0xff]  ;;  %v12647_v18 = vcombine.low %v537_v7, %v541_v8  ;;  %v551_v7 = vld [vmem:[#allocation5 + $0x130] sm:$0xff]  ;;  %v548_v8 = vld [vmem:[#allocation5 + $0x118] sm:$0xff] }
 0x11e   : > { %v12658_v21 = vcombine.high %v546_v16, %v550_v17  ;;  %v12657_v28 = vcombine.low %v546_v16, %v550_v17  ;;  %v12662_v16 = vcombine.high %v548_v8, %v552_v10  ;;  %v560_v17 = vld [vmem:[#allocation5 + $0x178] sm:$0xff] }
 0x11f   : > { %12616 = vmatmul.mubr.msk.bf16.gmra.mrb[4].mxu0 %vm492_vm0, %v16631_v23  ;;  %12618 = vmatmul.mubr.msk.bf16.gmra.mrb[4].mxu1 %vm492_vm0, %v16631_v23 }
 0x120   : > { %973 = vmatpush1.bf16.msra.mxu0 %v12587_v24  ;;  %1026 = vmatpush1.bf16.msra.mxu1 %v12589_v25  ;;  %v557_v24 = vld [vmem:[#allocation5 + $0x160] sm:$0xff]  ;;  %v554_v25 = vld [vmem:[#allocation5 + $0x148] sm:$0xff] }
 0x121   : > { %974 = vmatprep.subr.bf16.mxu0 %v12596_v26  ;;  %1027 = vmatprep.subr.bf16.mxu1 %v12598_v27  ;;  %v558_v26 = vld [vmem:[#allocation5 + $0x168] sm:$0xff]  ;;  %v12655_v27 = vcombine.low %v545_v14, %v549_v15  ;;  %v559_v14 = vld [vmem:[#allocation5 + $0x170] sm:$0xff]  ;;  %v556_v15 = vld [vmem:[#allocation5 + $0x158] sm:$0xff] }
 0x122   : > { %1000 = vmatprep.mubr.bf16.mxu0 %v16270_v0  ;;  %1053 = vmatprep.mubr.bf16.mxu1 %v16270_v0  ;;  %v12666_v29 = vcombine.high %v554_v25, %v558_v26  ;;  %v12665_v37 = vcombine.low %v554_v25, %v558_v26  ;;  %v1540_v25 = vld [vmem:[#allocation5 + $0x308] sm:$0xff] }
 0x123   : > { %v1544_v26 = vld [vmem:[#allocation5 + $0x328] sm:$0xff] }
 0x124   : > { %975 = vmatpush1.bf16.msra.mxu0 %v12595_v32  ;;  %1028 = vmatpush1.bf16.msra.mxu1 %v12597_v33  ;;  %v516_v32 = vld [vmem:[#allocation5 + $0x18] sm:$0xff] }
 0x125   : > { %976 = vmatprep.subr.bf16.mxu0 %v12604_v34  ;;  %1029 = vmatprep.subr.bf16.mxu1 %v12606_v35  ;;  %v520_v33 = vld [vmem:[#allocation5 + $0x38] sm:$0xff]  ;;  %v12663_v34 = vcombine.low %v553_v22, %v557_v24 }
 0x126   : > { %v507_v35 = vld [vmem:[#allocation2] sm:$0xff]  ;;  %v12630_v39 = vcombine.high %v516_v32, %v520_v33  ;;  %v12629_v47 = vcombine.low %v516_v32, %v520_v33  ;;  %v12682_v32 = vcombine.high %v1540_v25, %v1544_v26  ;;  %v1552_v33 = vld [vmem:[#allocation5 + $0x368] sm:$0xff] }
 0x128   : > { %977 = vmatpush1.bf16.msra.mxu0 %v12603_v40  ;;  %1030 = vmatpush1.bf16.msra.mxu1 %v12605_v41  ;;  %v523_v40 = vld [vmem:[#allocation5 + $0x50] sm:$0xff] }
 0x129   : > { %978 = vmatprep.subr.bf16.mxu0 %v12612_v42  ;;  %1031 = vmatprep.subr.bf16.mxu1 %v12614_v43  ;;  %v527_v41 = vld [vmem:[#allocation5 + $0x70] sm:$0xff]  ;;  %v16651_v42 = vpack.c.bf16 %v508_v36, %v507_v35  ;;  %v524_v43 = vld [vmem:[#allocation5 + $0x58] sm:$0xff]  ;;  %v12681_v35 = vcombine.low %v1540_v25, %v1544_v26 }
 0x12a   : > { %v12638_v52 = vcombine.high %v524_v43, %v528_v44  ;;  %v12635_v55 = vcombine.low %v523_v40, %v527_v41  ;;  %v1557_v25 = vld [vmem:[#allocation5 + $0x390] sm:$0xff] }
 0x12b   : > { %v1561_v26 = vld [vmem:[#allocation5 + $0x3b0] sm:$0xff] }
 0x12c   : > { %979 = vmatpush1.bf16.msra.mxu0 %v12611_v48  ;;  %1032 = vmatpush1.bf16.msra.mxu1 %v12613_v49  ;;  %v12636_v48 = vcombine.high %v523_v40, %v527_v41  ;;  %v535_v49 = vld [vmem:[#allocation5 + $0xb0] sm:$0xff]  ;;  %v1556_v40 = vld [vmem:[#allocation5 + $0x388] sm:$0xff] }
 0x12d   : > { %1320 = vmatprep.subr.bf16.mxu0 %v12624_v50  ;;  %1373 = vmatprep.subr.bf16.mxu1 %v12626_v51  ;;  %v532_v50 = vld [vmem:[#allocation5 + $0x98] sm:$0xff]  ;;  %v1560_v41 = vld [vmem:[#allocation5 + $0x3a8] sm:$0xff] }
 0x12e   : > { %v536_v51 = vld [vmem:[#allocation5 + $0xb8] sm:$0xff] }
 0x12f   : > { %12619 = vmatmul.mubr.msk.bf16.vlgmr.msra.gmra.mrb[8].mxu0 %vm492_vm0, %v16623_v2  ;;  %12621 = vmatmul.mubr.msk.bf16.vlgmr.msra.gmra.mrb[8].mxu1 %vm492_vm0, %v16623_v2  ;;  %v12641_v2 = vcombine.low %v530_v62, %v534_v63  ;;  %v12646_v61 = vcombine.high %v532_v50, %v536_v51  ;;  %v544_v62 = vld [vmem:[#allocation5 + $0xf8] sm:$0xff]  ;;  %v16659_v63 = vpack.c.bf16 %v510_v54, %v509_v53  ;;  %v1571_v53 = vld [vmem:[#allocation5 + $0x400] sm:$0xff] }
 0x130   : > { %1321 = vmatpush1.bf16.msra.mxu0 %v12623_v56  ;;  %1374 = vmatpush1.bf16.msra.mxu1 %v12625_v57  ;;  %v12637_v56 = vcombine.low %v524_v43, %v528_v44  ;;  %v12644_v57 = vcombine.high %v531_v46, %v535_v49  ;;  %v12654_v9 = vcombine.high %v540_v60, %v544_v62  ;;  %v1575_v54 = vld [vmem:[#allocation5 + $0x420] sm:$0xff] }
 0x131   : > { %1322 = vmatprep.subr.bf16.mxu0 %v12632_v58  ;;  %1375 = vmatprep.subr.bf16.mxu1 %v12634_v59  ;;  %v539_v58 = vld [vmem:[#allocation5 + $0xd0] sm:$0xff]  ;;  %v12689_v44 = vcombine.low %v1548_v31, %v1552_v33 }
 0x132   : > { %1010 = vmatprep.mubr.bf16.mxu0 %v16270_v0  ;;  %1063 = vmatprep.mubr.bf16.mxu1 %v16270_v0  ;;  %v543_v59 = vld [vmem:[#allocation5 + $0xf0] sm:$0xff] }
 0x134   : > { %1323 = vmatpush1.bf16.msra.mxu0 %v12631_v3  ;;  %1376 = vmatpush1.bf16.msra.mxu1 %v12633_v4  ;;  %v12643_v3 = vcombine.low %v531_v46, %v535_v49  ;;  %v12645_v4 = vcombine.low %v532_v50, %v536_v51  ;;  %v1563_v46 = vld [vmem:[#allocation5 + $0x3c0] sm:$0xff]  ;;  %v12698_v49 = vcombine.high %v1556_v40, %v1560_v41  ;;  %v1568_v50 = vld [vmem:[#allocation5 + $0x3e8] sm:$0xff] }
 0x135   : > { %1324 = vmatprep.subr.bf16.mxu0 %v12640_v5  ;;  %1377 = vmatprep.subr.bf16.mxu1 %v12642_v6  ;;  %v12652_v5 = vcombine.high %v539_v58, %v543_v59  ;;  %v547_v6 = vld [vmem:[#allocation5 + $0x110] sm:$0xff] }
 0x137   : > { %12620 = vmatmul.mubr.msk.bf16.gmra.mrb[12].mxu0 %vm492_vm0, %v16631_v23  ;;  %12622 = vmatmul.mubr.msk.bf16.gmra.mrb[12].mxu1 %vm492_vm0, %v16631_v23  ;;  %v12664_v23 = vcombine.high %v553_v22, %v557_v24  ;;  %v12670_v22 = vcombine.high %v556_v15, %v560_v17  ;;  %v1543_v24 = vld [vmem:[#allocation5 + $0x320] sm:$0xff] }
 0x138   : > { %1325 = vmatpush1.bf16.msra.mxu0 %v12639_v11  ;;  %1378 = vmatpush1.bf16.msra.mxu1 %v12641_v2  ;;  %v12651_v11 = vcombine.low %v539_v58, %v543_v59  ;;  %v12653_v2 = vcombine.low %v540_v60, %v544_v62  ;;  %v12712_v60 = vcombine.high %v1571_v53, %v1575_v54  ;;  %v1583_v62 = vld [vmem:[#allocation5 + $0x460] sm:$0xff] }
 0x139   : > { %1326 = vmatprep.subr.bf16.mxu0 %v12648_v12  ;;  %1379 = vmatprep.subr.bf16.mxu1 %v12650_v13  ;;  %v12660_v12 = vcombine.high %v547_v6, %v551_v7  ;;  %v555_v13 = vld [vmem:[#allocation5 + $0x150] sm:$0xff] }
 0x13a   : > { %1352 = vmatprep.mubr.bf16.mxu0 %v16270_v0  ;;  %1405 = vmatprep.mubr.bf16.mxu1 %v16270_v0 }
 0x13c   : > { %1327 = vmatpush1.bf16.msra.mxu0 %v12647_v18  ;;  %1380 = vmatpush1.bf16.msra.mxu1 %v12649_v19  ;;  %v12659_v18 = vcombine.low %v547_v6, %v551_v7  ;;  %v12661_v19 = vcombine.low %v548_v8, %v552_v10  ;;  %v12711_v6 = vcombine.low %v1571_v53, %v1575_v54  ;;  %v1541_v7 = vld [vmem:[#allocation5 + $0x310] sm:$0xff]  ;;  %v1542_v10 = vld [vmem:[#allocation5 + $0x318] sm:$0xff] }
 0x13d   : > { %1328 = vmatprep.subr.bf16.mxu0 %v12656_v20  ;;  %1381 = vmatprep.subr.bf16.mxu1 %v12658_v21  ;;  %v12668_v20 = vcombine.high %v555_v13, %v559_v14  ;;  %v1539_v21 = vld [vmem:[#allocation5 + $0x300] sm:$0xff]  ;;  %v1545_v8 = vld [vmem:[#allocation5 + $0x330] sm:$0xff] }
 0x140   : > { %1329 = vmatpush1.bf16.msra.mxu0 %v12655_v27  ;;  %1382 = vmatpush1.bf16.msra.mxu1 %v12657_v28  ;;  %v12667_v27 = vcombine.low %v555_v13, %v559_v14  ;;  %v12669_v28 = vcombine.low %v556_v15, %v560_v17  ;;  %v1533_v13 = vld [vmem:[#allocation2 + $0xa] sm:$0xff]  ;;  %v1549_v15 = vld [vmem:[#allocation5 + $0x350] sm:$0xff] }
 0x141   : > { %1330 = vmatprep.subr.bf16.mxu0 %v12664_v23  ;;  %1383 = vmatprep.subr.bf16.mxu1 %v12666_v29  ;;  %v12680_v23 = vcombine.high %v1539_v21, %v1543_v24  ;;  %v1547_v29 = vld [vmem:[#allocation5 + $0x340] sm:$0xff] }
 0x142   : > { %v12688_v36 = vcombine.high %v1547_v29, %v1551_v30  ;;  %v12687_v43 = vcombine.low %v1547_v29, %v1551_v30  ;;  %v1562_v29 = vld [vmem:[#allocation5 + $0x3b8] sm:$0xff] }
 0x144   : > { %1331 = vmatpush1.bf16.msra.mxu0 %v12663_v34  ;;  %1384 = vmatpush1.bf16.msra.mxu1 %v12665_v37  ;;  %v12679_v34 = vcombine.low %v1539_v21, %v1543_v24  ;;  %v1555_v37 = vld [vmem:[#allocation5 + $0x380] sm:$0xff]  ;;  %v12683_v24 = vcombine.low %v1541_v7, %v1545_v8 }
 0x145   : > { %1426 = vmatprep.subr.bf16.mxu0 %v12628_v38  ;;  %1479 = vmatprep.subr.bf16.mxu1 %v12630_v39  ;;  %v12690_v38 = vcombine.high %v1548_v31, %v1552_v33  ;;  %v1559_v39 = vld [vmem:[#allocation5 + $0x3a0] sm:$0xff]  ;;  %v1534_v31 = vld [vmem:[#allocation2 + $0x12] sm:$0xff] }
 0x146   : > { %v12695_v51 = vcombine.low %v1555_v37, %v1559_v39 }
 0x147   : > { %12671 = vmatmul.mubr.msk.bf16.vlgmr.msra.gmra.mrb[0].mxu0 %vm492_vm0, %v16651_v42  ;;  %12673 = vmatmul.mubr.msk.bf16.vlgmr.msra.gmra.mrb[0].mxu1 %vm492_vm0, %v16651_v42 }
 0x148   : > { %1427 = vmatpush1.bf16.msra.mxu0 %v12627_v45  ;;  %1480 = vmatpush1.bf16.msra.mxu1 %v12629_v47  ;;  %v12696_v45 = vcombine.high %v1555_v37, %v1559_v39  ;;  %v1567_v47 = vld [vmem:[#allocation5 + $0x3e0] sm:$0xff]  ;;  %v12700_v37 = vcombine.high %v1557_v25, %v1561_v26  ;;  %v1570_v39 = vld [vmem:[#allocation5 + $0x3f8] sm:$0xff] }
 0x149   : > { %1428 = vmatprep.subr.bf16.mxu0 %v12636_v48  ;;  %1481 = vmatprep.subr.bf16.mxu1 %v12638_v52  ;;  %v1564_v48 = vld [vmem:[#allocation5 + $0x3c8] sm:$0xff]  ;;  %v12704_v52 = vcombine.high %v1563_v46, %v1567_v47  ;;  %v12703_v58 = vcombine.low %v1563_v46, %v1567_v47 }
 0x14a   : > { %1362 = vmatprep.mubr.bf16.mxu0 %v16270_v0  ;;  %1415 = vmatprep.mubr.bf16.mxu1 %v16270_v0  ;;  %v12705_v59 = vcombine.low %v1564_v48, %v1568_v50 }
 0x14c   : > { %1429 = vmatpush1.bf16.msra.mxu0 %v12635_v55  ;;  %1482 = vmatpush1.bf16.msra.mxu1 %v12637_v56  ;;  %v1572_v55 = vld [vmem:[#allocation5 + $0x408] sm:$0xff]  ;;  %v12706_v56 = vcombine.high %v1564_v48, %v1568_v50  ;;  %v1574_v48 = vld [vmem:[#allocation5 + $0x418] sm:$0xff] }
 0x14d   : > { %1430 = vmatprep.subr.bf16.mxu0 %v12644_v57  ;;  %1483 = vmatprep.subr.bf16.mxu1 %v12646_v61  ;;  %v1576_v57 = vld [vmem:[#allocation5 + $0x428] sm:$0xff]  ;;  %v1579_v61 = vld [vmem:[#allocation5 + $0x440] sm:$0xff] }
 0x14e   : > { %v12719_v14 = vcombine.low %v1579_v61, %v1583_v62 }
 0x14f   : > { %12672 = vmatmul.mubr.msk.bf16.gmra.mrb[4].mxu0 %vm492_vm0, %v16659_v63  ;;  %12674 = vmatmul.mubr.msk.bf16.gmra.mrb[4].mxu1 %vm492_vm0, %v16659_v63 }
 0x150   : > { %1431 = vmatpush1.bf16.msra.mxu0 %v12643_v3  ;;  %1484 = vmatpush1.bf16.msra.mxu1 %v12645_v4  ;;  %v1580_v3 = vld [vmem:[#allocation5 + $0x448] sm:$0xff]  ;;  %v12714_v4 = vcombine.high %v1572_v55, %v1576_v57 }
 0x151   : > { %1432 = vmatprep.subr.bf16.mxu0 %v12652_v5  ;;  %1485 = vmatprep.subr.bf16.mxu1 %v12654_v9  ;;  %v1584_v5 = vld [vmem:[#allocation5 + $0x468] sm:$0xff]  ;;  %v12720_v9 = vcombine.high %v1579_v61, %v1583_v62 }
 0x152   : > { %1458 = vmatprep.mubr.bf16.mxu0 %v16270_v0  ;;  %1511 = vmatprep.mubr.bf16.mxu1 %v16270_v0  ;;  %v12721_v17 = vcombine.low %v1580_v3, %v1584_v5 }
 0x154   : > { %1433 = vmatpush1.bf16.msra.mxu0 %v12651_v11  ;;  %1486 = vmatpush1.bf16.msra.mxu1 %v12653_v2  ;;  %v1546_v11 = vld [vmem:[#allocation5 + $0x338] sm:$0xff]  ;;  %v12722_v2 = vcombine.high %v1580_v3, %v1584_v5  ;;  %v2085_v3 = vld [vmem:[#allocation5 + $0x488] sm:$0xff] }
 0x155   : > { %1434 = vmatprep.subr.bf16.mxu0 %v12660_v12  ;;  %1487 = vmatprep.subr.bf16.mxu1 %v12662_v16  ;;  %v1532_v12 = vld [vmem:[#allocation2 + $0x2] sm:$0xff]  ;;  %v1553_v16 = vld [vmem:[#allocation5 + $0x370] sm:$0xff]  ;;  %v12686_v21 = vcombine.high %v1542_v10, %v1546_v11 }
 0x156   : > { %v12691_v33 = vcombine.low %v1549_v15, %v1553_v16 }
 0x158   : > { %1435 = vmatpush1.bf16.msra.mxu0 %v12659_v18  ;;  %1488 = vmatpush1.bf16.msra.mxu1 %v12661_v19  ;;  %v12684_v18 = vcombine.high %v1541_v7, %v1545_v8  ;;  %v1550_v19 = vld [vmem:[#allocation5 + $0x358] sm:$0xff]  ;;  %v2092_v7 = vld [vmem:[#allocation5 + $0x4c0] sm:$0xff] }
 0x159   : > { %1436 = vmatprep.subr.bf16.mxu0 %v12668_v20  ;;  %1489 = vmatprep.subr.bf16.mxu1 %v12670_v22  ;;  %v1554_v20 = vld [vmem:[#allocation5 + $0x378] sm:$0xff]  ;;  %v16679_v22 = vpack.c.bf16 %v1533_v13, %v1532_v12  ;;  %v2096_v8 = vld [vmem:[#allocation5 + $0x4e0] sm:$0xff] }
 0x15a   : > { %v12694_v30 = vcombine.high %v1550_v19, %v1554_v20  ;;  %v2100_v13 = vld [vmem:[#allocation5 + $0x500] sm:$0xff] }
 0x15c   : > { %1437 = vmatpush1.bf16.msra.mxu0 %v12667_v27  ;;  %1490 = vmatpush1.bf16.msra.mxu1 %v12669_v28  ;;  %v12685_v27 = vcombine.low %v1542_v10, %v1546_v11  ;;  %v12692_v28 = vcombine.high %v1549_v15, %v1553_v16  ;;  %v2093_v10 = vld [vmem:[#allocation5 + $0x4c8] sm:$0xff]  ;;  %v12744_v16 = vcombine.high %v2092_v7, %v2096_v8 }
 0x15d   : > { %1833 = vmatprep.subr.bf16.mxu0 %v12680_v23  ;;  %1886 = vmatprep.subr.bf16.mxu1 %v12682_v32  ;;  %v1558_v23 = vld [vmem:[#allocation5 + $0x398] sm:$0xff]  ;;  %v2097_v11 = vld [vmem:[#allocation5 + $0x4e8] sm:$0xff] }
 0x15e   : > { %v1535_v32 = vld [vmem:[#allocation2 + $0x1a] sm:$0xff]  ;;  %v12701_v46 = vcombine.low %v1558_v23, %v1562_v29 }
 0x15f   : > { %12675 = vmatmul.mubr.msk.bf16.vlgmr.msra.gmra.mrb[8].mxu0 %vm492_vm0, %v16651_v42  ;;  %12677 = vmatmul.mubr.msk.bf16.vlgmr.msra.gmra.mrb[8].mxu1 %vm492_vm0, %v16651_v42  ;;  %v12697_v42 = vcombine.low %v1556_v40, %v1560_v41  ;;  %v12702_v40 = vcombine.high %v1558_v23, %v1562_v29  ;;  %v16687_v41 = vpack.c.bf16 %v1535_v32, %v1534_v31 }
 0x160   : > { %1834 = vmatpush1.bf16.msra.mxu0 %v12679_v34  ;;  %1887 = vmatpush1.bf16.msra.mxu1 %v12681_v35  ;;  %v1565_v34 = vld [vmem:[#allocation5 + $0x3d0] sm:$0xff] }
 0x161   : > { %1835 = vmatprep.subr.bf16.mxu0 %v12688_v36  ;;  %1888 = vmatprep.subr.bf16.mxu1 %v12690_v38  ;;  %v1569_v35 = vld [vmem:[#allocation5 + $0x3f0] sm:$0xff]  ;;  %v12693_v36 = vcombine.low %v1550_v19, %v1554_v20  ;;  %v1566_v38 = vld [vmem:[#allocation5 + $0x3d8] sm:$0xff]  ;;  %v12746_v19 = vcombine.high %v2093_v10, %v2097_v11  ;;  %v12743_v20 = vcombine.low %v2092_v7, %v2096_v8 }
 0x162   : > { %1468 = vmatprep.mubr.bf16.mxu0 %v16270_v0  ;;  %1521 = vmatprep.mubr.bf16.mxu1 %v16270_v0  ;;  %v12708_v47 = vcombine.high %v1565_v34, %v1569_v35  ;;  %v12710_v50 = vcombine.high %v1566_v38, %v1570_v39  ;;  %v12709_v53 = vcombine.low %v1566_v38, %v1570_v39  ;;  %v2128_v38 = vld [vmem:[#allocation5 + $0x5e0] sm:$0xff]  ;;  %v2103_v8 = vld [vmem:[#allocation5 + $0x518] sm:$0xff] }
 0x164   : > { %1836 = vmatpush1.bf16.msra.mxu0 %v12687_v43  ;;  %1889 = vmatpush1.bf16.msra.mxu1 %v12689_v44  ;;  %v12699_v43 = vcombine.low %v1557_v25, %v1561_v26  ;;  %v1573_v44 = vld [vmem:[#allocation5 + $0x410] sm:$0xff]  ;;  %v12745_v25 = vcombine.low %v2093_v10, %v2097_v11 }
 0x165   : > { %1837 = vmatprep.subr.bf16.mxu0 %v12696_v45  ;;  %1890 = vmatprep.subr.bf16.mxu1 %v12698_v49  ;;  %v1577_v45 = vld [vmem:[#allocation5 + $0x430] sm:$0xff]  ;;  %v1578_v49 = vld [vmem:[#allocation5 + $0x438] sm:$0xff] }
 0x166   : > { %v12716_v54 = vcombine.high %v1573_v44, %v1577_v45  ;;  %v12717_v61 = vcombine.low %v1574_v48, %v1578_v49  ;;  %v2079_v10 = vld [vmem:[#allocation2 + $0x13] sm:$0xff]  ;;  %v2080_v11 = vld [vmem:[#allocation2 + $0x1b] sm:$0xff] }
 0x167   : > { %12676 = vmatmul.mubr.msk.bf16.gmra.mrb[12].mxu0 %vm492_vm0, %v16659_v63  ;;  %12678 = vmatmul.mubr.msk.bf16.gmra.mrb[12].mxu1 %vm492_vm0, %v16659_v63  ;;  %v12713_v63 = vcombine.low %v1572_v55, %v1576_v57  ;;  %v1582_v55 = vld [vmem:[#allocation5 + $0x458] sm:$0xff]  ;;  %v12718_v57 = vcombine.high %v1574_v48, %v1578_v49  ;;  %v2090_v48 = vld [vmem:[#allocation5 + $0x4b0] sm:$0xff] }
 0x168   : > { %1838 = vmatpush1.bf16.msra.mxu0 %v12695_v51  ;;  %1891 = vmatpush1.bf16.msra.mxu1 %v12697_v42  ;;  %v12707_v51 = vcombine.low %v1565_v34, %v1569_v35  ;;  %v1581_v42 = vld [vmem:[#allocation5 + $0x450] sm:$0xff]  ;;  %v2121_v34 = vld [vmem:[#allocation5 + $0x5a8] sm:$0xff] }
 0x169   : > { %1839 = vmatprep.subr.bf16.mxu0 %v12704_v52  ;;  %1892 = vmatprep.subr.bf16.mxu1 %v12706_v56  ;;  %v1585_v52 = vld [vmem:[#allocation5 + $0x470] sm:$0xff]  ;;  %v1586_v56 = vld [vmem:[#allocation5 + $0x478] sm:$0xff] }
 0x16a   : > { %1865 = vmatprep.mubr.bf16.mxu0 %v16270_v0  ;;  %1918 = vmatprep.mubr.bf16.mxu1 %v16270_v0  ;;  %v12724_v62 = vcombine.high %v1581_v42, %v1585_v52  ;;  %v12726_v5 = vcombine.high %v1582_v55, %v1586_v56 }
 0x16c   : > { %1840 = vmatpush1.bf16.msra.mxu0 %v12703_v58  ;;  %1893 = vmatpush1.bf16.msra.mxu1 %v12705_v59  ;;  %v12715_v58 = vcombine.low %v1573_v44, %v1577_v45  ;;  %v2084_v59 = vld [vmem:[#allocation5 + $0x480] sm:$0xff]  ;;  %v2129_v44 = vld [vmem:[#allocation5 + $0x5e8] sm:$0xff] }
 0x16d   : > { %1841 = vmatprep.subr.bf16.mxu0 %v12712_v60  ;;  %1894 = vmatprep.subr.bf16.mxu1 %v12714_v4  ;;  %v2088_v60 = vld [vmem:[#allocation5 + $0x4a0] sm:$0xff]  ;;  %v2089_v4 = vld [vmem:[#allocation5 + $0x4a8] sm:$0xff] }
 0x16e   : > { %v12735_v12 = vcombine.low %v2084_v59, %v2088_v60  ;;  %v12737_v15 = vcombine.low %v2085_v3, %v2089_v4 }
 0x170   : > { %1842 = vmatpush1.bf16.msra.mxu0 %v12711_v6  ;;  %1895 = vmatpush1.bf16.msra.mxu1 %v12713_v63  ;;  %v12723_v6 = vcombine.low %v1581_v42, %v1585_v52  ;;  %v12725_v63 = vcombine.low %v1582_v55, %v1586_v56  ;;  %v2077_v52 = vld [vmem:[#allocation2 + $0x3] sm:$0xff]  ;;  %v2094_v55 = vld [vmem:[#allocation5 + $0x4d0] sm:$0xff] }
 0x171   : > { %1843 = vmatprep.subr.bf16.mxu0 %v12720_v9  ;;  %1896 = vmatprep.subr.bf16.mxu1 %v12722_v2  ;;  %v12736_v9 = vcombine.high %v2084_v59, %v2088_v60  ;;  %v12738_v2 = vcombine.high %v2085_v3, %v2089_v4  ;;  %v2098_v56 = vld [vmem:[#allocation5 + $0x4f0] sm:$0xff]  ;;  %v2095_v59 = vld [vmem:[#allocation5 + $0x4d8] sm:$0xff] }
 0x172   : > { %v2099_v60 = vld [vmem:[#allocation5 + $0x4f8] sm:$0xff]  ;;  %v2102_v4 = vld [vmem:[#allocation5 + $0x510] sm:$0xff]  ;;  %v12748_v7 = vcombine.high %v2094_v55, %v2098_v56 }
 0x174   : > { %1844 = vmatpush1.bf16.msra.mxu0 %v12719_v14  ;;  %1897 = vmatpush1.bf16.msra.mxu1 %v12721_v17  ;;  %v2104_v14 = vld [vmem:[#allocation5 + $0x520] sm:$0xff]  ;;  %v2101_v17 = vld [vmem:[#allocation5 + $0x508] sm:$0xff] }
 0x175   : > { %1939 = vmatprep.subr.bf16.mxu0 %v12684_v18  ;;  %1992 = vmatprep.subr.bf16.mxu1 %v12686_v21  ;;  %v2105_v18 = vld [vmem:[#allocation5 + $0x528] sm:$0xff]  ;;  %v2108_v21 = vld [vmem:[#allocation5 + $0x540] sm:$0xff]  ;;  %v12752_v26 = vcombine.high %v2100_v13, %v2104_v14  ;;  %v12751_v29 = vcombine.low %v2100_v13, %v2104_v14  ;;  %v2114_v13 = vld [vmem:[#allocation5 + $0x570] sm:$0xff]  ;;  %v12749_v14 = vcombine.low %v2095_v59, %v2099_v60 }
 0x176   : > { %v12754_v23 = vcombine.high %v2101_v17, %v2105_v18  ;;  %v12753_v31 = vcombine.low %v2101_v17, %v2105_v18  ;;  %v2115_v17 = vld [vmem:[#allocation5 + $0x578] sm:$0xff] }
 0x177   : > { %12727 = vmatmul.mubr.msk.bf16.vlgmr.msra.gmra.mrb[0].mxu0 %vm492_vm0, %v16679_v22  ;;  %12729 = vmatmul.mubr.msk.bf16.vlgmr.msra.gmra.mrb[0].mxu1 %vm492_vm0, %v16679_v22 }
 0x178   : > { %1940 = vmatpush1.bf16.msra.mxu0 %v12683_v24  ;;  %1993 = vmatpush1.bf16.msra.mxu1 %v12685_v27  ;;  %v2112_v24 = vld [vmem:[#allocation5 + $0x560] sm:$0xff]  ;;  %v2109_v27 = vld [vmem:[#allocation5 + $0x548] sm:$0xff] }
 0x179   : > { %1941 = vmatprep.subr.bf16.mxu0 %v12692_v28  ;;  %1994 = vmatprep.subr.bf16.mxu1 %v12694_v30  ;;  %v2113_v28 = vld [vmem:[#allocation5 + $0x568] sm:$0xff]  ;;  %v2116_v30 = vld [vmem:[#allocation5 + $0x580] sm:$0xff]  ;;  %v12760_v32 = vcombine.high %v2108_v21, %v2112_v24 }
 0x17a   : > { %1875 = vmatprep.mubr.bf16.mxu0 %v16270_v0  ;;  %1928 = vmatprep.mubr.bf16.mxu1 %v16270_v0  ;;  %v12762_v35 = vcombine.high %v2109_v27, %v2113_v28  ;;  %v12761_v39 = vcombine.low %v2109_v27, %v2113_v28  ;;  %v2119_v27 = vld [vmem:[#allocation5 + $0x598] sm:$0xff] }
 0x17b   : > { %v2123_v28 = vld [vmem:[#allocation5 + $0x5b8] sm:$0xff] }
 0x17c   : > { %1942 = vmatpush1.bf16.msra.mxu0 %v12691_v33  ;;  %1995 = vmatpush1.bf16.msra.mxu1 %v12693_v36  ;;  %v2117_v33 = vld [vmem:[#allocation5 + $0x588] sm:$0xff]  ;;  %v12759_v36 = vcombine.low %v2108_v21, %v2112_v24  ;;  %v2118_v21 = vld [vmem:[#allocation5 + $0x590] sm:$0xff] }
 0x17d   : > { %1943 = vmatprep.subr.bf16.mxu0 %v12700_v37  ;;  %1996 = vmatprep.subr.bf16.mxu1 %v12702_v40  ;;  %v2124_v37 = vld [vmem:[#allocation5 + $0x5c0] sm:$0xff]  ;;  %v12770_v45 = vcombine.high %v2117_v33, %v2121_v34  ;;  %v2122_v24 = vld [vmem:[#allocation5 + $0x5b0] sm:$0xff] }
 0x17e   : > { %v12776_v49 = vcombine.high %v2124_v37, %v2128_v38 }
 0x17f   : > { %12728 = vmatmul.mubr.msk.bf16.gmra.mrb[4].mxu0 %vm492_vm0, %v16687_v41  ;;  %12730 = vmatmul.mubr.msk.bf16.gmra.mrb[4].mxu1 %vm492_vm0, %v16687_v41 }
 0x180   : > { %1944 = vmatpush1.bf16.msra.mxu0 %v12699_v43  ;;  %1997 = vmatpush1.bf16.msra.mxu1 %v12701_v46  ;;  %v2125_v43 = vld [vmem:[#allocation5 + $0x5c8] sm:$0xff] }
 0x181   : > { %1945 = vmatprep.subr.bf16.mxu0 %v12708_v47  ;;  %1998 = vmatprep.subr.bf16.mxu1 %v12710_v50  ;;  %v2086_v47 = vld [vmem:[#allocation5 + $0x490] sm:$0xff]  ;;  %v2087_v50 = vld [vmem:[#allocation5 + $0x498] sm:$0xff]  ;;  %v12778_v42 = vcombine.high %v2125_v43, %v2129_v44 }
 0x182   : > { %1971 = vmatprep.mubr.bf16.mxu0 %v16270_v0  ;;  %2024 = vmatprep.mubr.bf16.mxu1 %v16270_v0  ;;  %v12739_v3 = vcombine.low %v2086_v47, %v2090_v48 }
 0x184   : > { %1946 = vmatpush1.bf16.msra.mxu0 %v12707_v51  ;;  %1999 = vmatpush1.bf16.msra.mxu1 %v12709_v53  ;;  %v2091_v51 = vld [vmem:[#allocation5 + $0x4b8] sm:$0xff]  ;;  %v2078_v53 = vld [vmem:[#allocation2 + $0xb] sm:$0xff] }
 0x185   : > { %1947 = vmatprep.subr.bf16.mxu0 %v12716_v54  ;;  %2000 = vmatprep.subr.bf16.mxu1 %v12718_v57  ;;  %v12775_v54 = vcombine.low %v2124_v37, %v2128_v38  ;;  %v12777_v57 = vcombine.low %v2125_v43, %v2129_v44  ;;  %v2629_v37 = vld [vmem:[#allocation5 + $0x600] sm:$0xff]  ;;  %v2630_v43 = vld [vmem:[#allocation5 + $0x608] sm:$0xff] }
 0x186   : > { %v2633_v38 = vld [vmem:[#allocation5 + $0x620] sm:$0xff]  ;;  %v2634_v44 = vld [vmem:[#allocation5 + $0x628] sm:$0xff] }
 0x188   : > { %1948 = vmatpush1.bf16.msra.mxu0 %v12715_v58  ;;  %2001 = vmatpush1.bf16.msra.mxu1 %v12717_v61  ;;  %v12740_v58 = vcombine.high %v2086_v47, %v2090_v48  ;;  %v12742_v61 = vcombine.high %v2087_v50, %v2091_v51  ;;  %v2637_v47 = vld [vmem:[#allocation5 + $0x640] sm:$0xff] }
 0x189   : > { %1949 = vmatprep.subr.bf16.mxu0 %v12724_v62  ;;  %2002 = vmatprep.subr.bf16.mxu1 %v12726_v5  ;;  %v16707_v62 = vpack.c.bf16 %v2078_v53, %v2077_v52  ;;  %v2106_v5 = vld [vmem:[#allocation5 + $0x530] sm:$0xff]  ;;  %v2641_v48 = vld [vmem:[#allocation5 + $0x660] sm:$0xff]  ;;  %v12791_v52 = vcombine.low %v2629_v37, %v2633_v38 }
 0x18a   : > { %v2645_v53 = vld [vmem:[#allocation5 + $0x680] sm:$0xff] }
 0x18c   : > { %1950 = vmatpush1.bf16.msra.mxu0 %v12723_v6  ;;  %2003 = vmatpush1.bf16.msra.mxu1 %v12725_v63  ;;  %v12741_v6 = vcombine.low %v2087_v50, %v2091_v51  ;;  %v2107_v63 = vld [vmem:[#allocation5 + $0x538] sm:$0xff]  ;;  %v2638_v50 = vld [vmem:[#allocation5 + $0x648] sm:$0xff] }
 0x18d   : > { %2378 = vmatprep.subr.bf16.mxu0 %v12736_v9  ;;  %2431 = vmatprep.subr.bf16.mxu1 %v12738_v2  ;;  %v12750_v9 = vcombine.high %v2095_v59, %v2099_v60  ;;  %v12747_v2 = vcombine.low %v2094_v55, %v2098_v56  ;;  %v12758_v18 = vcombine.high %v2103_v8, %v2107_v63  ;;  %v2642_v51 = vld [vmem:[#allocation5 + $0x668] sm:$0xff] }
 0x18e   : > { %v12793_v55 = vcombine.low %v2630_v43, %v2634_v44  ;;  %v12800_v56 = vcombine.high %v2637_v47, %v2641_v48  ;;  %v12802_v59 = vcombine.high %v2638_v50, %v2642_v51  ;;  %v12799_v60 = vcombine.low %v2637_v47, %v2641_v48  ;;  %v2648_v48 = vld [vmem:[#allocation5 + $0x698] sm:$0xff] }
 0x18f   : > { %12731 = vmatmul.mubr.msk.bf16.vlgmr.msra.gmra.mrb[8].mxu0 %vm492_vm0, %v16679_v22  ;;  %12733 = vmatmul.mubr.msk.bf16.vlgmr.msra.gmra.mrb[8].mxu1 %vm492_vm0, %v16679_v22  ;;  %v2120_v22 = vld [vmem:[#allocation5 + $0x5a0] sm:$0xff] }
 0x190   : > { %2379 = vmatpush1.bf16.msra.mxu0 %v12735_v12  ;;  %2432 = vmatpush1.bf16.msra.mxu1 %v12737_v15  ;;  %v12768_v40 = vcombine.high %v2116_v30, %v2120_v22  ;;  %v12767_v46 = vcombine.low %v2116_v30, %v2120_v22  ;;  %v2110_v12 = vld [vmem:[#allocation5 + $0x550] sm:$0xff]  ;;  %v12756_v15 = vcombine.high %v2102_v4, %v2106_v5 }
 0x191   : > { %2380 = vmatprep.subr.bf16.mxu0 %v12744_v16  ;;  %2433 = vmatprep.subr.bf16.mxu1 %v12746_v19  ;;  %v2111_v16 = vld [vmem:[#allocation5 + $0x558] sm:$0xff]  ;;  %v16715_v19 = vpack.c.bf16 %v2080_v11, %v2079_v10  ;;  %v2126_v30 = vld [vmem:[#allocation5 + $0x5d0] sm:$0xff] }
 0x192   : > { %1981 = vmatprep.mubr.bf16.mxu0 %v16270_v0  ;;  %2034 = vmatprep.mubr.bf16.mxu1 %v16270_v0  ;;  %v2130_v22 = vld [vmem:[#allocation5 + $0x5f0] sm:$0xff] }
 0x194   : > { %2381 = vmatpush1.bf16.msra.mxu0 %v12743_v20  ;;  %2434 = vmatpush1.bf16.msra.mxu1 %v12745_v25  ;;  %v12755_v20 = vcombine.low %v2102_v4, %v2106_v5  ;;  %v12757_v25 = vcombine.low %v2103_v8, %v2107_v63  ;;  %v12801_v4 = vcombine.low %v2638_v50, %v2642_v51  ;;  %v2624_v50 = vld [vmem:[#allocation2 + $0x14] sm:$0xff]  ;;  %v2625_v51 = vld [vmem:[#allocation2 + $0x1c] sm:$0xff] }
 0x195   : > { %2382 = vmatprep.subr.bf16.mxu0 %v12752_v26  ;;  %2435 = vmatprep.subr.bf16.mxu1 %v12754_v23  ;;  %v12764_v26 = vcombine.high %v2110_v12, %v2114_v13  ;;  %v12766_v23 = vcombine.high %v2111_v16, %v2115_v17 }
 0x197   : > { %12732 = vmatmul.mubr.msk.bf16.gmra.mrb[12].mxu0 %vm492_vm0, %v16687_v41  ;;  %12734 = vmatmul.mubr.msk.bf16.gmra.mrb[12].mxu1 %vm492_vm0, %v16687_v41  ;;  %v12769_v41 = vcombine.low %v2117_v33, %v2121_v34  ;;  %v2127_v33 = vld [vmem:[#allocation5 + $0x5d8] sm:$0xff] }
 0x198   : > { %2383 = vmatpush1.bf16.msra.mxu0 %v12751_v29  ;;  %2436 = vmatpush1.bf16.msra.mxu1 %v12753_v31  ;;  %v12763_v29 = vcombine.low %v2110_v12, %v2114_v13  ;;  %v12765_v31 = vcombine.low %v2111_v16, %v2115_v17  ;;  %v2131_v34 = vld [vmem:[#allocation5 + $0x5f8] sm:$0xff]  ;;  %v2666_v12 = vld [vmem:[#allocation5 + $0x728] sm:$0xff]  ;;  %v2673_v16 = vld [vmem:[#allocation5 + $0x760] sm:$0xff] }
 0x199   : > { %2384 = vmatprep.subr.bf16.mxu0 %v12760_v32  ;;  %2437 = vmatprep.subr.bf16.mxu1 %v12762_v35  ;;  %v12772_v32 = vcombine.high %v2118_v21, %v2122_v24  ;;  %v12774_v35 = vcombine.high %v2119_v27, %v2123_v28 }
 0x19a   : > { %2410 = vmatprep.mubr.bf16.mxu0 %v16270_v0  ;;  %2463 = vmatprep.mubr.bf16.mxu1 %v16270_v0 }
 0x19c   : > { %2385 = vmatpush1.bf16.msra.mxu0 %v12759_v36  ;;  %2438 = vmatpush1.bf16.msra.mxu1 %v12761_v39  ;;  %v12771_v36 = vcombine.low %v2118_v21, %v2122_v24  ;;  %v12773_v39 = vcombine.low %v2119_v27, %v2123_v28  ;;  %v2674_v21 = vld [vmem:[#allocation5 + $0x768] sm:$0xff]  ;;  %v2635_v27 = vld [vmem:[#allocation5 + $0x630] sm:$0xff] }
 0x19d   : > { %2386 = vmatprep.subr.bf16.mxu0 %v12768_v40  ;;  %2439 = vmatprep.subr.bf16.mxu1 %v12770_v45  ;;  %v12780_v40 = vcombine.high %v2126_v30, %v2130_v22  ;;  %v12782_v45 = vcombine.high %v2127_v33, %v2131_v34 }
 0x1a0   : > { %2387 = vmatpush1.bf16.msra.mxu0 %v12767_v46  ;;  %2440 = vmatpush1.bf16.msra.mxu1 %v12769_v41  ;;  %v12779_v46 = vcombine.low %v2126_v30, %v2130_v22  ;;  %v12781_v41 = vcombine.low %v2127_v33, %v2131_v34  ;;  %v2622_v22 = vld [vmem:[#allocation2 + $0x4] sm:$0xff]  ;;  %v2639_v33 = vld [vmem:[#allocation5 + $0x650] sm:$0xff] }
 0x1a1   : > { %2388 = vmatprep.subr.bf16.mxu0 %v12776_v49  ;;  %2441 = vmatprep.subr.bf16.mxu1 %v12778_v42  ;;  %v12792_v49 = vcombine.high %v2629_v37, %v2633_v38  ;;  %v12794_v42 = vcombine.high %v2630_v43, %v2634_v44  ;;  %v2643_v34 = vld [vmem:[#allocation5 + $0x670] sm:$0xff]  ;;  %v2640_v37 = vld [vmem:[#allocation5 + $0x658] sm:$0xff] }
 0x1a2   : > { %v2644_v38 = vld [vmem:[#allocation5 + $0x678] sm:$0xff]  ;;  %v2647_v44 = vld [vmem:[#allocation5 + $0x690] sm:$0xff]  ;;  %v12804_v47 = vcombine.high %v2639_v33, %v2643_v34 }
 0x1a4   : > { %2389 = vmatpush1.bf16.msra.mxu0 %v12775_v54  ;;  %2442 = vmatpush1.bf16.msra.mxu1 %v12777_v57  ;;  %v2649_v54 = vld [vmem:[#allocation5 + $0x6a0] sm:$0xff]  ;;  %v2646_v57 = vld [vmem:[#allocation5 + $0x688] sm:$0xff] }
 0x1a5   : > { %2484 = vmatprep.subr.bf16.mxu0 %v12740_v58  ;;  %2537 = vmatprep.subr.bf16.mxu1 %v12742_v61  ;;  %v2650_v58 = vld [vmem:[#allocation5 + $0x6a8] sm:$0xff]  ;;  %v2653_v61 = vld [vmem:[#allocation5 + $0x6c0] sm:$0xff]  ;;  %v12808_v5 = vcombine.high %v2645_v53, %v2649_v54  ;;  %v12807_v63 = vcombine.low %v2645_v53, %v2649_v54  ;;  %v2659_v53 = vld [vmem:[#allocation5 + $0x6f0] sm:$0xff]  ;;  %v12805_v54 = vcombine.low %v2640_v37, %v2644_v38 }
 0x1a6   : > { %v12810_v8 = vcombine.high %v2646_v57, %v2650_v58  ;;  %v12809_v10 = vcombine.low %v2646_v57, %v2650_v58  ;;  %v2660_v57 = vld [vmem:[#allocation5 + $0x6f8] sm:$0xff] }
 0x1a7   : > { %12783 = vmatmul.mubr.msk.bf16.vlgmr.msra.gmra.mrb[0].mxu0 %vm492_vm0, %v16707_v62  ;;  %12785 = vmatmul.mubr.msk.bf16.vlgmr.msra.gmra.mrb[0].mxu1 %vm492_vm0, %v16707_v62 }
 0x1a8   : > { %2485 = vmatpush1.bf16.msra.mxu0 %v12739_v3  ;;  %2538 = vmatpush1.bf16.msra.mxu1 %v12741_v6  ;;  %v2657_v3 = vld [vmem:[#allocation5 + $0x6e0] sm:$0xff]  ;;  %v2654_v6 = vld [vmem:[#allocation5 + $0x6c8] sm:$0xff] }
 0x1a9   : > { %2486 = vmatprep.subr.bf16.mxu0 %v12748_v7  ;;  %2539 = vmatprep.subr.bf16.mxu1 %v12750_v9  ;;  %v2658_v7 = vld [vmem:[#allocation5 + $0x6e8] sm:$0xff]  ;;  %v2661_v9 = vld [vmem:[#allocation5 + $0x700] sm:$0xff]  ;;  %v12816_v11 = vcombine.high %v2653_v61, %v2657_v3 }
 0x1aa   : > { %2420 = vmatprep.mubr.bf16.mxu0 %v16270_v0  ;;  %2473 = vmatprep.mubr.bf16.mxu1 %v16270_v0  ;;  %v12818_v13 = vcombine.high %v2654_v6, %v2658_v7  ;;  %v12817_v17 = vcombine.low %v2654_v6, %v2658_v7  ;;  %v2664_v6 = vld [vmem:[#allocation5 + $0x718] sm:$0xff] }
 0x1ab   : > { %v2668_v7 = vld [vmem:[#allocation5 + $0x738] sm:$0xff] }
 0x1ac   : > { %2487 = vmatpush1.bf16.msra.mxu0 %v12747_v2  ;;  %2540 = vmatpush1.bf16.msra.mxu1 %v12749_v14  ;;  %v2662_v2 = vld [vmem:[#allocation5 + $0x708] sm:$0xff]  ;;  %v12815_v14 = vcombine.low %v2653_v61, %v2657_v3  ;;  %v2663_v61 = vld [vmem:[#allocation5 + $0x710] sm:$0xff] }
 0x1ad   : > { %2488 = vmatprep.subr.bf16.mxu0 %v12756_v15  ;;  %2541 = vmatprep.subr.bf16.mxu1 %v12758_v18  ;;  %v2669_v15 = vld [vmem:[#allocation5 + $0x740] sm:$0xff]  ;;  %v12826_v24 = vcombine.high %v2662_v2, %v2666_v12  ;;  %v2667_v3 = vld [vmem:[#allocation5 + $0x730] sm:$0xff] }
 0x1ae   : > { %v12832_v28 = vcombine.high %v2669_v15, %v2673_v16 }
 0x1af   : > { %12784 = vmatmul.mubr.msk.bf16.gmra.mrb[4].mxu0 %vm492_vm0, %v16715_v19  ;;  %12786 = vmatmul.mubr.msk.bf16.gmra.mrb[4].mxu1 %vm492_vm0, %v16715_v19 }
 0x1b0   : > { %2489 = vmatpush1.bf16.msra.mxu0 %v12755_v20  ;;  %2542 = vmatpush1.bf16.msra.mxu1 %v12757_v25  ;;  %v2670_v20 = vld [vmem:[#allocation5 + $0x748] sm:$0xff] }
 0x1b1   : > { %2490 = vmatprep.subr.bf16.mxu0 %v12764_v26  ;;  %2543 = vmatprep.subr.bf16.mxu1 %v12766_v23  ;;  %v2631_v26 = vld [vmem:[#allocation5 + $0x610] sm:$0xff]  ;;  %v2632_v23 = vld [vmem:[#allocation5 + $0x618] sm:$0xff]  ;;  %v12834_v30 = vcombine.high %v2670_v20, %v2674_v21 }
 0x1b2   : > { %2516 = vmatprep.mubr.bf16.mxu0 %v16270_v0  ;;  %2569 = vmatprep.mubr.bf16.mxu1 %v16270_v0  ;;  %v12795_v43 = vcombine.low %v2631_v26, %v2635_v27 }
 0x1b4   : > { %2491 = vmatpush1.bf16.msra.mxu0 %v12763_v29  ;;  %2544 = vmatpush1.bf16.msra.mxu1 %v12765_v31  ;;  %v2636_v29 = vld [vmem:[#allocation5 + $0x638] sm:$0xff]  ;;  %v2623_v31 = vld [vmem:[#allocation2 + $0xc] sm:$0xff] }
 0x1b5   : > { %2492 = vmatprep.subr.bf16.mxu0 %v12772_v32  ;;  %2545 = vmatprep.subr.bf16.mxu1 %v12774_v35  ;;  %v12831_v32 = vcombine.low %v2669_v15, %v2673_v16  ;;  %v12833_v35 = vcombine.low %v2670_v20, %v2674_v21  ;;  %v12829_v15 = vcombine.low %v2664_v6, %v2668_v7  ;;  %v14439_v21 = vld [vmem:[#allocation10 + $0x404] ss:$16 sps:$4 sm:$0xff]  }
 0x1b8   : > { %2493 = vmatpush1.bf16.msra.mxu0 %v12771_v36  ;;  %2546 = vmatpush1.bf16.msra.mxu1 %v12773_v39  ;;  %v12796_v36 = vcombine.high %v2631_v26, %v2635_v27  ;;  %v12798_v39 = vcombine.high %v2632_v23, %v2636_v29  ;;  %v14440_v26 = vld [vmem:[#allocation10 + $0x408] ss:$16 sps:$4 sm:$0xff]   ;;  %v14445_v27 = vld [vmem:[#allocation10 + $0x424] ss:$16 sps:$4 sm:$0xff]  }
 0x1b9   : > { %2494 = vmatprep.subr.bf16.mxu0 %v12780_v40  ;;  %2547 = vmatprep.subr.bf16.mxu1 %v12782_v45  ;;  %v16735_v40 = vpack.c.bf16 %v2623_v31, %v2622_v22  ;;  %v2651_v45 = vld [vmem:[#allocation5 + $0x6b0] sm:$0xff]  ;;  %v14455_v31 = vld [vmem:[#allocation10 + $0x460] ss:$16 sps:$4 sm:$0xff]  }
 0x1ba   : > { %v14452_v22 = vld [vmem:[#allocation10 + $0x448] ss:$16 sps:$4 sm:$0xff]  }
 0x1bc   : > { %2495 = vmatpush1.bf16.msra.mxu0 %v12779_v46  ;;  %2548 = vmatpush1.bf16.msra.mxu1 %v12781_v41  ;;  %v12797_v46 = vcombine.low %v2632_v23, %v2636_v29  ;;  %v2652_v41 = vld [vmem:[#allocation5 + $0x6b8] sm:$0xff]  ;;  %v14446_v23 = vld [vmem:[#allocation10 + $0x428] ss:$16 sps:$4 sm:$0xff]   ;;  %v14454_v29 = vld [vmem:[#allocation10 + $0x44c] ss:$16 sps:$4 sm:$0xff]  }
 0x1bd   : > { %2923 = vmatprep.subr.bf16.mxu0 %v12792_v49  ;;  %2976 = vmatprep.subr.bf16.mxu1 %v12794_v42  ;;  %v12806_v49 = vcombine.high %v2640_v37, %v2644_v38  ;;  %v12803_v42 = vcombine.low %v2639_v33, %v2643_v34  ;;  %v12814_v58 = vcombine.high %v2648_v48, %v2652_v41  ;;  %v14458_v33 = vld [vmem:[#allocation10 + $0x468] ss:$16 sps:$4 sm:$0xff]   ;;  %v14460_v34 = vld [vmem:[#allocation10 + $0x46c] ss:$16 sps:$4 sm:$0xff]   ;;  %v14461_v37 = vld [vmem:[#allocation10 + $0x480] ss:$16 sps:$4 sm:$0xff]  }
 0x1be   : > { %v14464_v38 = vld [vmem:[#allocation10 + $0x488] ss:$16 sps:$4 sm:$0xff]  }
 0x1bf   : > { %12787 = vmatmul.mubr.msk.bf16.vlgmr.msra.gmra.mrb[8].mxu0 %vm492_vm0, %v16707_v62  ;;  %12789 = vmatmul.mubr.msk.bf16.vlgmr.msra.gmra.mrb[8].mxu1 %vm492_vm0, %v16707_v62  ;;  %v2665_v62 = vld [vmem:[#allocation5 + $0x720] sm:$0xff] }
 0x1c0   : > { %2924 = vmatpush1.bf16.msra.mxu0 %v12791_v52  ;;  %2977 = vmatpush1.bf16.msra.mxu1 %v12793_v55  ;;  %v12824_v18 = vcombine.high %v2661_v9, %v2665_v62  ;;  %v12823_v25 = vcombine.low %v2661_v9, %v2665_v62  ;;  %v2655_v52 = vld [vmem:[#allocation5 + $0x6d0] sm:$0xff]  ;;  %v12812_v55 = vcombine.high %v2647_v44, %v2651_v45 }
 0x1c1   : > { %2925 = vmatprep.subr.bf16.mxu0 %v12800_v56  ;;  %2978 = vmatprep.subr.bf16.mxu1 %v12802_v59  ;;  %v2656_v56 = vld [vmem:[#allocation5 + $0x6d8] sm:$0xff]  ;;  %v2627_v59 = vpack.c.bf16 %v2625_v51, %v2624_v50  ;;  %v2671_v9 = vld [vmem:[#allocation5 + $0x750] sm:$0xff] }
 0x1c2   : > { %2526 = vmatprep.mubr.bf16.mxu0 %v16270_v0  ;;  %2579 = vmatprep.mubr.bf16.mxu1 %v16270_v0  ;;  %v2675_v62 = vld [vmem:[#allocation5 + $0x770] sm:$0xff]  ;;  %v14479_v50 = vld [vmem:[#allocation10 + $0x4e0] ss:$16 sps:$4 sm:$0xff]  }
 0x1c3   : > { %v12836_v16 = vcombine.high %v2671_v9, %v2675_v62  ;;  %v14482_v51 = vld [vmem:[#allocation10 + $0x4e8] ss:$16 sps:$4 sm:$0xff]  }
 0x1c4   : > { %2926 = vmatpush1.bf16.msra.mxu0 %v12799_v60  ;;  %2979 = vmatpush1.bf16.msra.mxu1 %v12801_v4  ;;  %v12811_v60 = vcombine.low %v2647_v44, %v2651_v45  ;;  %v12813_v4 = vcombine.low %v2648_v48, %v2652_v41  ;;  %v14470_v44 = vld [vmem:[#allocation10 + $0x4a8] ss:$16 sps:$4 sm:$0xff]   ;;  %v14475_v45 = vld [vmem:[#allocation10 + $0x4c4] ss:$16 sps:$4 sm:$0xff]  }
 0x1c5   : > { %2927 = vmatprep.subr.bf16.mxu0 %v12808_v5  ;;  %2980 = vmatprep.subr.bf16.mxu1 %v12810_v8  ;;  %v12820_v5 = vcombine.high %v2655_v52, %v2659_v53  ;;  %v12822_v8 = vcombine.high %v2656_v56, %v2660_v57  ;;  %v14476_v48 = vld [vmem:[#allocation10 + $0x4c8] ss:$16 sps:$4 sm:$0xff]   ;;  %v14481_v41 = vld [vmem:[#allocation10 + $0x4e4] ss:$16 sps:$4 sm:$0xff]  }
 0x1c7   : > { %12788 = vmatmul.mubr.msk.bf16.gmra.mrb[12].mxu0 %vm492_vm0, %v16715_v19  ;;  %12790 = vmatmul.mubr.msk.bf16.gmra.mrb[12].mxu1 %vm492_vm0, %v16715_v19  ;;  %v12825_v19 = vcombine.low %v2662_v2, %v2666_v12  ;;  %v2672_v2 = vld [vmem:[#allocation5 + $0x758] sm:$0xff] }
 0x1c8   : > { %2928 = vmatpush1.bf16.msra.mxu0 %v12807_v63  ;;  %2981 = vmatpush1.bf16.msra.mxu1 %v12809_v10  ;;  %v12819_v63 = vcombine.low %v2655_v52, %v2659_v53  ;;  %v12821_v10 = vcombine.low %v2656_v56, %v2660_v57  ;;  %v2676_v12 = vld [vmem:[#allocation5 + $0x778] sm:$0xff]  ;;  %v14490_v52 = vld [vmem:[#allocation10 + $0x50c] ss:$16 sps:$4 sm:$0xff]  }
 0x1c9   : > { %2929 = vmatprep.subr.bf16.mxu0 %v12816_v11  ;;  %2982 = vmatprep.subr.bf16.mxu1 %v12818_v13  ;;  %v12828_v11 = vcombine.high %v2663_v61, %v2667_v3  ;;  %v12830_v13 = vcombine.high %v2664_v6, %v2668_v7  ;;  %v12837_v20 = vcombine.low %v2672_v2, %v2676_v12  ;;  %v14485_v53 = vld [vmem:[#allocation10 + $0x500] ss:$16 sps:$4 sm:$0xff]   ;;  %v14496_v56 = vld [vmem:[#allocation10 + $0x52c] ss:$16 sps:$4 sm:$0xff]   ;;  %v14506_v7 = vld [vmem:[#allocation10 + $0x568] ss:$16 sps:$4 sm:$0xff]  }
 0x1ca   : > { %2955 = vmatprep.mubr.bf16.mxu0 %v16270_v0  ;;  %3008 = vmatprep.mubr.bf16.mxu1 %v16270_v0  ;;  %v14491_v57 = vld [vmem:[#allocation10 + $0x520] ss:$16 sps:$4 sm:$0xff]  }
 0x1cb   : > { %v14503_v6 = vld [vmem:[#allocation10 + $0x560] ss:$16 sps:$4 sm:$0xff]  }
 0x1cc   : > { %2930 = vmatpush1.bf16.msra.mxu0 %v12815_v14  ;;  %2983 = vmatpush1.bf16.msra.mxu1 %v12817_v17  ;;  %v12827_v14 = vcombine.low %v2663_v61, %v2667_v3  ;;  %v12838_v17 = vcombine.high %v2672_v2, %v2676_v12  ;;  %v14497_v61 = vld [vmem:[#allocation10 + $0x540] ss:$16 sps:$4 sm:$0xff]   ;;  %v14500_v3 = vld [vmem:[#allocation10 + $0x548] ss:$16 sps:$4 sm:$0xff]   ;;  %v14520_v12 = vld [vmem:[#allocation10 + $0x5ac] ss:$16 sps:$4 sm:$0xff]  }
 0x1cd   : > { %2931 = vmatprep.subr.bf16.mxu0 %v12824_v18  ;;  %2984 = vmatprep.subr.bf16.mxu1 %v12826_v24  ;;  %v12835_v18 = vcombine.low %v2671_v9, %v2675_v62  ;;  %v14442_v24 = vld [vmem:[#allocation10 + $0x40c] ss:$16 sps:$4 sm:$0xff]   ;;  %v14509_v9 = vld [vmem:[#allocation10 + $0x580] ss:$16 sps:$4 sm:$0xff]   ;;  %v14512_v62 = vld [vmem:[#allocation10 + $0x588] ss:$16 sps:$4 sm:$0xff]  }
 0x1ce   : > { %v14518_v2 = vld [vmem:[#allocation10 + $0x5a8] ss:$16 sps:$4 sm:$0xff]  }
 0x1d0   : > { %2932 = vmatpush1.bf16.msra.mxu0 %v12823_v25  ;;  %2985 = vmatpush1.bf16.msra.mxu1 %v12825_v19  ;;  %v14437_v25 = vld [vmem:[#allocation10 + $0x400] ss:$16 sps:$4 sm:$0xff]   ;;  %v14448_v19 = vld [vmem:[#allocation10 + $0x42c] ss:$16 sps:$4 sm:$0xff]  }
 0x1d1   : > { %2933 = vmatprep.subr.bf16.mxu0 %v12832_v28  ;;  %2986 = vmatprep.subr.bf16.mxu1 %v12834_v30  ;;  %v14443_v28 = vld [vmem:[#allocation10 + $0x420] ss:$16 sps:$4 sm:$0xff]  }
 0x1d2   : > { %v14449_v30 = vld [vmem:[#allocation10 + $0x440] ss:$16 sps:$4 sm:$0xff]  }
 0x1d4   : > { %2934 = vmatpush1.bf16.msra.mxu0 %v12831_v32  ;;  %2987 = vmatpush1.bf16.msra.mxu1 %v12833_v35  ;;  %v14457_v32 = vld [vmem:[#allocation10 + $0x464] ss:$16 sps:$4 sm:$0xff]  }
 0x1d5   : > { %3029 = vmatprep.subr.bf16.mxu0 %v12796_v36  ;;  %3082 = vmatprep.subr.bf16.mxu1 %v12798_v39  ;;  %v14463_v35 = vld [vmem:[#allocation10 + $0x484] ss:$16 sps:$4 sm:$0xff]   ;;  %v14466_v36 = vld [vmem:[#allocation10 + $0x48c] ss:$16 sps:$4 sm:$0xff]  }
 0x1d6   : > { %v14469_v39 = vld [vmem:[#allocation10 + $0x4a4] ss:$16 sps:$4 sm:$0xff]  }
 0x1d7   : > { %12839 = vmatmul.mubr.msk.bf16.vlgmr.msra.gmra.mrb[0].mxu0 %vm492_vm0, %v16735_v40  ;;  %12841 = vmatmul.mubr.msk.bf16.vlgmr.msra.gmra.mrb[0].mxu1 %vm492_vm0, %v16735_v40 }
 0x1d8   : > { %3030 = vmatpush1.bf16.msra.mxu0 %v12795_v43  ;;  %3083 = vmatpush1.bf16.msra.mxu1 %v12797_v46  ;;  %v14467_v43 = vld [vmem:[#allocation10 + $0x4a0] ss:$16 sps:$4 sm:$0xff]   ;;  %v14478_v46 = vld [vmem:[#allocation10 + $0x4cc] ss:$16 sps:$4 sm:$0xff]  }
 0x1d9   : > { %3031 = vmatprep.subr.bf16.mxu0 %v12804_v47  ;;  %3084 = vmatprep.subr.bf16.mxu1 %v12806_v49  ;;  %v14473_v47 = vld [vmem:[#allocation10 + $0x4c0] ss:$16 sps:$4 sm:$0xff]   ;;  %v14484_v49 = vld [vmem:[#allocation10 + $0x4ec] ss:$16 sps:$4 sm:$0xff]  }
 0x1da   : > { %2965 = vmatprep.mubr.bf16.mxu0 %v16270_v0  ;;  %3018 = vmatprep.mubr.bf16.mxu1 %v16270_v0 }
 0x1dc   : > { %3032 = vmatpush1.bf16.msra.mxu0 %v12803_v42  ;;  %3085 = vmatpush1.bf16.msra.mxu1 %v12805_v54  ;;  %v14487_v42 = vld [vmem:[#allocation10 + $0x504] ss:$16 sps:$4 sm:$0xff]   ;;  %v14488_v54 = vld [vmem:[#allocation10 + $0x508] ss:$16 sps:$4 sm:$0xff]  }
 0x1dd   : > { %3033 = vmatprep.subr.bf16.mxu0 %v12812_v55  ;;  %3086 = vmatprep.subr.bf16.mxu1 %v12814_v58  ;;  %v14493_v55 = vld [vmem:[#allocation10 + $0x524] ss:$16 sps:$4 sm:$0xff]   ;;  %v14494_v58 = vld [vmem:[#allocation10 + $0x528] ss:$16 sps:$4 sm:$0xff]  }
 0x1df   : > { %12840 = vmatmul.mubr.msk.bf16.gmra.mrb[4].mxu0 %vm492_vm0, %v2627_v59  ;;  %12842 = vmatmul.mubr.msk.bf16.gmra.mrb[4].mxu1 %vm492_vm0, %v2627_v59 }
 0x1e0   : > { %3034 = vmatpush1.bf16.msra.mxu0 %v12811_v60  ;;  %3087 = vmatpush1.bf16.msra.mxu1 %v12813_v4  ;;  %v14502_v60 = vld [vmem:[#allocation10 + $0x54c] ss:$16 sps:$4 sm:$0xff]   ;;  %v14505_v4 = vld [vmem:[#allocation10 + $0x564] ss:$16 sps:$4 sm:$0xff]  }
 0x1e1   : > { %3035 = vmatprep.subr.bf16.mxu0 %v12820_v5  ;;  %3088 = vmatprep.subr.bf16.mxu1 %v12822_v8  ;;  %v14508_v5 = vld [vmem:[#allocation10 + $0x56c] ss:$16 sps:$4 sm:$0xff]   ;;  %v14511_v8 = vld [vmem:[#allocation10 + $0x584] ss:$16 sps:$4 sm:$0xff]  }
 0x1e2   : > { %3061 = vmatprep.mubr.bf16.mxu0 %v16270_v0  ;;  %3114 = vmatprep.mubr.bf16.mxu1 %v16270_v0 }
 0x1e4   : > { %3036 = vmatpush1.bf16.msra.mxu0 %v12819_v63  ;;  %3089 = vmatpush1.bf16.msra.mxu1 %v12821_v10  ;;  %v14514_v63 = vld [vmem:[#allocation10 + $0x58c] ss:$16 sps:$4 sm:$0xff]   ;;  %v14515_v10 = vld [vmem:[#allocation10 + $0x5a0] ss:$16 sps:$4 sm:$0xff]  }
 0x1e5   : > { %3037 = vmatprep.subr.bf16.mxu0 %v12828_v11  ;;  %3090 = vmatprep.subr.bf16.mxu1 %v12830_v13  ;;  %v14517_v11 = vld [vmem:[#allocation10 + $0x5a4] ss:$16 sps:$4 sm:$0xff]  }
 0x1e6   : > { %v14523_v13 = vld [vmem:[#allocation10 + $0x5c4] ss:$16 sps:$4 sm:$0xff]  }
 0x1e8   : > { %3038 = vmatpush1.bf16.msra.mxu0 %v12827_v14  ;;  %3091 = vmatpush1.bf16.msra.mxu1 %v12829_v15  ;;  %v14521_v14 = vld [vmem:[#allocation10 + $0x5c0] ss:$16 sps:$4 sm:$0xff]   ;;  %v14526_v15 = vld [vmem:[#allocation10 + $0x5cc] ss:$16 sps:$4 sm:$0xff]  }
 0x1e9   : > { %3039 = vmatprep.subr.bf16.mxu0 %v12836_v16  ;;  %3092 = vmatprep.subr.bf16.mxu1 %v12838_v17  ;;  %v14524_v16 = vld [vmem:[#allocation10 + $0x5c8] ss:$16 sps:$4 sm:$0xff]   ;;  %v14529_v17 = vld [vmem:[#allocation10 + $0x5e4] ss:$16 sps:$4 sm:$0xff]  }
 0x1ec   : > { %3040 = vmatpush1.bf16.msra.mxu0 %v12835_v18  ;;  %3093 = vmatpush1.bf16.msra.mxu1 %v12837_v20  ;;  %v14532_v18 = vld [vmem:[#allocation10 + $0x5ec] ss:$16 sps:$4 sm:$0xff]   ;;  %v14527_v20 = vld [vmem:[#allocation10 + $0x5e0] ss:$16 sps:$4 sm:$0xff]  }
 0x1ed   : > { %4874 = vmatprep.subr.bf16.mxu0 %v14439_v21  ;;  %4960 = vmatprep.subr.bf16.mxu1 %v14442_v24  ;;  %v14530_v21 = vld [vmem:[#allocation10 + $0x5e8] ss:$16 sps:$4 sm:$0xff]   ;;  %v14535_v24 = vld [vmem:[#allocation10 + $0x604] ss:$16 sps:$4 sm:$0xff]  }
 0x1ef   : > { %12843 = vmatmul.mubr.msk.bf16.vlgmr.msra.gmra.mrb[8].mxu0 %vm492_vm0, %v16735_v40  ;;  %12845 = vmatmul.mubr.msk.bf16.vlgmr.msra.gmra.mrb[8].mxu1 %vm492_vm0, %v16735_v40  ;;  %v14472_v40 = vld [vmem:[#allocation10 + $0x4ac] ss:$16 sps:$4 sm:$0xff]  }
 0x1f0   : > { %3071 = vmatprep.mubr.bf16.mxu0 %v16270_v0  ;;  %3124 = vmatprep.mubr.bf16.mxu1 %v16270_v0  ;;  %v14451_v0 = vld [vmem:[#allocation10 + $0x444] ss:$16 sps:$4 sm:$0xff]  }
 0x1f1   : > { %4875 = vmatpush1.bf16.msra.mxu0 %v14437_v25  ;;  %4961 = vmatpush1.bf16.msra.mxu1 %v14440_v26  ;;  %v14538_v25 = vld [vmem:[#allocation10 + $0x60c] ss:$16 sps:$4 sm:$0xff]   ;;  %v3169_v26 = vlaneseq }
 0x1f2   : > { %4876 = vmatprep.subr.bf16.mxu0 %v14445_v27  ;;  %4962 = vmatprep.subr.bf16.mxu1 %v14448_v19 }
 0x1f3   : > { %v16755_v19 = vshrl.u32 %v3169_v26, 7 }
 0x1f5   : > { %4877 = vmatpush1.bf16.msra.mxu0 %v14443_v28  ;;  %4963 = vmatpush1.bf16.msra.mxu1 %v14446_v23 }
 0x1f6   : > { %4878 = vmatprep.subr.bf16.mxu0 %v14451_v0  ;;  %4964 = vmatprep.subr.bf16.mxu1 %v14454_v29 }
 0x1f7   : > { %12844 = vmatmul.mubr.msk.bf16.gmra.mrb[12].mxu0 %vm492_vm0, %v2627_v59  ;;  %12846 = vmatmul.mubr.msk.bf16.gmra.mrb[12].mxu1 %vm492_vm0, %v2627_v59  ;;  %v14499_v59 = vld [vmem:[#allocation10 + $0x544] ss:$16 sps:$4 sm:$0xff]  }
 0x1f9   : > { %4879 = vmatpush1.bf16.msra.mxu0 %v14449_v30  ;;  %4965 = vmatpush1.bf16.msra.mxu1 %v14452_v22 }
 0x1fa   : > { %4880 = vmatprep.subr.bf16.mxu0 %v14457_v32  ;;  %4966 = vmatprep.subr.bf16.mxu1 %v14460_v34  ;;  %v16761_v32 = vsub.s32 2, %v16755_v19 }
 0x1fd   : > { %4881 = vmatpush1.bf16.msra.mxu0 %v14455_v31  ;;  %4967 = vmatpush1.bf16.msra.mxu1 %v14458_v33  ;;  %v16758_v31 = vsub.s32 0, %v16755_v19  ;;  %v16764_v33 = vsub.s32 1, %v16755_v19 }
 0x1fe   : > { %4882 = vmatprep.subr.bf16.mxu0 %v14463_v35  ;;  %4968 = vmatprep.subr.bf16.mxu1 %v14466_v36  ;;  %v3167_v35 = vld [vmem:[#allocation8] sm:$0xff]  ;;  %v16767_v36 = vsub.s32 3, %v16755_v19 }
 0x201   : > { %4883 = vmatpush1.bf16.msra.mxu0 %v14461_v37  ;;  %4969 = vmatpush1.bf16.msra.mxu1 %v14464_v38  ;;  %v3172_v37 = vrot.slane %v3167_v35, %v16758_v31  ;;  %v3180_v38 = vrot.slane %v3167_v35, %v16761_v32 }
 0x202   : > { %4884 = vmatprep.subr.bf16.mxu0 %v14469_v39  ;;  %4970 = vmatprep.subr.bf16.mxu1 %v14472_v40  ;;  %v3176_v39 = vrot.slane %v3167_v35, %v16764_v33 }
 0x205   : > { %4885 = vmatpush1.bf16.msra.mxu0 %v14467_v43  ;;  %4971 = vmatpush1.bf16.msra.mxu1 %v14470_v44 }
 0x206   : > { %4886 = vmatprep.subr.bf16.mxu0 %v14475_v45  ;;  %4972 = vmatprep.subr.bf16.mxu1 %v14478_v46 }
 0x209   : > { %4887 = vmatpush1.bf16.msra.mxu0 %v14473_v47  ;;  %4973 = vmatpush1.bf16.msra.mxu1 %v14476_v48  ;;  %v3184_v47 = vrot.slane %v3167_v35, %v16767_v36 }
 0x20a   : > { %4888 = vmatprep.subr.bf16.mxu0 %v14481_v41  ;;  %4974 = vmatprep.subr.bf16.mxu1 %v14484_v49 }
 0x20d   : > { %4889 = vmatpush1.bf16.msra.mxu0 %v14479_v50  ;;  %4975 = vmatpush1.bf16.msra.mxu1 %v14482_v51 }
 0x20e   : > { %4890 = vmatprep.subr.bf16.mxu0 %v14487_v42  ;;  %4976 = vmatprep.subr.bf16.mxu1 %v14490_v52  ;;  %v16778_v52 = vsub.s32 4, %v16755_v19 }
 0x211   : > { %4891 = vmatpush1.bf16.msra.mxu0 %v14485_v53  ;;  %4977 = vmatpush1.bf16.msra.mxu1 %v14488_v54 }
 0x212   : > { %4892 = vmatprep.subr.bf16.mxu0 %v14493_v55  ;;  %4978 = vmatprep.subr.bf16.mxu1 %v14496_v56  ;;  %v16785_v55 = vsub.s32 6, %v16755_v19  ;;  %v3191_v56 = vsub.s32 5, %v16755_v19 }
 0x215   : > { %4893 = vmatpush1.bf16.msra.mxu0 %v14491_v57  ;;  %4979 = vmatpush1.bf16.msra.mxu1 %v14494_v58 }
 0x216   : > { %4894 = vmatprep.subr.bf16.mxu0 %v14499_v59  ;;  %4980 = vmatprep.subr.bf16.mxu1 %v14502_v60  ;;  %v3199_v60 = vsub.s32 7, %v16755_v19 }
 0x219   : > { %4895 = vmatpush1.bf16.msra.mxu0 %v14497_v61  ;;  %4981 = vmatpush1.bf16.msra.mxu1 %v14500_v3  ;;  %v16272_v61 = vmov 1983009808  }
 0x21a   : > { %4896 = vmatprep.subr.bf16.mxu0 %v14505_v4  ;;  %4982 = vmatprep.subr.bf16.mxu1 %v14508_v5  ;;  %v3310_v3 = vunpack.c.l.s4 %v16272_v61 }
 0x21d   : > { %4897 = vmatpush1.bf16.msra.mxu0 %v14503_v6  ;;  %4983 = vmatpush1.bf16.msra.mxu1 %v14506_v7 }
 0x21e   : > { %4898 = vmatprep.subr.bf16.mxu0 %v14511_v8  ;;  %4984 = vmatprep.subr.bf16.mxu1 %v14514_v63 }
 0x221   : > { %4899 = vmatpush1.bf16.msra.mxu0 %v14509_v9  ;;  %4985 = vmatpush1.bf16.msra.mxu1 %v14512_v62 }
 0x222   : > { %4900 = vmatprep.subr.bf16.mxu0 %v14517_v11  ;;  %4986 = vmatprep.subr.bf16.mxu1 %v14520_v12  ;;  %v3311_v12 = vunpack.c.0.s8 %v3310_v3 }
 0x225   : > { %4901 = vmatpush1.bf16.msra.mxu0 %v14515_v10  ;;  %4987 = vmatpush1.bf16.msra.mxu1 %v14518_v2  ;;  %v16804_v2 = vrot.slane %v3167_v35, %v16778_v52 }
 0x226   : > { %4902 = vmatprep.subr.bf16.mxu0 %v14523_v13  ;;  %4988 = vmatprep.subr.bf16.mxu1 %v14526_v15  ;;  %v16807_v13 = vrot.slane %v3167_v35, %v16785_v55  ;;  %v16811_v15 = vrot.slane %v3167_v35, %v3199_v60 }
 0x229   : > { %4903 = vmatpush1.bf16.msra.mxu0 %v14521_v14  ;;  %4989 = vmatpush1.bf16.msra.mxu1 %v14524_v16  ;;  %v16809_v14 = vrot.slane %v3167_v35, %v3191_v56 }
 0x22a   : > { %4904 = vmatprep.subr.bf16.mxu0 %v14529_v17  ;;  %4990 = vmatprep.subr.bf16.mxu1 %v14532_v18 }
 0x22d   : > { %4905 = vmatpush1.bf16.msra.mxu0 %v14527_v20  ;;  %4991 = vmatpush1.bf16.msra.mxu1 %v14530_v21 }
 0x22e   : > { %4917 = vmatprep.subr.bf16.mxu0 %v14535_v24  ;;  %5003 = vmatprep.subr.bf16.mxu1 %v14538_v25 }
 0x2aa   : > { %v2957_v27 = vpop.f32.mrb[0].mxu0  ;;  %v3010_v28 = vpop.f32.mrb[0].mxu1 }
 0x2ab   : > { %v2959_v23 = vpop.f32.mrb[1].mxu0  ;;  %v3012_v0 = vpop.f32.mrb[1].mxu1  ;;  %v3209_v49 = vadd.f32 %v3172_v37, %v2957_v27  ;;  %v16773_v50 = vadd.f32 %v3180_v38, %v3010_v28 }
 0x2ac   : > { %v2961_v29 = vpop.f32.mrb[2].mxu0  ;;  %v3014_v30 = vpop.f32.mrb[2].mxu1  ;;  %v16775_v51 = vadd.f32 %v3176_v39, %v2959_v23  ;;  %v16780_v53 = vadd.f32 %v3184_v47, %v3012_v0 }
 0x2ad   : > { %v2963_v22 = vpop.f32.mrb[3].mxu0  ;;  %v3016_v34 = vpop.f32.mrb[3].mxu1  ;;  %v16782_v54 = vadd.f32 %v3172_v37, %v2961_v29  ;;  %v3241_v57 = vmax.f32 %v3209_v49, 0.0  ;;  %v3243_v58 = vmax.f32 %v16773_v50, 0.0  ;;  %v3219_v4 = vadd.f32 %v3180_v38, %v3014_v30 }
 0x2ae   : > { %v3242_v59 = vmax.f32 %v16775_v51, 0.0  ;;  %v3218_v5 = vadd.f32 %v3176_v39, %v2963_v22  ;;  %v3244_v6 = vmax.f32 %v16780_v53, 0.0  ;;  %v3220_v8 = vadd.f32 %v3184_v47, %v3016_v34 }
 0x2af   : > { %v3249_v7 = vmax.f32 %v16782_v54, 0.0  ;;  %v3251_v16 = vmax.f32 %v3219_v4, 0.0  ;;  %v16820_v29 = vsub.s32 %v3311_v12, %v16755_v19 }
 0x2b0   : > { %v3250_v17 = vmax.f32 %v3218_v5, 0.0  ;;  %v3252_v18 = vmax.f32 %v3220_v8, 0.0 }
 0x2b2   : > { %v2967_v40 = vpop.f32.mrb[4].mxu0  ;;  %v3020_v43 = vpop.f32.mrb[4].mxu1 }
 0x2b3   : > { %v2969_v44 = vpop.f32.mrb[5].mxu0  ;;  %v3022_v45 = vpop.f32.mrb[5].mxu1  ;;  %v16793_v63 = vadd.f32 %v3172_v37, %v2967_v40  ;;  %v16795_v9 = vadd.f32 %v3180_v38, %v3020_v43 }
 0x2b4   : > { %v2971_v46 = vpop.f32.mrb[6].mxu0  ;;  %v3024_v48 = vpop.f32.mrb[6].mxu1  ;;  %v16797_v62 = vadd.f32 %v3176_v39, %v2969_v44  ;;  %v16799_v10 = vadd.f32 %v3184_v47, %v3022_v45 }
 0x2b5   : > { %v2973_v41 = vpop.f32.mrb[7].mxu0  ;;  %v3026_v42 = vpop.f32.mrb[7].mxu1  ;;  %v16801_v11 = vadd.f32 %v3172_v37, %v2971_v46  ;;  %v3257_v20 = vmax.f32 %v16793_v63, 0.0  ;;  %v3259_v21 = vmax.f32 %v16795_v9, 0.0  ;;  %v16822_v30 = vadd.f32 %v3180_v38, %v3024_v48 }
 0x2b6   : > { %v3258_v24 = vmax.f32 %v16797_v62, 0.0  ;;  %v3260_v25 = vmax.f32 %v16799_v10, 0.0  ;;  %v16824_v22 = vadd.f32 %v3176_v39, %v2973_v41  ;;  %v16828_v43 = vadd.f32 %v3184_v47, %v3026_v42 }
 0x2b7   : > { %v3265_v26 = vmax.f32 %v16801_v11, 0.0 }
 0x2c2   : > { %v3063_v27 = vpop.f32.mrb[8].mxu0  ;;  %v3116_v23 = vpop.f32.mrb[8].mxu1 }
 0x2c3   : > { %v3213_v28 = vadd.f32 %v16804_v2, %v3063_v27  ;;  %v3065_v0 = vpop.f32.mrb[9].mxu0  ;;  %v3215_v34 = vadd.f32 %v16807_v13, %v3116_v23  ;;  %v3118_v37 = vpop.f32.mrb[9].mxu1 }
 0x2c4   : > { %v3214_v35 = vadd.f32 %v16809_v14, %v3065_v0  ;;  %v3067_v40 = vpop.f32.mrb[10].mxu0  ;;  %v3216_v45 = vadd.f32 %v16811_v15, %v3118_v37  ;;  %v3120_v49 = vpop.f32.mrb[10].mxu1 }
 0x2c5   : > { %v3245_v44 = vmax.f32 %v3213_v28, 0.0  ;;  %v3221_v46 = vadd.f32 %v16804_v2, %v3067_v40  ;;  %v3069_v19 = vpop.f32.mrb[11].mxu0  ;;  %v3247_v50 = vmax.f32 %v3215_v34, 0.0  ;;  %v3223_v39 = vadd.f32 %v16807_v13, %v3120_v49  ;;  %v3122_v41 = vpop.f32.mrb[11].mxu1 }
 0x2c6   : > { %v3246_v38 = vmax.f32 %v3214_v35, 0.0  ;;  %v3222_v48 = vadd.f32 %v16809_v14, %v3069_v19  ;;  %v3248_v53 = vmax.f32 %v3216_v45, 0.0  ;;  %v3224_v47 = vadd.f32 %v16811_v15, %v3122_v41 }
 0x2c7   : > { %v3273_v51 = vmax.f32 %v3241_v57, %v3245_v44  ;;  %v3253_v54 = vmax.f32 %v3221_v46, 0.0  ;;  %v3275_v42 = vmax.f32 %v3243_v58, %v3247_v50  ;;  %v3255_v60 = vmax.f32 %v3223_v39, 0.0 }
 0x2c8   : > { %v3274_v56 = vmax.f32 %v3242_v59, %v3246_v38  ;;  %v3254_v61 = vmax.f32 %v3222_v48, 0.0  ;;  %v3276_v4 = vmax.f32 %v3244_v6, %v3248_v53  ;;  %v3256_v8 = vmax.f32 %v3224_v47, 0.0 }
 0x2c9   : > { %v3277_v5 = vmax.f32 %v3249_v7, %v3253_v54  ;;  %v3279_v28 = vmax.f32 %v3251_v16, %v3255_v60 }
 0x2ca   : > { %v3305_v12 = vcombine.low %v3273_v51, %v3274_v56  ;;  %v3306_v27 = vcombine.high %v3273_v51, %v3274_v56  ;;  %v3278_v23 = vmax.f32 %v3250_v17, %v3254_v61  ;;  %v3073_v0 = vpop.f32.mrb[12].mxu0  ;;  %v3307_v34 = vcombine.low %v3275_v42, %v3276_v4  ;;  %v3126_v40 = vpop.f32.mrb[12].mxu1 }
 0x2cb   : > { %v3308_v57 = vcombine.high %v3275_v42, %v3276_v4  ;;  %v3280_v35 = vmax.f32 %v3252_v18, %v3256_v8  ;;  %v3229_v37 = vadd.f32 %v16804_v2, %v3073_v0  ;;  %v16837_v58 = vpop.f32.mrb[13].mxu0  ;;  %v16841_v45 = vpop.f32.mrb[13].mxu1  ;;  %v16854_v41 = vadd.f32 %v16807_v13, %v3126_v40 }
 0x2cc   : > { %v3315_v59 = vrot.slane %v3305_v12, %v16820_v29  ;;  %v3322_v44 = vrot.slane %v3306_v27, %v16820_v29  ;;  %v3341_v6 = vcombine.low %v3277_v5, %v3278_v23  ;;  %v3342_v7 = vcombine.high %v3277_v5, %v3278_v23  ;;  %v16843_v46 = vpop.f32.mrb[14].mxu0  ;;  %v16847_v19 = vpop.f32.mrb[14].mxu1 }
 0x2cd   : > { %v3329_v16 = vrot.slane %v3307_v34, %v16820_v29  ;;  %v3336_v17 = vrot.slane %v3308_v57, %v16820_v29  ;;  %v3343_v18 = vcombine.low %v3279_v28, %v3280_v35  ;;  %v3344_v49 = vcombine.high %v3279_v28, %v3280_v35  ;;  %v16849_v50 = vpop.f32.mrb[15].mxu0  ;;  %v16856_v51 = vpop.f32.mrb[15].mxu1 }
 0x2ce   : > { %v3351_v38 = vrot.slane %v3341_v6, %v16820_v29  ;;  %v3358_v39 = vrot.slane %v3342_v7, %v16820_v29  ;;  %v3261_v48 = vmax.f32 %v3229_v37, 0.0  ;;  %v3263_v4 = vmax.f32 %v16854_v41, 0.0 }
 0x2cf   : > { %v3337_v53 = vcombine.low %v3315_v59, %v3329_v16  ;;  %v3338_v54 = vcombine.high %v3315_v59, %v3329_v16  ;;  %v3339_v47 = vcombine.low %v3322_v44, %v3336_v17  ;;  %v3340_v42 = vcombine.high %v3322_v44, %v3336_v17 }
 0x2d0   : > { %v3365_v56 = vrot.slane %v3343_v18, %v16820_v29  ;;  %v3372_v60 = vrot.slane %v3344_v49, %v16820_v29  ;;  %v16862_v61 = vmax.f32 %v3257_v20, %v3261_v48 }
 0x2d1   : > { %v12847_v5 = vrot.slane %v3337_v53, 9  ;;  %v12848_v8 = vrot.slane %v3338_v54, 9  ;;  %v12849_v12 = vrot.slane %v3339_v47, 9  ;;  %v12850_v27 = vrot.slane %v3340_v42, 9 }
 0x2d2   : > { %v3373_v28 = vcombine.low %v3351_v38, %v3365_v56  ;;  %v3374_v23 = vcombine.high %v3351_v38, %v3365_v56  ;;  %v3375_v0 = vcombine.low %v3358_v39, %v3372_v60  ;;  %v3376_v34 = vcombine.high %v3358_v39, %v3372_v60 }
 0x2d3   : > { %v3513_v57 = vmax.f32 %v3337_v53, %v12847_v5  ;;  %v3514_v35 = vmax.f32 %v3338_v54, %v12848_v8  ;;  %v3515_v37 = vmax.f32 %v3339_v47, %v12849_v12  ;;  %v3516_v40 = vmax.f32 %v3340_v42, %v12850_v27 }
 0x2d4   : > { %v12851_v59 = vrot.slane %v3373_v28, 9  ;;  %v12852_v44 = vrot.slane %v3374_v23, 9  ;;  %v12853_v6 = vrot.slane %v3375_v0, 9  ;;  %v12854_v63 = vrot.slane %v3376_v34, 9 }
 0x2d5   : > { %v3560_v20 = vrot.slane %v3513_v57, %v16758_v31  ;;  %v3564_v7 = vrot.slane %v3513_v57, %v16761_v32  ;;  %v3568_v16 = vrot.slane %v3513_v57, %v16778_v52  ;;  %v3572_v17 = vrot.slane %v3513_v57, %v16785_v55 }
 0x2d6   : > { %v3576_v18 = vrot.slane %v3514_v35, %v16758_v31  ;;  %v3580_v49 = vrot.slane %v3514_v35, %v16761_v32  ;;  %v3584_v38 = vrot.slane %v3514_v35, %v16778_v52  ;;  %v3588_v39 = vrot.slane %v3514_v35, %v16785_v55 }
 0x2d7   : > { %v3592_v48 = vrot.slane %v3515_v37, %v16758_v31  ;;  %v3596_v41 = vrot.slane %v3515_v37, %v16761_v32  ;;  %v3600_v53 = vrot.slane %v3515_v37, %v16778_v52  ;;  %v3604_v54 = vrot.slane %v3515_v37, %v16785_v55 }
 0x2d8   : > { %v3608_v47 = vrot.slane %v3516_v40, %v16758_v31  ;;  %v3612_v42 = vrot.slane %v3516_v40, %v16761_v32  ;;  %v3616_v56 = vrot.slane %v3516_v40, %v16778_v52  ;;  %v3620_v60 = vrot.slane %v3516_v40, %v16785_v55 }
 0x2d9   : > { %v3814_v5 = vsel %vm3813_vm2, %v3576_v18, %v3560_v20  ;;  %v3823_v8 = vsel %vm3813_vm2, %v3580_v49, %v3564_v7  ;;  %v3828_v12 = vsel %vm3813_vm2, %v3584_v38, %v3568_v16  ;;  %v3833_v27 = vsel %vm3813_vm2, %v3588_v39, %v3572_v17 }
 0x2da   : > { %v3816_v57 = vsel %vm3815_vm3, %v3592_v48, %v3814_v5  ;;  %v3824_v35 = vsel %vm3815_vm3, %v3596_v41, %v3823_v8  ;;  %v3829_v37 = vsel %vm3815_vm3, %v3600_v53, %v3828_v12  ;;  %v3834_v1 = vsel %vm3815_vm3, %v3604_v54, %v3833_v27 }
 0x2db   : > { %v3818_v40 = vsel %vm3817_vm4, %v3608_v47, %v3816_v57  ;;  %v3825_v3 = vsel %vm3817_vm4, %v3612_v42, %v3824_v35  ;;  %v3830_v20 = vsel %vm3817_vm4, %v3616_v56, %v3829_v37  ;;  %v3835_v7 = vsel %vm3817_vm4, %v3620_v60, %v3834_v1 }
 0x2dc   : > { %v3517_v16 = vmax.f32 %v3373_v28, %v12851_v59  ;;  %v3518_v18 = vmax.f32 %v3374_v23, %v12852_v44  ;;  %v3519_v17 = vmax.f32 %v3375_v0, %v12853_v6  ;;  %v3520_v49 = vmax.f32 %v3376_v34, %v12854_v63 }
 0x2dd   : > { %v3283_v38 = vmax.f32 %v3259_v21, %v3263_v4  ;;  %v3230_v39 = vadd.f32 %v16809_v14, %v16837_v58  ;;  %v3232_v48 = vadd.f32 %v16811_v15, %v16841_v45  ;;  %v3237_v41 = vadd.f32 %v16804_v2, %v16843_v46 }
 0x2de   : > { %v3624_v53 = vrot.slane %v3517_v16, %v16758_v31  ;;  %v3628_v1 = vrot.slane %v3517_v16, %v16761_v32  ;;  %v3632_v28 = vrot.slane %v3517_v16, %v16778_v52  ;;  %v3636_v23 = vrot.slane %v3517_v16, %v16785_v55 }
 0x2df   : > { %v3640_v9 = vrot.slane %v3518_v18, %v16758_v31  ;;  %v3644_v21 = vrot.slane %v3518_v18, %v16761_v32  ;;  %v3648_v58 = vrot.slane %v3518_v18, %v16778_v52  ;;  %v3652_v4 = vrot.slane %v3518_v18, %v16785_v55 }
 0x2e0   : > { %v3656_v45 = vrot.slane %v3519_v17, %v16758_v31  ;;  %v3660_v2 = vrot.slane %v3519_v17, %v16761_v32  ;;  %v3664_v46 = vrot.slane %v3519_v17, %v16778_v52  ;;  %v3668_v0 = vrot.slane %v3519_v17, %v16785_v55 }
 0x2e1   : > { %v3672_v34 = vrot.slane %v3520_v49, %v16758_v31  ;;  %v3676_v59 = vrot.slane %v3520_v49, %v16761_v32  ;;  %v3680_v44 = vrot.slane %v3520_v49, %v16778_v52  ;;  %v3684_v6 = vrot.slane %v3520_v49, %v16785_v55 }
 0x2e2   : > { %v3820_v63 = vsel %vm3819_vm5, %v3624_v53, %v3818_v40  ;;  %v3826_v54 = vsel %vm3819_vm5, %v3628_v1, %v3825_v3  ;;  %v3831_v47 = vsel %vm3819_vm5, %v3632_v28, %v3830_v20  ;;  %v3836_v42 = vsel %vm3819_vm5, %v3636_v23, %v3835_v7 }
 0x2e3   : > { %v3822_v56 = vsel %vm3821_vm6, %v3640_v9, %v3820_v63  ;;  %v3827_v60 = vsel %vm3821_vm6, %v3644_v21, %v3826_v54  ;;  %v3832_v5 = vsel %vm3821_vm6, %v3648_v58, %v3831_v47  ;;  %v3837_v8 = vsel %vm3821_vm6, %v3652_v4, %v3836_v42 }
 0x2e4   : > { %v16926_v12 = vsel %vm3838_vm7, %v3672_v34, %v3656_v45  ;;  %v16929_v27 = vsel %vm3838_vm7, %v3676_v59, %v3660_v2  ;;  %v16932_v3 = vsel %vm3838_vm7, %v3680_v44, %v3664_v46  ;;  %v16935_v57 = vsel %vm3838_vm7, %v3684_v6, %v3668_v0  ;;  %3884 = vst [vmem:[#allocation3] sm:$0xfc] %v3822_v56 }
 0x2e5   : > { %3885 = vst [vmem:[#allocation3 + $0x8] sm:$0xfc] %v3827_v60  ;;  %3886 = vst [vmem:[#allocation3 + $0x10] sm:$0xfc] %v3832_v5  ;;  %v3262_v35 = vmax.f32 %v3230_v39, 0.0  ;;  %v3264_v37 = vmax.f32 %v3232_v48, 0.0  ;;  %v3239_v20 = vadd.f32 %v16807_v13, %v16847_v19  ;;  %v3238_v18 = vadd.f32 %v16809_v14, %v16849_v50 }
 0x2e6   : > { %3887 = vst [vmem:[#allocation3 + $0x18] sm:$0xfc] %v3837_v8  ;;  %v3269_v40 = vmax.f32 %v3237_v41, 0.0  ;;  %v3266_v7 = vmax.f32 %v16824_v22, 0.0  ;;  %v3268_v16 = vmax.f32 %v16828_v43, 0.0  ;;  %v3240_v17 = vadd.f32 %v16811_v15, %v16856_v51 }
 0x2e7   : > { %v3282_v49 = vmax.f32 %v3258_v24, %v3262_v35  ;;  %v3284_v39 = vmax.f32 %v3260_v25, %v3264_v37  ;;  %v3271_v13 = vmax.f32 %v3239_v20, 0.0  ;;  %v3270_v19 = vmax.f32 %v3238_v18, 0.0 }
 0x2e8   : > { %v3285_v48 = vmax.f32 %v3265_v26, %v3269_v40  ;;  %v3272_v22 = vmax.f32 %v3240_v17, 0.0  ;;  %v17480_v15 = vmax.f32 %v16822_v30, 0.0 }
 0x2e9   : > { %v3377_v43 = vcombine.low %v16862_v61, %v3282_v49  ;;  %v3378_v41 = vcombine.high %v16862_v61, %v3282_v49  ;;  %v3379_v14 = vcombine.low %v3283_v38, %v3284_v39  ;;  %v3380_v50 = vcombine.high %v3283_v38, %v3284_v39 }
 0x2ea   : > { %v3287_v51 = vmax.f32 %v17480_v15, %v3271_v13  ;;  %v3286_v62 = vmax.f32 %v3266_v7, %v3270_v19  ;;  %v3288_v24 = vmax.f32 %v3268_v16, %v3272_v22 }
 0x2eb   : > { %v3387_v10 = vrot.slane %v3377_v43, %v16820_v29  ;;  %v3394_v25 = vrot.slane %v3378_v41, %v16820_v29  ;;  %v3401_v11 = vrot.slane %v3379_v14, %v16820_v29  ;;  %v3408_v26 = vrot.slane %v3380_v50, %v16820_v29 }
 0x2ec   : > { %v3413_v53 = vcombine.low %v3285_v48, %v3286_v62  ;;  %v3414_v1 = vcombine.high %v3285_v48, %v3286_v62  ;;  %v3415_v28 = vcombine.low %v3287_v51, %v3288_v24  ;;  %v3416_v61 = vcombine.high %v3287_v51, %v3288_v24 }
 0x2ed   : > { %v3409_v23 = vcombine.low %v3387_v10, %v3401_v11  ;;  %v3410_v38 = vcombine.high %v3387_v10, %v3401_v11  ;;  %v3411_v9 = vcombine.low %v3394_v25, %v3408_v26  ;;  %v3412_v30 = vcombine.high %v3394_v25, %v3408_v26 }
 0x2ee   : > { %v3423_v21 = vrot.slane %v3413_v53, %v16820_v29  ;;  %v3430_v58 = vrot.slane %v3414_v1, %v16820_v29  ;;  %v3437_v4 = vrot.slane %v3415_v28, %v16820_v29  ;;  %v3444_v45 = vrot.slane %v3416_v61, %v16820_v29 }
 0x2ef   : > { %v12855_v2 = vrot.slane %v3409_v23, 9  ;;  %v12856_v46 = vrot.slane %v3410_v38, 9  ;;  %v12857_v0 = vrot.slane %v3411_v9, 9  ;;  %v12858_v34 = vrot.slane %v3412_v30, 9 }
 0x2f0   : > { %v3445_v59 = vcombine.low %v3423_v21, %v3437_v4  ;;  %v3446_v44 = vcombine.high %v3423_v21, %v3437_v4  ;;  %v3447_v6 = vcombine.low %v3430_v58, %v3444_v45  ;;  %v3448_v63 = vcombine.high %v3430_v58, %v3444_v45 }
 0x2f1   : > { %v3521_v54 = vmax.f32 %v3409_v23, %v12855_v2  ;;  %v3522_v47 = vmax.f32 %v3410_v38, %v12856_v46  ;;  %v3523_v42 = vmax.f32 %v3411_v9, %v12857_v0  ;;  %v3524_v56 = vmax.f32 %v3412_v30, %v12858_v34 }
 0x2f2   : > { %v12859_v60 = vrot.slane %v3445_v59, 9  ;;  %v12860_v5 = vrot.slane %v3446_v44, 9  ;;  %v12861_v8 = vrot.slane %v3447_v6, 9  ;;  %v12862_v35 = vrot.slane %v3448_v63, 9 }
 0x2f3   : > { %v3688_v37 = vrot.slane %v3521_v54, %v16758_v31  ;;  %v3692_v40 = vrot.slane %v3521_v54, %v16761_v32  ;;  %v3696_v20 = vrot.slane %v3521_v54, %v16778_v52  ;;  %v3700_v7 = vrot.slane %v3521_v54, %v16785_v55  ;;  %v4036_v54 = vld [vmem:[#allocation3] sm:$0xfe] }
 0x2f4   : > { %v3704_v16 = vrot.slane %v3522_v47, %v16758_v31  ;;  %v3708_v18 = vrot.slane %v3522_v47, %v16761_v32  ;;  %v3712_v17 = vrot.slane %v3522_v47, %v16778_v52  ;;  %v3716_v49 = vrot.slane %v3522_v47, %v16785_v55  ;;  %v4038_v47 = vld [vmem:[#allocation3 + $0x10] sm:$0xfe] }
 0x2f5   : > { %v3720_v39 = vrot.slane %v3523_v42, %v16758_v31  ;;  %v3724_v48 = vrot.slane %v3523_v42, %v16761_v32  ;;  %v3728_v13 = vrot.slane %v3523_v42, %v16778_v52  ;;  %v3732_v19 = vrot.slane %v3523_v42, %v16785_v55 }
 0x2f6   : > { %v3736_v22 = vrot.slane %v3524_v56, %v16758_v31  ;;  %v3740_v43 = vrot.slane %v3524_v56, %v16761_v32  ;;  %v3744_v41 = vrot.slane %v3524_v56, %v16778_v52  ;;  %v3748_v14 = vrot.slane %v3524_v56, %v16785_v55 }
 0x2f7   : > { %v3841_v50 = vsel %vm3840_vm8, %v3688_v37, %v16926_v12  ;;  %v3848_v15 = vsel %vm3840_vm8, %v3692_v40, %v16929_v27  ;;  %v3855_v51 = vsel %vm3840_vm8, %v3696_v20, %v16932_v3  ;;  %v3862_v62 = vsel %vm3840_vm8, %v3700_v7, %v16935_v57 }
 0x2f8   : > { %v3842_v24 = vsel %vm3813_vm2, %v3704_v16, %v3841_v50  ;;  %v3849_v10 = vsel %vm3813_vm2, %v3708_v18, %v3848_v15  ;;  %v3856_v25 = vsel %vm3813_vm2, %v3712_v17, %v3855_v51  ;;  %v3863_v11 = vsel %vm3813_vm2, %v3716_v49, %v3862_v62 }
 0x2f9   : > { %v3843_v26 = vsel %vm3815_vm3, %v3720_v39, %v3842_v24  ;;  %v3850_v12 = vsel %vm3815_vm3, %v3724_v48, %v3849_v10  ;;  %v3857_v27 = vsel %vm3815_vm3, %v3728_v13, %v3856_v25  ;;  %v3864_v53 = vsel %vm3815_vm3, %v3732_v19, %v3863_v11  ;;  %v4039_v39 = vld [vmem:[#allocation3 + $0x18] sm:$0xfe] }
 0x2fa   : > { %v3844_v3 = vsel %vm3817_vm4, %v3736_v22, %v3843_v26  ;;  %v3851_v57 = vsel %vm3817_vm4, %v3740_v43, %v3850_v12  ;;  %v3858_v1 = vsel %vm3817_vm4, %v3744_v41, %v3857_v27  ;;  %v3865_v28 = vsel %vm3817_vm4, %v3748_v14, %v3864_v53  ;;  %v5861_v10 = vld [vmem:[#allocation3 + $0x18] sm:$0xfc] }
 0x2fb   : > { %v3525_v61 = vmax.f32 %v3445_v59, %v12859_v60  ;;  %v3526_v23 = vmax.f32 %v3446_v44, %v12860_v5  ;;  %v3527_v38 = vmax.f32 %v3447_v6, %v12861_v8  ;;  %v3528_v9 = vmax.f32 %v3448_v63, %v12862_v35  ;;  %v4037_v63 = vld [vmem:[#allocation3 + $0x8] sm:$0xfe] }
 0x2fd   : > { %v3752_v30 = vrot.slane %v3525_v61, %v16758_v31  ;;  %v3756_v21 = vrot.slane %v3525_v61, %v16761_v32  ;;  %v3760_v58 = vrot.slane %v3525_v61, %v16778_v52  ;;  %v3764_v4 = vrot.slane %v3525_v61, %v16785_v55 }
 0x2fe   : > { %v3768_v45 = vrot.slane %v3526_v23, %v16758_v31  ;;  %v3772_v2 = vrot.slane %v3526_v23, %v16761_v32  ;;  %v3776_v46 = vrot.slane %v3526_v23, %v16778_v52  ;;  %v3780_v0 = vrot.slane %v3526_v23, %v16785_v55 }
 0x2ff   : > { %v3784_v34 = vrot.slane %v3527_v38, %v16758_v31  ;;  %v3788_v59 = vrot.slane %v3527_v38, %v16761_v32  ;;  %v3792_v44 = vrot.slane %v3527_v38, %v16778_v52  ;;  %v3796_v6 = vrot.slane %v3527_v38, %v16785_v55 }
 0x300   : > { %v3800_v42 = vrot.slane %v3528_v9, %v16758_v31  ;;  %v3804_v56 = vrot.slane %v3528_v9, %v16761_v32  ;;  %v3808_v60 = vrot.slane %v3528_v9, %v16778_v52  ;;  %v3812_v5 = vrot.slane %v3528_v9, %v16785_v55 }
 0x301   : > { %v3845_v8 = vsel %vm3819_vm5, %v3752_v30, %v3844_v3  ;;  %v3852_v35 = vsel %vm3819_vm5, %v3756_v21, %v3851_v57  ;;  %v3859_v37 = vsel %vm3819_vm5, %v3760_v58, %v3858_v1  ;;  %v3866_v40 = vsel %vm3819_vm5, %v3764_v4, %v3865_v28  ;;  %v5860_v1 = vld [vmem:[#allocation3 + $0x10] sm:$0xfc] }
 0x302   : > { %v17020_v20 = vsel %vm3821_vm6, %v3768_v45, %v3845_v8  ;;  %v17023_v7 = vsel %vm3821_vm6, %v3772_v2, %v3852_v35  ;;  %v17026_v16 = vsel %vm3821_vm6, %v3776_v46, %v3859_v37  ;;  %v17029_v52 = vsel %vm3821_vm6, %v3780_v0, %v3866_v40  ;;  %v6851_v40 = vld [vmem:[#allocation3 + $0x18] sm:$0xf8] }
 0x303   : > { %v3868_v55 = vsel %vm3838_vm7, %v3800_v42, %v3784_v34  ;;  %v3869_v18 = vsel %vm3838_vm7, %v3804_v56, %v3788_v59  ;;  %v3870_v17 = vsel %vm3838_vm7, %v3808_v60, %v3792_v44  ;;  %v3871_v49 = vsel %vm3838_vm7, %v3812_v5, %v3796_v6  ;;  %3888 = vst [vmem:[#allocation3 + $0x20] sm:$0xff] %v17020_v20  ;;  %v14533_v59 = vld [vmem:[#allocation10 + $0x600] ss:$16 sps:$4 sm:$0xff]   ;;  %v14536_v44 = vld [vmem:[#allocation10 + $0x608] ss:$16 sps:$4 sm:$0xff]  }
 0x304   : > { %3889 = vst [vmem:[#allocation3 + $0x28] sm:$0xff] %v17023_v7  ;;  %3890 = vst [vmem:[#allocation3 + $0x30] sm:$0xff] %v17026_v16  ;;  %v4045_v48 = vpack.c.bf16 %v17023_v7, %v4037_v63  ;;  %v4044_v13 = vpack.c.bf16 %v17020_v20, %v4036_v54  ;;  %v4046_v19 = vpack.c.bf16 %v17026_v16, %v4038_v47 }
 0x305   : > { %3892 = vst [vmem:[#allocation3 + $0x40] sm:$0x3] %v3868_v55  ;;  %3893 = vst [vmem:[#allocation3 + $0x48] sm:$0x3] %v3869_v18  ;;  %v4047_v41 = vpack.c.bf16 %v17029_v52, %v4039_v39  ;;  %v5869_v9 = vpack.c.bf16 %v17029_v52, %v5861_v10  ;;  %v5868_v0 = vpack.c.bf16 %v17026_v16, %v5860_v1  ;;  %v14541_v55 = vld [vmem:[#allocation10 + $0x624] ss:$16 sps:$4 sm:$0xff]  }
 0x306   : > { %3894 = vst [vmem:[#allocation3 + $0x50] sm:$0x3] %v3870_v17  ;;  %3895 = vst [vmem:[#allocation3 + $0x58] sm:$0x3] %v3871_v49  ;;  %v4197_v22 = vshll.u32 %v4045_v48, 16  ;;  %v4185_v43 = vshll.u32 %v4044_v13, 16 }
 0x307   : > { %v4209_v14 = vshll.u32 %v4046_v19, 16  ;;  %v4195_v50 = vshrl.u32 %v4045_v48, 16  ;;  %v4183_v51 = vshrl.u32 %v4044_v13, 16  ;;  %v4221_v24 = vshll.u32 %v4047_v41, 16  ;;  %v14544_v18 = vld [vmem:[#allocation10 + $0x62c] ss:$16 sps:$4 sm:$0xff]  }
 0x308   : > { %v4199_v15 = vrot.slane %v4197_v22, 1  ;;  %v4187_v62 = vrot.slane %v4185_v43, 1  ;;  %v4219_v28 = vshrl.u32 %v4047_v41, 16  ;;  %v4207_v23 = vshrl.u32 %v4046_v19, 16  ;;  %v14539_v48 = vld [vmem:[#allocation10 + $0x620] ss:$16 sps:$4 sm:$0xff]  }
 0x309   : > { %v4211_v57 = vrot.slane %v4209_v14, 1  ;;  %v4223_v58 = vrot.slane %v4221_v24, 1  ;;  %v6021_v56 = vrot.slane %v5869_v9, 1  ;;  %v14542_v13 = vld [vmem:[#allocation10 + $0x628] ss:$16 sps:$4 sm:$0xff]   ;;  %v6018_v43 = vrot.slane %v5868_v0, 1 }
 0x30a   : > { %v4200_v45 = vor.u32 %v4199_v15, %v4195_v50  ;;  %v4188_v6 = vor.u32 %v4187_v62, %v4183_v51  ;;  %v14547_v22 = vld [vmem:[#allocation10 + $0x644] ss:$16 sps:$4 sm:$0xff]   ;;  %v6859_v50 = vpack.c.bf16 %v17029_v52, %v6851_v40  ;;  %v14550_v15 = vld [vmem:[#allocation10 + $0x64c] ss:$16 sps:$4 sm:$0xff]   ;;  %v14554_v1 = vld [vmem:[#allocation10 + $0x668] ss:$16 sps:$4 sm:$0xff]  }
 0x30b   : > { %v4212_v54 = vor.u32 %v4211_v57, %v4207_v23  ;;  %v4224_v37 = vor.u32 %v4223_v58, %v4219_v28  ;;  %v6850_v51 = vld [vmem:[#allocation3 + $0x10] sm:$0xf8]  ;;  %v14551_v57 = vld [vmem:[#allocation10 + $0x660] ss:$16 sps:$4 sm:$0xff]   ;;  %v7889_v28 = vld [vmem:[#allocation3 + $0x18] sm:$0xf0] }
 0x30c   : > { %v4041_v25 = vld [vmem:[#allocation3 + $0x48] sm:$0x1]  ;;  %v4040_v11 = vld [vmem:[#allocation3 + $0x40] sm:$0x1]  ;;  %v7049_v23 = vshll.u32 %v6859_v50, 16 }
 0x30d   : > { %v4043_v26 = vld [vmem:[#allocation3 + $0x58] sm:$0x1]  ;;  %v4049_v12 = vpack.c.bf16 %v4041_v25, %v4041_v25  ;;  %v4048_v27 = vpack.c.bf16 %v4040_v11, %v4040_v11  ;;  %v4042_v3 = vld [vmem:[#allocation3 + $0x50] sm:$0x1]  ;;  %v14562_v0 = vld [vmem:[#allocation10 + $0x68c] ss:$16 sps:$4 sm:$0xff]  }
 0x30e   : > { %v4051_v53 = vpack.c.bf16 %v4043_v26, %v4043_v26  ;;  %v4050_v61 = vpack.c.bf16 %v4042_v3, %v4042_v3  ;;  %v5865_v38 = vld [vmem:[#allocation3 + $0x58] sm:$0x3]  ;;  %v5864_v5 = vld [vmem:[#allocation3 + $0x50] sm:$0x3]  ;;  %v7046_v26 = vshrl.u32 %v6859_v50, 16 }
 0x30f   : > { %v4202_v30 = vshll.u32 %v4049_v12, 16  ;;  %v4190_v21 = vshll.u32 %v4048_v27, 16  ;;  %v5873_v46 = vpack.c.bf16 %v5865_v38, %v5865_v38  ;;  %v5872_v39 = vpack.c.bf16 %v5864_v5, %v5864_v5  ;;  %v6855_v14 = vld [vmem:[#allocation3 + $0x58] sm:$0x7]  ;;  %v6854_v62 = vld [vmem:[#allocation3 + $0x50] sm:$0x7] }
 0x310   : > { %v4226_v4 = vshll.u32 %v4051_v53, 16  ;;  %v4214_v2 = vshll.u32 %v4050_v61, 16  ;;  %v6863_v10 = vpack.c.bf16 %v6855_v14, %v6855_v14  ;;  %v14545_v25 = vld [vmem:[#allocation10 + $0x640] ss:$16 sps:$4 sm:$0xff]   ;;  %v14548_v11 = vld [vmem:[#allocation10 + $0x648] ss:$16 sps:$4 sm:$0xff]   ;;  %v6858_v12 = vpack.c.bf16 %v17026_v16, %v6850_v51 }
 0x311   : > { %v4204_v34 = vrot.slane %v4202_v30, 1  ;;  %v4192_v63 = vrot.slane %v4190_v21, 1  ;;  %v6022_v60 = vrot.slane %v5873_v46, 1  ;;  %v6019_v41 = vrot.slane %v5872_v39, 1  ;;  %v14553_v53 = vld [vmem:[#allocation10 + $0x664] ss:$16 sps:$4 sm:$0xff]  }
 0x312   : > { %v4228_v47 = vrot.slane %v4226_v4, 1  ;;  %v4216_v42 = vrot.slane %v4214_v2, 1  ;;  %v6862_v27 = vpack.c.bf16 %v6854_v62, %v6854_v62  ;;  %v14556_v3 = vld [vmem:[#allocation10 + $0x66c] ss:$16 sps:$4 sm:$0xff]   ;;  %v7054_v38 = vshrl.u32 %v6863_v10, 16 }
 0x313   : > { %v4205_v8 = vsel %vm4181_vm9, %v4200_v45, %v4204_v34  ;;  %v4193_v35 = vsel %vm4181_vm9, %v4188_v6, %v4192_v63  ;;  %v17050_v49 = vsel %vm6011_vm10, %v6021_v56, %v6022_v60  ;;  %v17055_v24 = vsel %vm6011_vm10, %v6018_v43, %v6019_v41  ;;  %v7888_v61 = vld [vmem:[#allocation3 + $0x10] sm:$0xf0]  ;;  %v7893_v30 = vld [vmem:[#allocation3 + $0x58] sm:$0xf]  ;;  %v7892_v2 = vld [vmem:[#allocation3 + $0x50] sm:$0xf] }
 0x314   : > { %4906 = vmatprep.mubr.bf16.mxu0 %v4205_v8  ;;  %4992 = vmatprep.mubr.bf16.mxu1 %v4205_v8  ;;  %v17047_v17 = vsel %vm4181_vm9, %v4212_v54, %v4216_v42  ;;  %v4229_v19 = vsel %vm4181_vm9, %v4224_v37, %v4228_v47  ;;  %v7057_v9 = vshll.u32 %v6863_v10, 16  ;;  %v7048_v21 = vrot.slane %v7046_v26, 1  ;;  %v14559_v46 = vld [vmem:[#allocation10 + $0x684] ss:$16 sps:$4 sm:$0xff]   ;;  %v14560_v47 = vld [vmem:[#allocation10 + $0x688] ss:$16 sps:$4 sm:$0xff]  }
 0x315   : > { %4907 = vmatmul.mubr.bf16.vlgmr.msra.gmra.mrb[16].mxu0 %v4193_v35  ;;  %4993 = vmatmul.mubr.bf16.vlgmr.msra.gmra.mrb[16].mxu1 %v4193_v35  ;;  %v7029_v58 = vshrl.u32 %v6858_v12, 16  ;;  %v7032_v4 = vshll.u32 %v6858_v12, 16  ;;  %v7037_v45 = vshrl.u32 %v6862_v27, 16  ;;  %v7897_v34 = vpack.c.bf16 %v17029_v52, %v7889_v28  ;;  %v14563_v39 = vld [vmem:[#allocation10 + $0x6a0] ss:$16 sps:$4 sm:$0xff]  }
 0x316   : > { %4918 = vmatpush1.bf16.msra.mxu0 %v14533_v59  ;;  %5004 = vmatpush1.bf16.msra.mxu1 %v14536_v44  ;;  %v14557_v59 = vld [vmem:[#allocation10 + $0x680] ss:$16 sps:$4 sm:$0xff]   ;;  %v7051_v44 = vrot.slane %v7049_v23, 2  ;;  %v7056_v6 = vrot.slane %v7054_v38, 1  ;;  %v7059_v63 = vrot.slane %v7057_v9, 2  ;;  %v7901_v54 = vpack.c.bf16 %v7893_v30, %v7893_v30 }
 0x317   : > { %4949 = vmatprep.mubr.bf16.mxu0 %v4229_v19  ;;  %5035 = vmatprep.mubr.bf16.mxu1 %v4229_v19  ;;  %v7031_v42 = vrot.slane %v7029_v58, 1  ;;  %v7040_v56 = vshll.u32 %v6862_v27, 16  ;;  %v7896_v60 = vpack.c.bf16 %v17026_v16, %v7888_v61  ;;  %v7900_v5 = vpack.c.bf16 %v7892_v2, %v7892_v2  ;;  %v14566_v19 = vld [vmem:[#allocation10 + $0x6a8] ss:$16 sps:$4 sm:$0xff]   ;;  %v14574_v51 = vld [vmem:[#allocation10 + $0x6cc] ss:$16 sps:$4 sm:$0xff]  }
 0x318   : > { %4919 = vmatprep.subr.bf16.mxu0 %v14541_v55  ;;  %5005 = vmatprep.subr.bf16.mxu1 %v14544_v18  ;;  %v7052_v8 = vor.u32 %v7051_v44, %v7048_v21  ;;  %v7060_v35 = vor.u32 %v7059_v63, %v7056_v6  ;;  %v7034_v37 = vrot.slane %v7032_v4, 2  ;;  %v7039_v40 = vrot.slane %v7037_v45, 1  ;;  %v14565_v55 = vld [vmem:[#allocation10 + $0x6a4] ss:$16 sps:$4 sm:$0xff]   ;;  %v14568_v18 = vld [vmem:[#allocation10 + $0x6ac] ss:$16 sps:$4 sm:$0xff]  }
 0x319   : > { %v8050_v16 = vrot.slane %v7901_v54, 2  ;;  %v8046_v14 = vrot.slane %v7896_v60, 2  ;;  %v8047_v50 = vrot.slane %v7900_v5, 2  ;;  %v14569_v10 = vld [vmem:[#allocation10 + $0x6c0] ss:$16 sps:$4 sm:$0xff]  }
 0x31a   : > { %4920 = vmatpush1.bf16.msra.mxu0 %v14539_v48  ;;  %5006 = vmatpush1.bf16.msra.mxu1 %v14542_v13  ;;  %v17061_v48 = vsel %vm6993_vm11, %v7052_v8, %v7060_v35  ;;  %v7042_v13 = vrot.slane %v7040_v56, 2  ;;  %v7035_v43 = vor.u32 %v7034_v37, %v7031_v42  ;;  %v14577_v12 = vld [vmem:[#allocation10 + $0x6e4] ss:$16 sps:$4 sm:$0xff]   ;;  %v14580_v27 = vld [vmem:[#allocation10 + $0x6ec] ss:$16 sps:$4 sm:$0xff]  }
 0x31b   : > { %4921 = vmatprep.subr.bf16.mxu0 %v14547_v22  ;;  %5007 = vmatprep.subr.bf16.mxu1 %v14550_v15  ;;  %v8049_v22 = vrot.slane %v7897_v34, 2  ;;  %v14571_v15 = vld [vmem:[#allocation10 + $0x6c4] ss:$16 sps:$4 sm:$0xff]   ;;  %v17070_v26 = vsel %vm8039_vm12, %v8046_v14, %v8047_v50  ;;  %v14581_v28 = vld [vmem:[#allocation10 + $0x700] ss:$16 sps:$4 sm:$0xff]  }
 0x31c   : > { %v7043_v41 = vor.u32 %v7042_v13, %v7039_v40  ;;  %v14584_v61 = vld [vmem:[#allocation10 + $0x708] ss:$16 sps:$4 sm:$0xff]   ;;  %v14589_v23 = vld [vmem:[#allocation10 + $0x724] ss:$16 sps:$4 sm:$0xff]   ;;  %v14592_v38 = vld [vmem:[#allocation10 + $0x72c] ss:$16 sps:$4 sm:$0xff]  }
 0x31d   : > { %v17064_v62 = vsel %vm8039_vm12, %v8049_v22, %v8050_v16  ;;  %v14587_v9 = vld [vmem:[#allocation10 + $0x720] ss:$16 sps:$4 sm:$0xff]   ;;  %v14590_v30 = vld [vmem:[#allocation10 + $0x728] ss:$16 sps:$4 sm:$0xff]   ;;  %v14595_v21 = vld [vmem:[#allocation10 + $0x744] ss:$16 sps:$4 sm:$0xff]  }
 0x31e   : > { %4922 = vmatpush1.bf16.msra.mxu0 %v14545_v25  ;;  %5008 = vmatpush1.bf16.msra.mxu1 %v14548_v11  ;;  %v14572_v25 = vld [vmem:[#allocation10 + $0x6c8] ss:$16 sps:$4 sm:$0xff]   ;;  %v17067_v11 = vsel %vm6993_vm11, %v7035_v43, %v7043_v41  ;;  %v14598_v58 = vld [vmem:[#allocation10 + $0x74c] ss:$16 sps:$4 sm:$0xff]   ;;  %v14593_v4 = vld [vmem:[#allocation10 + $0x740] ss:$16 sps:$4 sm:$0xff]  }
 0x31f   : > { %4923 = vmatprep.subr.bf16.mxu0 %v14553_v53  ;;  %5009 = vmatprep.subr.bf16.mxu1 %v14556_v3  ;;  %v14575_v53 = vld [vmem:[#allocation10 + $0x6e0] ss:$16 sps:$4 sm:$0xff]   ;;  %v14578_v3 = vld [vmem:[#allocation10 + $0x6e8] ss:$16 sps:$4 sm:$0xff]   ;;  %v14601_v2 = vld [vmem:[#allocation10 + $0x764] ss:$16 sps:$4 sm:$0xff]  }
 0x320   : > { %v14596_v45 = vld [vmem:[#allocation10 + $0x748] ss:$16 sps:$4 sm:$0xff]   ;;  %v14610_v44 = vld [vmem:[#allocation10 + $0x78c] ss:$16 sps:$4 sm:$0xff]   ;;  %v14605_v6 = vld [vmem:[#allocation10 + $0x780] ss:$16 sps:$4 sm:$0xff]  }
 0x321   : > { %v14602_v34 = vld [vmem:[#allocation10 + $0x768] ss:$16 sps:$4 sm:$0xff]   ;;  %v14613_v54 = vld [vmem:[#allocation10 + $0x7a4] ss:$16 sps:$4 sm:$0xff]   ;;  %v14611_v42 = vld [vmem:[#allocation10 + $0x7a0] ss:$16 sps:$4 sm:$0xff]  }
 0x322   : > { %4924 = vmatpush1.bf16.msra.mxu0 %v14551_v57  ;;  %5010 = vmatpush1.bf16.msra.mxu1 %v14554_v1  ;;  %v14583_v57 = vld [vmem:[#allocation10 + $0x704] ss:$16 sps:$4 sm:$0xff]   ;;  %v14586_v1 = vld [vmem:[#allocation10 + $0x70c] ss:$16 sps:$4 sm:$0xff]   ;;  %v14608_v63 = vld [vmem:[#allocation10 + $0x788] ss:$16 sps:$4 sm:$0xff]  }
 0x323   : > { %4925 = vmatprep.subr.bf16.mxu0 %v14559_v46  ;;  %5011 = vmatprep.subr.bf16.mxu1 %v14562_v0  ;;  %v14604_v46 = vld [vmem:[#allocation10 + $0x76c] ss:$16 sps:$4 sm:$0xff]   ;;  %v14599_v0 = vld [vmem:[#allocation10 + $0x760] ss:$16 sps:$4 sm:$0xff]   ;;  %v14614_v56 = vld [vmem:[#allocation10 + $0x7a8] ss:$16 sps:$4 sm:$0xff]  }
 0x324   : > { %v14619_v60 = vld [vmem:[#allocation10 + $0x7c4] ss:$16 sps:$4 sm:$0xff]   ;;  %v14622_v5 = vld [vmem:[#allocation10 + $0x7cc] ss:$16 sps:$4 sm:$0xff]   ;;  %v14617_v8 = vld [vmem:[#allocation10 + $0x7c0] ss:$16 sps:$4 sm:$0xff]  }
 0x325   : > { %v14620_v35 = vld [vmem:[#allocation10 + $0x7c8] ss:$16 sps:$4 sm:$0xff]   ;;  %v14625_v37 = vld [vmem:[#allocation10 + $0x7e4] ss:$16 sps:$4 sm:$0xff]   ;;  %v14628_v40 = vld [vmem:[#allocation10 + $0x7ec] ss:$16 sps:$4 sm:$0xff]  }
 0x326   : > { %4926 = vmatpush1.bf16.msra.mxu0 %v14557_v59  ;;  %5012 = vmatpush1.bf16.msra.mxu1 %v14560_v47  ;;  %v14607_v59 = vld [vmem:[#allocation10 + $0x784] ss:$16 sps:$4 sm:$0xff]   ;;  %v14616_v47 = vld [vmem:[#allocation10 + $0x7ac] ss:$16 sps:$4 sm:$0xff]   ;;  %v14629_v22 = vld [vmem:[#allocation10] ss:$16 sps:$4 sm:$0xff]  }
 0x327   : > { %4927 = vmatprep.subr.bf16.mxu0 %v14565_v55  ;;  %5013 = vmatprep.subr.bf16.mxu1 %v14568_v18  ;;  %v14623_v55 = vld [vmem:[#allocation10 + $0x7e0] ss:$16 sps:$4 sm:$0xff]   ;;  %v14626_v18 = vld [vmem:[#allocation10 + $0x7e8] ss:$16 sps:$4 sm:$0xff]   ;;  %v14634_v13 = vld [vmem:[#allocation10 + $0xc] ss:$16 sps:$4 sm:$0xff]  }
 0x328   : > { %v14632_v16 = vld [vmem:[#allocation10 + $0x8] ss:$16 sps:$4 sm:$0xff]   ;;  %v14637_v41 = vld [vmem:[#allocation10 + $0x24] ss:$16 sps:$4 sm:$0xff]   ;;  %v14640_v14 = vld [vmem:[#allocation10 + $0x2c] ss:$16 sps:$4 sm:$0xff]  }
 0x329   : > { %v14635_v50 = vld [vmem:[#allocation10 + $0x20] ss:$16 sps:$4 sm:$0xff]  }
 0x32a   : > { %4928 = vmatpush1.bf16.msra.mxu0 %v14563_v39  ;;  %5014 = vmatpush1.bf16.msra.mxu1 %v14566_v19  ;;  %v14631_v39 = vld [vmem:[#allocation10 + $0x4] ss:$16 sps:$4 sm:$0xff]  }
 0x32b   : > { %4929 = vmatprep.subr.bf16.mxu0 %v14571_v15  ;;  %5015 = vmatprep.subr.bf16.mxu1 %v14574_v51  ;;  %v3897_v19 = vld [vmem:[#allocation3 + $0x8] sm:$0xff]  ;;  %v14638_v15 = vld [vmem:[#allocation10 + $0x28] ss:$16 sps:$4 sm:$0xff]  }
 0x32c   : > { %v3905_v43 = vpack.c.bf16 %v17023_v7, %v3897_v19  ;;  %v14643_v51 = vld [vmem:[#allocation10 + $0x44] ss:$16 sps:$4 sm:$0xff]   ;;  %v14644_v7 = vld [vmem:[#allocation10 + $0x48] ss:$16 sps:$4 sm:$0xff]  }
 0x32d   : > { %v14704_v19 = vld [vmem:[#allocation10 + $0x188] ss:$16 sps:$4 sm:$0xff]  }
 0x32e   : > { %4930 = vmatpush1.bf16.msra.mxu0 %v14569_v10  ;;  %5016 = vmatpush1.bf16.msra.mxu1 %v14572_v25  ;;  %v14646_v10 = vld [vmem:[#allocation10 + $0x4c] ss:$16 sps:$4 sm:$0xff]   ;;  %v14641_v25 = vld [vmem:[#allocation10 + $0x40] ss:$16 sps:$4 sm:$0xff]  }
 0x32f   : > { %4931 = vmatprep.subr.bf16.mxu0 %v14577_v12  ;;  %5017 = vmatprep.subr.bf16.mxu1 %v14580_v27  ;;  %v14649_v12 = vld [vmem:[#allocation10 + $0x64] ss:$16 sps:$4 sm:$0xff]   ;;  %v14652_v27 = vld [vmem:[#allocation10 + $0x6c] ss:$16 sps:$4 sm:$0xff]  }
 0x332   : > { %4932 = vmatpush1.bf16.msra.mxu0 %v14575_v53  ;;  %5018 = vmatpush1.bf16.msra.mxu1 %v14578_v3  ;;  %v14650_v53 = vld [vmem:[#allocation10 + $0x68] ss:$16 sps:$4 sm:$0xff]   ;;  %v14655_v3 = vld [vmem:[#allocation10 + $0x84] ss:$16 sps:$4 sm:$0xff]  }
 0x333   : > { %4933 = vmatprep.subr.bf16.mxu0 %v14583_v57  ;;  %5019 = vmatprep.subr.bf16.mxu1 %v14586_v1  ;;  %v14658_v57 = vld [vmem:[#allocation10 + $0x8c] ss:$16 sps:$4 sm:$0xff]   ;;  %v14653_v1 = vld [vmem:[#allocation10 + $0x80] ss:$16 sps:$4 sm:$0xff]  }
 0x336   : > { %4934 = vmatpush1.bf16.msra.mxu0 %v14581_v28  ;;  %5020 = vmatpush1.bf16.msra.mxu1 %v14584_v61  ;;  %v14656_v28 = vld [vmem:[#allocation10 + $0x88] ss:$16 sps:$4 sm:$0xff]   ;;  %v14661_v61 = vld [vmem:[#allocation10 + $0xa4] ss:$16 sps:$4 sm:$0xff]  }
 0x337   : > { %4935 = vmatprep.subr.bf16.mxu0 %v14589_v23  ;;  %5021 = vmatprep.subr.bf16.mxu1 %v14592_v38  ;;  %v14664_v23 = vld [vmem:[#allocation10 + $0xac] ss:$16 sps:$4 sm:$0xff]   ;;  %v14659_v38 = vld [vmem:[#allocation10 + $0xa0] ss:$16 sps:$4 sm:$0xff]  }
 0x33a   : > { %4936 = vmatpush1.bf16.msra.mxu0 %v14587_v9  ;;  %5022 = vmatpush1.bf16.msra.mxu1 %v14590_v30  ;;  %v14662_v9 = vld [vmem:[#allocation10 + $0xa8] ss:$16 sps:$4 sm:$0xff]   ;;  %v14667_v30 = vld [vmem:[#allocation10 + $0xc4] ss:$16 sps:$4 sm:$0xff]  }
 0x33b   : > { %4937 = vmatprep.subr.bf16.mxu0 %v14595_v21  ;;  %5023 = vmatprep.subr.bf16.mxu1 %v14598_v58  ;;  %v14670_v21 = vld [vmem:[#allocation10 + $0xcc] ss:$16 sps:$4 sm:$0xff]   ;;  %v14665_v58 = vld [vmem:[#allocation10 + $0xc0] ss:$16 sps:$4 sm:$0xff]  }
 0x33e   : > { %4938 = vmatpush1.bf16.msra.mxu0 %v14593_v4  ;;  %5024 = vmatpush1.bf16.msra.mxu1 %v14596_v45  ;;  %v14668_v4 = vld [vmem:[#allocation10 + $0xc8] ss:$16 sps:$4 sm:$0xff]   ;;  %v14673_v45 = vld [vmem:[#allocation10 + $0xe4] ss:$16 sps:$4 sm:$0xff]  }
 0x33f   : > { %4939 = vmatprep.subr.bf16.mxu0 %v14601_v2  ;;  %5025 = vmatprep.subr.bf16.mxu1 %v14604_v46  ;;  %v14676_v2 = vld [vmem:[#allocation10 + $0xec] ss:$16 sps:$4 sm:$0xff]   ;;  %v14671_v46 = vld [vmem:[#allocation10 + $0xe0] ss:$16 sps:$4 sm:$0xff]  }
 0x342   : > { %4940 = vmatpush1.bf16.msra.mxu0 %v14599_v0  ;;  %5026 = vmatpush1.bf16.msra.mxu1 %v14602_v34  ;;  %v14674_v0 = vld [vmem:[#allocation10 + $0xe8] ss:$16 sps:$4 sm:$0xff]   ;;  %v14679_v34 = vld [vmem:[#allocation10 + $0x104] ss:$16 sps:$4 sm:$0xff]  }
 0x343   : > { %4941 = vmatprep.subr.bf16.mxu0 %v14607_v59  ;;  %5027 = vmatprep.subr.bf16.mxu1 %v14610_v44  ;;  %v14682_v59 = vld [vmem:[#allocation10 + $0x10c] ss:$16 sps:$4 sm:$0xff]   ;;  %v14677_v44 = vld [vmem:[#allocation10 + $0x100] ss:$16 sps:$4 sm:$0xff]  }
 0x346   : > { %4942 = vmatpush1.bf16.msra.mxu0 %v14605_v6  ;;  %5028 = vmatpush1.bf16.msra.mxu1 %v14608_v63  ;;  %v14680_v6 = vld [vmem:[#allocation10 + $0x108] ss:$16 sps:$4 sm:$0xff]   ;;  %v14685_v63 = vld [vmem:[#allocation10 + $0x124] ss:$16 sps:$4 sm:$0xff]  }
 0x347   : > { %4943 = vmatprep.subr.bf16.mxu0 %v14613_v54  ;;  %5029 = vmatprep.subr.bf16.mxu1 %v14616_v47  ;;  %v14688_v54 = vld [vmem:[#allocation10 + $0x12c] ss:$16 sps:$4 sm:$0xff]   ;;  %v14683_v47 = vld [vmem:[#allocation10 + $0x120] ss:$16 sps:$4 sm:$0xff]  }
 0x34a   : > { %4944 = vmatpush1.bf16.msra.mxu0 %v14611_v42  ;;  %5030 = vmatpush1.bf16.msra.mxu1 %v14614_v56  ;;  %v14686_v42 = vld [vmem:[#allocation10 + $0x128] ss:$16 sps:$4 sm:$0xff]   ;;  %v14691_v56 = vld [vmem:[#allocation10 + $0x144] ss:$16 sps:$4 sm:$0xff]  }
 0x34b   : > { %4945 = vmatprep.subr.bf16.mxu0 %v14619_v60  ;;  %5031 = vmatprep.subr.bf16.mxu1 %v14622_v5  ;;  %v14694_v60 = vld [vmem:[#allocation10 + $0x14c] ss:$16 sps:$4 sm:$0xff]   ;;  %v14689_v5 = vld [vmem:[#allocation10 + $0x140] ss:$16 sps:$4 sm:$0xff]  }
 0x34e   : > { %4946 = vmatpush1.bf16.msra.mxu0 %v14617_v8  ;;  %5032 = vmatpush1.bf16.msra.mxu1 %v14620_v35  ;;  %v14692_v8 = vld [vmem:[#allocation10 + $0x148] ss:$16 sps:$4 sm:$0xff]   ;;  %v14697_v35 = vld [vmem:[#allocation10 + $0x164] ss:$16 sps:$4 sm:$0xff]  }
 0x34f   : > { %4947 = vmatprep.subr.bf16.mxu0 %v14625_v37  ;;  %5033 = vmatprep.subr.bf16.mxu1 %v14628_v40  ;;  %v14700_v37 = vld [vmem:[#allocation10 + $0x16c] ss:$16 sps:$4 sm:$0xff]   ;;  %v14695_v40 = vld [vmem:[#allocation10 + $0x160] ss:$16 sps:$4 sm:$0xff]  }
 0x352   : > { %4948 = vmatpush1.bf16.msra.mxu0 %v14623_v55  ;;  %5034 = vmatpush1.bf16.msra.mxu1 %v14626_v18  ;;  %v14698_v55 = vld [vmem:[#allocation10 + $0x168] ss:$16 sps:$4 sm:$0xff]   ;;  %v14703_v18 = vld [vmem:[#allocation10 + $0x184] ss:$16 sps:$4 sm:$0xff]  }
 0x353   : > { %5686 = vmatprep.subr.bf16.mxu0 %v14631_v39  ;;  %5772 = vmatprep.subr.bf16.mxu1 %v14634_v13  ;;  %v14706_v39 = vld [vmem:[#allocation10 + $0x18c] ss:$16 sps:$4 sm:$0xff]   ;;  %v14701_v13 = vld [vmem:[#allocation10 + $0x180] ss:$16 sps:$4 sm:$0xff]  }
 0x355   : > { %4950 = vmatmul.mubr.bf16.vlgmr.msra.gmra.mrb[16].mxu0 %v17047_v17  ;;  %5036 = vmatmul.mubr.bf16.vlgmr.msra.gmra.mrb[16].mxu1 %v17047_v17  ;;  %v14647_v17 = vld [vmem:[#allocation10 + $0x60] ss:$16 sps:$4 sm:$0xff]  }
 0x356   : > { %5687 = vmatpush1.bf16.msra.mxu0 %v14629_v22  ;;  %5718 = vmatprep.mubr.bf16.mxu0 %v3905_v43  ;;  %v14709_v22 = vld [vmem:[#allocation10 + $0x1a4] ss:$16 sps:$4 sm:$0xff]  }
 0x357   : > { %5773 = vmatpush1.bf16.msra.mxu1 %v14632_v16  ;;  %5804 = vmatprep.mubr.bf16.mxu1 %v3905_v43  ;;  %v14712_v16 = vld [vmem:[#allocation10 + $0x1ac] ss:$16 sps:$4 sm:$0xff]   ;;  %v14707_v43 = vld [vmem:[#allocation10 + $0x1a0] ss:$16 sps:$4 sm:$0xff]  }
 0x358   : > { %5688 = vmatprep.subr.bf16.mxu0 %v14637_v41  ;;  %5774 = vmatprep.subr.bf16.mxu1 %v14640_v14  ;;  %v14710_v41 = vld [vmem:[#allocation10 + $0x1a8] ss:$16 sps:$4 sm:$0xff]   ;;  %v14715_v14 = vld [vmem:[#allocation10 + $0x1c4] ss:$16 sps:$4 sm:$0xff]  }
 0x35a   : > { %5689 = vmatpush1.bf16.msra.mxu0 %v14635_v50  ;;  %v14718_v50 = vld [vmem:[#allocation10 + $0x1cc] ss:$16 sps:$4 sm:$0xff]  }
 0x35b   : > { %5775 = vmatpush1.bf16.msra.mxu1 %v14638_v15  ;;  %5690 = vmatprep.subr.bf16.mxu0 %v14643_v51  ;;  %v14713_v15 = vld [vmem:[#allocation10 + $0x1c0] ss:$16 sps:$4 sm:$0xff]   ;;  %v14716_v51 = vld [vmem:[#allocation10 + $0x1c8] ss:$16 sps:$4 sm:$0xff]  }
 0x35c   : > { %5776 = vmatprep.subr.bf16.mxu1 %v14646_v10  ;;  %v14721_v10 = vld [vmem:[#allocation10 + $0x1e4] ss:$16 sps:$4 sm:$0xff]  }
 0x35e   : > { %5691 = vmatpush1.bf16.msra.mxu0 %v14641_v25  ;;  %v14724_v25 = vld [vmem:[#allocation10 + $0x1ec] ss:$16 sps:$4 sm:$0xff]  }
 0x35f   : > { %5777 = vmatpush1.bf16.msra.mxu1 %v14644_v7  ;;  %5692 = vmatprep.subr.bf16.mxu0 %v14649_v12  ;;  %v14719_v7 = vld [vmem:[#allocation10 + $0x1e0] ss:$16 sps:$4 sm:$0xff]   ;;  %v14722_v12 = vld [vmem:[#allocation10 + $0x1e8] ss:$16 sps:$4 sm:$0xff]  }
 0x360   : > { %5778 = vmatprep.subr.bf16.mxu1 %v14652_v27  ;;  %v14727_v27 = vld [vmem:[#allocation10 + $0x204] ss:$16 sps:$4 sm:$0xff]  }
 0x362   : > { %5693 = vmatpush1.bf16.msra.mxu0 %v14647_v17  ;;  %v3896_v17 = vld [vmem:[#allocation3] sm:$0xff] }
 0x363   : > { %5779 = vmatpush1.bf16.msra.mxu1 %v14650_v53  ;;  %5694 = vmatprep.subr.bf16.mxu0 %v14655_v3  ;;  %v14730_v53 = vld [vmem:[#allocation10 + $0x20c] ss:$16 sps:$4 sm:$0xff]   ;;  %v14725_v3 = vld [vmem:[#allocation10 + $0x200] ss:$16 sps:$4 sm:$0xff]  }
 0x364   : > { %5780 = vmatprep.subr.bf16.mxu1 %v14658_v57  ;;  %v3899_v57 = vld [vmem:[#allocation3 + $0x18] sm:$0xff] }
 0x366   : > { %5695 = vmatpush1.bf16.msra.mxu0 %v14653_v1  ;;  %v3904_v1 = vpack.c.bf16 %v17020_v20, %v3896_v17  ;;  %v14737_v20 = vld [vmem:[#allocation10 + $0x240] ss:$16 sps:$4 sm:$0xff]  }
 0x367   : > { %5781 = vmatpush1.bf16.msra.mxu1 %v14656_v28  ;;  %5696 = vmatprep.subr.bf16.mxu0 %v14661_v61  ;;  %v14728_v28 = vld [vmem:[#allocation10 + $0x208] ss:$16 sps:$4 sm:$0xff]   ;;  %v14733_v61 = vld [vmem:[#allocation10 + $0x224] ss:$16 sps:$4 sm:$0xff]   ;;  %v14797_v17 = vld [vmem:[#allocation10 + $0x380] ss:$16 sps:$4 sm:$0xff]  }
 0x368   : > { %5782 = vmatprep.subr.bf16.mxu1 %v14664_v23  ;;  %v3907_v23 = vpack.c.bf16 %v17029_v52, %v3899_v57  ;;  %v14748_v52 = vld [vmem:[#allocation10 + $0x26c] ss:$16 sps:$4 sm:$0xff]  }
 0x369   : > { %v14808_v57 = vld [vmem:[#allocation10 + $0x3ac] ss:$16 sps:$4 sm:$0xff]  }
 0x36a   : > { %5697 = vmatpush1.bf16.msra.mxu0 %v14659_v38  ;;  %v14736_v38 = vld [vmem:[#allocation10 + $0x22c] ss:$16 sps:$4 sm:$0xff]  }
 0x36b   : > { %5783 = vmatpush1.bf16.msra.mxu1 %v14662_v9  ;;  %5698 = vmatprep.subr.bf16.mxu0 %v14667_v30  ;;  %v14731_v9 = vld [vmem:[#allocation10 + $0x220] ss:$16 sps:$4 sm:$0xff]   ;;  %v14734_v30 = vld [vmem:[#allocation10 + $0x228] ss:$16 sps:$4 sm:$0xff]  }
 0x36c   : > { %5784 = vmatprep.subr.bf16.mxu1 %v14670_v21  ;;  %v14739_v21 = vld [vmem:[#allocation10 + $0x244] ss:$16 sps:$4 sm:$0xff]  }
 0x36e   : > { %5699 = vmatpush1.bf16.msra.mxu0 %v14665_v58  ;;  %v14742_v58 = vld [vmem:[#allocation10 + $0x24c] ss:$16 sps:$4 sm:$0xff]  }
 0x36f   : > { %5785 = vmatpush1.bf16.msra.mxu1 %v14668_v4  ;;  %5700 = vmatprep.subr.bf16.mxu0 %v14673_v45  ;;  %v14740_v4 = vld [vmem:[#allocation10 + $0x248] ss:$16 sps:$4 sm:$0xff]   ;;  %v14745_v45 = vld [vmem:[#allocation10 + $0x264] ss:$16 sps:$4 sm:$0xff]  }
 0x370   : > { %5786 = vmatprep.subr.bf16.mxu1 %v14676_v2  ;;  %v14743_v2 = vld [vmem:[#allocation10 + $0x260] ss:$16 sps:$4 sm:$0xff]  }
 0x372   : > { %5701 = vmatpush1.bf16.msra.mxu0 %v14671_v46  ;;  %v14746_v46 = vld [vmem:[#allocation10 + $0x268] ss:$16 sps:$4 sm:$0xff]  }
 0x373   : > { %5787 = vmatpush1.bf16.msra.mxu1 %v14674_v0  ;;  %5702 = vmatprep.subr.bf16.mxu0 %v14679_v34  ;;  %v14751_v0 = vld [vmem:[#allocation10 + $0x284] ss:$16 sps:$4 sm:$0xff]   ;;  %v14754_v34 = vld [vmem:[#allocation10 + $0x28c] ss:$16 sps:$4 sm:$0xff]  }
 0x374   : > { %5788 = vmatprep.subr.bf16.mxu1 %v14682_v59  ;;  %v14749_v59 = vld [vmem:[#allocation10 + $0x280] ss:$16 sps:$4 sm:$0xff]  }
 0x376   : > { %5703 = vmatpush1.bf16.msra.mxu0 %v14677_v44  ;;  %v14752_v44 = vld [vmem:[#allocation10 + $0x288] ss:$16 sps:$4 sm:$0xff]  }
 0x377   : > { %5789 = vmatpush1.bf16.msra.mxu1 %v14680_v6  ;;  %5704 = vmatprep.subr.bf16.mxu0 %v14685_v63  ;;  %v14757_v6 = vld [vmem:[#allocation10 + $0x2a4] ss:$16 sps:$4 sm:$0xff]   ;;  %v14760_v63 = vld [vmem:[#allocation10 + $0x2ac] ss:$16 sps:$4 sm:$0xff]  }
 0x378   : > { %5790 = vmatprep.subr.bf16.mxu1 %v14688_v54  ;;  %v14755_v54 = vld [vmem:[#allocation10 + $0x2a0] ss:$16 sps:$4 sm:$0xff]  }
 0x37a   : > { %5705 = vmatpush1.bf16.msra.mxu0 %v14683_v47  ;;  %v14758_v47 = vld [vmem:[#allocation10 + $0x2a8] ss:$16 sps:$4 sm:$0xff]  }
 0x37b   : > { %5791 = vmatpush1.bf16.msra.mxu1 %v14686_v42  ;;  %5706 = vmatprep.subr.bf16.mxu0 %v14691_v56  ;;  %v14763_v42 = vld [vmem:[#allocation10 + $0x2c4] ss:$16 sps:$4 sm:$0xff]   ;;  %v14766_v56 = vld [vmem:[#allocation10 + $0x2cc] ss:$16 sps:$4 sm:$0xff]  }
 0x37c   : > { %5792 = vmatprep.subr.bf16.mxu1 %v14694_v60  ;;  %v14761_v60 = vld [vmem:[#allocation10 + $0x2c0] ss:$16 sps:$4 sm:$0xff]  }
 0x37e   : > { %5707 = vmatpush1.bf16.msra.mxu0 %v14689_v5  ;;  %v14764_v5 = vld [vmem:[#allocation10 + $0x2c8] ss:$16 sps:$4 sm:$0xff]  }
 0x37f   : > { %5793 = vmatpush1.bf16.msra.mxu1 %v14692_v8  ;;  %5708 = vmatprep.subr.bf16.mxu0 %v14697_v35  ;;  %v14769_v8 = vld [vmem:[#allocation10 + $0x2e4] ss:$16 sps:$4 sm:$0xff]   ;;  %v14772_v35 = vld [vmem:[#allocation10 + $0x2ec] ss:$16 sps:$4 sm:$0xff]  }
 0x380   : > { %5794 = vmatprep.subr.bf16.mxu1 %v14700_v37  ;;  %v14767_v37 = vld [vmem:[#allocation10 + $0x2e0] ss:$16 sps:$4 sm:$0xff]  }
 0x382   : > { %5709 = vmatpush1.bf16.msra.mxu0 %v14695_v40  ;;  %v14770_v40 = vld [vmem:[#allocation10 + $0x2e8] ss:$16 sps:$4 sm:$0xff]  }
 0x383   : > { %5795 = vmatpush1.bf16.msra.mxu1 %v14698_v55  ;;  %5710 = vmatprep.subr.bf16.mxu0 %v14703_v18  ;;  %v14775_v55 = vld [vmem:[#allocation10 + $0x304] ss:$16 sps:$4 sm:$0xff]   ;;  %v14778_v18 = vld [vmem:[#allocation10 + $0x30c] ss:$16 sps:$4 sm:$0xff]  }
 0x384   : > { %5796 = vmatprep.subr.bf16.mxu1 %v14706_v39  ;;  %v14773_v39 = vld [vmem:[#allocation10 + $0x300] ss:$16 sps:$4 sm:$0xff]  }
 0x386   : > { %5711 = vmatpush1.bf16.msra.mxu0 %v14701_v13  ;;  %v14776_v13 = vld [vmem:[#allocation10 + $0x308] ss:$16 sps:$4 sm:$0xff]  }
 0x387   : > { %5797 = vmatpush1.bf16.msra.mxu1 %v14704_v19  ;;  %5712 = vmatprep.subr.bf16.mxu0 %v14709_v22  ;;  %v14781_v19 = vld [vmem:[#allocation10 + $0x324] ss:$16 sps:$4 sm:$0xff]   ;;  %v14784_v22 = vld [vmem:[#allocation10 + $0x32c] ss:$16 sps:$4 sm:$0xff]  }
 0x388   : > { %5798 = vmatprep.subr.bf16.mxu1 %v14712_v16  ;;  %v14779_v16 = vld [vmem:[#allocation10 + $0x320] ss:$16 sps:$4 sm:$0xff]  }
 0x38a   : > { %5713 = vmatpush1.bf16.msra.mxu0 %v14707_v43  ;;  %v14782_v43 = vld [vmem:[#allocation10 + $0x328] ss:$16 sps:$4 sm:$0xff]  }
 0x38b   : > { %5799 = vmatpush1.bf16.msra.mxu1 %v14710_v41  ;;  %5714 = vmatprep.subr.bf16.mxu0 %v14715_v14  ;;  %v14787_v41 = vld [vmem:[#allocation10 + $0x344] ss:$16 sps:$4 sm:$0xff]   ;;  %v14790_v14 = vld [vmem:[#allocation10 + $0x34c] ss:$16 sps:$4 sm:$0xff]  }
 0x38c   : > { %5800 = vmatprep.subr.bf16.mxu1 %v14718_v50  ;;  %v14785_v50 = vld [vmem:[#allocation10 + $0x340] ss:$16 sps:$4 sm:$0xff]  }
 0x38e   : > { %5715 = vmatpush1.bf16.msra.mxu0 %v14713_v15  ;;  %v14788_v15 = vld [vmem:[#allocation10 + $0x348] ss:$16 sps:$4 sm:$0xff]  }
 0x38f   : > { %5801 = vmatpush1.bf16.msra.mxu1 %v14716_v51  ;;  %5716 = vmatprep.subr.bf16.mxu0 %v14721_v10  ;;  %v14793_v51 = vld [vmem:[#allocation10 + $0x364] ss:$16 sps:$4 sm:$0xff]   ;;  %v14796_v10 = vld [vmem:[#allocation10 + $0x36c] ss:$16 sps:$4 sm:$0xff]  }
 0x390   : > { %5802 = vmatprep.subr.bf16.mxu1 %v14724_v25  ;;  %v14791_v25 = vld [vmem:[#allocation10 + $0x360] ss:$16 sps:$4 sm:$0xff]  }
 0x392   : > { %5717 = vmatpush1.bf16.msra.mxu0 %v14719_v7  ;;  %v14794_v7 = vld [vmem:[#allocation10 + $0x368] ss:$16 sps:$4 sm:$0xff]  }
 0x393   : > { %5803 = vmatpush1.bf16.msra.mxu1 %v14722_v12  ;;  %5729 = vmatprep.subr.bf16.mxu0 %v14727_v27  ;;  %v14799_v12 = vld [vmem:[#allocation10 + $0x384] ss:$16 sps:$4 sm:$0xff]   ;;  %v14802_v27 = vld [vmem:[#allocation10 + $0x38c] ss:$16 sps:$4 sm:$0xff]  }
 0x394   : > { %5815 = vmatprep.subr.bf16.mxu1 %v14730_v53  ;;  %v14800_v53 = vld [vmem:[#allocation10 + $0x388] ss:$16 sps:$4 sm:$0xff]  }
 0x395   : > { %5719 = vmatmul.mubr.bf16.vlgmr.msra.gmra.mrb[16].mxu0 %v3904_v1 }
 0x396   : > { %5805 = vmatmul.mubr.bf16.vlgmr.msra.gmra.mrb[16].mxu1 %v3904_v1  ;;  %5730 = vmatpush1.bf16.msra.mxu0 %v14725_v3  ;;  %v14805_v3 = vld [vmem:[#allocation10 + $0x3a4] ss:$16 sps:$4 sm:$0xff]   ;;  %v14803_v1 = vld [vmem:[#allocation10 + $0x3a0] ss:$16 sps:$4 sm:$0xff]  }
 0x397   : > { %5761 = vmatprep.mubr.bf16.mxu0 %v3907_v23  ;;  %5816 = vmatpush1.bf16.msra.mxu1 %v14728_v28  ;;  %v14806_v28 = vld [vmem:[#allocation10 + $0x3a8] ss:$16 sps:$4 sm:$0xff]  }
 0x398   : > { %5847 = vmatprep.mubr.bf16.mxu1 %v3907_v23  ;;  %5731 = vmatprep.subr.bf16.mxu0 %v14733_v61  ;;  %v14811_v61 = vld [vmem:[#allocation10 + $0x3c4] ss:$16 sps:$4 sm:$0xff]   ;;  %v14814_v23 = vld [vmem:[#allocation10 + $0x3cc] ss:$16 sps:$4 sm:$0xff]  }
 0x399   : > { %5817 = vmatprep.subr.bf16.mxu1 %v14736_v38  ;;  %v14809_v38 = vld [vmem:[#allocation10 + $0x3c0] ss:$16 sps:$4 sm:$0xff]  }
 0x39a   : > { %5732 = vmatpush1.bf16.msra.mxu0 %v14731_v9  ;;  %v14812_v9 = vld [vmem:[#allocation10 + $0x3c8] ss:$16 sps:$4 sm:$0xff]  }
 0x39b   : > { %5818 = vmatpush1.bf16.msra.mxu1 %v14734_v30  ;;  %5733 = vmatprep.subr.bf16.mxu0 %v14739_v21  ;;  %v14817_v30 = vld [vmem:[#allocation10 + $0x3e4] ss:$16 sps:$4 sm:$0xff]   ;;  %v5863_v21 = vld [vmem:[#allocation3 + $0x48] sm:$0x3] }
 0x39c   : > { %5819 = vmatprep.subr.bf16.mxu1 %v14742_v58  ;;  %v14820_v58 = vld [vmem:[#allocation10 + $0x3ec] ss:$16 sps:$4 sm:$0xff]  }
 0x39e   : > { %5734 = vmatpush1.bf16.msra.mxu0 %v14737_v20  ;;  %v5859_v20 = vld [vmem:[#allocation3 + $0x8] sm:$0xfc] }
 0x39f   : > { %5820 = vmatpush1.bf16.msra.mxu1 %v14740_v4  ;;  %5735 = vmatprep.subr.bf16.mxu0 %v14745_v45  ;;  %v14815_v4 = vld [vmem:[#allocation10 + $0x3e0] ss:$16 sps:$4 sm:$0xff]   ;;  %v5871_v45 = vpack.c.bf16 %v5863_v21, %v5863_v21  ;;  %v14878_v21 = vld [vmem:[#allocation10 + $0x928] ss:$16 sps:$4 sm:$0xff]  }
 0x3a0   : > { %5821 = vmatprep.subr.bf16.mxu1 %v14748_v52  ;;  %v14818_v52 = vld [vmem:[#allocation10 + $0x3e8] ss:$16 sps:$4 sm:$0xff]  }
 0x3a2   : > { %5736 = vmatpush1.bf16.msra.mxu0 %v14743_v2  ;;  %v14823_v2 = vld [vmem:[#allocation10 + $0x804] ss:$16 sps:$4 sm:$0xff]  }
 0x3a3   : > { %5822 = vmatpush1.bf16.msra.mxu1 %v14746_v46  ;;  %5737 = vmatprep.subr.bf16.mxu0 %v14751_v0  ;;  %v3898_v46 = vld [vmem:[#allocation3 + $0x10] sm:$0xff] }
 0x3a4   : > { %5823 = vmatprep.subr.bf16.mxu1 %v14754_v34  ;;  %v14826_v0 = vld [vmem:[#allocation10 + $0x80c] ss:$16 sps:$4 sm:$0xff]   ;;  %v17077_v34 = vld [vmem:[#allocation3 + $0x28] sm:$0xff] }
 0x3a6   : > { %5738 = vmatpush1.bf16.msra.mxu0 %v14749_v59  ;;  %v5867_v59 = vpack.c.bf16 %v17077_v34, %v5859_v20  ;;  %v14886_v20 = vld [vmem:[#allocation10 + $0x94c] ss:$16 sps:$4 sm:$0xff]  }
 0x3a7   : > { %5824 = vmatpush1.bf16.msra.mxu1 %v14752_v44  ;;  %5739 = vmatprep.subr.bf16.mxu0 %v14757_v6  ;;  %v14821_v44 = vld [vmem:[#allocation10 + $0x800] ss:$16 sps:$4 sm:$0xff]   ;;  %v6016_v6 = vrot.slane %v5871_v45, 1  ;;  %v14884_v45 = vld [vmem:[#allocation10 + $0x948] ss:$16 sps:$4 sm:$0xff]  }
 0x3a8   : > { %5825 = vmatprep.subr.bf16.mxu1 %v14760_v63  ;;  %v15946_v63 = vld [vmem:[#allocation3 + $0x30] sm:$0xff] }
 0x3aa   : > { %5740 = vmatpush1.bf16.msra.mxu0 %v14755_v54  ;;  %v3906_v54 = vpack.c.bf16 %v15946_v63, %v3898_v46  ;;  %v14887_v46 = vld [vmem:[#allocation10 + $0x960] ss:$16 sps:$4 sm:$0xff]   ;;  %v14896_v63 = vld [vmem:[#allocation10 + $0x988] ss:$16 sps:$4 sm:$0xff]  }
 0x3ab   : > { %5826 = vmatpush1.bf16.msra.mxu1 %v14758_v47  ;;  %5741 = vmatprep.subr.bf16.mxu0 %v14763_v42  ;;  %v14824_v47 = vld [vmem:[#allocation10 + $0x808] ss:$16 sps:$4 sm:$0xff]   ;;  %v6015_v42 = vrot.slane %v5867_v59, 1  ;;  %v14895_v59 = vld [vmem:[#allocation10 + $0x984] ss:$16 sps:$4 sm:$0xff]  }
 0x3ac   : > { %5827 = vmatprep.subr.bf16.mxu1 %v14766_v56  ;;  %v14829_v56 = vld [vmem:[#allocation10 + $0x824] ss:$16 sps:$4 sm:$0xff]  }
 0x3ae   : > { %5742 = vmatpush1.bf16.msra.mxu0 %v14761_v60  ;;  %v14832_v60 = vld [vmem:[#allocation10 + $0x82c] ss:$16 sps:$4 sm:$0xff]  }
 0x3af   : > { %5828 = vmatpush1.bf16.msra.mxu1 %v14764_v5  ;;  %5743 = vmatprep.subr.bf16.mxu0 %v14769_v8  ;;  %v6017_v5 = vsel %vm6011_vm10, %v6015_v42, %v6016_v6  ;;  %v14827_v8 = vld [vmem:[#allocation10 + $0x820] ss:$16 sps:$4 sm:$0xff]  }
 0x3b0   : > { %5829 = vmatprep.subr.bf16.mxu1 %v14772_v35  ;;  %v14830_v35 = vld [vmem:[#allocation10 + $0x828] ss:$16 sps:$4 sm:$0xff]   ;;  %v14893_v6 = vld [vmem:[#allocation10 + $0x980] ss:$16 sps:$4 sm:$0xff]  }
 0x3b1   : > { %v14899_v42 = vld [vmem:[#allocation10 + $0x9a0] ss:$16 sps:$4 sm:$0xff]  }
 0x3b2   : > { %5744 = vmatpush1.bf16.msra.mxu0 %v14767_v37  ;;  %v14835_v37 = vld [vmem:[#allocation10 + $0x844] ss:$16 sps:$4 sm:$0xff]  }
 0x3b3   : > { %5830 = vmatpush1.bf16.msra.mxu1 %v14770_v40  ;;  %5745 = vmatprep.subr.bf16.mxu0 %v14775_v55  ;;  %v14838_v40 = vld [vmem:[#allocation10 + $0x84c] ss:$16 sps:$4 sm:$0xff]   ;;  %v14833_v55 = vld [vmem:[#allocation10 + $0x840] ss:$16 sps:$4 sm:$0xff]  }
 0x3b4   : > { %5831 = vmatprep.subr.bf16.mxu1 %v14778_v18  ;;  %v14836_v18 = vld [vmem:[#allocation10 + $0x848] ss:$16 sps:$4 sm:$0xff]  }
 0x3b6   : > { %5746 = vmatpush1.bf16.msra.mxu0 %v14773_v39  ;;  %v14841_v39 = vld [vmem:[#allocation10 + $0x864] ss:$16 sps:$4 sm:$0xff]  }
 0x3b7   : > { %5832 = vmatpush1.bf16.msra.mxu1 %v14776_v13  ;;  %5747 = vmatprep.subr.bf16.mxu0 %v14781_v19  ;;  %v14844_v13 = vld [vmem:[#allocation10 + $0x86c] ss:$16 sps:$4 sm:$0xff]   ;;  %v14839_v19 = vld [vmem:[#allocation10 + $0x860] ss:$16 sps:$4 sm:$0xff]  }
 0x3b8   : > { %5833 = vmatprep.subr.bf16.mxu1 %v14784_v22  ;;  %v14842_v22 = vld [vmem:[#allocation10 + $0x868] ss:$16 sps:$4 sm:$0xff]  }
 0x3ba   : > { %5748 = vmatpush1.bf16.msra.mxu0 %v14779_v16  ;;  %v14847_v16 = vld [vmem:[#allocation10 + $0x884] ss:$16 sps:$4 sm:$0xff]  }
 0x3bb   : > { %5834 = vmatpush1.bf16.msra.mxu1 %v14782_v43  ;;  %5749 = vmatprep.subr.bf16.mxu0 %v14787_v41  ;;  %v14850_v43 = vld [vmem:[#allocation10 + $0x88c] ss:$16 sps:$4 sm:$0xff]   ;;  %v14845_v41 = vld [vmem:[#allocation10 + $0x880] ss:$16 sps:$4 sm:$0xff]  }
 0x3bc   : > { %5835 = vmatprep.subr.bf16.mxu1 %v14790_v14  ;;  %v14848_v14 = vld [vmem:[#allocation10 + $0x888] ss:$16 sps:$4 sm:$0xff]  }
 0x3be   : > { %5750 = vmatpush1.bf16.msra.mxu0 %v14785_v50  ;;  %v14853_v50 = vld [vmem:[#allocation10 + $0x8a4] ss:$16 sps:$4 sm:$0xff]  }
 0x3bf   : > { %5836 = vmatpush1.bf16.msra.mxu1 %v14788_v15  ;;  %5751 = vmatprep.subr.bf16.mxu0 %v14793_v51  ;;  %v14856_v15 = vld [vmem:[#allocation10 + $0x8ac] ss:$16 sps:$4 sm:$0xff]   ;;  %v14851_v51 = vld [vmem:[#allocation10 + $0x8a0] ss:$16 sps:$4 sm:$0xff]  }
 0x3c0   : > { %5837 = vmatprep.subr.bf16.mxu1 %v14796_v10  ;;  %v14854_v10 = vld [vmem:[#allocation10 + $0x8a8] ss:$16 sps:$4 sm:$0xff]  }
 0x3c2   : > { %5752 = vmatpush1.bf16.msra.mxu0 %v14791_v25  ;;  %v14859_v25 = vld [vmem:[#allocation10 + $0x8c4] ss:$16 sps:$4 sm:$0xff]  }
 0x3c3   : > { %5838 = vmatpush1.bf16.msra.mxu1 %v14794_v7  ;;  %5753 = vmatprep.subr.bf16.mxu0 %v14799_v12  ;;  %v14862_v7 = vld [vmem:[#allocation10 + $0x8cc] ss:$16 sps:$4 sm:$0xff]   ;;  %v14857_v12 = vld [vmem:[#allocation10 + $0x8c0] ss:$16 sps:$4 sm:$0xff]  }
 0x3c4   : > { %5839 = vmatprep.subr.bf16.mxu1 %v14802_v27  ;;  %v14860_v27 = vld [vmem:[#allocation10 + $0x8c8] ss:$16 sps:$4 sm:$0xff]  }
 0x3c6   : > { %5754 = vmatpush1.bf16.msra.mxu0 %v14797_v17  ;;  %v14865_v17 = vld [vmem:[#allocation10 + $0x8e4] ss:$16 sps:$4 sm:$0xff]  }
 0x3c7   : > { %5840 = vmatpush1.bf16.msra.mxu1 %v14800_v53  ;;  %5755 = vmatprep.subr.bf16.mxu0 %v14805_v3  ;;  %v14868_v53 = vld [vmem:[#allocation10 + $0x8ec] ss:$16 sps:$4 sm:$0xff]   ;;  %v14863_v3 = vld [vmem:[#allocation10 + $0x8e0] ss:$16 sps:$4 sm:$0xff]  }
 0x3c8   : > { %5841 = vmatprep.subr.bf16.mxu1 %v14808_v57  ;;  %v14866_v57 = vld [vmem:[#allocation10 + $0x8e8] ss:$16 sps:$4 sm:$0xff]  }
 0x3ca   : > { %5756 = vmatpush1.bf16.msra.mxu0 %v14803_v1  ;;  %v14871_v1 = vld [vmem:[#allocation10 + $0x904] ss:$16 sps:$4 sm:$0xff]  }
 0x3cb   : > { %5842 = vmatpush1.bf16.msra.mxu1 %v14806_v28  ;;  %5757 = vmatprep.subr.bf16.mxu0 %v14811_v61  ;;  %v14874_v28 = vld [vmem:[#allocation10 + $0x90c] ss:$16 sps:$4 sm:$0xff]   ;;  %v14869_v61 = vld [vmem:[#allocation10 + $0x900] ss:$16 sps:$4 sm:$0xff]  }
 0x3cc   : > { %5843 = vmatprep.subr.bf16.mxu1 %v14814_v23  ;;  %v14872_v23 = vld [vmem:[#allocation10 + $0x908] ss:$16 sps:$4 sm:$0xff]  }
 0x3ce   : > { %5758 = vmatpush1.bf16.msra.mxu0 %v14809_v38  ;;  %v14877_v38 = vld [vmem:[#allocation10 + $0x924] ss:$16 sps:$4 sm:$0xff]  }
 0x3cf   : > { %5844 = vmatpush1.bf16.msra.mxu1 %v14812_v9  ;;  %5759 = vmatprep.subr.bf16.mxu0 %v14817_v30  ;;  %v14880_v9 = vld [vmem:[#allocation10 + $0x92c] ss:$16 sps:$4 sm:$0xff]   ;;  %v14875_v30 = vld [vmem:[#allocation10 + $0x920] ss:$16 sps:$4 sm:$0xff]  }
 0x3d0   : > { %5845 = vmatprep.subr.bf16.mxu1 %v14820_v58  ;;  %v14883_v58 = vld [vmem:[#allocation10 + $0x944] ss:$16 sps:$4 sm:$0xff]  }
 0x3d2   : > { %5760 = vmatpush1.bf16.msra.mxu0 %v14815_v4  ;;  %v14881_v4 = vld [vmem:[#allocation10 + $0x940] ss:$16 sps:$4 sm:$0xff]  }
 0x3d3   : > { %5846 = vmatpush1.bf16.msra.mxu1 %v14818_v52  ;;  %6668 = vmatprep.subr.bf16.mxu0 %v14823_v2  ;;  %v14889_v52 = vld [vmem:[#allocation10 + $0x964] ss:$16 sps:$4 sm:$0xff]   ;;  %v14892_v2 = vld [vmem:[#allocation10 + $0x96c] ss:$16 sps:$4 sm:$0xff]  }
 0x3d4   : > { %6754 = vmatprep.subr.bf16.mxu1 %v14826_v0  ;;  %v14890_v0 = vld [vmem:[#allocation10 + $0x968] ss:$16 sps:$4 sm:$0xff]  }
 0x3d5   : > { %5762 = vmatmul.mubr.bf16.vlgmr.msra.gmra.mrb[16].mxu0 %v3906_v54 }
 0x3d6   : > { %5848 = vmatmul.mubr.bf16.vlgmr.msra.gmra.mrb[16].mxu1 %v3906_v54  ;;  %6669 = vmatpush1.bf16.msra.mxu0 %v14821_v44  ;;  %v14898_v44 = vld [vmem:[#allocation10 + $0x98c] ss:$16 sps:$4 sm:$0xff]   ;;  %v14901_v54 = vld [vmem:[#allocation10 + $0x9a4] ss:$16 sps:$4 sm:$0xff]  }
 0x3d7   : > { %6700 = vmatprep.mubr.bf16.mxu0 %v6017_v5  ;;  %6755 = vmatpush1.bf16.msra.mxu1 %v14824_v47  ;;  %v14904_v47 = vld [vmem:[#allocation10 + $0x9ac] ss:$16 sps:$4 sm:$0xff]  }
 0x3d8   : > { %6786 = vmatprep.mubr.bf16.mxu1 %v6017_v5  ;;  %6670 = vmatprep.subr.bf16.mxu0 %v14829_v56  ;;  %v14902_v56 = vld [vmem:[#allocation10 + $0x9a8] ss:$16 sps:$4 sm:$0xff]   ;;  %v14910_v5 = vld [vmem:[#allocation10 + $0x9cc] ss:$16 sps:$4 sm:$0xff]  }
 0x3d9   : > { %6756 = vmatprep.subr.bf16.mxu1 %v14832_v60  ;;  %v14907_v60 = vld [vmem:[#allocation10 + $0x9c4] ss:$16 sps:$4 sm:$0xff]  }
 0x3da   : > { %6671 = vmatpush1.bf16.msra.mxu0 %v14827_v8  ;;  %v5862_v8 = vld [vmem:[#allocation3 + $0x40] sm:$0x3] }
 0x3db   : > { %6757 = vmatpush1.bf16.msra.mxu1 %v14830_v35  ;;  %6672 = vmatprep.subr.bf16.mxu0 %v14835_v37  ;;  %v14905_v35 = vld [vmem:[#allocation10 + $0x9c0] ss:$16 sps:$4 sm:$0xff]   ;;  %v14908_v37 = vld [vmem:[#allocation10 + $0x9c8] ss:$16 sps:$4 sm:$0xff]  }
 0x3dc   : > { %6758 = vmatprep.subr.bf16.mxu1 %v14838_v40  ;;  %v14913_v40 = vld [vmem:[#allocation10 + $0x9e4] ss:$16 sps:$4 sm:$0xff]  }
 0x3de   : > { %6673 = vmatpush1.bf16.msra.mxu0 %v14833_v55  ;;  %v5858_v55 = vld [vmem:[#allocation3] sm:$0xfc] }
 0x3df   : > { %6759 = vmatpush1.bf16.msra.mxu1 %v14836_v18  ;;  %6674 = vmatprep.subr.bf16.mxu0 %v14841_v39  ;;  %v14916_v18 = vld [vmem:[#allocation10 + $0x9ec] ss:$16 sps:$4 sm:$0xff]   ;;  %v5870_v39 = vpack.c.bf16 %v5862_v8, %v5862_v8  ;;  %v14974_v8 = vld [vmem:[#allocation10 + $0xb28] ss:$16 sps:$4 sm:$0xff]  }
 0x3e0   : > { %6760 = vmatprep.subr.bf16.mxu1 %v14844_v13  ;;  %v14911_v13 = vld [vmem:[#allocation10 + $0x9e0] ss:$16 sps:$4 sm:$0xff]  }
 0x3e2   : > { %6675 = vmatpush1.bf16.msra.mxu0 %v14839_v19  ;;  %v17081_v19 = vld [vmem:[#allocation3 + $0x20] sm:$0xff] }
 0x3e3   : > { %6761 = vmatpush1.bf16.msra.mxu1 %v14842_v22  ;;  %6676 = vmatprep.subr.bf16.mxu0 %v14847_v16  ;;  %v5866_v22 = vpack.c.bf16 %v17081_v19, %v5858_v55  ;;  %v14914_v16 = vld [vmem:[#allocation10 + $0x9e8] ss:$16 sps:$4 sm:$0xff]  }
 0x3e4   : > { %6762 = vmatprep.subr.bf16.mxu1 %v14850_v43  ;;  %v14919_v43 = vld [vmem:[#allocation10 + $0xa04] ss:$16 sps:$4 sm:$0xff]   ;;  %v14980_v55 = vld [vmem:[#allocation10 + $0xb48] ss:$16 sps:$4 sm:$0xff]  }
 0x3e6   : > { %6677 = vmatpush1.bf16.msra.mxu0 %v14845_v41  ;;  %v6013_v41 = vrot.slane %v5870_v39, 1  ;;  %v14988_v39 = vld [vmem:[#allocation10 + $0xb6c] ss:$16 sps:$4 sm:$0xff]  }
 0x3e7   : > { %6763 = vmatpush1.bf16.msra.mxu1 %v14848_v14  ;;  %6678 = vmatprep.subr.bf16.mxu0 %v14853_v50  ;;  %v14922_v14 = vld [vmem:[#allocation10 + $0xa0c] ss:$16 sps:$4 sm:$0xff]   ;;  %v6012_v50 = vrot.slane %v5866_v22, 1  ;;  %v14986_v22 = vld [vmem:[#allocation10 + $0xb68] ss:$16 sps:$4 sm:$0xff]  }
 0x3e8   : > { %6764 = vmatprep.subr.bf16.mxu1 %v14856_v15  ;;  %v14917_v15 = vld [vmem:[#allocation10 + $0xa00] ss:$16 sps:$4 sm:$0xff]  }
 0x3ea   : > { %6679 = vmatpush1.bf16.msra.mxu0 %v14851_v51  ;;  %v14920_v51 = vld [vmem:[#allocation10 + $0xa08] ss:$16 sps:$4 sm:$0xff]  }
 0x3eb   : > { %6765 = vmatpush1.bf16.msra.mxu1 %v14854_v10  ;;  %6680 = vmatprep.subr.bf16.mxu0 %v14859_v25  ;;  %v6014_v10 = vsel %vm6011_vm10, %v6012_v50, %v6013_v41  ;;  %v14925_v25 = vld [vmem:[#allocation10 + $0xa24] ss:$16 sps:$4 sm:$0xff]   ;;  %v14989_v41 = vld [vmem:[#allocation10 + $0xb80] ss:$16 sps:$4 sm:$0xff]  }
 0x3ec   : > { %6766 = vmatprep.subr.bf16.mxu1 %v14862_v7  ;;  %v14928_v7 = vld [vmem:[#allocation10 + $0xa2c] ss:$16 sps:$4 sm:$0xff]   ;;  %v14997_v50 = vld [vmem:[#allocation10 + $0xba4] ss:$16 sps:$4 sm:$0xff]  }
 0x3ee   : > { %6681 = vmatpush1.bf16.msra.mxu0 %v14857_v12  ;;  %v14923_v12 = vld [vmem:[#allocation10 + $0xa20] ss:$16 sps:$4 sm:$0xff]  }
 0x3ef   : > { %6767 = vmatpush1.bf16.msra.mxu1 %v14860_v27  ;;  %6682 = vmatprep.subr.bf16.mxu0 %v14865_v17  ;;  %v14926_v27 = vld [vmem:[#allocation10 + $0xa28] ss:$16 sps:$4 sm:$0xff]   ;;  %v14931_v17 = vld [vmem:[#allocation10 + $0xa44] ss:$16 sps:$4 sm:$0xff]  }
 0x3f0   : > { %6768 = vmatprep.subr.bf16.mxu1 %v14868_v53  ;;  %v14934_v53 = vld [vmem:[#allocation10 + $0xa4c] ss:$16 sps:$4 sm:$0xff]  }
 0x3f2   : > { %6683 = vmatpush1.bf16.msra.mxu0 %v14863_v3  ;;  %v14929_v3 = vld [vmem:[#allocation10 + $0xa40] ss:$16 sps:$4 sm:$0xff]  }
 0x3f3   : > { %6769 = vmatpush1.bf16.msra.mxu1 %v14866_v57  ;;  %6684 = vmatprep.subr.bf16.mxu0 %v14871_v1  ;;  %v14932_v57 = vld [vmem:[#allocation10 + $0xa48] ss:$16 sps:$4 sm:$0xff]   ;;  %v14937_v1 = vld [vmem:[#allocation10 + $0xa64] ss:$16 sps:$4 sm:$0xff]  }
 0x3f4   : > { %6770 = vmatprep.subr.bf16.mxu1 %v14874_v28  ;;  %v14940_v28 = vld [vmem:[#allocation10 + $0xa6c] ss:$16 sps:$4 sm:$0xff]  }
 0x3f6   : > { %6685 = vmatpush1.bf16.msra.mxu0 %v14869_v61  ;;  %v14935_v61 = vld [vmem:[#allocation10 + $0xa60] ss:$16 sps:$4 sm:$0xff]  }
 0x3f7   : > { %6771 = vmatpush1.bf16.msra.mxu1 %v14872_v23  ;;  %6686 = vmatprep.subr.bf16.mxu0 %v14877_v38  ;;  %v14938_v23 = vld [vmem:[#allocation10 + $0xa68] ss:$16 sps:$4 sm:$0xff]   ;;  %v14943_v38 = vld [vmem:[#allocation10 + $0xa84] ss:$16 sps:$4 sm:$0xff]  }
 0x3f8   : > { %6772 = vmatprep.subr.bf16.mxu1 %v14880_v9  ;;  %v14946_v9 = vld [vmem:[#allocation10 + $0xa8c] ss:$16 sps:$4 sm:$0xff]  }
 0x3fa   : > { %6687 = vmatpush1.bf16.msra.mxu0 %v14875_v30  ;;  %v14944_v30 = vld [vmem:[#allocation10 + $0xa88] ss:$16 sps:$4 sm:$0xff]  }
 0x3fb   : > { %6773 = vmatpush1.bf16.msra.mxu1 %v14878_v21  ;;  %6688 = vmatprep.subr.bf16.mxu0 %v14883_v58  ;;  %v14949_v21 = vld [vmem:[#allocation10 + $0xaa4] ss:$16 sps:$4 sm:$0xff]   ;;  %v14952_v58 = vld [vmem:[#allocation10 + $0xaac] ss:$16 sps:$4 sm:$0xff]  }
 0x3fc   : > { %6774 = vmatprep.subr.bf16.mxu1 %v14886_v20  ;;  %v14947_v20 = vld [vmem:[#allocation10 + $0xaa0] ss:$16 sps:$4 sm:$0xff]  }
 0x3fe   : > { %6689 = vmatpush1.bf16.msra.mxu0 %v14881_v4  ;;  %v14950_v4 = vld [vmem:[#allocation10 + $0xaa8] ss:$16 sps:$4 sm:$0xff]  }
 0x3ff   : > { %6775 = vmatpush1.bf16.msra.mxu1 %v14884_v45  ;;  %6690 = vmatprep.subr.bf16.mxu0 %v14889_v52  ;;  %v14955_v45 = vld [vmem:[#allocation10 + $0xac4] ss:$16 sps:$4 sm:$0xff]   ;;  %v14958_v52 = vld [vmem:[#allocation10 + $0xacc] ss:$16 sps:$4 sm:$0xff]  }
 0x400   : > { %6776 = vmatprep.subr.bf16.mxu1 %v14892_v2  ;;  %v14953_v2 = vld [vmem:[#allocation10 + $0xac0] ss:$16 sps:$4 sm:$0xff]  }
 0x402   : > { %6691 = vmatpush1.bf16.msra.mxu0 %v14887_v46  ;;  %v14956_v46 = vld [vmem:[#allocation10 + $0xac8] ss:$16 sps:$4 sm:$0xff]  }
 0x403   : > { %6777 = vmatpush1.bf16.msra.mxu1 %v14890_v0  ;;  %6692 = vmatprep.subr.bf16.mxu0 %v14895_v59  ;;  %v14961_v0 = vld [vmem:[#allocation10 + $0xae4] ss:$16 sps:$4 sm:$0xff]   ;;  %v14964_v59 = vld [vmem:[#allocation10 + $0xaec] ss:$16 sps:$4 sm:$0xff]  }
 0x404   : > { %6778 = vmatprep.subr.bf16.mxu1 %v14898_v44  ;;  %v14959_v44 = vld [vmem:[#allocation10 + $0xae0] ss:$16 sps:$4 sm:$0xff]  }
 0x406   : > { %6693 = vmatpush1.bf16.msra.mxu0 %v14893_v6  ;;  %v14962_v6 = vld [vmem:[#allocation10 + $0xae8] ss:$16 sps:$4 sm:$0xff]  }
 0x407   : > { %6779 = vmatpush1.bf16.msra.mxu1 %v14896_v63  ;;  %6694 = vmatprep.subr.bf16.mxu0 %v14901_v54  ;;  %v14967_v63 = vld [vmem:[#allocation10 + $0xb04] ss:$16 sps:$4 sm:$0xff]   ;;  %v14970_v54 = vld [vmem:[#allocation10 + $0xb0c] ss:$16 sps:$4 sm:$0xff]  }
 0x408   : > { %6780 = vmatprep.subr.bf16.mxu1 %v14904_v47  ;;  %v14965_v47 = vld [vmem:[#allocation10 + $0xb00] ss:$16 sps:$4 sm:$0xff]  }
 0x40a   : > { %6695 = vmatpush1.bf16.msra.mxu0 %v14899_v42  ;;  %v14968_v42 = vld [vmem:[#allocation10 + $0xb08] ss:$16 sps:$4 sm:$0xff]  }
 0x40b   : > { %6781 = vmatpush1.bf16.msra.mxu1 %v14902_v56  ;;  %6696 = vmatprep.subr.bf16.mxu0 %v14907_v60  ;;  %v14973_v56 = vld [vmem:[#allocation10 + $0xb24] ss:$16 sps:$4 sm:$0xff]   ;;  %v14976_v60 = vld [vmem:[#allocation10 + $0xb2c] ss:$16 sps:$4 sm:$0xff]  }
 0x40c   : > { %6782 = vmatprep.subr.bf16.mxu1 %v14910_v5  ;;  %v14971_v5 = vld [vmem:[#allocation10 + $0xb20] ss:$16 sps:$4 sm:$0xff]  }
 0x40e   : > { %6697 = vmatpush1.bf16.msra.mxu0 %v14905_v35  ;;  %v14979_v35 = vld [vmem:[#allocation10 + $0xb44] ss:$16 sps:$4 sm:$0xff]  }
 0x40f   : > { %6783 = vmatpush1.bf16.msra.mxu1 %v14908_v37  ;;  %6698 = vmatprep.subr.bf16.mxu0 %v14913_v40  ;;  %v14982_v37 = vld [vmem:[#allocation10 + $0xb4c] ss:$16 sps:$4 sm:$0xff]   ;;  %v14977_v40 = vld [vmem:[#allocation10 + $0xb40] ss:$16 sps:$4 sm:$0xff]  }
 0x410   : > { %6784 = vmatprep.subr.bf16.mxu1 %v14916_v18  ;;  %v14985_v18 = vld [vmem:[#allocation10 + $0xb64] ss:$16 sps:$4 sm:$0xff]  }
 0x412   : > { %6699 = vmatpush1.bf16.msra.mxu0 %v14911_v13  ;;  %v14983_v13 = vld [vmem:[#allocation10 + $0xb60] ss:$16 sps:$4 sm:$0xff]  }
 0x413   : > { %6785 = vmatpush1.bf16.msra.mxu1 %v14914_v16  ;;  %6711 = vmatprep.subr.bf16.mxu0 %v14919_v43  ;;  %v14991_v16 = vld [vmem:[#allocation10 + $0xb84] ss:$16 sps:$4 sm:$0xff]   ;;  %v14994_v43 = vld [vmem:[#allocation10 + $0xb8c] ss:$16 sps:$4 sm:$0xff]  }
 0x414   : > { %6797 = vmatprep.subr.bf16.mxu1 %v14922_v14  ;;  %v14992_v14 = vld [vmem:[#allocation10 + $0xb88] ss:$16 sps:$4 sm:$0xff]  }
 0x415   : > { %6701 = vmatmul.mubr.bf16.vlgmr.msra.gmra.mrb[16].mxu0 %v6014_v10 }
 0x416   : > { %6787 = vmatmul.mubr.bf16.vlgmr.msra.gmra.mrb[16].mxu1 %v6014_v10  ;;  %6712 = vmatpush1.bf16.msra.mxu0 %v14917_v15  ;;  %v6853_v15 = vld [vmem:[#allocation3 + $0x48] sm:$0x7]  ;;  %v6849_v10 = vld [vmem:[#allocation3 + $0x8] sm:$0xf8] }
 0x417   : > { %6743 = vmatprep.mubr.bf16.mxu0 %v17050_v49  ;;  %6798 = vmatpush1.bf16.msra.mxu1 %v14920_v51  ;;  %v15000_v51 = vld [vmem:[#allocation10 + $0xbac] ss:$16 sps:$4 sm:$0xff]  }
 0x418   : > { %6829 = vmatprep.mubr.bf16.mxu1 %v17050_v49  ;;  %6713 = vmatprep.subr.bf16.mxu0 %v14925_v25  ;;  %v14941_v49 = vld [vmem:[#allocation10 + $0xa80] ss:$16 sps:$4 sm:$0xff]  }
 0x419   : > { %6799 = vmatprep.subr.bf16.mxu1 %v14928_v7  ;;  %v14995_v25 = vld [vmem:[#allocation10 + $0xba0] ss:$16 sps:$4 sm:$0xff]   ;;  %v6861_v7 = vpack.c.bf16 %v6853_v15, %v6853_v15  ;;  %v15057_v15 = vld [vmem:[#allocation10 + $0xce4] ss:$16 sps:$4 sm:$0xff]  }
 0x41a   : > { %6714 = vmatpush1.bf16.msra.mxu0 %v14923_v12  ;;  %v14998_v12 = vld [vmem:[#allocation10 + $0xba8] ss:$16 sps:$4 sm:$0xff]  }
 0x41b   : > { %6800 = vmatpush1.bf16.msra.mxu1 %v14926_v27  ;;  %6715 = vmatprep.subr.bf16.mxu0 %v14931_v17  ;;  %v15003_v27 = vld [vmem:[#allocation10 + $0xbc4] ss:$16 sps:$4 sm:$0xff]   ;;  %v15006_v17 = vld [vmem:[#allocation10 + $0xbcc] ss:$16 sps:$4 sm:$0xff]  }
 0x41c   : > { %6801 = vmatprep.subr.bf16.mxu1 %v14934_v53  ;;  %v6857_v53 = vpack.c.bf16 %v17077_v34, %v6849_v10  ;;  %v15015_v34 = vld [vmem:[#allocation10 + $0xc04] ss:$16 sps:$4 sm:$0xff]   ;;  %v15055_v10 = vld [vmem:[#allocation10 + $0xce0] ss:$16 sps:$4 sm:$0xff]  }
 0x41e   : > { %6716 = vmatpush1.bf16.msra.mxu0 %v14929_v3  ;;  %v15001_v3 = vld [vmem:[#allocation10 + $0xbc0] ss:$16 sps:$4 sm:$0xff]  }
 0x41f   : > { %6802 = vmatpush1.bf16.msra.mxu1 %v14932_v57  ;;  %6717 = vmatprep.subr.bf16.mxu0 %v14937_v1  ;;  %v7020_v57 = vshrl.u32 %v6861_v7, 16  ;;  %v7023_v1 = vshll.u32 %v6861_v7, 16  ;;  %v15063_v7 = vld [vmem:[#allocation10 + $0xd04] ss:$16 sps:$4 sm:$0xff]  }
 0x420   : > { %6803 = vmatprep.subr.bf16.mxu1 %v14940_v28  ;;  %v15004_v28 = vld [vmem:[#allocation10 + $0xbc8] ss:$16 sps:$4 sm:$0xff]  }
 0x422   : > { %6718 = vmatpush1.bf16.msra.mxu0 %v14935_v61  ;;  %v15009_v61 = vld [vmem:[#allocation10 + $0xbe4] ss:$16 sps:$4 sm:$0xff]  }
 0x423   : > { %6804 = vmatpush1.bf16.msra.mxu1 %v14938_v23  ;;  %6719 = vmatprep.subr.bf16.mxu0 %v14943_v38  ;;  %v15012_v23 = vld [vmem:[#allocation10 + $0xbec] ss:$16 sps:$4 sm:$0xff]   ;;  %v7012_v38 = vshrl.u32 %v6857_v53, 16 }
 0x424   : > { %6805 = vmatprep.subr.bf16.mxu1 %v14946_v9  ;;  %v7015_v9 = vshll.u32 %v6857_v53, 16  ;;  %v15069_v53 = vld [vmem:[#allocation10 + $0xd24] ss:$16 sps:$4 sm:$0xff]  }
 0x426   : > { %6720 = vmatpush1.bf16.msra.mxu0 %v14941_v49  ;;  %v15007_v49 = vld [vmem:[#allocation10 + $0xbe0] ss:$16 sps:$4 sm:$0xff]  }
 0x427   : > { %6806 = vmatpush1.bf16.msra.mxu1 %v14944_v30  ;;  %6721 = vmatprep.subr.bf16.mxu0 %v14949_v21  ;;  %v7022_v30 = vrot.slane %v7020_v57, 1  ;;  %v7025_v21 = vrot.slane %v7023_v1, 2  ;;  %v15067_v57 = vld [vmem:[#allocation10 + $0xd20] ss:$16 sps:$4 sm:$0xff]   ;;  %v15070_v1 = vld [vmem:[#allocation10 + $0xd28] ss:$16 sps:$4 sm:$0xff]  }
 0x428   : > { %6807 = vmatprep.subr.bf16.mxu1 %v14952_v58  ;;  %v15010_v58 = vld [vmem:[#allocation10 + $0xbe8] ss:$16 sps:$4 sm:$0xff]  }
 0x42a   : > { %6722 = vmatpush1.bf16.msra.mxu0 %v14947_v20  ;;  %v15018_v20 = vld [vmem:[#allocation10 + $0xc0c] ss:$16 sps:$4 sm:$0xff]  }
 0x42b   : > { %6808 = vmatpush1.bf16.msra.mxu1 %v14950_v4  ;;  %6723 = vmatprep.subr.bf16.mxu0 %v14955_v45  ;;  %v7014_v4 = vrot.slane %v7012_v38, 1  ;;  %v7017_v45 = vrot.slane %v7015_v9, 2  ;;  %v15076_v38 = vld [vmem:[#allocation10 + $0xd48] ss:$16 sps:$4 sm:$0xff]   ;;  %v15081_v9 = vld [vmem:[#allocation10 + $0xd64] ss:$16 sps:$4 sm:$0xff]  }
 0x42c   : > { %6809 = vmatprep.subr.bf16.mxu1 %v14958_v52  ;;  %v15013_v52 = vld [vmem:[#allocation10 + $0xc00] ss:$16 sps:$4 sm:$0xff]  }
 0x42e   : > { %6724 = vmatpush1.bf16.msra.mxu0 %v14953_v2  ;;  %v7026_v2 = vor.u32 %v7025_v21, %v7022_v30  ;;  %v15079_v30 = vld [vmem:[#allocation10 + $0xd60] ss:$16 sps:$4 sm:$0xff]   ;;  %v15082_v21 = vld [vmem:[#allocation10 + $0xd68] ss:$16 sps:$4 sm:$0xff]  }
 0x42f   : > { %6810 = vmatpush1.bf16.msra.mxu1 %v14956_v46  ;;  %6725 = vmatprep.subr.bf16.mxu0 %v14961_v0  ;;  %v15016_v46 = vld [vmem:[#allocation10 + $0xc08] ss:$16 sps:$4 sm:$0xff]   ;;  %v7018_v0 = vor.u32 %v7017_v45, %v7014_v4  ;;  %v15085_v4 = vld [vmem:[#allocation10 + $0xd80] ss:$16 sps:$4 sm:$0xff]  }
 0x430   : > { %6811 = vmatprep.subr.bf16.mxu1 %v14964_v59  ;;  %v15021_v59 = vld [vmem:[#allocation10 + $0xc24] ss:$16 sps:$4 sm:$0xff]   ;;  %v15088_v45 = vld [vmem:[#allocation10 + $0xd88] ss:$16 sps:$4 sm:$0xff]  }
 0x432   : > { %6726 = vmatpush1.bf16.msra.mxu0 %v14959_v44  ;;  %v15024_v44 = vld [vmem:[#allocation10 + $0xc2c] ss:$16 sps:$4 sm:$0xff]  }
 0x433   : > { %6812 = vmatpush1.bf16.msra.mxu1 %v14962_v6  ;;  %6727 = vmatprep.subr.bf16.mxu0 %v14967_v63  ;;  %v7027_v6 = vsel %vm6993_vm11, %v7018_v0, %v7026_v2  ;;  %v15019_v63 = vld [vmem:[#allocation10 + $0xc20] ss:$16 sps:$4 sm:$0xff]   ;;  %v6848_v2 = vld [vmem:[#allocation3] sm:$0xf8] }
 0x434   : > { %6813 = vmatprep.subr.bf16.mxu1 %v14970_v54  ;;  %v15022_v54 = vld [vmem:[#allocation10 + $0xc28] ss:$16 sps:$4 sm:$0xff]  }
 0x436   : > { %6728 = vmatpush1.bf16.msra.mxu0 %v14965_v47  ;;  %v15027_v47 = vld [vmem:[#allocation10 + $0xc44] ss:$16 sps:$4 sm:$0xff]  }
 0x437   : > { %6814 = vmatpush1.bf16.msra.mxu1 %v14968_v42  ;;  %6729 = vmatprep.subr.bf16.mxu0 %v14973_v56  ;;  %v15030_v42 = vld [vmem:[#allocation10 + $0xc4c] ss:$16 sps:$4 sm:$0xff]   ;;  %v15025_v56 = vld [vmem:[#allocation10 + $0xc40] ss:$16 sps:$4 sm:$0xff]  }
 0x438   : > { %6815 = vmatprep.subr.bf16.mxu1 %v14976_v60  ;;  %v15028_v60 = vld [vmem:[#allocation10 + $0xc48] ss:$16 sps:$4 sm:$0xff]  }
 0x43a   : > { %6730 = vmatpush1.bf16.msra.mxu0 %v14971_v5  ;;  %v15033_v5 = vld [vmem:[#allocation10 + $0xc64] ss:$16 sps:$4 sm:$0xff]  }
 0x43b   : > { %6816 = vmatpush1.bf16.msra.mxu1 %v14974_v8  ;;  %6731 = vmatprep.subr.bf16.mxu0 %v14979_v35  ;;  %v15031_v8 = vld [vmem:[#allocation10 + $0xc60] ss:$16 sps:$4 sm:$0xff]   ;;  %v15034_v35 = vld [vmem:[#allocation10 + $0xc68] ss:$16 sps:$4 sm:$0xff]  }
 0x43c   : > { %6817 = vmatprep.subr.bf16.mxu1 %v14982_v37  ;;  %v15039_v37 = vld [vmem:[#allocation10 + $0xc84] ss:$16 sps:$4 sm:$0xff]  }
 0x43e   : > { %6732 = vmatpush1.bf16.msra.mxu0 %v14977_v40  ;;  %v15042_v40 = vld [vmem:[#allocation10 + $0xc8c] ss:$16 sps:$4 sm:$0xff]  }
 0x43f   : > { %6818 = vmatpush1.bf16.msra.mxu1 %v14980_v55  ;;  %6733 = vmatprep.subr.bf16.mxu0 %v14985_v18  ;;  %v15037_v55 = vld [vmem:[#allocation10 + $0xc80] ss:$16 sps:$4 sm:$0xff]   ;;  %v15040_v18 = vld [vmem:[#allocation10 + $0xc88] ss:$16 sps:$4 sm:$0xff]  }
 0x440   : > { %6819 = vmatprep.subr.bf16.mxu1 %v14988_v39  ;;  %v15045_v39 = vld [vmem:[#allocation10 + $0xca4] ss:$16 sps:$4 sm:$0xff]  }
 0x442   : > { %6734 = vmatpush1.bf16.msra.mxu0 %v14983_v13  ;;  %v15048_v13 = vld [vmem:[#allocation10 + $0xcac] ss:$16 sps:$4 sm:$0xff]  }
 0x443   : > { %6820 = vmatpush1.bf16.msra.mxu1 %v14986_v22  ;;  %6735 = vmatprep.subr.bf16.mxu0 %v14991_v16  ;;  %v15043_v22 = vld [vmem:[#allocation10 + $0xca0] ss:$16 sps:$4 sm:$0xff]   ;;  %v15046_v16 = vld [vmem:[#allocation10 + $0xca8] ss:$16 sps:$4 sm:$0xff]  }
 0x444   : > { %6821 = vmatprep.subr.bf16.mxu1 %v14994_v43  ;;  %v15051_v43 = vld [vmem:[#allocation10 + $0xcc4] ss:$16 sps:$4 sm:$0xff]  }
 0x446   : > { %6736 = vmatpush1.bf16.msra.mxu0 %v14989_v41  ;;  %v15054_v41 = vld [vmem:[#allocation10 + $0xccc] ss:$16 sps:$4 sm:$0xff]  }
 0x447   : > { %6822 = vmatpush1.bf16.msra.mxu1 %v14992_v14  ;;  %6737 = vmatprep.subr.bf16.mxu0 %v14997_v50  ;;  %v15049_v14 = vld [vmem:[#allocation10 + $0xcc0] ss:$16 sps:$4 sm:$0xff]   ;;  %v15052_v50 = vld [vmem:[#allocation10 + $0xcc8] ss:$16 sps:$4 sm:$0xff]  }
 0x448   : > { %6823 = vmatprep.subr.bf16.mxu1 %v15000_v51  ;;  %v15060_v51 = vld [vmem:[#allocation10 + $0xcec] ss:$16 sps:$4 sm:$0xff]  }
 0x44a   : > { %6738 = vmatpush1.bf16.msra.mxu0 %v14995_v25  ;;  %v15058_v25 = vld [vmem:[#allocation10 + $0xce8] ss:$16 sps:$4 sm:$0xff]  }
 0x44b   : > { %6824 = vmatpush1.bf16.msra.mxu1 %v14998_v12  ;;  %6739 = vmatprep.subr.bf16.mxu0 %v15003_v27  ;;  %v15066_v12 = vld [vmem:[#allocation10 + $0xd0c] ss:$16 sps:$4 sm:$0xff]   ;;  %v15061_v27 = vld [vmem:[#allocation10 + $0xd00] ss:$16 sps:$4 sm:$0xff]  }
 0x44c   : > { %6825 = vmatprep.subr.bf16.mxu1 %v15006_v17  ;;  %v15064_v17 = vld [vmem:[#allocation10 + $0xd08] ss:$16 sps:$4 sm:$0xff]  }
 0x44e   : > { %6740 = vmatpush1.bf16.msra.mxu0 %v15001_v3  ;;  %v15072_v3 = vld [vmem:[#allocation10 + $0xd2c] ss:$16 sps:$4 sm:$0xff]  }
 0x44f   : > { %6826 = vmatpush1.bf16.msra.mxu1 %v15004_v28  ;;  %6741 = vmatprep.subr.bf16.mxu0 %v15009_v61  ;;  %v15075_v28 = vld [vmem:[#allocation10 + $0xd44] ss:$16 sps:$4 sm:$0xff]   ;;  %v15078_v61 = vld [vmem:[#allocation10 + $0xd4c] ss:$16 sps:$4 sm:$0xff]  }
 0x450   : > { %6827 = vmatprep.subr.bf16.mxu1 %v15012_v23  ;;  %v15073_v23 = vld [vmem:[#allocation10 + $0xd40] ss:$16 sps:$4 sm:$0xff]  }
 0x452   : > { %6742 = vmatpush1.bf16.msra.mxu0 %v15007_v49  ;;  %v15084_v49 = vld [vmem:[#allocation10 + $0xd6c] ss:$16 sps:$4 sm:$0xff]  }
 0x453   : > { %6828 = vmatpush1.bf16.msra.mxu1 %v15010_v58  ;;  %7706 = vmatprep.subr.bf16.mxu0 %v15015_v34  ;;  %v15087_v58 = vld [vmem:[#allocation10 + $0xd84] ss:$16 sps:$4 sm:$0xff]   ;;  %v15090_v34 = vld [vmem:[#allocation10 + $0xd8c] ss:$16 sps:$4 sm:$0xff]  }
 0x454   : > { %7792 = vmatprep.subr.bf16.mxu1 %v15018_v20  ;;  %v6852_v20 = vld [vmem:[#allocation3 + $0x40] sm:$0x7] }
 0x455   : > { %6744 = vmatmul.mubr.bf16.vlgmr.msra.gmra.mrb[16].mxu0 %v17055_v24  ;;  %v6860_v0 = vpack.c.bf16 %v6852_v20, %v6852_v20  ;;  %v15148_v20 = vld [vmem:[#allocation10 + $0xec8] ss:$16 sps:$4 sm:$0xff]  }
 0x456   : > { %6830 = vmatmul.mubr.bf16.vlgmr.msra.gmra.mrb[16].mxu1 %v17055_v24  ;;  %7707 = vmatpush1.bf16.msra.mxu0 %v15013_v52  ;;  %v15036_v24 = vld [vmem:[#allocation10 + $0xc6c] ss:$16 sps:$4 sm:$0xff]   ;;  %v15093_v52 = vld [vmem:[#allocation10 + $0xda4] ss:$16 sps:$4 sm:$0xff]  }
 0x457   : > { %7738 = vmatprep.mubr.bf16.mxu0 %v7027_v6  ;;  %7793 = vmatpush1.bf16.msra.mxu1 %v15016_v46  ;;  %v15096_v46 = vld [vmem:[#allocation10 + $0xdac] ss:$16 sps:$4 sm:$0xff]  }
 0x458   : > { %7824 = vmatprep.mubr.bf16.mxu1 %v7027_v6  ;;  %7708 = vmatprep.subr.bf16.mxu0 %v15021_v59  ;;  %v15091_v59 = vld [vmem:[#allocation10 + $0xda0] ss:$16 sps:$4 sm:$0xff]   ;;  %v15094_v6 = vld [vmem:[#allocation10 + $0xda8] ss:$16 sps:$4 sm:$0xff]  }
 0x459   : > { %7794 = vmatprep.subr.bf16.mxu1 %v15024_v44  ;;  %v6856_v44 = vpack.c.bf16 %v17081_v19, %v6848_v2  ;;  %v15154_v2 = vld [vmem:[#allocation10 + $0xee8] ss:$16 sps:$4 sm:$0xff]  }
 0x45a   : > { %7709 = vmatpush1.bf16.msra.mxu0 %v15019_v63  ;;  %v15099_v63 = vld [vmem:[#allocation10 + $0xdc4] ss:$16 sps:$4 sm:$0xff]  }
 0x45b   : > { %7795 = vmatpush1.bf16.msra.mxu1 %v15022_v54  ;;  %7710 = vmatprep.subr.bf16.mxu0 %v15027_v47  ;;  %v15102_v54 = vld [vmem:[#allocation10 + $0xdcc] ss:$16 sps:$4 sm:$0xff]   ;;  %v7003_v47 = vshrl.u32 %v6860_v0, 16 }
 0x45c   : > { %7796 = vmatprep.subr.bf16.mxu1 %v15030_v42  ;;  %v7006_v42 = vshll.u32 %v6860_v0, 16  ;;  %v15162_v0 = vld [vmem:[#allocation10 + $0xf0c] ss:$16 sps:$4 sm:$0xff]  }
 0x45e   : > { %7711 = vmatpush1.bf16.msra.mxu0 %v15025_v56  ;;  %v15097_v56 = vld [vmem:[#allocation10 + $0xdc0] ss:$16 sps:$4 sm:$0xff]   ;;  %v7008_v19 = vrot.slane %v7006_v42, 2  ;;  %v15171_v42 = vld [vmem:[#allocation10 + $0xf44] ss:$16 sps:$4 sm:$0xff]  }
 0x45f   : > { %7797 = vmatpush1.bf16.msra.mxu1 %v15028_v60  ;;  %7712 = vmatprep.subr.bf16.mxu0 %v15033_v5  ;;  %v6995_v60 = vshrl.u32 %v6856_v44, 16  ;;  %v6998_v5 = vshll.u32 %v6856_v44, 16  ;;  %v15160_v44 = vld [vmem:[#allocation10 + $0xf08] ss:$16 sps:$4 sm:$0xff]  }
 0x460   : > { %7798 = vmatprep.subr.bf16.mxu1 %v15036_v24  ;;  %v15100_v24 = vld [vmem:[#allocation10 + $0xdc8] ss:$16 sps:$4 sm:$0xff]  }
 0x462   : > { %7713 = vmatpush1.bf16.msra.mxu0 %v15031_v8  ;;  %v15105_v8 = vld [vmem:[#allocation10 + $0xde4] ss:$16 sps:$4 sm:$0xff]  }
 0x463   : > { %7799 = vmatpush1.bf16.msra.mxu1 %v15034_v35  ;;  %7714 = vmatprep.subr.bf16.mxu0 %v15039_v37  ;;  %v15108_v35 = vld [vmem:[#allocation10 + $0xdec] ss:$16 sps:$4 sm:$0xff]   ;;  %v7005_v37 = vrot.slane %v7003_v47, 1  ;;  %v15166_v47 = vld [vmem:[#allocation10 + $0xf28] ss:$16 sps:$4 sm:$0xff]  }
 0x464   : > { %7800 = vmatprep.subr.bf16.mxu1 %v15042_v40  ;;  %v15103_v40 = vld [vmem:[#allocation10 + $0xde0] ss:$16 sps:$4 sm:$0xff]  }
 0x466   : > { %7715 = vmatpush1.bf16.msra.mxu0 %v15037_v55  ;;  %v6997_v55 = vrot.slane %v6995_v60, 1  ;;  %v15169_v60 = vld [vmem:[#allocation10 + $0xf40] ss:$16 sps:$4 sm:$0xff]  }
 0x467   : > { %7801 = vmatpush1.bf16.msra.mxu1 %v15040_v18  ;;  %7716 = vmatprep.subr.bf16.mxu0 %v15045_v39  ;;  %v7000_v18 = vrot.slane %v6998_v5, 2  ;;  %v15106_v39 = vld [vmem:[#allocation10 + $0xde8] ss:$16 sps:$4 sm:$0xff]  }
 0x468   : > { %7802 = vmatprep.subr.bf16.mxu1 %v15048_v13  ;;  %v15111_v13 = vld [vmem:[#allocation10 + $0xe04] ss:$16 sps:$4 sm:$0xff]   ;;  %v15172_v5 = vld [vmem:[#allocation10 + $0xf48] ss:$16 sps:$4 sm:$0xff]  }
 0x46a   : > { %7717 = vmatpush1.bf16.msra.mxu0 %v15043_v22  ;;  %v7009_v22 = vor.u32 %v7008_v19, %v7005_v37  ;;  %v15178_v37 = vld [vmem:[#allocation10 + $0xf68] ss:$16 sps:$4 sm:$0xff]   ;;  %v15183_v19 = vld [vmem:[#allocation10 + $0xf84] ss:$16 sps:$4 sm:$0xff]  }
 0x46b   : > { %7803 = vmatpush1.bf16.msra.mxu1 %v15046_v16  ;;  %7718 = vmatprep.subr.bf16.mxu0 %v15051_v43  ;;  %v15114_v16 = vld [vmem:[#allocation10 + $0xe0c] ss:$16 sps:$4 sm:$0xff]   ;;  %v7001_v43 = vor.u32 %v7000_v18, %v6997_v55  ;;  %v15181_v55 = vld [vmem:[#allocation10 + $0xf80] ss:$16 sps:$4 sm:$0xff]   ;;  %v15184_v18 = vld [vmem:[#allocation10 + $0xf88] ss:$16 sps:$4 sm:$0xff]  }
 0x46c   : > { %7804 = vmatprep.subr.bf16.mxu1 %v15054_v41  ;;  %v15109_v41 = vld [vmem:[#allocation10 + $0xe00] ss:$16 sps:$4 sm:$0xff]  }
 0x46e   : > { %7719 = vmatpush1.bf16.msra.mxu0 %v15049_v14  ;;  %v15112_v14 = vld [vmem:[#allocation10 + $0xe08] ss:$16 sps:$4 sm:$0xff]  }
 0x46f   : > { %7805 = vmatpush1.bf16.msra.mxu1 %v15052_v50  ;;  %7720 = vmatprep.subr.bf16.mxu0 %v15057_v15  ;;  %v7010_v50 = vsel %vm6993_vm11, %v7001_v43, %v7009_v22  ;;  %v15117_v15 = vld [vmem:[#allocation10 + $0xe24] ss:$16 sps:$4 sm:$0xff]   ;;  %v15187_v22 = vld [vmem:[#allocation10 + $0xfa0] ss:$16 sps:$4 sm:$0xff]  }
 0x470   : > { %7806 = vmatprep.subr.bf16.mxu1 %v15060_v51  ;;  %v15120_v51 = vld [vmem:[#allocation10 + $0xe2c] ss:$16 sps:$4 sm:$0xff]   ;;  %v15195_v43 = vld [vmem:[#allocation10 + $0xfc4] ss:$16 sps:$4 sm:$0xff]  }
 0x472   : > { %7721 = vmatpush1.bf16.msra.mxu0 %v15055_v10  ;;  %v15115_v10 = vld [vmem:[#allocation10 + $0xe20] ss:$16 sps:$4 sm:$0xff]  }
 0x473   : > { %7807 = vmatpush1.bf16.msra.mxu1 %v15058_v25  ;;  %7722 = vmatprep.subr.bf16.mxu0 %v15063_v7  ;;  %v15118_v25 = vld [vmem:[#allocation10 + $0xe28] ss:$16 sps:$4 sm:$0xff]   ;;  %v15123_v7 = vld [vmem:[#allocation10 + $0xe44] ss:$16 sps:$4 sm:$0xff]  }
 0x474   : > { %7808 = vmatprep.subr.bf16.mxu1 %v15066_v12  ;;  %v15126_v12 = vld [vmem:[#allocation10 + $0xe4c] ss:$16 sps:$4 sm:$0xff]  }
 0x476   : > { %7723 = vmatpush1.bf16.msra.mxu0 %v15061_v27  ;;  %v15121_v27 = vld [vmem:[#allocation10 + $0xe40] ss:$16 sps:$4 sm:$0xff]  }
 0x477   : > { %7809 = vmatpush1.bf16.msra.mxu1 %v15064_v17  ;;  %7724 = vmatprep.subr.bf16.mxu0 %v15069_v53  ;;  %v15124_v17 = vld [vmem:[#allocation10 + $0xe48] ss:$16 sps:$4 sm:$0xff]   ;;  %v15129_v53 = vld [vmem:[#allocation10 + $0xe64] ss:$16 sps:$4 sm:$0xff]  }
 0x478   : > { %7810 = vmatprep.subr.bf16.mxu1 %v15072_v3  ;;  %v15132_v3 = vld [vmem:[#allocation10 + $0xe6c] ss:$16 sps:$4 sm:$0xff]  }
 0x47a   : > { %7725 = vmatpush1.bf16.msra.mxu0 %v15067_v57  ;;  %v15127_v57 = vld [vmem:[#allocation10 + $0xe60] ss:$16 sps:$4 sm:$0xff]  }
 0x47b   : > { %7811 = vmatpush1.bf16.msra.mxu1 %v15070_v1  ;;  %7726 = vmatprep.subr.bf16.mxu0 %v15075_v28  ;;  %v15130_v1 = vld [vmem:[#allocation10 + $0xe68] ss:$16 sps:$4 sm:$0xff]   ;;  %v15135_v28 = vld [vmem:[#allocation10 + $0xe84] ss:$16 sps:$4 sm:$0xff]  }
 0x47c   : > { %7812 = vmatprep.subr.bf16.mxu1 %v15078_v61  ;;  %v15138_v61 = vld [vmem:[#allocation10 + $0xe8c] ss:$16 sps:$4 sm:$0xff]  }
 0x47e   : > { %7727 = vmatpush1.bf16.msra.mxu0 %v15073_v23  ;;  %v15136_v23 = vld [vmem:[#allocation10 + $0xe88] ss:$16 sps:$4 sm:$0xff]  }
 0x47f   : > { %7813 = vmatpush1.bf16.msra.mxu1 %v15076_v38  ;;  %7728 = vmatprep.subr.bf16.mxu0 %v15081_v9  ;;  %v15141_v38 = vld [vmem:[#allocation10 + $0xea4] ss:$16 sps:$4 sm:$0xff]   ;;  %v15144_v9 = vld [vmem:[#allocation10 + $0xeac] ss:$16 sps:$4 sm:$0xff]  }
 0x480   : > { %7814 = vmatprep.subr.bf16.mxu1 %v15084_v49  ;;  %v15139_v49 = vld [vmem:[#allocation10 + $0xea0] ss:$16 sps:$4 sm:$0xff]  }
 0x482   : > { %7729 = vmatpush1.bf16.msra.mxu0 %v15079_v30  ;;  %v15142_v30 = vld [vmem:[#allocation10 + $0xea8] ss:$16 sps:$4 sm:$0xff]  }
 0x483   : > { %7815 = vmatpush1.bf16.msra.mxu1 %v15082_v21  ;;  %7730 = vmatprep.subr.bf16.mxu0 %v15087_v58  ;;  %v15147_v21 = vld [vmem:[#allocation10 + $0xec4] ss:$16 sps:$4 sm:$0xff]   ;;  %v15150_v58 = vld [vmem:[#allocation10 + $0xecc] ss:$16 sps:$4 sm:$0xff]  }
 0x484   : > { %7816 = vmatprep.subr.bf16.mxu1 %v15090_v34  ;;  %v15145_v34 = vld [vmem:[#allocation10 + $0xec0] ss:$16 sps:$4 sm:$0xff]  }
 0x486   : > { %7731 = vmatpush1.bf16.msra.mxu0 %v15085_v4  ;;  %v15153_v4 = vld [vmem:[#allocation10 + $0xee4] ss:$16 sps:$4 sm:$0xff]  }
 0x487   : > { %7817 = vmatpush1.bf16.msra.mxu1 %v15088_v45  ;;  %7732 = vmatprep.subr.bf16.mxu0 %v15093_v52  ;;  %v15156_v45 = vld [vmem:[#allocation10 + $0xeec] ss:$16 sps:$4 sm:$0xff]   ;;  %v15151_v52 = vld [vmem:[#allocation10 + $0xee0] ss:$16 sps:$4 sm:$0xff]  }
 0x488   : > { %7818 = vmatprep.subr.bf16.mxu1 %v15096_v46  ;;  %v15159_v46 = vld [vmem:[#allocation10 + $0xf04] ss:$16 sps:$4 sm:$0xff]  }
 0x48a   : > { %7733 = vmatpush1.bf16.msra.mxu0 %v15091_v59  ;;  %v15157_v59 = vld [vmem:[#allocation10 + $0xf00] ss:$16 sps:$4 sm:$0xff]  }
 0x48b   : > { %7819 = vmatpush1.bf16.msra.mxu1 %v15094_v6  ;;  %7734 = vmatprep.subr.bf16.mxu0 %v15099_v63  ;;  %v15165_v6 = vld [vmem:[#allocation10 + $0xf24] ss:$16 sps:$4 sm:$0xff]   ;;  %v15168_v63 = vld [vmem:[#allocation10 + $0xf2c] ss:$16 sps:$4 sm:$0xff]  }
 0x48c   : > { %7820 = vmatprep.subr.bf16.mxu1 %v15102_v54  ;;  %v15163_v54 = vld [vmem:[#allocation10 + $0xf20] ss:$16 sps:$4 sm:$0xff]  }
 0x48e   : > { %7735 = vmatpush1.bf16.msra.mxu0 %v15097_v56  ;;  %v15174_v56 = vld [vmem:[#allocation10 + $0xf4c] ss:$16 sps:$4 sm:$0xff]  }
 0x48f   : > { %7821 = vmatpush1.bf16.msra.mxu1 %v15100_v24  ;;  %7736 = vmatprep.subr.bf16.mxu0 %v15105_v8  ;;  %v15177_v24 = vld [vmem:[#allocation10 + $0xf64] ss:$16 sps:$4 sm:$0xff]   ;;  %v15180_v8 = vld [vmem:[#allocation10 + $0xf6c] ss:$16 sps:$4 sm:$0xff]  }
 0x490   : > { %7822 = vmatprep.subr.bf16.mxu1 %v15108_v35  ;;  %v15175_v35 = vld [vmem:[#allocation10 + $0xf60] ss:$16 sps:$4 sm:$0xff]  }
 0x492   : > { %7737 = vmatpush1.bf16.msra.mxu0 %v15103_v40  ;;  %v15186_v40 = vld [vmem:[#allocation10 + $0xf8c] ss:$16 sps:$4 sm:$0xff]  }
 0x493   : > { %7823 = vmatpush1.bf16.msra.mxu1 %v15106_v39  ;;  %7749 = vmatprep.subr.bf16.mxu0 %v15111_v13  ;;  %v15189_v39 = vld [vmem:[#allocation10 + $0xfa4] ss:$16 sps:$4 sm:$0xff]   ;;  %v15192_v13 = vld [vmem:[#allocation10 + $0xfac] ss:$16 sps:$4 sm:$0xff]  }
 0x494   : > { %7835 = vmatprep.subr.bf16.mxu1 %v15114_v16  ;;  %v15190_v16 = vld [vmem:[#allocation10 + $0xfa8] ss:$16 sps:$4 sm:$0xff]  }
 0x495   : > { %7739 = vmatmul.mubr.bf16.vlgmr.msra.gmra.mrb[16].mxu0 %v7010_v50 }
 0x496   : > { %7825 = vmatmul.mubr.bf16.vlgmr.msra.gmra.mrb[16].mxu1 %v7010_v50  ;;  %7750 = vmatpush1.bf16.msra.mxu0 %v15109_v41  ;;  %v15198_v41 = vld [vmem:[#allocation10 + $0xfcc] ss:$16 sps:$4 sm:$0xff]   ;;  %v15196_v50 = vld [vmem:[#allocation10 + $0xfc8] ss:$16 sps:$4 sm:$0xff]  }
 0x497   : > { %7781 = vmatprep.mubr.bf16.mxu0 %v17061_v48  ;;  %7836 = vmatpush1.bf16.msra.mxu1 %v15112_v14  ;;  %v15193_v14 = vld [vmem:[#allocation10 + $0xfc0] ss:$16 sps:$4 sm:$0xff]  }
 0x498   : > { %7867 = vmatprep.mubr.bf16.mxu1 %v17061_v48  ;;  %7751 = vmatprep.subr.bf16.mxu0 %v15117_v15  ;;  %v15133_v48 = vld [vmem:[#allocation10 + $0xe80] ss:$16 sps:$4 sm:$0xff]   ;;  %v15201_v15 = vld [vmem:[#allocation10 + $0xfe4] ss:$16 sps:$4 sm:$0xff]  }
 0x499   : > { %7837 = vmatprep.subr.bf16.mxu1 %v15120_v51  ;;  %v7891_v51 = vld [vmem:[#allocation3 + $0x48] sm:$0xf] }
 0x49a   : > { %7752 = vmatpush1.bf16.msra.mxu0 %v15115_v10  ;;  %v15204_v10 = vld [vmem:[#allocation10 + $0xfec] ss:$16 sps:$4 sm:$0xff]  }
 0x49b   : > { %7838 = vmatpush1.bf16.msra.mxu1 %v15118_v25  ;;  %7753 = vmatprep.subr.bf16.mxu0 %v15123_v7  ;;  %v7887_v25 = vld [vmem:[#allocation3 + $0x8] sm:$0xf0]  ;;  %v15199_v7 = vld [vmem:[#allocation10 + $0xfe0] ss:$16 sps:$4 sm:$0xff]  }
 0x49c   : > { %7839 = vmatprep.subr.bf16.mxu1 %v15126_v12  ;;  %v7899_v12 = vpack.c.bf16 %v7891_v51, %v7891_v51  ;;  %v15271_v51 = vld [vmem:[#allocation10 + $0x1160] ss:$16 sps:$4 sm:$0xff]  }
 0x49e   : > { %7754 = vmatpush1.bf16.msra.mxu0 %v15121_v27  ;;  %v15202_v27 = vld [vmem:[#allocation10 + $0xfe8] ss:$16 sps:$4 sm:$0xff]  }
 0x49f   : > { %7840 = vmatpush1.bf16.msra.mxu1 %v15124_v17  ;;  %7755 = vmatprep.subr.bf16.mxu0 %v15129_v53  ;;  %v15207_v17 = vld [vmem:[#allocation10 + $0x1004] ss:$16 sps:$4 sm:$0xff]   ;;  %v15210_v53 = vld [vmem:[#allocation10 + $0x100c] ss:$16 sps:$4 sm:$0xff]  }
 0x4a0   : > { %7841 = vmatprep.subr.bf16.mxu1 %v15132_v3  ;;  %v15948_v3 = vld [vmem:[#allocation3 + $0x28] sm:$0xff] }
 0x4a2   : > { %7756 = vmatpush1.bf16.msra.mxu0 %v15127_v57  ;;  %v7895_v57 = vpack.c.bf16 %v15948_v3, %v7887_v25  ;;  %v15279_v25 = vld [vmem:[#allocation10 + $0x1184] ss:$16 sps:$4 sm:$0xff]   ;;  %v15283_v3 = vld [vmem:[#allocation10 + $0x11a0] ss:$16 sps:$4 sm:$0xff]  }
 0x4a3   : > { %7842 = vmatpush1.bf16.msra.mxu1 %v15130_v1  ;;  %7757 = vmatprep.subr.bf16.mxu0 %v15135_v28  ;;  %v15205_v1 = vld [vmem:[#allocation10 + $0x1000] ss:$16 sps:$4 sm:$0xff]   ;;  %v8044_v28 = vrot.slane %v7899_v12, 2 }
 0x4a4   : > { %7843 = vmatprep.subr.bf16.mxu1 %v15138_v61  ;;  %v15208_v61 = vld [vmem:[#allocation10 + $0x1008] ss:$16 sps:$4 sm:$0xff]   ;;  %v15277_v12 = vld [vmem:[#allocation10 + $0x1180] ss:$16 sps:$4 sm:$0xff]  }
 0x4a6   : > { %7758 = vmatpush1.bf16.msra.mxu0 %v15133_v48  ;;  %v8043_v48 = vrot.slane %v7895_v57, 2  ;;  %v15286_v57 = vld [vmem:[#allocation10 + $0x11a8] ss:$16 sps:$4 sm:$0xff]  }
 0x4a7   : > { %7844 = vmatpush1.bf16.msra.mxu1 %v15136_v23  ;;  %7759 = vmatprep.subr.bf16.mxu0 %v15141_v38  ;;  %v15213_v23 = vld [vmem:[#allocation10 + $0x1024] ss:$16 sps:$4 sm:$0xff]   ;;  %v15216_v38 = vld [vmem:[#allocation10 + $0x102c] ss:$16 sps:$4 sm:$0xff]  }
 0x4a8   : > { %7845 = vmatprep.subr.bf16.mxu1 %v15144_v9  ;;  %v8045_v9 = vsel %vm8039_vm12, %v8043_v48, %v8044_v28  ;;  %v15294_v28 = vld [vmem:[#allocation10 + $0x11cc] ss:$16 sps:$4 sm:$0xff]   ;;  %v15289_v48 = vld [vmem:[#allocation10 + $0x11c0] ss:$16 sps:$4 sm:$0xff]  }
 0x4aa   : > { %7760 = vmatpush1.bf16.msra.mxu0 %v15139_v49  ;;  %v15211_v49 = vld [vmem:[#allocation10 + $0x1020] ss:$16 sps:$4 sm:$0xff]  }
 0x4ab   : > { %7846 = vmatpush1.bf16.msra.mxu1 %v15142_v30  ;;  %7761 = vmatprep.subr.bf16.mxu0 %v15147_v21  ;;  %v15214_v30 = vld [vmem:[#allocation10 + $0x1028] ss:$16 sps:$4 sm:$0xff]   ;;  %v15219_v21 = vld [vmem:[#allocation10 + $0x1044] ss:$16 sps:$4 sm:$0xff]  }
 0x4ac   : > { %7847 = vmatprep.subr.bf16.mxu1 %v15150_v58  ;;  %v15222_v58 = vld [vmem:[#allocation10 + $0x104c] ss:$16 sps:$4 sm:$0xff]  }
 0x4ae   : > { %7762 = vmatpush1.bf16.msra.mxu0 %v15145_v34  ;;  %v15217_v34 = vld [vmem:[#allocation10 + $0x1040] ss:$16 sps:$4 sm:$0xff]  }
 0x4af   : > { %7848 = vmatpush1.bf16.msra.mxu1 %v15148_v20  ;;  %7763 = vmatprep.subr.bf16.mxu0 %v15153_v4  ;;  %v15220_v20 = vld [vmem:[#allocation10 + $0x1048] ss:$16 sps:$4 sm:$0xff]   ;;  %v15225_v4 = vld [vmem:[#allocation10 + $0x1064] ss:$16 sps:$4 sm:$0xff]  }
 0x4b0   : > { %7849 = vmatprep.subr.bf16.mxu1 %v15156_v45  ;;  %v15223_v45 = vld [vmem:[#allocation10 + $0x1060] ss:$16 sps:$4 sm:$0xff]  }
 0x4b2   : > { %7764 = vmatpush1.bf16.msra.mxu0 %v15151_v52  ;;  %v15226_v52 = vld [vmem:[#allocation10 + $0x1068] ss:$16 sps:$4 sm:$0xff]  }
 0x4b3   : > { %7850 = vmatpush1.bf16.msra.mxu1 %v15154_v2  ;;  %7765 = vmatprep.subr.bf16.mxu0 %v15159_v46  ;;  %v15231_v2 = vld [vmem:[#allocation10 + $0x1084] ss:$16 sps:$4 sm:$0xff]   ;;  %v15234_v46 = vld [vmem:[#allocation10 + $0x108c] ss:$16 sps:$4 sm:$0xff]  }
 0x4b4   : > { %7851 = vmatprep.subr.bf16.mxu1 %v15162_v0  ;;  %v15229_v0 = vld [vmem:[#allocation10 + $0x1080] ss:$16 sps:$4 sm:$0xff]  }
 0x4b6   : > { %7766 = vmatpush1.bf16.msra.mxu0 %v15157_v59  ;;  %v15232_v59 = vld [vmem:[#allocation10 + $0x1088] ss:$16 sps:$4 sm:$0xff]  }
 0x4b7   : > { %7852 = vmatpush1.bf16.msra.mxu1 %v15160_v44  ;;  %7767 = vmatprep.subr.bf16.mxu0 %v15165_v6  ;;  %v15237_v44 = vld [vmem:[#allocation10 + $0x10a4] ss:$16 sps:$4 sm:$0xff]   ;;  %v15240_v6 = vld [vmem:[#allocation10 + $0x10ac] ss:$16 sps:$4 sm:$0xff]  }
 0x4b8   : > { %7853 = vmatprep.subr.bf16.mxu1 %v15168_v63  ;;  %v15235_v63 = vld [vmem:[#allocation10 + $0x10a0] ss:$16 sps:$4 sm:$0xff]  }
 0x4ba   : > { %7768 = vmatpush1.bf16.msra.mxu0 %v15163_v54  ;;  %v15238_v54 = vld [vmem:[#allocation10 + $0x10a8] ss:$16 sps:$4 sm:$0xff]  }
 0x4bb   : > { %7854 = vmatpush1.bf16.msra.mxu1 %v15166_v47  ;;  %7769 = vmatprep.subr.bf16.mxu0 %v15171_v42  ;;  %v15243_v47 = vld [vmem:[#allocation10 + $0x10c4] ss:$16 sps:$4 sm:$0xff]   ;;  %v15246_v42 = vld [vmem:[#allocation10 + $0x10cc] ss:$16 sps:$4 sm:$0xff]  }
 0x4bc   : > { %7855 = vmatprep.subr.bf16.mxu1 %v15174_v56  ;;  %v15241_v56 = vld [vmem:[#allocation10 + $0x10c0] ss:$16 sps:$4 sm:$0xff]  }
 0x4be   : > { %7770 = vmatpush1.bf16.msra.mxu0 %v15169_v60  ;;  %v15244_v60 = vld [vmem:[#allocation10 + $0x10c8] ss:$16 sps:$4 sm:$0xff]  }
 0x4bf   : > { %7856 = vmatpush1.bf16.msra.mxu1 %v15172_v5  ;;  %7771 = vmatprep.subr.bf16.mxu0 %v15177_v24  ;;  %v15249_v5 = vld [vmem:[#allocation10 + $0x10e4] ss:$16 sps:$4 sm:$0xff]   ;;  %v15252_v24 = vld [vmem:[#allocation10 + $0x10ec] ss:$16 sps:$4 sm:$0xff]  }
 0x4c0   : > { %7857 = vmatprep.subr.bf16.mxu1 %v15180_v8  ;;  %v15247_v8 = vld [vmem:[#allocation10 + $0x10e0] ss:$16 sps:$4 sm:$0xff]  }
 0x4c2   : > { %7772 = vmatpush1.bf16.msra.mxu0 %v15175_v35  ;;  %v15250_v35 = vld [vmem:[#allocation10 + $0x10e8] ss:$16 sps:$4 sm:$0xff]  }
 0x4c3   : > { %7858 = vmatpush1.bf16.msra.mxu1 %v15178_v37  ;;  %7773 = vmatprep.subr.bf16.mxu0 %v15183_v19  ;;  %v15255_v37 = vld [vmem:[#allocation10 + $0x1104] ss:$16 sps:$4 sm:$0xff]   ;;  %v15258_v19 = vld [vmem:[#allocation10 + $0x110c] ss:$16 sps:$4 sm:$0xff]  }
 0x4c4   : > { %7859 = vmatprep.subr.bf16.mxu1 %v15186_v40  ;;  %v15253_v40 = vld [vmem:[#allocation10 + $0x1100] ss:$16 sps:$4 sm:$0xff]  }
 0x4c6   : > { %7774 = vmatpush1.bf16.msra.mxu0 %v15181_v55  ;;  %v15256_v55 = vld [vmem:[#allocation10 + $0x1108] ss:$16 sps:$4 sm:$0xff]  }
 0x4c7   : > { %7860 = vmatpush1.bf16.msra.mxu1 %v15184_v18  ;;  %7775 = vmatprep.subr.bf16.mxu0 %v15189_v39  ;;  %v15261_v18 = vld [vmem:[#allocation10 + $0x1124] ss:$16 sps:$4 sm:$0xff]   ;;  %v15264_v39 = vld [vmem:[#allocation10 + $0x112c] ss:$16 sps:$4 sm:$0xff]  }
 0x4c8   : > { %7861 = vmatprep.subr.bf16.mxu1 %v15192_v13  ;;  %v15259_v13 = vld [vmem:[#allocation10 + $0x1120] ss:$16 sps:$4 sm:$0xff]  }
 0x4ca   : > { %7776 = vmatpush1.bf16.msra.mxu0 %v15187_v22  ;;  %v15262_v22 = vld [vmem:[#allocation10 + $0x1128] ss:$16 sps:$4 sm:$0xff]  }
 0x4cb   : > { %7862 = vmatpush1.bf16.msra.mxu1 %v15190_v16  ;;  %7777 = vmatprep.subr.bf16.mxu0 %v15195_v43  ;;  %v15267_v16 = vld [vmem:[#allocation10 + $0x1144] ss:$16 sps:$4 sm:$0xff]   ;;  %v15270_v43 = vld [vmem:[#allocation10 + $0x114c] ss:$16 sps:$4 sm:$0xff]  }
 0x4cc   : > { %7863 = vmatprep.subr.bf16.mxu1 %v15198_v41  ;;  %v15265_v41 = vld [vmem:[#allocation10 + $0x1140] ss:$16 sps:$4 sm:$0xff]  }
 0x4ce   : > { %7778 = vmatpush1.bf16.msra.mxu0 %v15193_v14  ;;  %v15268_v14 = vld [vmem:[#allocation10 + $0x1148] ss:$16 sps:$4 sm:$0xff]  }
 0x4cf   : > { %7864 = vmatpush1.bf16.msra.mxu1 %v15196_v50  ;;  %7779 = vmatprep.subr.bf16.mxu0 %v15201_v15  ;;  %v15273_v50 = vld [vmem:[#allocation10 + $0x1164] ss:$16 sps:$4 sm:$0xff]   ;;  %v15276_v15 = vld [vmem:[#allocation10 + $0x116c] ss:$16 sps:$4 sm:$0xff]  }
 0x4d0   : > { %7865 = vmatprep.subr.bf16.mxu1 %v15204_v10  ;;  %v15274_v10 = vld [vmem:[#allocation10 + $0x1168] ss:$16 sps:$4 sm:$0xff]  }
 0x4d2   : > { %7780 = vmatpush1.bf16.msra.mxu0 %v15199_v7  ;;  %v15282_v7 = vld [vmem:[#allocation10 + $0x118c] ss:$16 sps:$4 sm:$0xff]  }
 0x4d3   : > { %7866 = vmatpush1.bf16.msra.mxu1 %v15202_v27  ;;  %8696 = vmatprep.subr.bf16.mxu0 %v15207_v17  ;;  %v15280_v27 = vld [vmem:[#allocation10 + $0x1188] ss:$16 sps:$4 sm:$0xff]   ;;  %v15285_v17 = vld [vmem:[#allocation10 + $0x11a4] ss:$16 sps:$4 sm:$0xff]  }
 0x4d4   : > { %8782 = vmatprep.subr.bf16.mxu1 %v15210_v53  ;;  %v15288_v53 = vld [vmem:[#allocation10 + $0x11ac] ss:$16 sps:$4 sm:$0xff]  }
 0x4d5   : > { %7782 = vmatmul.mubr.bf16.vlgmr.msra.gmra.mrb[16].mxu0 %v17067_v11 }
 0x4d6   : > { %7868 = vmatmul.mubr.bf16.vlgmr.msra.gmra.mrb[16].mxu1 %v17067_v11  ;;  %8697 = vmatpush1.bf16.msra.mxu0 %v15205_v1  ;;  %v15228_v11 = vld [vmem:[#allocation10 + $0x106c] ss:$16 sps:$4 sm:$0xff]   ;;  %v15291_v1 = vld [vmem:[#allocation10 + $0x11c4] ss:$16 sps:$4 sm:$0xff]  }
 0x4d7   : > { %8728 = vmatprep.mubr.bf16.mxu0 %v8045_v9  ;;  %8783 = vmatpush1.bf16.msra.mxu1 %v15208_v61  ;;  %v7890_v61 = vld [vmem:[#allocation3 + $0x40] sm:$0xf] }
 0x4d8   : > { %8814 = vmatprep.mubr.bf16.mxu1 %v8045_v9  ;;  %8698 = vmatprep.subr.bf16.mxu0 %v15213_v23  ;;  %v15292_v23 = vld [vmem:[#allocation10 + $0x11c8] ss:$16 sps:$4 sm:$0xff]   ;;  %v7886_v9 = vld [vmem:[#allocation3] sm:$0xf0] }
 0x4d9   : > { %8784 = vmatprep.subr.bf16.mxu1 %v15216_v38  ;;  %v15297_v38 = vld [vmem:[#allocation10 + $0x11e4] ss:$16 sps:$4 sm:$0xff]  }
 0x4da   : > { %8699 = vmatpush1.bf16.msra.mxu0 %v15211_v49  ;;  %v15300_v49 = vld [vmem:[#allocation10 + $0x11ec] ss:$16 sps:$4 sm:$0xff]  }
 0x4db   : > { %8785 = vmatpush1.bf16.msra.mxu1 %v15214_v30  ;;  %8700 = vmatprep.subr.bf16.mxu0 %v15219_v21  ;;  %v7898_v30 = vpack.c.bf16 %v7890_v61, %v7890_v61  ;;  %v15295_v21 = vld [vmem:[#allocation10 + $0x11e0] ss:$16 sps:$4 sm:$0xff]   ;;  %v15369_v61 = vld [vmem:[#allocation10 + $0x1364] ss:$16 sps:$4 sm:$0xff]  }
 0x4dc   : > { %8786 = vmatprep.subr.bf16.mxu1 %v15222_v58  ;;  %v15949_v58 = vld [vmem:[#allocation3 + $0x20] sm:$0xff] }
 0x4de   : > { %8701 = vmatpush1.bf16.msra.mxu0 %v15217_v34  ;;  %v7894_v34 = vpack.c.bf16 %v15949_v58, %v7886_v9  ;;  %v15375_v9 = vld [vmem:[#allocation10 + $0x1384] ss:$16 sps:$4 sm:$0xff]  }
 0x4df   : > { %8787 = vmatpush1.bf16.msra.mxu1 %v15220_v20  ;;  %8702 = vmatprep.subr.bf16.mxu0 %v15225_v4  ;;  %v15298_v20 = vld [vmem:[#allocation10 + $0x11e8] ss:$16 sps:$4 sm:$0xff]   ;;  %v15303_v4 = vld [vmem:[#allocation10 + $0x1204] ss:$16 sps:$4 sm:$0xff]  }
 0x4e0   : > { %8788 = vmatprep.subr.bf16.mxu1 %v15228_v11  ;;  %v8041_v11 = vrot.slane %v7898_v30, 2  ;;  %v15373_v30 = vld [vmem:[#allocation10 + $0x1380] ss:$16 sps:$4 sm:$0xff]   ;;  %v15381_v58 = vld [vmem:[#allocation10 + $0x13a4] ss:$16 sps:$4 sm:$0xff]  }
 0x4e2   : > { %8703 = vmatpush1.bf16.msra.mxu0 %v15223_v45  ;;  %v15306_v45 = vld [vmem:[#allocation10 + $0x120c] ss:$16 sps:$4 sm:$0xff]  }
 0x4e3   : > { %8789 = vmatpush1.bf16.msra.mxu1 %v15226_v52  ;;  %8704 = vmatprep.subr.bf16.mxu0 %v15231_v2  ;;  %v8040_v52 = vrot.slane %v7894_v34, 2  ;;  %v15301_v2 = vld [vmem:[#allocation10 + $0x1200] ss:$16 sps:$4 sm:$0xff]   ;;  %v15384_v34 = vld [vmem:[#allocation10 + $0x13ac] ss:$16 sps:$4 sm:$0xff]  }
 0x4e4   : > { %8790 = vmatprep.subr.bf16.mxu1 %v15234_v46  ;;  %v15304_v46 = vld [vmem:[#allocation10 + $0x1208] ss:$16 sps:$4 sm:$0xff]  }
 0x4e6   : > { %8705 = vmatpush1.bf16.msra.mxu0 %v15229_v0  ;;  %v8042_v0 = vsel %vm8039_vm12, %v8040_v52, %v8041_v11  ;;  %v15387_v11 = vld [vmem:[#allocation10 + $0x13c4] ss:$16 sps:$4 sm:$0xff]   ;;  %v15385_v52 = vld [vmem:[#allocation10 + $0x13c0] ss:$16 sps:$4 sm:$0xff]  }
 0x4e7   : > { %8791 = vmatpush1.bf16.msra.mxu1 %v15232_v59  ;;  %8706 = vmatprep.subr.bf16.mxu0 %v15237_v44  ;;  %v15309_v59 = vld [vmem:[#allocation10 + $0x1224] ss:$16 sps:$4 sm:$0xff]   ;;  %v15312_v44 = vld [vmem:[#allocation10 + $0x122c] ss:$16 sps:$4 sm:$0xff]  }
 0x4e8   : > { %8792 = vmatprep.subr.bf16.mxu1 %v15240_v6  ;;  %v15307_v6 = vld [vmem:[#allocation10 + $0x1220] ss:$16 sps:$4 sm:$0xff]  }
 0x4ea   : > { %8707 = vmatpush1.bf16.msra.mxu0 %v15235_v63  ;;  %v15310_v63 = vld [vmem:[#allocation10 + $0x1228] ss:$16 sps:$4 sm:$0xff]  }
 0x4eb   : > { %8793 = vmatpush1.bf16.msra.mxu1 %v15238_v54  ;;  %8708 = vmatprep.subr.bf16.mxu0 %v15243_v47  ;;  %v15315_v54 = vld [vmem:[#allocation10 + $0x1244] ss:$16 sps:$4 sm:$0xff]   ;;  %v15318_v47 = vld [vmem:[#allocation10 + $0x124c] ss:$16 sps:$4 sm:$0xff]  }
 0x4ec   : > { %8794 = vmatprep.subr.bf16.mxu1 %v15246_v42  ;;  %v15313_v42 = vld [vmem:[#allocation10 + $0x1240] ss:$16 sps:$4 sm:$0xff]  }
 0x4ee   : > { %8709 = vmatpush1.bf16.msra.mxu0 %v15241_v56  ;;  %v15316_v56 = vld [vmem:[#allocation10 + $0x1248] ss:$16 sps:$4 sm:$0xff]  }
 0x4ef   : > { %8795 = vmatpush1.bf16.msra.mxu1 %v15244_v60  ;;  %8710 = vmatprep.subr.bf16.mxu0 %v15249_v5  ;;  %v15321_v60 = vld [vmem:[#allocation10 + $0x1264] ss:$16 sps:$4 sm:$0xff]   ;;  %v15324_v5 = vld [vmem:[#allocation10 + $0x126c] ss:$16 sps:$4 sm:$0xff]  }
 0x4f0   : > { %8796 = vmatprep.subr.bf16.mxu1 %v15252_v24  ;;  %v15319_v24 = vld [vmem:[#allocation10 + $0x1260] ss:$16 sps:$4 sm:$0xff]  }
 0x4f2   : > { %8711 = vmatpush1.bf16.msra.mxu0 %v15247_v8  ;;  %v15322_v8 = vld [vmem:[#allocation10 + $0x1268] ss:$16 sps:$4 sm:$0xff]  }
 0x4f3   : > { %8797 = vmatpush1.bf16.msra.mxu1 %v15250_v35  ;;  %8712 = vmatprep.subr.bf16.mxu0 %v15255_v37  ;;  %v15327_v35 = vld [vmem:[#allocation10 + $0x1284] ss:$16 sps:$4 sm:$0xff]   ;;  %v15330_v37 = vld [vmem:[#allocation10 + $0x128c] ss:$16 sps:$4 sm:$0xff]  }
 0x4f4   : > { %8798 = vmatprep.subr.bf16.mxu1 %v15258_v19  ;;  %v15328_v19 = vld [vmem:[#allocation10 + $0x1288] ss:$16 sps:$4 sm:$0xff]  }
 0x4f6   : > { %8713 = vmatpush1.bf16.msra.mxu0 %v15253_v40  ;;  %v15333_v40 = vld [vmem:[#allocation10 + $0x12a4] ss:$16 sps:$4 sm:$0xff]  }
 0x4f7   : > { %8799 = vmatpush1.bf16.msra.mxu1 %v15256_v55  ;;  %8714 = vmatprep.subr.bf16.mxu0 %v15261_v18  ;;  %v15336_v55 = vld [vmem:[#allocation10 + $0x12ac] ss:$16 sps:$4 sm:$0xff]   ;;  %v15331_v18 = vld [vmem:[#allocation10 + $0x12a0] ss:$16 sps:$4 sm:$0xff]  }
 0x4f8   : > { %8800 = vmatprep.subr.bf16.mxu1 %v15264_v39  ;;  %v15334_v39 = vld [vmem:[#allocation10 + $0x12a8] ss:$16 sps:$4 sm:$0xff]  }
 0x4fa   : > { %8715 = vmatpush1.bf16.msra.mxu0 %v15259_v13  ;;  %v15339_v13 = vld [vmem:[#allocation10 + $0x12c4] ss:$16 sps:$4 sm:$0xff]  }
 0x4fb   : > { %8801 = vmatpush1.bf16.msra.mxu1 %v15262_v22  ;;  %8716 = vmatprep.subr.bf16.mxu0 %v15267_v16  ;;  %v15342_v22 = vld [vmem:[#allocation10 + $0x12cc] ss:$16 sps:$4 sm:$0xff]   ;;  %v15337_v16 = vld [vmem:[#allocation10 + $0x12c0] ss:$16 sps:$4 sm:$0xff]  }
 0x4fc   : > { %8802 = vmatprep.subr.bf16.mxu1 %v15270_v43  ;;  %v15340_v43 = vld [vmem:[#allocation10 + $0x12c8] ss:$16 sps:$4 sm:$0xff]  }
 0x4fe   : > { %8717 = vmatpush1.bf16.msra.mxu0 %v15265_v41  ;;  %v15345_v41 = vld [vmem:[#allocation10 + $0x12e4] ss:$16 sps:$4 sm:$0xff]  }
 0x4ff   : > { %8803 = vmatpush1.bf16.msra.mxu1 %v15268_v14  ;;  %8718 = vmatprep.subr.bf16.mxu0 %v15273_v50  ;;  %v15348_v14 = vld [vmem:[#allocation10 + $0x12ec] ss:$16 sps:$4 sm:$0xff]   ;;  %v15343_v50 = vld [vmem:[#allocation10 + $0x12e0] ss:$16 sps:$4 sm:$0xff]  }
 0x500   : > { %8804 = vmatprep.subr.bf16.mxu1 %v15276_v15  ;;  %v15346_v15 = vld [vmem:[#allocation10 + $0x12e8] ss:$16 sps:$4 sm:$0xff]  }
 0x502   : > { %8719 = vmatpush1.bf16.msra.mxu0 %v15271_v51  ;;  %v15351_v51 = vld [vmem:[#allocation10 + $0x1304] ss:$16 sps:$4 sm:$0xff]  }
 0x503   : > { %8805 = vmatpush1.bf16.msra.mxu1 %v15274_v10  ;;  %8720 = vmatprep.subr.bf16.mxu0 %v15279_v25  ;;  %v15354_v10 = vld [vmem:[#allocation10 + $0x130c] ss:$16 sps:$4 sm:$0xff]   ;;  %v15349_v25 = vld [vmem:[#allocation10 + $0x1300] ss:$16 sps:$4 sm:$0xff]  }
 0x504   : > { %8806 = vmatprep.subr.bf16.mxu1 %v15282_v7  ;;  %v15352_v7 = vld [vmem:[#allocation10 + $0x1308] ss:$16 sps:$4 sm:$0xff]  }
 0x506   : > { %8721 = vmatpush1.bf16.msra.mxu0 %v15277_v12  ;;  %v15357_v12 = vld [vmem:[#allocation10 + $0x1324] ss:$16 sps:$4 sm:$0xff]  }
 0x507   : > { %8807 = vmatpush1.bf16.msra.mxu1 %v15280_v27  ;;  %8722 = vmatprep.subr.bf16.mxu0 %v15285_v17  ;;  %v15360_v27 = vld [vmem:[#allocation10 + $0x132c] ss:$16 sps:$4 sm:$0xff]   ;;  %v15355_v17 = vld [vmem:[#allocation10 + $0x1320] ss:$16 sps:$4 sm:$0xff]  }
 0x508   : > { %8808 = vmatprep.subr.bf16.mxu1 %v15288_v53  ;;  %v15358_v53 = vld [vmem:[#allocation10 + $0x1328] ss:$16 sps:$4 sm:$0xff]  }
 0x50a   : > { %8723 = vmatpush1.bf16.msra.mxu0 %v15283_v3  ;;  %v15363_v3 = vld [vmem:[#allocation10 + $0x1344] ss:$16 sps:$4 sm:$0xff]  }
 0x50b   : > { %8809 = vmatpush1.bf16.msra.mxu1 %v15286_v57  ;;  %8724 = vmatprep.subr.bf16.mxu0 %v15291_v1  ;;  %v15366_v57 = vld [vmem:[#allocation10 + $0x134c] ss:$16 sps:$4 sm:$0xff]   ;;  %v15361_v1 = vld [vmem:[#allocation10 + $0x1340] ss:$16 sps:$4 sm:$0xff]  }
 0x50c   : > { %8810 = vmatprep.subr.bf16.mxu1 %v15294_v28  ;;  %v15364_v28 = vld [vmem:[#allocation10 + $0x1348] ss:$16 sps:$4 sm:$0xff]  }
 0x50e   : > { %8725 = vmatpush1.bf16.msra.mxu0 %v15289_v48  ;;  %v15372_v48 = vld [vmem:[#allocation10 + $0x136c] ss:$16 sps:$4 sm:$0xff]  }
 0x50f   : > { %8811 = vmatpush1.bf16.msra.mxu1 %v15292_v23  ;;  %8726 = vmatprep.subr.bf16.mxu0 %v15297_v38  ;;  %v15367_v23 = vld [vmem:[#allocation10 + $0x1360] ss:$16 sps:$4 sm:$0xff]   ;;  %v15370_v38 = vld [vmem:[#allocation10 + $0x1368] ss:$16 sps:$4 sm:$0xff]  }
 0x510   : > { %8812 = vmatprep.subr.bf16.mxu1 %v15300_v49  ;;  %v15378_v49 = vld [vmem:[#allocation10 + $0x138c] ss:$16 sps:$4 sm:$0xff]  }
 0x512   : > { %8727 = vmatpush1.bf16.msra.mxu0 %v15295_v21  ;;  %v15376_v21 = vld [vmem:[#allocation10 + $0x1388] ss:$16 sps:$4 sm:$0xff]  }
 0x513   : > { %8813 = vmatpush1.bf16.msra.mxu1 %v15298_v20  ;;  %8739 = vmatprep.subr.bf16.mxu0 %v15303_v4  ;;  %v15379_v20 = vld [vmem:[#allocation10 + $0x13a0] ss:$16 sps:$4 sm:$0xff]   ;;  %v15382_v4 = vld [vmem:[#allocation10 + $0x13a8] ss:$16 sps:$4 sm:$0xff]  }
 0x514   : > { %8825 = vmatprep.subr.bf16.mxu1 %v15306_v45  ;;  %v15390_v45 = vld [vmem:[#allocation10 + $0x13cc] ss:$16 sps:$4 sm:$0xff]  }
 0x515   : > { %8729 = vmatmul.mubr.bf16.vlgmr.msra.gmra.mrb[16].mxu0 %v8042_v0 }
 0x516   : > { %8815 = vmatmul.mubr.bf16.vlgmr.msra.gmra.mrb[16].mxu1 %v8042_v0  ;;  %8740 = vmatpush1.bf16.msra.mxu0 %v15301_v2  ;;  %v15388_v2 = vld [vmem:[#allocation10 + $0x13c8] ss:$16 sps:$4 sm:$0xff]   ;;  %v15396_v0 = vld [vmem:[#allocation10 + $0x13ec] ss:$16 sps:$4 sm:$0xff]  }
 0x517   : > { %8771 = vmatprep.mubr.bf16.mxu0 %v17064_v62  ;;  %8826 = vmatpush1.bf16.msra.mxu1 %v15304_v46  ;;  %v15393_v46 = vld [vmem:[#allocation10 + $0x13e4] ss:$16 sps:$4 sm:$0xff]  }
 0x518   : > { %8857 = vmatprep.mubr.bf16.mxu1 %v17064_v62  ;;  %8741 = vmatprep.subr.bf16.mxu0 %v15309_v59  ;;  %v15325_v62 = vld [vmem:[#allocation10 + $0x1280] ss:$16 sps:$4 sm:$0xff]  }
 0x519   : > { %8827 = vmatprep.subr.bf16.mxu1 %v15312_v44  ;;  %v15391_v59 = vld [vmem:[#allocation10 + $0x13e0] ss:$16 sps:$4 sm:$0xff]   ;;  %v15394_v44 = vld [vmem:[#allocation10 + $0x13e8] ss:$16 sps:$4 sm:$0xff]  }
 0x51a   : > { %8742 = vmatpush1.bf16.msra.mxu0 %v15307_v6  ;;  %v15399_v6 = vld [vmem:[#allocation13 + $0x204] ss:$16 sps:$4 sm:$0xff]  }
 0x51b   : > { %8828 = vmatpush1.bf16.msra.mxu1 %v15310_v63  ;;  %8743 = vmatprep.subr.bf16.mxu0 %v15315_v54  ;;  %v15402_v63 = vld [vmem:[#allocation13 + $0x20c] ss:$16 sps:$4 sm:$0xff]   ;;  %v15397_v54 = vld [vmem:[#allocation13 + $0x200] ss:$16 sps:$4 sm:$0xff]  }
 0x51c   : > { %8829 = vmatprep.subr.bf16.mxu1 %v15318_v47  ;;  %v15400_v47 = vld [vmem:[#allocation13 + $0x208] ss:$16 sps:$4 sm:$0xff]  }
 0x51e   : > { %8744 = vmatpush1.bf16.msra.mxu0 %v15313_v42  ;;  %v15405_v42 = vld [vmem:[#allocation13 + $0x224] ss:$16 sps:$4 sm:$0xff]  }
 0x51f   : > { %8830 = vmatpush1.bf16.msra.mxu1 %v15316_v56  ;;  %8745 = vmatprep.subr.bf16.mxu0 %v15321_v60  ;;  %v15408_v56 = vld [vmem:[#allocation13 + $0x22c] ss:$16 sps:$4 sm:$0xff]   ;;  %v15403_v60 = vld [vmem:[#allocation13 + $0x220] ss:$16 sps:$4 sm:$0xff]  }
 0x520   : > { %8831 = vmatprep.subr.bf16.mxu1 %v15324_v5  ;;  %v15406_v5 = vld [vmem:[#allocation13 + $0x228] ss:$16 sps:$4 sm:$0xff]  }
 0x522   : > { %8746 = vmatpush1.bf16.msra.mxu0 %v15319_v24  ;;  %v15411_v24 = vld [vmem:[#allocation13 + $0x244] ss:$16 sps:$4 sm:$0xff]  }
 0x523   : > { %8832 = vmatpush1.bf16.msra.mxu1 %v15322_v8  ;;  %8747 = vmatprep.subr.bf16.mxu0 %v15327_v35  ;;  %v15414_v8 = vld [vmem:[#allocation13 + $0x24c] ss:$16 sps:$4 sm:$0xff]   ;;  %v15409_v35 = vld [vmem:[#allocation13 + $0x240] ss:$16 sps:$4 sm:$0xff]  }
 0x524   : > { %8833 = vmatprep.subr.bf16.mxu1 %v15330_v37  ;;  %v15412_v37 = vld [vmem:[#allocation13 + $0x248] ss:$16 sps:$4 sm:$0xff]  }
 0x526   : > { %8748 = vmatpush1.bf16.msra.mxu0 %v15325_v62  ;;  %v15417_v62 = vld [vmem:[#allocation13 + $0x264] ss:$16 sps:$4 sm:$0xff]  }
 0x527   : > { %8834 = vmatpush1.bf16.msra.mxu1 %v15328_v19  ;;  %8749 = vmatprep.subr.bf16.mxu0 %v15333_v40  ;;  %v15420_v19 = vld [vmem:[#allocation13 + $0x26c] ss:$16 sps:$4 sm:$0xff]   ;;  %v15415_v40 = vld [vmem:[#allocation13 + $0x260] ss:$16 sps:$4 sm:$0xff]  }
 0x528   : > { %8835 = vmatprep.subr.bf16.mxu1 %v15336_v55  ;;  %v15423_v55 = vld [vmem:[#allocation13 + $0x284] ss:$16 sps:$4 sm:$0xff]  }
 0x52a   : > { %8750 = vmatpush1.bf16.msra.mxu0 %v15331_v18  ;;  %v15426_v18 = vld [vmem:[#allocation13 + $0x28c] ss:$16 sps:$4 sm:$0xff]  }
 0x52b   : > { %8836 = vmatpush1.bf16.msra.mxu1 %v15334_v39  ;;  %8751 = vmatprep.subr.bf16.mxu0 %v15339_v13  ;;  %v15421_v39 = vld [vmem:[#allocation13 + $0x280] ss:$16 sps:$4 sm:$0xff]   ;;  %v15424_v13 = vld [vmem:[#allocation13 + $0x288] ss:$16 sps:$4 sm:$0xff]  }
 0x52c   : > { %8837 = vmatprep.subr.bf16.mxu1 %v15342_v22  ;;  %v15429_v22 = vld [vmem:[#allocation13 + $0x2a4] ss:$16 sps:$4 sm:$0xff]  }
 0x52e   : > { %8752 = vmatpush1.bf16.msra.mxu0 %v15337_v16  ;;  %v15432_v16 = vld [vmem:[#allocation13 + $0x2ac] ss:$16 sps:$4 sm:$0xff]  }
 0x52f   : > { %8838 = vmatpush1.bf16.msra.mxu1 %v15340_v43  ;;  %8753 = vmatprep.subr.bf16.mxu0 %v15345_v41  ;;  %v15427_v43 = vld [vmem:[#allocation13 + $0x2a0] ss:$16 sps:$4 sm:$0xff]   ;;  %v15430_v41 = vld [vmem:[#allocation13 + $0x2a8] ss:$16 sps:$4 sm:$0xff]  }
 0x530   : > { %8839 = vmatprep.subr.bf16.mxu1 %v15348_v14  ;;  %v15433_v14 = vld [vmem:[#allocation13 + $0x2c0] ss:$16 sps:$4 sm:$0xff]  }
 0x532   : > { %8754 = vmatpush1.bf16.msra.mxu0 %v15343_v50  ;;  %v15435_v50 = vld [vmem:[#allocation13 + $0x2c4] ss:$16 sps:$4 sm:$0xff]  }
 0x533   : > { %8840 = vmatpush1.bf16.msra.mxu1 %v15346_v15  ;;  %8755 = vmatprep.subr.bf16.mxu0 %v15351_v51  ;;  %v15436_v15 = vld [vmem:[#allocation13 + $0x2c8] ss:$16 sps:$4 sm:$0xff]   ;;  %v15438_v51 = vld [vmem:[#allocation13 + $0x2cc] ss:$16 sps:$4 sm:$0xff]  }
 0x534   : > { %8841 = vmatprep.subr.bf16.mxu1 %v15354_v10  ;;  %v15439_v10 = vld [vmem:[#allocation13 + $0x2e0] ss:$16 sps:$4 sm:$0xff]  }
 0x536   : > { %8756 = vmatpush1.bf16.msra.mxu0 %v15349_v25  ;;  %v15441_v25 = vld [vmem:[#allocation13 + $0x2e4] ss:$16 sps:$4 sm:$0xff]  }
 0x537   : > { %8842 = vmatpush1.bf16.msra.mxu1 %v15352_v7  ;;  %8757 = vmatprep.subr.bf16.mxu0 %v15357_v12  ;;  %v15442_v7 = vld [vmem:[#allocation13 + $0x2e8] ss:$16 sps:$4 sm:$0xff]   ;;  %v15444_v12 = vld [vmem:[#allocation13 + $0x2ec] ss:$16 sps:$4 sm:$0xff]  }
 0x538   : > { %8843 = vmatprep.subr.bf16.mxu1 %v15360_v27  ;;  %v15447_v27 = vld [vmem:[#allocation13 + $0x304] ss:$16 sps:$4 sm:$0xff]  }
 0x53a   : > { %8758 = vmatpush1.bf16.msra.mxu0 %v15355_v17  ;;  %v15450_v17 = vld [vmem:[#allocation13 + $0x30c] ss:$16 sps:$4 sm:$0xff]  }
 0x53b   : > { %8844 = vmatpush1.bf16.msra.mxu1 %v15358_v53  ;;  %8759 = vmatprep.subr.bf16.mxu0 %v15363_v3  ;;  %v15445_v53 = vld [vmem:[#allocation13 + $0x300] ss:$16 sps:$4 sm:$0xff]   ;;  %v15448_v3 = vld [vmem:[#allocation13 + $0x308] ss:$16 sps:$4 sm:$0xff]  }
 0x53c   : > { %8845 = vmatprep.subr.bf16.mxu1 %v15366_v57  ;;  %v15453_v57 = vld [vmem:[#allocation13 + $0x324] ss:$16 sps:$4 sm:$0xff]  }
 0x53e   : > { %8760 = vmatpush1.bf16.msra.mxu0 %v15361_v1  ;;  %v15456_v1 = vld [vmem:[#allocation13 + $0x32c] ss:$16 sps:$4 sm:$0xff]  }
 0x53f   : > { %8846 = vmatpush1.bf16.msra.mxu1 %v15364_v28  ;;  %8761 = vmatprep.subr.bf16.mxu0 %v15369_v61  ;;  %v15451_v28 = vld [vmem:[#allocation13 + $0x320] ss:$16 sps:$4 sm:$0xff]   ;;  %v15454_v61 = vld [vmem:[#allocation13 + $0x328] ss:$16 sps:$4 sm:$0xff]  }
 0x540   : > { %8847 = vmatprep.subr.bf16.mxu1 %v15372_v48  ;;  %v15459_v48 = vld [vmem:[#allocation13 + $0x344] ss:$16 sps:$4 sm:$0xff]  }
 0x542   : > { %8762 = vmatpush1.bf16.msra.mxu0 %v15367_v23  ;;  %v15462_v23 = vld [vmem:[#allocation13 + $0x34c] ss:$16 sps:$4 sm:$0xff]  }
 0x543   : > { %8848 = vmatpush1.bf16.msra.mxu1 %v15370_v38  ;;  %8763 = vmatprep.subr.bf16.mxu0 %v15375_v9  ;;  %v15457_v38 = vld [vmem:[#allocation13 + $0x340] ss:$16 sps:$4 sm:$0xff]   ;;  %v15460_v9 = vld [vmem:[#allocation13 + $0x348] ss:$16 sps:$4 sm:$0xff]  }
 0x544   : > { %8849 = vmatprep.subr.bf16.mxu1 %v15378_v49  ;;  %v15465_v49 = vld [vmem:[#allocation13 + $0x364] ss:$16 sps:$4 sm:$0xff]  }
 0x546   : > { %8764 = vmatpush1.bf16.msra.mxu0 %v15373_v30  ;;  %v15468_v30 = vld [vmem:[#allocation13 + $0x36c] ss:$16 sps:$4 sm:$0xff]  }
 0x547   : > { %8850 = vmatpush1.bf16.msra.mxu1 %v15376_v21  ;;  %8765 = vmatprep.subr.bf16.mxu0 %v15381_v58  ;;  %v15463_v21 = vld [vmem:[#allocation13 + $0x360] ss:$16 sps:$4 sm:$0xff]   ;;  %v15466_v58 = vld [vmem:[#allocation13 + $0x368] ss:$16 sps:$4 sm:$0xff]  }
 0x548   : > { %8851 = vmatprep.subr.bf16.mxu1 %v15384_v34  ;;  %v15471_v34 = vld [vmem:[#allocation13 + $0x384] ss:$16 sps:$4 sm:$0xff]  }
 0x54a   : > { %8766 = vmatpush1.bf16.msra.mxu0 %v15379_v20  ;;  %v15474_v20 = vld [vmem:[#allocation13 + $0x38c] ss:$16 sps:$4 sm:$0xff]  }
 0x54b   : > { %8852 = vmatpush1.bf16.msra.mxu1 %v15382_v4  ;;  %8767 = vmatprep.subr.bf16.mxu0 %v15387_v11  ;;  %v15469_v4 = vld [vmem:[#allocation13 + $0x380] ss:$16 sps:$4 sm:$0xff]   ;;  %v15472_v11 = vld [vmem:[#allocation13 + $0x388] ss:$16 sps:$4 sm:$0xff]  }
 0x54c   : > { %8853 = vmatprep.subr.bf16.mxu1 %v15390_v45  ;;  %v15477_v45 = vld [vmem:[#allocation13 + $0x3a4] ss:$16 sps:$4 sm:$0xff]  }
 0x54e   : > { %8768 = vmatpush1.bf16.msra.mxu0 %v15385_v52  ;;  %v15480_v52 = vld [vmem:[#allocation13 + $0x3ac] ss:$16 sps:$4 sm:$0xff]  }
 0x54f   : > { %8854 = vmatpush1.bf16.msra.mxu1 %v15388_v2  ;;  %8769 = vmatprep.subr.bf16.mxu0 %v15393_v46  ;;  %v15475_v2 = vld [vmem:[#allocation13 + $0x3a0] ss:$16 sps:$4 sm:$0xff]   ;;  %v15478_v46 = vld [vmem:[#allocation13 + $0x3a8] ss:$16 sps:$4 sm:$0xff]  }
 0x550   : > { %8855 = vmatprep.subr.bf16.mxu1 %v15396_v0  ;;  %v15483_v0 = vld [vmem:[#allocation13 + $0x3c4] ss:$16 sps:$4 sm:$0xff]  }
 0x552   : > { %8770 = vmatpush1.bf16.msra.mxu0 %v15391_v59  ;;  %v15486_v59 = vld [vmem:[#allocation13 + $0x3cc] ss:$16 sps:$4 sm:$0xff]  }
 0x553   : > { %8856 = vmatpush1.bf16.msra.mxu1 %v15394_v44  ;;  %9569 = vmatprep.subr.bf16.mxu0 %v15399_v6  ;;  %v15481_v44 = vld [vmem:[#allocation13 + $0x3c0] ss:$16 sps:$4 sm:$0xff]   ;;  %v15484_v6 = vld [vmem:[#allocation13 + $0x3c8] ss:$16 sps:$4 sm:$0xff]  }
 0x554   : > { %9610 = vmatprep.subr.bf16.mxu1 %v15402_v63  ;;  %v15489_v63 = vld [vmem:[#allocation13 + $0x3e4] ss:$16 sps:$4 sm:$0xff]  }
 0x555   : > { %8772 = vmatmul.mubr.bf16.vlgmr.msra.gmra.mrb[16].mxu0 %v17070_v26 }
 0x556   : > { %8858 = vmatmul.mubr.bf16.vlgmr.msra.gmra.mrb[16].mxu1 %v17070_v26  ;;  %9570 = vmatpush1.bf16.msra.mxu0 %v15397_v54  ;;  %v15418_v26 = vld [vmem:[#allocation13 + $0x268] ss:$16 sps:$4 sm:$0xff]   ;;  %v15492_v54 = vld [vmem:[#allocation13 + $0x3ec] ss:$16 sps:$4 sm:$0xff]  }
 0x557   : > { %9611 = vmatpush1.bf16.msra.mxu1 %v15400_v47  ;;  %9571 = vmatprep.subr.bf16.mxu0 %v15405_v42  ;;  %v15487_v47 = vld [vmem:[#allocation13 + $0x3e0] ss:$16 sps:$4 sm:$0xff]   ;;  %v15490_v42 = vld [vmem:[#allocation13 + $0x3e8] ss:$16 sps:$4 sm:$0xff]  }
 0x558   : > { %9612 = vmatprep.subr.bf16.mxu1 %v15408_v56  ;;  %v15495_v56 = vld [vmem:[#allocation13 + $0x4] ss:$16 sps:$4 sm:$0xff]  }
 0x55a   : > { %9572 = vmatpush1.bf16.msra.mxu0 %v15403_v60  ;;  %v15498_v60 = vld [vmem:[#allocation13 + $0xc] ss:$16 sps:$4 sm:$0xff]  }
 0x55b   : > { %9613 = vmatpush1.bf16.msra.mxu1 %v15406_v5  ;;  %9573 = vmatprep.subr.bf16.mxu0 %v15411_v24  ;;  %v8876_v5 = vld [vmem:[#allocation11] sm:$0xf] }
 0x55c   : > { %9614 = vmatprep.subr.bf16.mxu1 %v15414_v8  ;;  %v8881_v24 = vrot.slane %v8876_v5, %v16758_v31  ;;  %v8889_v8 = vrot.slane %v8876_v5, %v16761_v32 }
 0x55e   : > { %9574 = vmatpush1.bf16.msra.mxu0 %v15409_v35  ;;  %v8885_v35 = vrot.slane %v8876_v5, %v16764_v33 }
 0x55f   : > { %9615 = vmatpush1.bf16.msra.mxu1 %v15412_v37  ;;  %9575 = vmatprep.subr.bf16.mxu0 %v15417_v62  ;;  %v8893_v37 = vrot.slane %v8876_v5, %v16767_v36 }
 0x560   : > { %9616 = vmatprep.subr.bf16.mxu1 %v15420_v19 }
 0x562   : > { %9576 = vmatpush1.bf16.msra.mxu0 %v15415_v40 }
 0x563   : > { %9617 = vmatpush1.bf16.msra.mxu1 %v15418_v26  ;;  %9577 = vmatprep.subr.bf16.mxu0 %v15423_v55 }
 0x564   : > { %9618 = vmatprep.subr.bf16.mxu1 %v15426_v18 }
 0x566   : > { %9578 = vmatpush1.bf16.msra.mxu0 %v15421_v39 }
 0x567   : > { %9619 = vmatpush1.bf16.msra.mxu1 %v15424_v13  ;;  %9579 = vmatprep.subr.bf16.mxu0 %v15429_v22 }
 0x568   : > { %9620 = vmatprep.subr.bf16.mxu1 %v15432_v16 }
 0x56a   : > { %9580 = vmatpush1.bf16.msra.mxu0 %v15427_v43 }
 0x56b   : > { %9621 = vmatpush1.bf16.msra.mxu1 %v15430_v41  ;;  %9581 = vmatprep.subr.bf16.mxu0 %v15435_v50 }
 0x56c   : > { %9622 = vmatprep.subr.bf16.mxu1 %v15438_v51 }
 0x56e   : > { %9582 = vmatpush1.bf16.msra.mxu0 %v15433_v14 }
 0x56f   : > { %9623 = vmatpush1.bf16.msra.mxu1 %v15436_v15  ;;  %9583 = vmatprep.subr.bf16.mxu0 %v15441_v25 }
 0x570   : > { %9624 = vmatprep.subr.bf16.mxu1 %v15444_v12 }
 0x572   : > { %9584 = vmatpush1.bf16.msra.mxu0 %v15439_v10 }
 0x573   : > { %9625 = vmatpush1.bf16.msra.mxu1 %v15442_v7  ;;  %9585 = vmatprep.subr.bf16.mxu0 %v15447_v27 }
 0x574   : > { %9626 = vmatprep.subr.bf16.mxu1 %v15450_v17 }
 0x576   : > { %9586 = vmatpush1.bf16.msra.mxu0 %v15445_v53 }
 0x577   : > { %9627 = vmatpush1.bf16.msra.mxu1 %v15448_v3  ;;  %9587 = vmatprep.subr.bf16.mxu0 %v15453_v57 }
 0x578   : > { %9628 = vmatprep.subr.bf16.mxu1 %v15456_v1 }
 0x57a   : > { %9588 = vmatpush1.bf16.msra.mxu0 %v15451_v28 }
 0x57b   : > { %9629 = vmatpush1.bf16.msra.mxu1 %v15454_v61  ;;  %9589 = vmatprep.subr.bf16.mxu0 %v15459_v48 }
 0x57c   : > { %9630 = vmatprep.subr.bf16.mxu1 %v15462_v23 }
 0x57e   : > { %9590 = vmatpush1.bf16.msra.mxu0 %v15457_v38 }
 0x57f   : > { %9631 = vmatpush1.bf16.msra.mxu1 %v15460_v9  ;;  %9591 = vmatprep.subr.bf16.mxu0 %v15465_v49 }
 0x580   : > { %9632 = vmatprep.subr.bf16.mxu1 %v15468_v30 }
 0x582   : > { %9592 = vmatpush1.bf16.msra.mxu0 %v15463_v21 }
 0x583   : > { %9633 = vmatpush1.bf16.msra.mxu1 %v15466_v58  ;;  %9593 = vmatprep.subr.bf16.mxu0 %v15471_v34 }
 0x584   : > { %9634 = vmatprep.subr.bf16.mxu1 %v15474_v20 }
 0x586   : > { %9594 = vmatpush1.bf16.msra.mxu0 %v15469_v4 }
 0x587   : > { %9635 = vmatpush1.bf16.msra.mxu1 %v15472_v11  ;;  %9595 = vmatprep.subr.bf16.mxu0 %v15477_v45 }
 0x588   : > { %9636 = vmatprep.subr.bf16.mxu1 %v15480_v52 }
 0x58a   : > { %9596 = vmatpush1.bf16.msra.mxu0 %v15475_v2 }
 0x58b   : > { %9637 = vmatpush1.bf16.msra.mxu1 %v15478_v46  ;;  %9597 = vmatprep.subr.bf16.mxu0 %v15483_v0 }
 0x58c   : > { %9638 = vmatprep.subr.bf16.mxu1 %v15486_v59 }
 0x58e   : > { %9598 = vmatpush1.bf16.msra.mxu0 %v15481_v44 }
 0x58f   : > { %9639 = vmatpush1.bf16.msra.mxu1 %v15484_v6  ;;  %9599 = vmatprep.subr.bf16.mxu0 %v15489_v63 }
 0x590   : > { %9640 = vmatprep.subr.bf16.mxu1 %v15492_v54 }
 0x592   : > { %9600 = vmatpush1.bf16.msra.mxu0 %v15487_v47 }
 0x593   : > { %9641 = vmatpush1.bf16.msra.mxu1 %v15490_v42  ;;  %9971 = vmatprep.subr.bf16.mxu0 %v15495_v56 }
 0x594   : > { %10012 = vmatprep.subr.bf16.mxu1 %v15498_v60 }
 0x628   : > { %v8773_v62 = vpop.f32.mrb[16].mxu0 }
 0x629   : > { %v8898_v19 = vadd.f32 %v8881_v24, %v8773_v62  ;;  %v8859_v40 = vpop.f32.mrb[16].mxu1  ;;  %v8775_v26 = vpop.f32.mrb[17].mxu0 }
 0x62a   : > { %v8900_v55 = vadd.f32 %v8889_v8, %v8859_v40  ;;  %v8899_v18 = vadd.f32 %v8885_v35, %v8775_v26  ;;  %v8861_v39 = vpop.f32.mrb[17].mxu1  ;;  %v8777_v13 = vpop.f32.mrb[18].mxu0 }
 0x62b   : > { %v8906_v22 = vmax.f32 %v8898_v19, 0.0  ;;  %v8901_v16 = vadd.f32 %v8893_v37, %v8861_v39  ;;  %v8902_v43 = vadd.f32 %v8881_v24, %v8777_v13  ;;  %v8863_v41 = vpop.f32.mrb[18].mxu1  ;;  %v8779_v14 = vpop.f32.mrb[19].mxu0 }
 0x62c   : > { %v8908_v50 = vmax.f32 %v8900_v55, 0.0  ;;  %v8907_v15 = vmax.f32 %v8899_v18, 0.0  ;;  %v8904_v51 = vadd.f32 %v8889_v8, %v8863_v41  ;;  %v8903_v10 = vadd.f32 %v8885_v35, %v8779_v14  ;;  %v8865_v25 = vpop.f32.mrb[19].mxu1 }
 0x62d   : > { %v8909_v7 = vmax.f32 %v8901_v16, 0.0  ;;  %v8910_v12 = vmax.f32 %v8902_v43, 0.0  ;;  %v8905_v27 = vadd.f32 %v8893_v37, %v8865_v25 }
 0x62e   : > { %v8914_v17 = vmax.f32 %v8906_v22, %v8908_v50  ;;  %v8912_v53 = vmax.f32 %v8904_v51, 0.0  ;;  %v8911_v3 = vmax.f32 %v8903_v10, 0.0 }
 0x62f   : > { %v8915_v57 = vmax.f32 %v8907_v15, %v8909_v7  ;;  %v8913_v1 = vmax.f32 %v8905_v27, 0.0 }
 0x630   : > { %v8916_v28 = vmax.f32 %v8910_v12, %v8912_v53 }
 0x631   : > { %v8922_v61 = vcombine.low %v8914_v17, %v8915_v57  ;;  %v8923_v48 = vcombine.high %v8914_v17, %v8915_v57  ;;  %v8917_v23 = vmax.f32 %v8911_v3, %v8913_v1 }
 0x633   : > { %v8930_v38 = vrot.slane %v8922_v61, %v16820_v29  ;;  %v8937_v9 = vrot.slane %v8923_v48, %v16820_v29  ;;  %v8940_v49 = vcombine.low %v8916_v28, %v8917_v23  ;;  %v8941_v30 = vcombine.high %v8916_v28, %v8917_v23 }
 0x635   : > { %v8938_v21 = vcombine.high %v8930_v38, %v8930_v38  ;;  %v8939_v58 = vcombine.high %v8937_v9, %v8937_v9  ;;  %v13503_v34 = vrot.slane %v8930_v38, 9  ;;  %v13505_v20 = vrot.slane %v8937_v9, 9 }
 0x636   : > { %v8948_v4 = vrot.slane %v8940_v49, %v16820_v29  ;;  %v8955_v11 = vrot.slane %v8941_v30, %v16820_v29 }
 0x637   : > { %v13504_v45 = vrot.slane %v8938_v21, 9  ;;  %v13506_v52 = vrot.slane %v8939_v58, 9  ;;  %v8990_v2 = vmax.f32 %v8930_v38, %v13503_v34  ;;  %v8992_v46 = vmax.f32 %v8937_v9, %v13505_v20 }
 0x638   : > { %v8956_v0 = vcombine.high %v8948_v4, %v8948_v4  ;;  %v8957_v59 = vcombine.high %v8955_v11, %v8955_v11  ;;  %v13507_v44 = vrot.slane %v8948_v4, 9  ;;  %v13509_v6 = vrot.slane %v8955_v11, 9 }
 0x639   : > { %v8991_v63 = vmax.f32 %v8938_v21, %v13504_v45  ;;  %v8993_v54 = vmax.f32 %v8939_v58, %v13506_v52  ;;  %v9013_v47 = vrot.slane %v8990_v2, %v16758_v31  ;;  %v9017_v42 = vrot.slane %v8990_v2, %v16761_v32  ;;  %v15501_v2 = vld [vmem:[#allocation13 + $0x24] ss:$16 sps:$4 sm:$0xff]  }
 0x63a   : > { %v13508_v56 = vrot.slane %v8956_v0, 9  ;;  %v13510_v60 = vrot.slane %v8957_v59, 9  ;;  %v9029_v8 = vrot.slane %v8992_v46, %v16758_v31  ;;  %v9033_v35 = vrot.slane %v8992_v46, %v16761_v32  ;;  %v15504_v46 = vld [vmem:[#allocation13 + $0x2c] ss:$16 sps:$4 sm:$0xff]  }
 0x63b   : > { %v9021_v5 = vrot.slane %v8991_v63, %v16758_v31  ;;  %v9025_v24 = vrot.slane %v8991_v63, %v16761_v32  ;;  %v8994_v37 = vmax.f32 %v8948_v4, %v13507_v44  ;;  %v8996_v19 = vmax.f32 %v8955_v11, %v13509_v6  ;;  %v15493_v4 = vld [vmem:[#allocation13] ss:$16 sps:$4 sm:$0xff]   ;;  %v15496_v11 = vld [vmem:[#allocation13 + $0x8] ss:$16 sps:$4 sm:$0xff]   ;;  %v15507_v6 = vld [vmem:[#allocation13 + $0x44] ss:$16 sps:$4 sm:$0xff]  }
 0x63c   : > { %v8995_v62 = vmax.f32 %v8956_v0, %v13508_v56  ;;  %v8997_v40 = vmax.f32 %v8957_v59, %v13510_v60  ;;  %v9037_v26 = vrot.slane %v8993_v54, %v16758_v31  ;;  %v9041_v55 = vrot.slane %v8993_v54, %v16761_v32  ;;  %v15499_v59 = vld [vmem:[#allocation13 + $0x20] ss:$16 sps:$4 sm:$0xff]   ;;  %v15502_v44 = vld [vmem:[#allocation13 + $0x28] ss:$16 sps:$4 sm:$0xff]   ;;  %v15510_v63 = vld [vmem:[#allocation13 + $0x4c] ss:$16 sps:$4 sm:$0xff]  }
 0x63d   : > { %v9074_v18 = vsel %vm3813_vm2, %v9021_v5, %v9013_v47  ;;  %v9079_v39 = vsel %vm3813_vm2, %v9025_v24, %v9017_v42  ;;  %v9045_v16 = vrot.slane %v8994_v37, %v16758_v31  ;;  %v9049_v43 = vrot.slane %v8994_v37, %v16761_v32  ;;  %v15505_v54 = vld [vmem:[#allocation13 + $0x40] ss:$16 sps:$4 sm:$0xff]   ;;  %v15508_v47 = vld [vmem:[#allocation13 + $0x48] ss:$16 sps:$4 sm:$0xff]   ;;  %v15513_v42 = vld [vmem:[#allocation13 + $0x64] ss:$16 sps:$4 sm:$0xff]  }
 0x63e   : > { %v9075_v13 = vsel %vm3815_vm3, %v9029_v8, %v9074_v18  ;;  %v9080_v22 = vsel %vm3815_vm3, %v9033_v35, %v9079_v39  ;;  %v9053_v50 = vrot.slane %v8995_v62, %v16758_v31  ;;  %v9057_v15 = vrot.slane %v8995_v62, %v16761_v32  ;;  %v15516_v56 = vld [vmem:[#allocation13 + $0x6c] ss:$16 sps:$4 sm:$0xff]   ;;  %v15511_v60 = vld [vmem:[#allocation13 + $0x60] ss:$16 sps:$4 sm:$0xff]   ;;  %v15514_v5 = vld [vmem:[#allocation13 + $0x68] ss:$16 sps:$4 sm:$0xff]  }
 0x63f   : > { %v9076_v41 = vsel %vm3817_vm4, %v9037_v26, %v9075_v13  ;;  %v9081_v14 = vsel %vm3817_vm4, %v9041_v55, %v9080_v22  ;;  %v9061_v51 = vrot.slane %v8996_v19, %v16758_v31  ;;  %v9065_v10 = vrot.slane %v8996_v19, %v16761_v32  ;;  %v15519_v24 = vld [vmem:[#allocation13 + $0x84] ss:$16 sps:$4 sm:$0xff]   ;;  %v15522_v8 = vld [vmem:[#allocation13 + $0x8c] ss:$16 sps:$4 sm:$0xff]   ;;  %v15517_v35 = vld [vmem:[#allocation13 + $0x80] ss:$16 sps:$4 sm:$0xff]  }
 0x640   : > { %v9069_v25 = vrot.slane %v8997_v40, %v16758_v31  ;;  %v9073_v7 = vrot.slane %v8997_v40, %v16761_v32  ;;  %v9077_v12 = vsel %vm3819_vm5, %v9045_v16, %v9076_v41  ;;  %v9082_v27 = vsel %vm3819_vm5, %v9049_v43, %v9081_v14  ;;  %v15520_v37 = vld [vmem:[#allocation13 + $0x88] ss:$16 sps:$4 sm:$0xff]   ;;  %v15525_v62 = vld [vmem:[#allocation13 + $0xa4] ss:$16 sps:$4 sm:$0xff]   ;;  %v15528_v19 = vld [vmem:[#allocation13 + $0xac] ss:$16 sps:$4 sm:$0xff]  }
 0x641   : > { %v9078_v17 = vsel %vm3821_vm6, %v9053_v50, %v9077_v12  ;;  %v9083_v53 = vsel %vm3821_vm6, %v9057_v15, %v9082_v27  ;;  %v15523_v40 = vld [vmem:[#allocation13 + $0xa0] ss:$16 sps:$4 sm:$0xff]   ;;  %v15526_v26 = vld [vmem:[#allocation13 + $0xa8] ss:$16 sps:$4 sm:$0xff]   ;;  %v15531_v55 = vld [vmem:[#allocation13 + $0xc4] ss:$16 sps:$4 sm:$0xff]  }
 0x642   : > { %v9084_v3 = vsel %vm3838_vm7, %v9069_v25, %v9061_v51  ;;  %v9085_v57 = vsel %vm3838_vm7, %v9073_v7, %v9065_v10  ;;  %9090 = vst [vmem:[#allocation4] sm:$0xfc] %v9078_v17  ;;  %9091 = vst [vmem:[#allocation4 + $0x8] sm:$0xfc] %v9083_v53  ;;  %v15534_v18 = vld [vmem:[#allocation13 + $0xcc] ss:$16 sps:$4 sm:$0xff]  }
 0x643   : > { %9092 = vst [vmem:[#allocation4 + $0x10] sm:$0x3] %v9084_v3  ;;  %9093 = vst [vmem:[#allocation4 + $0x18] sm:$0x3] %v9085_v57  ;;  %v15529_v39 = vld [vmem:[#allocation13 + $0xc0] ss:$16 sps:$4 sm:$0xff]  }
 0x644   : > { %v15532_v13 = vld [vmem:[#allocation13 + $0xc8] ss:$16 sps:$4 sm:$0xff]   ;;  %v15537_v22 = vld [vmem:[#allocation13 + $0xe4] ss:$16 sps:$4 sm:$0xff]   ;;  %v15540_v16 = vld [vmem:[#allocation13 + $0xec] ss:$16 sps:$4 sm:$0xff]  }
 0x645   : > { %v15535_v43 = vld [vmem:[#allocation13 + $0xe0] ss:$16 sps:$4 sm:$0xff]   ;;  %v15538_v41 = vld [vmem:[#allocation13 + $0xe8] ss:$16 sps:$4 sm:$0xff]   ;;  %v15543_v14 = vld [vmem:[#allocation13 + $0x104] ss:$16 sps:$4 sm:$0xff]  }
 0x646   : > { %v15546_v50 = vld [vmem:[#allocation13 + $0x10c] ss:$16 sps:$4 sm:$0xff]   ;;  %v15541_v15 = vld [vmem:[#allocation13 + $0x100] ss:$16 sps:$4 sm:$0xff]   ;;  %v15544_v51 = vld [vmem:[#allocation13 + $0x108] ss:$16 sps:$4 sm:$0xff]  }
 0x647   : > { %v15549_v10 = vld [vmem:[#allocation13 + $0x124] ss:$16 sps:$4 sm:$0xff]   ;;  %v15552_v25 = vld [vmem:[#allocation13 + $0x12c] ss:$16 sps:$4 sm:$0xff]   ;;  %v15547_v7 = vld [vmem:[#allocation13 + $0x120] ss:$16 sps:$4 sm:$0xff]  }
 0x648   : > { %v15550_v12 = vld [vmem:[#allocation13 + $0x128] ss:$16 sps:$4 sm:$0xff]   ;;  %v15555_v27 = vld [vmem:[#allocation13 + $0x144] ss:$16 sps:$4 sm:$0xff]   ;;  %v15558_v17 = vld [vmem:[#allocation13 + $0x14c] ss:$16 sps:$4 sm:$0xff]  }
 0x649   : > { %v9163_v1 = vld [vmem:[#allocation4 + $0x8] sm:$0xfe]  ;;  %v9162_v61 = vld [vmem:[#allocation4] sm:$0xfe] }
 0x64a   : > { %v9165_v28 = vld [vmem:[#allocation4 + $0x18] sm:$0x1]  ;;  %v9164_v23 = vld [vmem:[#allocation4 + $0x10] sm:$0x1]  ;;  %v9095_v45 = vld [vmem:[#allocation4 + $0x8] sm:$0xff] }
 0x64b   : > { %v9167_v48 = vpack.c.bf16 %v9165_v28, %v9163_v1  ;;  %v9166_v38 = vpack.c.bf16 %v9164_v23, %v9162_v61  ;;  %v9097_v0 = vpack.c.bf16 %v9095_v45, %v9095_v45  ;;  %v15553_v53 = vld [vmem:[#allocation13 + $0x140] ss:$16 sps:$4 sm:$0xff]   ;;  %v15556_v3 = vld [vmem:[#allocation13 + $0x148] ss:$16 sps:$4 sm:$0xff]   ;;  %v15561_v57 = vld [vmem:[#allocation13 + $0x164] ss:$16 sps:$4 sm:$0xff]  }
 0x64c   : > { %v15564_v1 = vld [vmem:[#allocation13 + $0x16c] ss:$16 sps:$4 sm:$0xff]   ;;  %v15559_v28 = vld [vmem:[#allocation13 + $0x160] ss:$16 sps:$4 sm:$0xff]   ;;  %v15562_v61 = vld [vmem:[#allocation13 + $0x168] ss:$16 sps:$4 sm:$0xff]  }
 0x64d   : > { %v9243_v9 = vshll.u32 %v9167_v48, 16  ;;  %v9236_v49 = vshll.u32 %v9166_v38, 16  ;;  %v9241_v30 = vshrl.u32 %v9167_v48, 16  ;;  %v9234_v58 = vshrl.u32 %v9166_v38, 16  ;;  %v15567_v48 = vld [vmem:[#allocation13 + $0x184] ss:$16 sps:$4 sm:$0xff]  }
 0x64e   : > { %v15570_v23 = vld [vmem:[#allocation13 + $0x18c] ss:$16 sps:$4 sm:$0xff]   ;;  %v15565_v38 = vld [vmem:[#allocation13 + $0x180] ss:$16 sps:$4 sm:$0xff]   ;;  %v15585_v45 = vld [vmem:[#allocation13 + $0x1e4] ss:$16 sps:$4 sm:$0xff]  }
 0x64f   : > { %v9245_v21 = vrot.slane %v9243_v9, 1  ;;  %v9238_v34 = vrot.slane %v9236_v49, 1  ;;  %v15568_v9 = vld [vmem:[#allocation13 + $0x188] ss:$16 sps:$4 sm:$0xff]   ;;  %v15573_v49 = vld [vmem:[#allocation13 + $0x1a4] ss:$16 sps:$4 sm:$0xff]  }
 0x651   : > { %v9246_v20 = vor.u32 %v9245_v21, %v9241_v30  ;;  %v9239_v52 = vor.u32 %v9238_v34, %v9234_v58  ;;  %v15576_v30 = vld [vmem:[#allocation13 + $0x1ac] ss:$16 sps:$4 sm:$0xff]   ;;  %v15571_v21 = vld [vmem:[#allocation13 + $0x1a0] ss:$16 sps:$4 sm:$0xff]   ;;  %v15574_v58 = vld [vmem:[#allocation13 + $0x1a8] ss:$16 sps:$4 sm:$0xff]  }
 0x652   : > { %v15579_v34 = vld [vmem:[#allocation13 + $0x1c4] ss:$16 sps:$4 sm:$0xff]  }
 0x653   : > { %9601 = vmatprep.mubr.bf16.mxu0 %v9246_v20  ;;  %9642 = vmatprep.mubr.bf16.mxu1 %v9246_v20  ;;  %v15582_v20 = vld [vmem:[#allocation13 + $0x1cc] ss:$16 sps:$4 sm:$0xff]  }
 0x654   : > { %9602 = vmatmul.mubr.bf16.vlgmr.msra.gmra.mrb[20].mxu0 %v9239_v52  ;;  %9643 = vmatmul.mubr.bf16.vlgmr.msra.gmra.mrb[20].mxu1 %v9239_v52  ;;  %v15588_v52 = vld [vmem:[#allocation13 + $0x1ec] ss:$16 sps:$4 sm:$0xff]  }
 0x655   : > { %9972 = vmatpush1.bf16.msra.mxu0 %v15493_v4  ;;  %10013 = vmatpush1.bf16.msra.mxu1 %v15496_v11  ;;  %v15577_v4 = vld [vmem:[#allocation13 + $0x1c0] ss:$16 sps:$4 sm:$0xff]   ;;  %v15580_v11 = vld [vmem:[#allocation13 + $0x1c8] ss:$16 sps:$4 sm:$0xff]  }
 0x656   : > { %10003 = vmatprep.mubr.bf16.mxu0 %v9097_v0  ;;  %10044 = vmatprep.mubr.bf16.mxu1 %v9097_v0  ;;  %v15586_v0 = vld [vmem:[#allocation13 + $0x1e8] ss:$16 sps:$4 sm:$0xff]  }
 0x657   : > { %9973 = vmatprep.subr.bf16.mxu0 %v15501_v2  ;;  %10014 = vmatprep.subr.bf16.mxu1 %v15504_v46  ;;  %v10054_v2 = vld [vmem:[#allocation4 + $0x8] sm:$0xfc] }
 0x658   : > { %v15583_v46 = vld [vmem:[#allocation13 + $0x1e0] ss:$16 sps:$4 sm:$0xff]  }
 0x659   : > { %9974 = vmatpush1.bf16.msra.mxu0 %v15499_v59  ;;  %10015 = vmatpush1.bf16.msra.mxu1 %v15502_v44  ;;  %v15591_v59 = vld [vmem:[#allocation13 + $0x404] ss:$16 sps:$4 sm:$0xff]   ;;  %v15594_v44 = vld [vmem:[#allocation13 + $0x40c] ss:$16 sps:$4 sm:$0xff]  }
 0x65a   : > { %9975 = vmatprep.subr.bf16.mxu0 %v15507_v6  ;;  %10016 = vmatprep.subr.bf16.mxu1 %v15510_v63  ;;  %v10056_v6 = vld [vmem:[#allocation4 + $0x18] sm:$0x3]  ;;  %v9094_v63 = vld [vmem:[#allocation4] sm:$0xff] }
 0x65d   : > { %9976 = vmatpush1.bf16.msra.mxu0 %v15505_v54  ;;  %10017 = vmatpush1.bf16.msra.mxu1 %v15508_v47  ;;  %v10058_v54 = vpack.c.bf16 %v10056_v6, %v10054_v2  ;;  %v15589_v47 = vld [vmem:[#allocation13 + $0x400] ss:$16 sps:$4 sm:$0xff]   ;;  %v15664_v2 = vld [vmem:[#allocation13 + $0x588] ss:$16 sps:$4 sm:$0xff]  }
 0x65e   : > { %9977 = vmatprep.subr.bf16.mxu0 %v15513_v42  ;;  %10018 = vmatprep.subr.bf16.mxu1 %v15516_v56  ;;  %v9096_v42 = vpack.c.bf16 %v9094_v63, %v9094_v63  ;;  %v15592_v56 = vld [vmem:[#allocation13 + $0x408] ss:$16 sps:$4 sm:$0xff]   ;;  %v15675_v63 = vld [vmem:[#allocation13 + $0x5c4] ss:$16 sps:$4 sm:$0xff]  }
 0x65f   : > { %v15670_v6 = vld [vmem:[#allocation13 + $0x5a8] ss:$16 sps:$4 sm:$0xff]  }
 0x661   : > { %9978 = vmatpush1.bf16.msra.mxu0 %v15511_v60  ;;  %10019 = vmatpush1.bf16.msra.mxu1 %v15514_v5  ;;  %v10127_v60 = vrot.slane %v10058_v54, 1  ;;  %v15597_v5 = vld [vmem:[#allocation13 + $0x424] ss:$16 sps:$4 sm:$0xff]   ;;  %v15678_v54 = vld [vmem:[#allocation13 + $0x5cc] ss:$16 sps:$4 sm:$0xff]  }
 0x662   : > { %9979 = vmatprep.subr.bf16.mxu0 %v15519_v24  ;;  %10020 = vmatprep.subr.bf16.mxu1 %v15522_v8  ;;  %v15600_v24 = vld [vmem:[#allocation13 + $0x42c] ss:$16 sps:$4 sm:$0xff]   ;;  %v15595_v8 = vld [vmem:[#allocation13 + $0x420] ss:$16 sps:$4 sm:$0xff]  }
 0x665   : > { %9980 = vmatpush1.bf16.msra.mxu0 %v15517_v35  ;;  %10021 = vmatpush1.bf16.msra.mxu1 %v15520_v37  ;;  %v15598_v35 = vld [vmem:[#allocation13 + $0x428] ss:$16 sps:$4 sm:$0xff]   ;;  %v15603_v37 = vld [vmem:[#allocation13 + $0x444] ss:$16 sps:$4 sm:$0xff]  }
 0x666   : > { %9981 = vmatprep.subr.bf16.mxu0 %v15525_v62  ;;  %10022 = vmatprep.subr.bf16.mxu1 %v15528_v19  ;;  %v15606_v62 = vld [vmem:[#allocation13 + $0x44c] ss:$16 sps:$4 sm:$0xff]   ;;  %v15601_v19 = vld [vmem:[#allocation13 + $0x440] ss:$16 sps:$4 sm:$0xff]  }
 0x669   : > { %9982 = vmatpush1.bf16.msra.mxu0 %v15523_v40  ;;  %10023 = vmatpush1.bf16.msra.mxu1 %v15526_v26  ;;  %v15604_v40 = vld [vmem:[#allocation13 + $0x448] ss:$16 sps:$4 sm:$0xff]   ;;  %v15609_v26 = vld [vmem:[#allocation13 + $0x464] ss:$16 sps:$4 sm:$0xff]  }
 0x66a   : > { %9983 = vmatprep.subr.bf16.mxu0 %v15531_v55  ;;  %10024 = vmatprep.subr.bf16.mxu1 %v15534_v18  ;;  %v15612_v55 = vld [vmem:[#allocation13 + $0x46c] ss:$16 sps:$4 sm:$0xff]   ;;  %v15607_v18 = vld [vmem:[#allocation13 + $0x460] ss:$16 sps:$4 sm:$0xff]  }
 0x66d   : > { %9984 = vmatpush1.bf16.msra.mxu0 %v15529_v39  ;;  %10025 = vmatpush1.bf16.msra.mxu1 %v15532_v13  ;;  %v15610_v39 = vld [vmem:[#allocation13 + $0x468] ss:$16 sps:$4 sm:$0xff]   ;;  %v15615_v13 = vld [vmem:[#allocation13 + $0x484] ss:$16 sps:$4 sm:$0xff]  }
 0x66e   : > { %9985 = vmatprep.subr.bf16.mxu0 %v15537_v22  ;;  %10026 = vmatprep.subr.bf16.mxu1 %v15540_v16  ;;  %v15618_v22 = vld [vmem:[#allocation13 + $0x48c] ss:$16 sps:$4 sm:$0xff]   ;;  %v15613_v16 = vld [vmem:[#allocation13 + $0x480] ss:$16 sps:$4 sm:$0xff]  }
 0x671   : > { %9986 = vmatpush1.bf16.msra.mxu0 %v15535_v43  ;;  %10027 = vmatpush1.bf16.msra.mxu1 %v15538_v41  ;;  %v15616_v43 = vld [vmem:[#allocation13 + $0x488] ss:$16 sps:$4 sm:$0xff]   ;;  %v15621_v41 = vld [vmem:[#allocation13 + $0x4a4] ss:$16 sps:$4 sm:$0xff]  }
 0x672   : > { %9987 = vmatprep.subr.bf16.mxu0 %v15543_v14  ;;  %10028 = vmatprep.subr.bf16.mxu1 %v15546_v50  ;;  %v15624_v14 = vld [vmem:[#allocation13 + $0x4ac] ss:$16 sps:$4 sm:$0xff]   ;;  %v15619_v50 = vld [vmem:[#allocation13 + $0x4a0] ss:$16 sps:$4 sm:$0xff]  }
 0x675   : > { %9988 = vmatpush1.bf16.msra.mxu0 %v15541_v15  ;;  %10029 = vmatpush1.bf16.msra.mxu1 %v15544_v51  ;;  %v15622_v15 = vld [vmem:[#allocation13 + $0x4a8] ss:$16 sps:$4 sm:$0xff]   ;;  %v15627_v51 = vld [vmem:[#allocation13 + $0x4c4] ss:$16 sps:$4 sm:$0xff]  }
 0x676   : > { %9989 = vmatprep.subr.bf16.mxu0 %v15549_v10  ;;  %10030 = vmatprep.subr.bf16.mxu1 %v15552_v25  ;;  %v15630_v10 = vld [vmem:[#allocation13 + $0x4cc] ss:$16 sps:$4 sm:$0xff]   ;;  %v15625_v25 = vld [vmem:[#allocation13 + $0x4c0] ss:$16 sps:$4 sm:$0xff]  }
 0x679   : > { %9990 = vmatpush1.bf16.msra.mxu0 %v15547_v7  ;;  %10031 = vmatpush1.bf16.msra.mxu1 %v15550_v12  ;;  %v15628_v7 = vld [vmem:[#allocation13 + $0x4c8] ss:$16 sps:$4 sm:$0xff]   ;;  %v15633_v12 = vld [vmem:[#allocation13 + $0x4e4] ss:$16 sps:$4 sm:$0xff]  }
 0x67a   : > { %9991 = vmatprep.subr.bf16.mxu0 %v15555_v27  ;;  %10032 = vmatprep.subr.bf16.mxu1 %v15558_v17  ;;  %v15636_v27 = vld [vmem:[#allocation13 + $0x4ec] ss:$16 sps:$4 sm:$0xff]   ;;  %v15631_v17 = vld [vmem:[#allocation13 + $0x4e0] ss:$16 sps:$4 sm:$0xff]  }
 0x67d   : > { %9992 = vmatpush1.bf16.msra.mxu0 %v15553_v53  ;;  %10033 = vmatpush1.bf16.msra.mxu1 %v15556_v3  ;;  %v15634_v53 = vld [vmem:[#allocation13 + $0x4e8] ss:$16 sps:$4 sm:$0xff]   ;;  %v15639_v3 = vld [vmem:[#allocation13 + $0x504] ss:$16 sps:$4 sm:$0xff]  }
 0x67e   : > { %9993 = vmatprep.subr.bf16.mxu0 %v15561_v57  ;;  %10034 = vmatprep.subr.bf16.mxu1 %v15564_v1  ;;  %v15642_v57 = vld [vmem:[#allocation13 + $0x50c] ss:$16 sps:$4 sm:$0xff]   ;;  %v15637_v1 = vld [vmem:[#allocation13 + $0x500] ss:$16 sps:$4 sm:$0xff]  }
 0x681   : > { %9994 = vmatpush1.bf16.msra.mxu0 %v15559_v28  ;;  %10035 = vmatpush1.bf16.msra.mxu1 %v15562_v61  ;;  %v15640_v28 = vld [vmem:[#allocation13 + $0x508] ss:$16 sps:$4 sm:$0xff]   ;;  %v15645_v61 = vld [vmem:[#allocation13 + $0x524] ss:$16 sps:$4 sm:$0xff]  }
 0x682   : > { %9995 = vmatprep.subr.bf16.mxu0 %v15567_v48  ;;  %10036 = vmatprep.subr.bf16.mxu1 %v15570_v23  ;;  %v15648_v48 = vld [vmem:[#allocation13 + $0x52c] ss:$16 sps:$4 sm:$0xff]   ;;  %v15643_v23 = vld [vmem:[#allocation13 + $0x520] ss:$16 sps:$4 sm:$0xff]  }
 0x685   : > { %9996 = vmatpush1.bf16.msra.mxu0 %v15565_v38  ;;  %10037 = vmatpush1.bf16.msra.mxu1 %v15568_v9  ;;  %v15646_v38 = vld [vmem:[#allocation13 + $0x528] ss:$16 sps:$4 sm:$0xff]   ;;  %v15651_v9 = vld [vmem:[#allocation13 + $0x544] ss:$16 sps:$4 sm:$0xff]  }
 0x686   : > { %9997 = vmatprep.subr.bf16.mxu0 %v15573_v49  ;;  %10038 = vmatprep.subr.bf16.mxu1 %v15576_v30  ;;  %v15654_v49 = vld [vmem:[#allocation13 + $0x54c] ss:$16 sps:$4 sm:$0xff]   ;;  %v15649_v30 = vld [vmem:[#allocation13 + $0x540] ss:$16 sps:$4 sm:$0xff]  }
 0x689   : > { %9998 = vmatpush1.bf16.msra.mxu0 %v15571_v21  ;;  %10039 = vmatpush1.bf16.msra.mxu1 %v15574_v58  ;;  %v15652_v21 = vld [vmem:[#allocation13 + $0x548] ss:$16 sps:$4 sm:$0xff]   ;;  %v15657_v58 = vld [vmem:[#allocation13 + $0x564] ss:$16 sps:$4 sm:$0xff]  }
 0x68a   : > { %9999 = vmatprep.subr.bf16.mxu0 %v15579_v34  ;;  %10040 = vmatprep.subr.bf16.mxu1 %v15582_v20  ;;  %v15660_v34 = vld [vmem:[#allocation13 + $0x56c] ss:$16 sps:$4 sm:$0xff]   ;;  %v15655_v20 = vld [vmem:[#allocation13 + $0x560] ss:$16 sps:$4 sm:$0xff]  }
 0x68d   : > { %10000 = vmatpush1.bf16.msra.mxu0 %v15577_v4  ;;  %10041 = vmatpush1.bf16.msra.mxu1 %v15580_v11  ;;  %v15658_v4 = vld [vmem:[#allocation13 + $0x568] ss:$16 sps:$4 sm:$0xff]   ;;  %v15663_v11 = vld [vmem:[#allocation13 + $0x584] ss:$16 sps:$4 sm:$0xff]  }
 0x68e   : > { %10001 = vmatprep.subr.bf16.mxu0 %v15585_v45  ;;  %10042 = vmatprep.subr.bf16.mxu1 %v15588_v52  ;;  %v15666_v45 = vld [vmem:[#allocation13 + $0x58c] ss:$16 sps:$4 sm:$0xff]   ;;  %v15661_v52 = vld [vmem:[#allocation13 + $0x580] ss:$16 sps:$4 sm:$0xff]  }
 0x691   : > { %10002 = vmatpush1.bf16.msra.mxu0 %v15583_v46  ;;  %10043 = vmatpush1.bf16.msra.mxu1 %v15586_v0  ;;  %v15669_v46 = vld [vmem:[#allocation13 + $0x5a4] ss:$16 sps:$4 sm:$0xff]   ;;  %v15672_v0 = vld [vmem:[#allocation13 + $0x5ac] ss:$16 sps:$4 sm:$0xff]  }
 0x692   : > { %10450 = vmatprep.subr.bf16.mxu0 %v15591_v59  ;;  %10491 = vmatprep.subr.bf16.mxu1 %v15594_v44  ;;  %v15667_v59 = vld [vmem:[#allocation13 + $0x5a0] ss:$16 sps:$4 sm:$0xff]  }
 0x693   : > { %v10537_v44 = vld [vmem:[#allocation4 + $0x8] sm:$0xf8] }
 0x694   : > { %10004 = vmatmul.mubr.bf16.vlgmr.msra.gmra.mrb[24].mxu0 %v9096_v42  ;;  %10045 = vmatmul.mubr.bf16.vlgmr.msra.gmra.mrb[24].mxu1 %v9096_v42 }
 0x695   : > { %10451 = vmatpush1.bf16.msra.mxu0 %v15589_v47  ;;  %10482 = vmatprep.mubr.bf16.mxu0 %v10127_v60  ;;  %v10539_v47 = vld [vmem:[#allocation4 + $0x18] sm:$0x7] }
 0x696   : > { %10492 = vmatpush1.bf16.msra.mxu1 %v15592_v56  ;;  %10523 = vmatprep.mubr.bf16.mxu1 %v10127_v60  ;;  %v10541_v42 = vpack.c.bf16 %v10539_v47, %v10537_v44  ;;  %v15673_v56 = vld [vmem:[#allocation13 + $0x5c0] ss:$16 sps:$4 sm:$0xff]   ;;  %v15676_v60 = vld [vmem:[#allocation13 + $0x5c8] ss:$16 sps:$4 sm:$0xff]  }
 0x697   : > { %10452 = vmatprep.subr.bf16.mxu0 %v15597_v5  ;;  %10493 = vmatprep.subr.bf16.mxu1 %v15600_v24  ;;  %v15681_v5 = vld [vmem:[#allocation13 + $0x5e4] ss:$16 sps:$4 sm:$0xff]   ;;  %v15684_v24 = vld [vmem:[#allocation13 + $0x5ec] ss:$16 sps:$4 sm:$0xff]   ;;  %v15739_v44 = vld [vmem:[#allocation13 + $0x720] ss:$16 sps:$4 sm:$0xff]  }
 0x698   : > { %v15745_v47 = vld [vmem:[#allocation13 + $0x740] ss:$16 sps:$4 sm:$0xff]  }
 0x699   : > { %10453 = vmatpush1.bf16.msra.mxu0 %v15595_v8  ;;  %v10053_v8 = vld [vmem:[#allocation4] sm:$0xfc] }
 0x69a   : > { %10494 = vmatpush1.bf16.msra.mxu1 %v15598_v35  ;;  %10454 = vmatprep.subr.bf16.mxu0 %v15603_v37  ;;  %v10616_v35 = vshrl.u32 %v10541_v42, 16  ;;  %v10619_v37 = vshll.u32 %v10541_v42, 16  ;;  %v15748_v42 = vld [vmem:[#allocation13 + $0x748] ss:$16 sps:$4 sm:$0xff]  }
 0x69b   : > { %10495 = vmatprep.subr.bf16.mxu1 %v15606_v62  ;;  %v15679_v62 = vld [vmem:[#allocation13 + $0x5e0] ss:$16 sps:$4 sm:$0xff]  }
 0x69d   : > { %10455 = vmatpush1.bf16.msra.mxu0 %v15601_v19  ;;  %v10055_v19 = vld [vmem:[#allocation4 + $0x10] sm:$0x3] }
 0x69e   : > { %10496 = vmatpush1.bf16.msra.mxu1 %v15604_v40  ;;  %10456 = vmatprep.subr.bf16.mxu0 %v15609_v26  ;;  %v15682_v40 = vld [vmem:[#allocation13 + $0x5e8] ss:$16 sps:$4 sm:$0xff]   ;;  %v10057_v26 = vpack.c.bf16 %v10055_v19, %v10053_v8  ;;  %v15759_v8 = vld [vmem:[#allocation13 + $0x784] ss:$16 sps:$4 sm:$0xff]  }
 0x69f   : > { %10497 = vmatprep.subr.bf16.mxu1 %v15612_v55  ;;  %v15687_v55 = vld [vmem:[#allocation13 + $0x604] ss:$16 sps:$4 sm:$0xff]  }
 0x6a0   : > { %v15765_v19 = vld [vmem:[#allocation13 + $0x7a4] ss:$16 sps:$4 sm:$0xff]  }
 0x6a1   : > { %10457 = vmatpush1.bf16.msra.mxu0 %v15607_v18  ;;  %v15690_v18 = vld [vmem:[#allocation13 + $0x60c] ss:$16 sps:$4 sm:$0xff]  }
 0x6a2   : > { %10498 = vmatpush1.bf16.msra.mxu1 %v15610_v39  ;;  %10458 = vmatprep.subr.bf16.mxu0 %v15615_v13  ;;  %v10618_v39 = vrot.slane %v10616_v35, 1  ;;  %v10621_v13 = vrot.slane %v10619_v37, 2  ;;  %v15762_v35 = vld [vmem:[#allocation13 + $0x78c] ss:$16 sps:$4 sm:$0xff]   ;;  %v15757_v37 = vld [vmem:[#allocation13 + $0x780] ss:$16 sps:$4 sm:$0xff]  }
 0x6a3   : > { %10499 = vmatprep.subr.bf16.mxu1 %v15618_v22  ;;  %v15685_v22 = vld [vmem:[#allocation13 + $0x600] ss:$16 sps:$4 sm:$0xff]  }
 0x6a5   : > { %10459 = vmatpush1.bf16.msra.mxu0 %v15613_v16  ;;  %v10126_v16 = vrot.slane %v10057_v26, 1  ;;  %v10536_v26 = vld [vmem:[#allocation4] sm:$0xf8] }
 0x6a6   : > { %10500 = vmatpush1.bf16.msra.mxu1 %v15616_v43  ;;  %10460 = vmatprep.subr.bf16.mxu0 %v15621_v41  ;;  %v15688_v43 = vld [vmem:[#allocation13 + $0x608] ss:$16 sps:$4 sm:$0xff]   ;;  %v15693_v41 = vld [vmem:[#allocation13 + $0x624] ss:$16 sps:$4 sm:$0xff]  }
 0x6a7   : > { %10501 = vmatprep.subr.bf16.mxu1 %v15624_v14  ;;  %v10622_v14 = vor.u32 %v10621_v13, %v10618_v39  ;;  %v15766_v39 = vld [vmem:[#allocation13 + $0x7a8] ss:$16 sps:$4 sm:$0xff]   ;;  %v15771_v13 = vld [vmem:[#allocation13 + $0x7c4] ss:$16 sps:$4 sm:$0xff]  }
 0x6a9   : > { %10461 = vmatpush1.bf16.msra.mxu0 %v15619_v50  ;;  %v15696_v50 = vld [vmem:[#allocation13 + $0x62c] ss:$16 sps:$4 sm:$0xff]  }
 0x6aa   : > { %10502 = vmatpush1.bf16.msra.mxu1 %v15622_v15  ;;  %10462 = vmatprep.subr.bf16.mxu0 %v15627_v51  ;;  %v15691_v15 = vld [vmem:[#allocation13 + $0x620] ss:$16 sps:$4 sm:$0xff]   ;;  %v15694_v51 = vld [vmem:[#allocation13 + $0x628] ss:$16 sps:$4 sm:$0xff]  }
 0x6ab   : > { %10503 = vmatprep.subr.bf16.mxu1 %v15630_v10  ;;  %v15699_v10 = vld [vmem:[#allocation13 + $0x644] ss:$16 sps:$4 sm:$0xff]  }
 0x6ad   : > { %10463 = vmatpush1.bf16.msra.mxu0 %v15625_v25  ;;  %v15702_v25 = vld [vmem:[#allocation13 + $0x64c] ss:$16 sps:$4 sm:$0xff]  }
 0x6ae   : > { %10504 = vmatpush1.bf16.msra.mxu1 %v15628_v7  ;;  %10464 = vmatprep.subr.bf16.mxu0 %v15633_v12  ;;  %v15697_v7 = vld [vmem:[#allocation13 + $0x640] ss:$16 sps:$4 sm:$0xff]   ;;  %v15700_v12 = vld [vmem:[#allocation13 + $0x648] ss:$16 sps:$4 sm:$0xff]  }
 0x6af   : > { %10505 = vmatprep.subr.bf16.mxu1 %v15636_v27  ;;  %v15705_v27 = vld [vmem:[#allocation13 + $0x664] ss:$16 sps:$4 sm:$0xff]  }
 0x6b1   : > { %10465 = vmatpush1.bf16.msra.mxu0 %v15631_v17  ;;  %v15708_v17 = vld [vmem:[#allocation13 + $0x66c] ss:$16 sps:$4 sm:$0xff]  }
 0x6b2   : > { %10506 = vmatpush1.bf16.msra.mxu1 %v15634_v53  ;;  %10466 = vmatprep.subr.bf16.mxu0 %v15639_v3  ;;  %v15703_v53 = vld [vmem:[#allocation13 + $0x660] ss:$16 sps:$4 sm:$0xff]   ;;  %v15706_v3 = vld [vmem:[#allocation13 + $0x668] ss:$16 sps:$4 sm:$0xff]  }
 0x6b3   : > { %10507 = vmatprep.subr.bf16.mxu1 %v15642_v57  ;;  %v15711_v57 = vld [vmem:[#allocation13 + $0x684] ss:$16 sps:$4 sm:$0xff]  }
 0x6b5   : > { %10467 = vmatpush1.bf16.msra.mxu0 %v15637_v1  ;;  %v15714_v1 = vld [vmem:[#allocation13 + $0x68c] ss:$16 sps:$4 sm:$0xff]  }
 0x6b6   : > { %10508 = vmatpush1.bf16.msra.mxu1 %v15640_v28  ;;  %10468 = vmatprep.subr.bf16.mxu0 %v15645_v61  ;;  %v15709_v28 = vld [vmem:[#allocation13 + $0x680] ss:$16 sps:$4 sm:$0xff]   ;;  %v15712_v61 = vld [vmem:[#allocation13 + $0x688] ss:$16 sps:$4 sm:$0xff]  }
 0x6b7   : > { %10509 = vmatprep.subr.bf16.mxu1 %v15648_v48  ;;  %v15717_v48 = vld [vmem:[#allocation13 + $0x6a4] ss:$16 sps:$4 sm:$0xff]  }
 0x6b9   : > { %10469 = vmatpush1.bf16.msra.mxu0 %v15643_v23  ;;  %v15720_v23 = vld [vmem:[#allocation13 + $0x6ac] ss:$16 sps:$4 sm:$0xff]  }
 0x6ba   : > { %10510 = vmatpush1.bf16.msra.mxu1 %v15646_v38  ;;  %10470 = vmatprep.subr.bf16.mxu0 %v15651_v9  ;;  %v15715_v38 = vld [vmem:[#allocation13 + $0x6a0] ss:$16 sps:$4 sm:$0xff]   ;;  %v15718_v9 = vld [vmem:[#allocation13 + $0x6a8] ss:$16 sps:$4 sm:$0xff]  }
 0x6bb   : > { %10511 = vmatprep.subr.bf16.mxu1 %v15654_v49  ;;  %v15723_v49 = vld [vmem:[#allocation13 + $0x6c4] ss:$16 sps:$4 sm:$0xff]  }
 0x6bd   : > { %10471 = vmatpush1.bf16.msra.mxu0 %v15649_v30  ;;  %v15726_v30 = vld [vmem:[#allocation13 + $0x6cc] ss:$16 sps:$4 sm:$0xff]  }
 0x6be   : > { %10512 = vmatpush1.bf16.msra.mxu1 %v15652_v21  ;;  %10472 = vmatprep.subr.bf16.mxu0 %v15657_v58  ;;  %v15721_v21 = vld [vmem:[#allocation13 + $0x6c0] ss:$16 sps:$4 sm:$0xff]   ;;  %v15724_v58 = vld [vmem:[#allocation13 + $0x6c8] ss:$16 sps:$4 sm:$0xff]  }
 0x6bf   : > { %10513 = vmatprep.subr.bf16.mxu1 %v15660_v34  ;;  %v15729_v34 = vld [vmem:[#allocation13 + $0x6e4] ss:$16 sps:$4 sm:$0xff]  }
 0x6c1   : > { %10473 = vmatpush1.bf16.msra.mxu0 %v15655_v20  ;;  %v15732_v20 = vld [vmem:[#allocation13 + $0x6ec] ss:$16 sps:$4 sm:$0xff]  }
 0x6c2   : > { %10514 = vmatpush1.bf16.msra.mxu1 %v15658_v4  ;;  %10474 = vmatprep.subr.bf16.mxu0 %v15663_v11  ;;  %v15727_v4 = vld [vmem:[#allocation13 + $0x6e0] ss:$16 sps:$4 sm:$0xff]   ;;  %v15730_v11 = vld [vmem:[#allocation13 + $0x6e8] ss:$16 sps:$4 sm:$0xff]  }
 0x6c3   : > { %10515 = vmatprep.subr.bf16.mxu1 %v15666_v45  ;;  %v15735_v45 = vld [vmem:[#allocation13 + $0x704] ss:$16 sps:$4 sm:$0xff]  }
 0x6c5   : > { %10475 = vmatpush1.bf16.msra.mxu0 %v15661_v52  ;;  %v15738_v52 = vld [vmem:[#allocation13 + $0x70c] ss:$16 sps:$4 sm:$0xff]  }
 0x6c6   : > { %10516 = vmatpush1.bf16.msra.mxu1 %v15664_v2  ;;  %10476 = vmatprep.subr.bf16.mxu0 %v15669_v46  ;;  %v15733_v2 = vld [vmem:[#allocation13 + $0x700] ss:$16 sps:$4 sm:$0xff]   ;;  %v15736_v46 = vld [vmem:[#allocation13 + $0x708] ss:$16 sps:$4 sm:$0xff]  }
 0x6c7   : > { %10517 = vmatprep.subr.bf16.mxu1 %v15672_v0  ;;  %v15741_v0 = vld [vmem:[#allocation13 + $0x724] ss:$16 sps:$4 sm:$0xff]  }
 0x6c9   : > { %10477 = vmatpush1.bf16.msra.mxu0 %v15667_v59  ;;  %v15744_v59 = vld [vmem:[#allocation13 + $0x72c] ss:$16 sps:$4 sm:$0xff]  }
 0x6ca   : > { %10518 = vmatpush1.bf16.msra.mxu1 %v15670_v6  ;;  %10478 = vmatprep.subr.bf16.mxu0 %v15675_v63  ;;  %v15742_v6 = vld [vmem:[#allocation13 + $0x728] ss:$16 sps:$4 sm:$0xff]   ;;  %v15747_v63 = vld [vmem:[#allocation13 + $0x744] ss:$16 sps:$4 sm:$0xff]  }
 0x6cb   : > { %10519 = vmatprep.subr.bf16.mxu1 %v15678_v54  ;;  %v15750_v54 = vld [vmem:[#allocation13 + $0x74c] ss:$16 sps:$4 sm:$0xff]  }
 0x6cd   : > { %10479 = vmatpush1.bf16.msra.mxu0 %v15673_v56  ;;  %v15753_v56 = vld [vmem:[#allocation13 + $0x764] ss:$16 sps:$4 sm:$0xff]  }
 0x6ce   : > { %10520 = vmatpush1.bf16.msra.mxu1 %v15676_v60  ;;  %10480 = vmatprep.subr.bf16.mxu0 %v15681_v5  ;;  %v15756_v60 = vld [vmem:[#allocation13 + $0x76c] ss:$16 sps:$4 sm:$0xff]   ;;  %v15751_v5 = vld [vmem:[#allocation13 + $0x760] ss:$16 sps:$4 sm:$0xff]  }
 0x6cf   : > { %10521 = vmatprep.subr.bf16.mxu1 %v15684_v24  ;;  %v15754_v24 = vld [vmem:[#allocation13 + $0x768] ss:$16 sps:$4 sm:$0xff]  }
 0x6d1   : > { %10481 = vmatpush1.bf16.msra.mxu0 %v15679_v62  ;;  %v15760_v62 = vld [vmem:[#allocation13 + $0x788] ss:$16 sps:$4 sm:$0xff]  }
 0x6d2   : > { %10522 = vmatpush1.bf16.msra.mxu1 %v15682_v40  ;;  %10945 = vmatprep.subr.bf16.mxu0 %v15687_v55  ;;  %v15768_v40 = vld [vmem:[#allocation13 + $0x7ac] ss:$16 sps:$4 sm:$0xff]   ;;  %v15763_v55 = vld [vmem:[#allocation13 + $0x7a0] ss:$16 sps:$4 sm:$0xff]  }
 0x6d3   : > { %10986 = vmatprep.subr.bf16.mxu1 %v15690_v18  ;;  %v10538_v18 = vld [vmem:[#allocation4 + $0x10] sm:$0x7] }
 0x6d4   : > { %10483 = vmatmul.mubr.bf16.vlgmr.msra.gmra.mrb[28].mxu0 %v10126_v16 }
 0x6d5   : > { %10524 = vmatmul.mubr.bf16.vlgmr.msra.gmra.mrb[28].mxu1 %v10126_v16  ;;  %10946 = vmatpush1.bf16.msra.mxu0 %v15685_v22  ;;  %v10540_v22 = vpack.c.bf16 %v10538_v18, %v10536_v26  ;;  %v15774_v16 = vld [vmem:[#allocation13 + $0x7cc] ss:$16 sps:$4 sm:$0xff]   ;;  %v15826_v18 = vld [vmem:[#allocation13 + $0x8e8] ss:$16 sps:$4 sm:$0xff]  }
 0x6d6   : > { %10977 = vmatprep.mubr.bf16.mxu0 %v10622_v14  ;;  %10987 = vmatpush1.bf16.msra.mxu1 %v15688_v43  ;;  %v15769_v43 = vld [vmem:[#allocation13 + $0x7c0] ss:$16 sps:$4 sm:$0xff]   ;;  %v15828_v26 = vld [vmem:[#allocation13 + $0x8ec] ss:$16 sps:$4 sm:$0xff]  }
 0x6d7   : > { %11018 = vmatprep.mubr.bf16.mxu1 %v10622_v14  ;;  %10947 = vmatprep.subr.bf16.mxu0 %v15693_v41  ;;  %v15772_v41 = vld [vmem:[#allocation13 + $0x7c8] ss:$16 sps:$4 sm:$0xff]   ;;  %v15777_v14 = vld [vmem:[#allocation13 + $0x7e4] ss:$16 sps:$4 sm:$0xff]  }
 0x6d8   : > { %10988 = vmatprep.subr.bf16.mxu1 %v15696_v50  ;;  %v10608_v50 = vshrl.u32 %v10540_v22, 16 }
 0x6d9   : > { %10948 = vmatpush1.bf16.msra.mxu0 %v15691_v15  ;;  %v10611_v15 = vshll.u32 %v10540_v22, 16  ;;  %v15829_v22 = vld [vmem:[#allocation13 + $0x900] ss:$16 sps:$4 sm:$0xff]  }
 0x6da   : > { %10989 = vmatpush1.bf16.msra.mxu1 %v15694_v51  ;;  %10949 = vmatprep.subr.bf16.mxu0 %v15699_v10  ;;  %v15780_v51 = vld [vmem:[#allocation13 + $0x7ec] ss:$16 sps:$4 sm:$0xff]   ;;  %v15775_v10 = vld [vmem:[#allocation13 + $0x7e0] ss:$16 sps:$4 sm:$0xff]  }
 0x6db   : > { %10990 = vmatprep.subr.bf16.mxu1 %v15702_v25  ;;  %v11032_v25 = vld [vmem:[#allocation4 + $0x8] sm:$0xf0] }
 0x6dd   : > { %10950 = vmatpush1.bf16.msra.mxu0 %v15697_v7  ;;  %v15778_v7 = vld [vmem:[#allocation13 + $0x7e8] ss:$16 sps:$4 sm:$0xff]  }
 0x6de   : > { %10991 = vmatpush1.bf16.msra.mxu1 %v15700_v12  ;;  %10951 = vmatprep.subr.bf16.mxu0 %v15705_v27  ;;  %v10610_v12 = vrot.slane %v10608_v50, 1  ;;  %v10613_v27 = vrot.slane %v10611_v15, 2  ;;  %v15838_v50 = vld [vmem:[#allocation13 + $0x928] ss:$16 sps:$4 sm:$0xff]   ;;  %v15843_v15 = vld [vmem:[#allocation13 + $0x944] ss:$16 sps:$4 sm:$0xff]  }
 0x6df   : > { %10992 = vmatprep.subr.bf16.mxu1 %v15708_v17  ;;  %v15783_v17 = vld [vmem:[#allocation13 + $0x804] ss:$16 sps:$4 sm:$0xff]  }
 0x6e1   : > { %10952 = vmatpush1.bf16.msra.mxu0 %v15703_v53  ;;  %v15786_v53 = vld [vmem:[#allocation13 + $0x80c] ss:$16 sps:$4 sm:$0xff]  }
 0x6e2   : > { %10993 = vmatpush1.bf16.msra.mxu1 %v15706_v3  ;;  %10953 = vmatprep.subr.bf16.mxu0 %v15711_v57  ;;  %v11034_v3 = vld [vmem:[#allocation4 + $0x18] sm:$0xf] }
 0x6e3   : > { %10994 = vmatprep.subr.bf16.mxu1 %v15714_v1  ;;  %v11036_v57 = vpack.c.bf16 %v11034_v3, %v11032_v25  ;;  %v15781_v1 = vld [vmem:[#allocation13 + $0x800] ss:$16 sps:$4 sm:$0xff]   ;;  %v15844_v25 = vld [vmem:[#allocation13 + $0x948] ss:$16 sps:$4 sm:$0xff]   ;;  %v15858_v3 = vld [vmem:[#allocation13 + $0x98c] ss:$16 sps:$4 sm:$0xff]  }
 0x6e5   : > { %10954 = vmatpush1.bf16.msra.mxu0 %v15709_v28  ;;  %v10614_v28 = vor.u32 %v10613_v27, %v10610_v12  ;;  %v15852_v12 = vld [vmem:[#allocation13 + $0x96c] ss:$16 sps:$4 sm:$0xff]   ;;  %v15847_v27 = vld [vmem:[#allocation13 + $0x960] ss:$16 sps:$4 sm:$0xff]  }
 0x6e6   : > { %10995 = vmatpush1.bf16.msra.mxu1 %v15712_v61  ;;  %10955 = vmatprep.subr.bf16.mxu0 %v15717_v48  ;;  %v15784_v61 = vld [vmem:[#allocation13 + $0x808] ss:$16 sps:$4 sm:$0xff]   ;;  %v15789_v48 = vld [vmem:[#allocation13 + $0x824] ss:$16 sps:$4 sm:$0xff]  }
 0x6e7   : > { %10996 = vmatprep.subr.bf16.mxu1 %v15720_v23  ;;  %v11105_v23 = vrot.slane %v11036_v57, 2  ;;  %v15853_v57 = vld [vmem:[#allocation13 + $0x980] ss:$16 sps:$4 sm:$0xff]  }
 0x6e9   : > { %10956 = vmatpush1.bf16.msra.mxu0 %v15715_v38  ;;  %v15792_v38 = vld [vmem:[#allocation13 + $0x82c] ss:$16 sps:$4 sm:$0xff]  }
 0x6ea   : > { %10997 = vmatpush1.bf16.msra.mxu1 %v15718_v9  ;;  %10957 = vmatprep.subr.bf16.mxu0 %v15723_v49  ;;  %v15787_v9 = vld [vmem:[#allocation13 + $0x820] ss:$16 sps:$4 sm:$0xff]   ;;  %v15790_v49 = vld [vmem:[#allocation13 + $0x828] ss:$16 sps:$4 sm:$0xff]  }
 0x6eb   : > { %10998 = vmatprep.subr.bf16.mxu1 %v15726_v30  ;;  %v15795_v30 = vld [vmem:[#allocation13 + $0x844] ss:$16 sps:$4 sm:$0xff]  }
 0x6ed   : > { %10958 = vmatpush1.bf16.msra.mxu0 %v15721_v21  ;;  %v15798_v21 = vld [vmem:[#allocation13 + $0x84c] ss:$16 sps:$4 sm:$0xff]  }
 0x6ee   : > { %10999 = vmatpush1.bf16.msra.mxu1 %v15724_v58  ;;  %10959 = vmatprep.subr.bf16.mxu0 %v15729_v34  ;;  %v15793_v58 = vld [vmem:[#allocation13 + $0x840] ss:$16 sps:$4 sm:$0xff]   ;;  %v15796_v34 = vld [vmem:[#allocation13 + $0x848] ss:$16 sps:$4 sm:$0xff]  }
 0x6ef   : > { %11000 = vmatprep.subr.bf16.mxu1 %v15732_v20  ;;  %v15801_v20 = vld [vmem:[#allocation13 + $0x864] ss:$16 sps:$4 sm:$0xff]  }
 0x6f1   : > { %10960 = vmatpush1.bf16.msra.mxu0 %v15727_v4  ;;  %v15804_v4 = vld [vmem:[#allocation13 + $0x86c] ss:$16 sps:$4 sm:$0xff]  }
 0x6f2   : > { %11001 = vmatpush1.bf16.msra.mxu1 %v15730_v11  ;;  %10961 = vmatprep.subr.bf16.mxu0 %v15735_v45  ;;  %v15799_v11 = vld [vmem:[#allocation13 + $0x860] ss:$16 sps:$4 sm:$0xff]   ;;  %v15802_v45 = vld [vmem:[#allocation13 + $0x868] ss:$16 sps:$4 sm:$0xff]  }
 0x6f3   : > { %11002 = vmatprep.subr.bf16.mxu1 %v15738_v52  ;;  %v15807_v52 = vld [vmem:[#allocation13 + $0x884] ss:$16 sps:$4 sm:$0xff]  }
 0x6f5   : > { %10962 = vmatpush1.bf16.msra.mxu0 %v15733_v2  ;;  %v15810_v2 = vld [vmem:[#allocation13 + $0x88c] ss:$16 sps:$4 sm:$0xff]  }
 0x6f6   : > { %11003 = vmatpush1.bf16.msra.mxu1 %v15736_v46  ;;  %10963 = vmatprep.subr.bf16.mxu0 %v15741_v0  ;;  %v15805_v46 = vld [vmem:[#allocation13 + $0x880] ss:$16 sps:$4 sm:$0xff]   ;;  %v15808_v0 = vld [vmem:[#allocation13 + $0x888] ss:$16 sps:$4 sm:$0xff]  }
 0x6f7   : > { %11004 = vmatprep.subr.bf16.mxu1 %v15744_v59  ;;  %v15813_v59 = vld [vmem:[#allocation13 + $0x8a4] ss:$16 sps:$4 sm:$0xff]  }
 0x6f9   : > { %10964 = vmatpush1.bf16.msra.mxu0 %v15739_v44  ;;  %v15816_v44 = vld [vmem:[#allocation13 + $0x8ac] ss:$16 sps:$4 sm:$0xff]  }
 0x6fa   : > { %11005 = vmatpush1.bf16.msra.mxu1 %v15742_v6  ;;  %10965 = vmatprep.subr.bf16.mxu0 %v15747_v63  ;;  %v15811_v6 = vld [vmem:[#allocation13 + $0x8a0] ss:$16 sps:$4 sm:$0xff]   ;;  %v15814_v63 = vld [vmem:[#allocation13 + $0x8a8] ss:$16 sps:$4 sm:$0xff]  }
 0x6fb   : > { %11006 = vmatprep.subr.bf16.mxu1 %v15750_v54  ;;  %v15819_v54 = vld [vmem:[#allocation13 + $0x8c4] ss:$16 sps:$4 sm:$0xff]  }
 0x6fd   : > { %10966 = vmatpush1.bf16.msra.mxu0 %v15745_v47 }
 0x6fe   : > { %11007 = vmatpush1.bf16.msra.mxu1 %v15748_v42  ;;  %10967 = vmatprep.subr.bf16.mxu0 %v15753_v56  ;;  %v15822_v56 = vld [vmem:[#allocation13 + $0x8cc] ss:$16 sps:$4 sm:$0xff]  }
 0x6ff   : > { %11008 = vmatprep.subr.bf16.mxu1 %v15756_v60 }
 0x701   : > { %10968 = vmatpush1.bf16.msra.mxu0 %v15751_v5 }
 0x702   : > { %11009 = vmatpush1.bf16.msra.mxu1 %v15754_v24  ;;  %10969 = vmatprep.subr.bf16.mxu0 %v15759_v8 }
 0x703   : > { %11010 = vmatprep.subr.bf16.mxu1 %v15762_v35  ;;  %v15817_v35 = vld [vmem:[#allocation13 + $0x8c0] ss:$16 sps:$4 sm:$0xff]  }
 0x705   : > { %10970 = vmatpush1.bf16.msra.mxu0 %v15757_v37 }
 0x706   : > { %11011 = vmatpush1.bf16.msra.mxu1 %v15760_v62  ;;  %10971 = vmatprep.subr.bf16.mxu0 %v15765_v19  ;;  %v15820_v19 = vld [vmem:[#allocation13 + $0x8c8] ss:$16 sps:$4 sm:$0xff]  }
 0x707   : > { %11012 = vmatprep.subr.bf16.mxu1 %v15768_v40  ;;  %v15825_v40 = vld [vmem:[#allocation13 + $0x8e4] ss:$16 sps:$4 sm:$0xff]  }
 0x709   : > { %10972 = vmatpush1.bf16.msra.mxu0 %v15763_v55  ;;  %v15823_v55 = vld [vmem:[#allocation13 + $0x8e0] ss:$16 sps:$4 sm:$0xff]  }
 0x70a   : > { %11013 = vmatpush1.bf16.msra.mxu1 %v15766_v39  ;;  %10973 = vmatprep.subr.bf16.mxu0 %v15771_v13  ;;  %v15831_v39 = vld [vmem:[#allocation13 + $0x904] ss:$16 sps:$4 sm:$0xff]   ;;  %v15834_v13 = vld [vmem:[#allocation13 + $0x90c] ss:$16 sps:$4 sm:$0xff]  }
 0x70b   : > { %11014 = vmatprep.subr.bf16.mxu1 %v15774_v16  ;;  %v15832_v16 = vld [vmem:[#allocation13 + $0x908] ss:$16 sps:$4 sm:$0xff]  }
 0x70d   : > { %10974 = vmatpush1.bf16.msra.mxu0 %v15769_v43  ;;  %v15837_v43 = vld [vmem:[#allocation13 + $0x924] ss:$16 sps:$4 sm:$0xff]  }
 0x70e   : > { %11015 = vmatpush1.bf16.msra.mxu1 %v15772_v41  ;;  %10975 = vmatprep.subr.bf16.mxu0 %v15777_v14  ;;  %v15840_v41 = vld [vmem:[#allocation13 + $0x92c] ss:$16 sps:$4 sm:$0xff]   ;;  %v15835_v14 = vld [vmem:[#allocation13 + $0x920] ss:$16 sps:$4 sm:$0xff]  }
 0x70f   : > { %11016 = vmatprep.subr.bf16.mxu1 %v15780_v51  ;;  %v15846_v51 = vld [vmem:[#allocation13 + $0x94c] ss:$16 sps:$4 sm:$0xff]  }
 0x711   : > { %10976 = vmatpush1.bf16.msra.mxu0 %v15775_v10  ;;  %v15841_v10 = vld [vmem:[#allocation13 + $0x940] ss:$16 sps:$4 sm:$0xff]  }
 0x712   : > { %11017 = vmatpush1.bf16.msra.mxu1 %v15778_v7  ;;  %11428 = vmatprep.subr.bf16.mxu0 %v15783_v17  ;;  %v15849_v7 = vld [vmem:[#allocation13 + $0x964] ss:$16 sps:$4 sm:$0xff]   ;;  %v15850_v17 = vld [vmem:[#allocation13 + $0x968] ss:$16 sps:$4 sm:$0xff]  }
 0x713   : > { %11469 = vmatprep.subr.bf16.mxu1 %v15786_v53  ;;  %v15855_v53 = vld [vmem:[#allocation13 + $0x984] ss:$16 sps:$4 sm:$0xff]  }
 0x714   : > { %10978 = vmatmul.mubr.bf16.vlgmr.msra.gmra.mrb[32].mxu0 %v10614_v28 }
 0x715   : > { %11019 = vmatmul.mubr.bf16.vlgmr.msra.gmra.mrb[32].mxu1 %v10614_v28  ;;  %11429 = vmatpush1.bf16.msra.mxu0 %v15781_v1  ;;  %v15856_v1 = vld [vmem:[#allocation13 + $0x988] ss:$16 sps:$4 sm:$0xff]   ;;  %v15861_v28 = vld [vmem:[#allocation13 + $0x9a4] ss:$16 sps:$4 sm:$0xff]  }
 0x716   : > { %11460 = vmatprep.mubr.bf16.mxu0 %v11105_v23  ;;  %11470 = vmatpush1.bf16.msra.mxu1 %v15784_v61  ;;  %v15864_v61 = vld [vmem:[#allocation13 + $0x9ac] ss:$16 sps:$4 sm:$0xff]  }
 0x717   : > { %11501 = vmatprep.mubr.bf16.mxu1 %v11105_v23  ;;  %11430 = vmatprep.subr.bf16.mxu0 %v15789_v48  ;;  %v15859_v48 = vld [vmem:[#allocation13 + $0x9a0] ss:$16 sps:$4 sm:$0xff]   ;;  %v15862_v23 = vld [vmem:[#allocation13 + $0x9a8] ss:$16 sps:$4 sm:$0xff]  }
 0x718   : > { %11471 = vmatprep.subr.bf16.mxu1 %v15792_v38  ;;  %v15867_v38 = vld [vmem:[#allocation13 + $0x9c4] ss:$16 sps:$4 sm:$0xff]  }
 0x719   : > { %11431 = vmatpush1.bf16.msra.mxu0 %v15787_v9  ;;  %v15870_v9 = vld [vmem:[#allocation13 + $0x9cc] ss:$16 sps:$4 sm:$0xff]  }
 0x71a   : > { %11472 = vmatpush1.bf16.msra.mxu1 %v15790_v49  ;;  %11432 = vmatprep.subr.bf16.mxu0 %v15795_v30  ;;  %v15865_v49 = vld [vmem:[#allocation13 + $0x9c0] ss:$16 sps:$4 sm:$0xff]   ;;  %v15868_v30 = vld [vmem:[#allocation13 + $0x9c8] ss:$16 sps:$4 sm:$0xff]  }
 0x71b   : > { %11473 = vmatprep.subr.bf16.mxu1 %v15798_v21  ;;  %v15873_v21 = vld [vmem:[#allocation13 + $0x9e4] ss:$16 sps:$4 sm:$0xff]  }
 0x71d   : > { %11433 = vmatpush1.bf16.msra.mxu0 %v15793_v58  ;;  %v15876_v58 = vld [vmem:[#allocation13 + $0x9ec] ss:$16 sps:$4 sm:$0xff]  }
 0x71e   : > { %11474 = vmatpush1.bf16.msra.mxu1 %v15796_v34  ;;  %11434 = vmatprep.subr.bf16.mxu0 %v15801_v20  ;;  %v11031_v34 = vld [vmem:[#allocation4] sm:$0xf0]  ;;  %v15871_v20 = vld [vmem:[#allocation13 + $0x9e0] ss:$16 sps:$4 sm:$0xff]  }
 0x71f   : > { %11475 = vmatprep.subr.bf16.mxu1 %v15804_v4  ;;  %v11033_v4 = vld [vmem:[#allocation4 + $0x10] sm:$0xf] }
 0x721   : > { %11435 = vmatpush1.bf16.msra.mxu0 %v15799_v11  ;;  %v15874_v11 = vld [vmem:[#allocation13 + $0x9e8] ss:$16 sps:$4 sm:$0xff]  }
 0x722   : > { %11476 = vmatpush1.bf16.msra.mxu1 %v15802_v45  ;;  %11436 = vmatprep.subr.bf16.mxu0 %v15807_v52  ;;  %v11035_v45 = vpack.c.bf16 %v11033_v4, %v11031_v34  ;;  %v15906_v34 = vld [vmem:[%s17436_s7 + $0x38] sm:$0xff]   ;;  %v15909_v4 = vld [vmem:[%s17436_s7 + $0x1c0] sm:$0xff]  }
 0x723   : > { %11477 = vmatprep.subr.bf16.mxu1 %v15810_v2 }
 0x724   : > { %v11104_v52 = vrot.slane %v11035_v45, 2  ;;  %v15911_v45 = vld [vmem:[%s17436_s7 + $0x140] sm:$0xff]  }
 0x725   : > { %11437 = vmatpush1.bf16.msra.mxu0 %v15805_v46 }
 0x726   : > { %11478 = vmatpush1.bf16.msra.mxu1 %v15808_v0  ;;  %11438 = vmatprep.subr.bf16.mxu0 %v15813_v59 }
 0x727   : > { %v17139_v47 = vpop.f32.mrb[20].mxu0  ;;  %v17141_v42 = vpop.f32.mrb[20].mxu1  ;;  %11479 = vmatprep.subr.bf16.mxu1 %v15816_v44 }
 0x728   : > { %v17143_v60 = vpop.f32.mrb[21].mxu0  ;;  %v17145_v5 = vpop.f32.mrb[21].mxu1 }
 0x729   : > { %11439 = vmatpush1.bf16.msra.mxu0 %v15811_v6  ;;  %v9607_v24 = vpop.f32.mrb[22].mxu0  ;;  %v9648_v8 = vpop.f32.mrb[22].mxu1 }
 0x72a   : > { %11480 = vmatpush1.bf16.msra.mxu1 %v15814_v63  ;;  %v9608_v37 = vpop.f32.mrb[23].mxu0  ;;  %v9649_v62 = vpop.f32.mrb[23].mxu1  ;;  %11440 = vmatprep.subr.bf16.mxu0 %v15819_v54 }
 0x72b   : > { %11481 = vmatprep.subr.bf16.mxu1 %v15822_v56  ;;  %v15877_v37 = vld [vmem:[%s17436_s7 + $0x40] sm:$0xff]   ;;  %v15883_v62 = vld [vmem:[%s17436_s7 + $0xc8] sm:$0xff]  }
 0x72d   : > { %11441 = vmatpush1.bf16.msra.mxu0 %v15817_v35 }
 0x72e   : > { %11482 = vmatpush1.bf16.msra.mxu1 %v15820_v19  ;;  %11442 = vmatprep.subr.bf16.mxu0 %v15825_v40  ;;  %v15882_v19 = vld [vmem:[%s17436_s7 + $0x8] sm:$0xff]  }
 0x72f   : > { %11483 = vmatprep.subr.bf16.mxu1 %v15828_v26  ;;  %v15884_v40 = vld [vmem:[%s17436_s7 + $0x88] sm:$0xff]   ;;  %v15885_v26 = vld [vmem:[%s17436_s7 + $0x50] sm:$0xff]  }
 0x731   : > { %11443 = vmatpush1.bf16.msra.mxu0 %v15823_v55  ;;  %v15886_v55 = vld [vmem:[%s17436_s7 + $0x10] sm:$0xff]  }
 0x732   : > { %11484 = vmatpush1.bf16.msra.mxu1 %v15826_v18  ;;  %11444 = vmatprep.subr.bf16.mxu0 %v15831_v39 }
 0x733   : > { %11485 = vmatprep.subr.bf16.mxu1 %v15834_v13 }
 0x735   : > { %11445 = vmatpush1.bf16.msra.mxu0 %v15829_v22 }
 0x736   : > { %11486 = vmatpush1.bf16.msra.mxu1 %v15832_v16  ;;  %11446 = vmatprep.subr.bf16.mxu0 %v15837_v43 }
 0x737   : > { %11487 = vmatprep.subr.bf16.mxu1 %v15840_v41 }
 0x739   : > { %11447 = vmatpush1.bf16.msra.mxu0 %v15835_v14 }
 0x73a   : > { %11488 = vmatpush1.bf16.msra.mxu1 %v15838_v50  ;;  %11448 = vmatprep.subr.bf16.mxu0 %v15843_v15 }
 0x73b   : > { %11489 = vmatprep.subr.bf16.mxu1 %v15846_v51 }
 0x73d   : > { %11449 = vmatpush1.bf16.msra.mxu0 %v15841_v10 }
 0x73e   : > { %11490 = vmatpush1.bf16.msra.mxu1 %v15844_v25  ;;  %11450 = vmatprep.subr.bf16.mxu0 %v15849_v7  ;;  %v15887_v25 = vld [vmem:[%s17436_s7 + $0xd0] sm:$0xff]  }
 0x73f   : > { %11491 = vmatprep.subr.bf16.mxu1 %v15852_v12  ;;  %v15888_v7 = vld [vmem:[%s17436_s7 + $0x90] sm:$0xff]   ;;  %v15889_v12 = vld [vmem:[%s17436_s7 + $0x58] sm:$0xff]  }
 0x741   : > { %11451 = vmatpush1.bf16.msra.mxu0 %v15847_v27  ;;  %v15890_v27 = vld [vmem:[%s17436_s7 + $0x18] sm:$0xff]  }
 0x742   : > { %11492 = vmatpush1.bf16.msra.mxu1 %v15850_v17  ;;  %11452 = vmatprep.subr.bf16.mxu0 %v15855_v53  ;;  %v15891_v17 = vld [vmem:[%s17436_s7 + $0xd8] sm:$0xff]   ;;  %v15893_v53 = vld [vmem:[%s17436_s7 + $0x60] sm:$0xff]  }
 0x743   : > { %11493 = vmatprep.subr.bf16.mxu1 %v15858_v3  ;;  %v15892_v3 = vld [vmem:[%s17436_s7 + $0x98] sm:$0xff]  }
 0x745   : > { %11453 = vmatpush1.bf16.msra.mxu0 %v15853_v57  ;;  %v15894_v57 = vld [vmem:[%s17436_s7 + $0x20] sm:$0xff]  }
 0x746   : > { %11494 = vmatpush1.bf16.msra.mxu1 %v15856_v1  ;;  %11454 = vmatprep.subr.bf16.mxu0 %v15861_v28  ;;  %v15895_v1 = vld [vmem:[%s17436_s7 + $0xe0] sm:$0xff]   ;;  %v15897_v28 = vld [vmem:[%s17436_s7 + $0x68] sm:$0xff]  }
 0x747   : > { %11495 = vmatprep.subr.bf16.mxu1 %v15864_v61  ;;  %v15896_v61 = vld [vmem:[%s17436_s7 + $0xa0] sm:$0xff]  }
 0x749   : > { %11455 = vmatpush1.bf16.msra.mxu0 %v15859_v48  ;;  %v15898_v48 = vld [vmem:[%s17436_s7 + $0x28] sm:$0xff]  }
 0x74a   : > { %11496 = vmatpush1.bf16.msra.mxu1 %v15862_v23  ;;  %11456 = vmatprep.subr.bf16.mxu0 %v15867_v38  ;;  %v15899_v23 = vld [vmem:[%s17436_s7 + $0xe8] sm:$0xff]   ;;  %v15901_v38 = vld [vmem:[%s17436_s7 + $0x70] sm:$0xff]  }
 0x74b   : > { %11497 = vmatprep.subr.bf16.mxu1 %v15870_v9  ;;  %v15900_v9 = vld [vmem:[%s17436_s7 + $0xa8] sm:$0xff]  }
 0x74d   : > { %11457 = vmatpush1.bf16.msra.mxu0 %v15865_v49  ;;  %v15902_v49 = vld [vmem:[%s17436_s7 + $0x30] sm:$0xff]  }
 0x74e   : > { %11498 = vmatpush1.bf16.msra.mxu1 %v15868_v30  ;;  %11458 = vmatprep.subr.bf16.mxu0 %v15873_v21  ;;  %v15903_v30 = vld [vmem:[%s17436_s7 + $0xf0] sm:$0xff]   ;;  %v15905_v21 = vld [vmem:[%s17436_s7 + $0x78] sm:$0xff]  }
 0x74f   : > { %11499 = vmatprep.subr.bf16.mxu1 %v15876_v58  ;;  %v15904_v58 = vld [vmem:[%s17436_s7 + $0xb0] sm:$0xff]  }
 0x751   : > { %11459 = vmatpush1.bf16.msra.mxu0 %v15871_v20  ;;  %v15907_v20 = vld [vmem:[%s17436_s7 + $0xf8] sm:$0xff]  }
 0x752   : > { %11500 = vmatpush1.bf16.msra.mxu1 %v15874_v11  ;;  %v15908_v11 = vld [vmem:[%s17436_s7 + $0xb8] sm:$0xff]  }
 0x753   : > { %14026 = vmatprep.subr.bf16.mxu1 %v15877_v37 }
 0x754   : > { %11461 = vmatmul.mubr.bf16.vlgmr.msra.gmra.mrb[36].mxu0 %v11104_v52 }
 0x755   : > { %11502 = vmatmul.mubr.bf16.vlgmr.msra.gmra.mrb[36].mxu1 %v11104_v52 }
 0x767   : > { %v10005_v2 = vpop.f32.mrb[24].mxu0  ;;  %v10046_v46 = vpop.f32.mrb[24].mxu1 }
 0x768   : > { %v10006_v0 = vadd.f32 %v10005_v2, %v17139_v47  ;;  %v10047_v59 = vadd.f32 %v10046_v46, %v17141_v42  ;;  %v10007_v44 = vpop.f32.mrb[25].mxu0  ;;  %v10048_v6 = vpop.f32.mrb[25].mxu1  ;;  %v15878_v47 = vld [vmem:[%s17436_s7] sm:$0xff]  }
 0x769   : > { %v10008_v63 = vadd.f32 %v10007_v44, %v17143_v60  ;;  %v10049_v54 = vadd.f32 %v10048_v6, %v17145_v5  ;;  %v10009_v56 = vpop.f32.mrb[26].mxu0  ;;  %v10050_v24 = vpop.f32.mrb[26].mxu1  ;;  %v15879_v42 = vld [vmem:[%s17436_s7 + $0xc0] sm:$0xff]   ;;  %v15881_v5 = vld [vmem:[%s17436_s7 + $0x48] sm:$0xff]   ;;  %14027 = vmatpush3.bf16.msra.mxu1 %v15878_v47 }
 0x76a   : > { %v10010_v8 = vpop.f32.mrb[27].mxu0  ;;  %v10051_v35 = vpop.f32.mrb[27].mxu1  ;;  %v15880_v60 = vld [vmem:[%s17436_s7 + $0x80] sm:$0xff]   ;;  %14004 = vmatprep.subr.bf16.mxu0 %v15879_v42  ;;  %14028 = vmatprep.subr.bf16.mxu1 %v15881_v5 }
 0x76b   : > { %14005 = vmatpush3.bf16.msra.mxu0 %v15880_v60  ;;  %v11514_v35 = vld [vmem:[#allocation14] sm:$0xf] }
 0x76c   : > { %14006 = vmatprep.subr.bf16.mxu0 %v15883_v62  ;;  %v11519_v37 = vrot.slane %v11514_v35, %v16758_v31  ;;  %v11527_v42 = vrot.slane %v11514_v35, %v16761_v32  ;;  %v11523_v60 = vrot.slane %v11514_v35, %v16764_v33 }
 0x76d   : > { %14029 = vmatpush3.bf16.msra.mxu1 %v15882_v19 }
 0x76e   : > { %14030 = vmatprep.subr.bf16.mxu1 %v15885_v26 }
 0x76f   : > { %14007 = vmatpush3.bf16.msra.mxu0 %v15884_v40  ;;  %v11531_v40 = vrot.slane %v11514_v35, %v16767_v36  ;;  %v15920_v35 = vld [vmem:[%s17436_s7 + $0x110] sm:$0xff]  }
 0x770   : > { %14008 = vmatprep.subr.bf16.mxu0 %v15887_v25 }
 0x771   : > { %14031 = vmatpush3.bf16.msra.mxu1 %v15886_v55 }
 0x772   : > { %14032 = vmatprep.subr.bf16.mxu1 %v15889_v12 }
 0x773   : > { %14009 = vmatpush3.bf16.msra.mxu0 %v15888_v7 }
 0x774   : > { %14010 = vmatprep.subr.bf16.mxu0 %v15891_v17 }
 0x775   : > { %14033 = vmatpush3.bf16.msra.mxu1 %v15890_v27 }
 0x776   : > { %14034 = vmatprep.subr.bf16.mxu1 %v15893_v53 }
 0x777   : > { %14011 = vmatpush3.bf16.msra.mxu0 %v15892_v3 }
 0x778   : > { %14012 = vmatprep.subr.bf16.mxu0 %v15895_v1 }
 0x779   : > { %14035 = vmatpush3.bf16.msra.mxu1 %v15894_v57 }
 0x77a   : > { %14036 = vmatprep.subr.bf16.mxu1 %v15897_v28 }
 0x77b   : > { %14013 = vmatpush3.bf16.msra.mxu0 %v15896_v61 }
 0x77c   : > { %14014 = vmatprep.subr.bf16.mxu0 %v15899_v23 }
 0x77d   : > { %14037 = vmatpush3.bf16.msra.mxu1 %v15898_v48 }
 0x77e   : > { %14038 = vmatprep.subr.bf16.mxu1 %v15901_v38 }
 0x77f   : > { %14015 = vmatpush3.bf16.msra.mxu0 %v15900_v9 }
 0x780   : > { %14016 = vmatprep.subr.bf16.mxu0 %v15903_v30 }
 0x781   : > { %14039 = vmatpush3.bf16.msra.mxu1 %v15902_v49 }
 0x782   : > { %14040 = vmatprep.subr.bf16.mxu1 %v15905_v21 }
 0x783   : > { %14017 = vmatpush3.bf16.msra.mxu0 %v15904_v58 }
 0x784   : > { %14018 = vmatprep.subr.bf16.mxu0 %v15907_v20  ;;  %v15910_v20 = vld [vmem:[%s17436_s7 + $0x180] sm:$0xff]  }
 0x785   : > { %14041 = vmatpush3.bf16.msra.mxu1 %v15906_v34 }
 0x786   : > { %14070 = vmatprep.subr.bf16.mxu1 %v15909_v4 }
 0x787   : > { %14019 = vmatpush3.bf16.msra.mxu0 %v15908_v11 }
 0x788   : > { %14048 = vmatprep.subr.bf16.mxu0 %v15911_v45 }
 0x7a7   : > { %v10484_v18 = vpop.f32.mrb[28].mxu0 }
 0x7a8   : > { %v10532_v39 = vadd.f32 %v10484_v18, %v10006_v0  ;;  %v10525_v13 = vpop.f32.mrb[28].mxu1  ;;  %v10486_v22 = vpop.f32.mrb[29].mxu0 }
 0x7a9   : > { %v10534_v16 = vadd.f32 %v10525_v13, %v10047_v59  ;;  %v10533_v43 = vadd.f32 %v10486_v22, %v10008_v63  ;;  %v10527_v41 = vpop.f32.mrb[29].mxu1  ;;  %v10488_v14 = vpop.f32.mrb[30].mxu0 }
 0x7aa   : > { %v10535_v50 = vadd.f32 %v10527_v41, %v10049_v54  ;;  %v10529_v15 = vpop.f32.mrb[30].mxu1  ;;  %v10489_v51 = vpop.f32.mrb[31].mxu0 }
 0x7ab   : > { %v10530_v10 = vpop.f32.mrb[31].mxu1 }
 0x7e7   : > { %v10979_v52 = vpop.f32.mrb[32].mxu0 }
 0x7e8   : > { %v11027_v2 = vadd.f32 %v10979_v52, %v10532_v39  ;;  %v11020_v46 = vpop.f32.mrb[32].mxu1  ;;  %v10981_v0 = vpop.f32.mrb[33].mxu0 }
 0x7e9   : > { %v11029_v59 = vadd.f32 %v11020_v46, %v10534_v16  ;;  %v11028_v44 = vadd.f32 %v10981_v0, %v10533_v43  ;;  %v11022_v6 = vpop.f32.mrb[33].mxu1  ;;  %v10983_v63 = vpop.f32.mrb[34].mxu0  ;;  %v15912_v46 = vld [vmem:[%s17436_s7 + $0x100] sm:$0xff]  }
 0x7ea   : > { %v11030_v54 = vadd.f32 %v11022_v6, %v10535_v50  ;;  %v11024_v56 = vpop.f32.mrb[34].mxu1  ;;  %v10984_v24 = vpop.f32.mrb[35].mxu0  ;;  %v15914_v6 = vld [vmem:[%s17436_s7 + $0x188] sm:$0xff]   ;;  %v15917_v63 = vld [vmem:[%s17436_s7 + $0x1d0] sm:$0xff]  }
 0x7eb   : > { %v11025_v8 = vpop.f32.mrb[35].mxu1  ;;  %v15919_v56 = vld [vmem:[%s17436_s7 + $0x150] sm:$0xff]  }
 0x7ec   : > { %v15918_v24 = vld [vmem:[%s17436_s7 + $0x190] sm:$0xff]   ;;  %v15921_v8 = vld [vmem:[%s17436_s7 + $0x1d8] sm:$0xff]  }
 0x827   : > { %v11462_v47 = vpop.f32.mrb[36].mxu0 }
 0x828   : > { %v11510_v5 = vadd.f32 %v11462_v47, %v11027_v2  ;;  %v11503_v62 = vpop.f32.mrb[36].mxu1  ;;  %v11464_v19 = vpop.f32.mrb[37].mxu0  ;;  %v15922_v47 = vld [vmem:[%s17436_s7 + $0x198] sm:$0xff]  }
 0x829   : > { %v11512_v26 = vadd.f32 %v11503_v62, %v11029_v59  ;;  %v11511_v55 = vadd.f32 %v11464_v19, %v11028_v44  ;;  %v11505_v18 = vpop.f32.mrb[37].mxu1  ;;  %v11466_v39 = vpop.f32.mrb[38].mxu0  ;;  %v15913_v59 = vld [vmem:[%s17436_s7 + $0x1c8] sm:$0xff]   ;;  %v15926_v62 = vld [vmem:[%s17436_s7 + $0x1a0] sm:$0xff]  }
 0x82a   : > { %v11536_v13 = vadd.f32 %v11519_v37, %v11510_v5  ;;  %v11513_v22 = vadd.f32 %v11505_v18, %v11030_v54  ;;  %v11507_v16 = vpop.f32.mrb[38].mxu1  ;;  %v11467_v43 = vpop.f32.mrb[39].mxu0  ;;  %v15915_v44 = vld [vmem:[%s17436_s7 + $0x148] sm:$0xff]   ;;  %v15923_v37 = vld [vmem:[%s17436_s7 + $0x158] sm:$0xff]   ;;  %v15927_v5 = vld [vmem:[%s17436_s7 + $0x160] sm:$0xff]  }
 0x82b   : > { %v11538_v41 = vadd.f32 %v11527_v42, %v11512_v26  ;;  %v11537_v14 = vadd.f32 %v11523_v60, %v11511_v55  ;;  %v11508_v50 = vpop.f32.mrb[39].mxu1  ;;  %v15916_v54 = vld [vmem:[%s17436_s7 + $0x108] sm:$0xff]   ;;  %v15925_v42 = vld [vmem:[%s17436_s7 + $0x1e0] sm:$0xff]   ;;  %v15924_v60 = vld [vmem:[%s17436_s7 + $0x118] sm:$0xff]  }
 0x82c   : > { %v11540_v15 = vmax.f32 %v11536_v13, 0.0  ;;  %v11539_v51 = vadd.f32 %v11531_v40, %v11513_v22  ;;  %v15929_v19 = vld [vmem:[%s17436_s7 + $0x1e8] sm:$0xff]   ;;  %v15928_v40 = vld [vmem:[%s17436_s7 + $0x120] sm:$0xff]   ;;  %v15933_v18 = vld [vmem:[%s17436_s7 + $0x1f0] sm:$0xff]  }
 0x82d   : > { %v11542_v10 = vmax.f32 %v11538_v41, 0.0  ;;  %v11541_v33 = vmax.f32 %v11537_v14, 0.0  ;;  %v15931_v26 = vld [vmem:[%s17436_s7 + $0x168] sm:$0xff]   ;;  %v15935_v13 = vld [vmem:[%s17436_s7 + $0x170] sm:$0xff]   ;;  %v15937_v16 = vld [vmem:[%s17436_s7 + $0x1f8] sm:$0xff]  }
 0x82e   : > { %v11543_v25 = vmax.f32 %v11539_v51, 0.0  ;;  %v15930_v55 = vld [vmem:[%s17436_s7 + $0x1a8] sm:$0xff]   ;;  %v15934_v22 = vld [vmem:[%s17436_s7 + $0x1b0] sm:$0xff]   ;;  %v15939_v41 = vld [vmem:[%s17436_s7 + $0x178] sm:$0xff]  }
 0x82f   : > { %v11544_v7 = vmax.f32 %v11540_v15, %v11542_v10  ;;  %v15932_v39 = vld [vmem:[%s17436_s7 + $0x128] sm:$0xff]   ;;  %v15936_v43 = vld [vmem:[%s17436_s7 + $0x130] sm:$0xff]   ;;  %v15938_v14 = vld [vmem:[%s17436_s7 + $0x1b8] sm:$0xff]  }
 0x830   : > { %v11545_v12 = vmax.f32 %v11541_v33, %v11543_v25  ;;  %v15940_v15 = vld [vmem:[%s17436_s7 + $0x138] sm:$0xff]   ;;  %v17481_v25 = vmov 0.0  }
 0x832   : > { %v11548_v27 = vcombine.low %v11544_v7, %v11545_v12  ;;  %v11549_v36 = vcombine.high %v11544_v7, %v11545_v12  ;;  %v15941_v7 = vld [vmem:[%s17438_s9] sm:$0xff]   ;;  %v15942_v12 = vld [vmem:[%s17438_s9 + $0x8] sm:$0xff]  }
 0x834   : > { %v11556_v17 = vrot.slane %v11548_v27, %v16820_v29  ;;  %v11563_v53 = vrot.slane %v11549_v36, %v16820_v29  ;;  %v15944_v27 = vld [vmem:[%s17438_s9 + $0x18] sm:$0xff]  }
 0x836   : > { %v13831_v3 = vrot.slane %v11556_v17, 9  ;;  %v11564_v57 = vcombine.high %v11556_v17, %v11556_v17  ;;  %v11565_v1 = vcombine.high %v11563_v53, %v11563_v53  ;;  %v13833_v28 = vrot.slane %v11563_v53, 9 }
 0x838   : > { %v11582_v61 = vmax.f32 %v11556_v17, %v13831_v3  ;;  %v13832_v48 = vrot.slane %v11564_v57, 9  ;;  %v13834_v23 = vrot.slane %v11565_v1, 9  ;;  %v17259_v38 = vmax.f32 %v11563_v53, %v13833_v28 }
 0x83a   : > { %v11597_v9 = vrot.slane %v11582_v61, %v16761_v32  ;;  %v11593_v49 = vrot.slane %v11582_v61, %v16758_v31  ;;  %v11583_v30 = vmax.f32 %v11564_v57, %v13832_v48  ;;  %v17263_v21 = vmax.f32 %v11565_v1, %v13834_v23 }
 0x83b   : > { %v11613_v58 = vrot.slane %v17259_v38, %v16761_v32  ;;  %v11609_v51 = vrot.slane %v17259_v38, %v16758_v31 }
 0x83c   : > { %v11631_v29 = vpack.c.bf16 %v11597_v9, %v11597_v9  ;;  %v11630_v34 = vpack.c.bf16 %v11593_v49, %v11593_v49  ;;  %v11605_v4 = vrot.slane %v11583_v30, %v16761_v32  ;;  %v11621_v11 = vrot.slane %v17263_v21, %v16761_v32 }
 0x83d   : > { %v11601_v45 = vrot.slane %v11583_v30, %v16758_v31  ;;  %v11635_v32 = vpack.c.bf16 %v11613_v58, %v11613_v58  ;;  %v11617_v50 = vrot.slane %v17263_v21, %v16758_v31  ;;  %v11634_v33 = vpack.c.bf16 %v11609_v51, %v11609_v51  ;;  %v15943_v31 = vld [vmem:[%s17438_s9 + $0x10] sm:$0xff]  }
 0x83e   : > { %11967 = vmatprep.mubr.bf16.mxu1 %v11631_v29  ;;  %v11633_v52 = vpack.c.bf16 %v11605_v4, %v11605_v4  ;;  %v11637_v2 = vpack.c.bf16 %v11621_v11, %v11621_v11 }
 0x83f   : > { %11968 = vmatmul.mubr.bf16.vlgmr.msra.gmra.mrb[40].mxu1 %v11630_v34  ;;  %v11632_v0 = vpack.c.bf16 %v11601_v45, %v11601_v45  ;;  %v11636_v10 = vpack.c.bf16 %v11617_v50, %v11617_v50 }
 0x840   : > { %14071 = vmatpush3.bf16.msra.mxu1 %v15910_v20  ;;  %11831 = vmatprep.mubr.bf16.mxu0 %v11633_v52  ;;  %v12315_v52 = vld [vmem:[#allocation16] sm:$0x1] }
 0x841   : > { %12306 = vmatprep.mubr.bf16.mxu1 %v11637_v2  ;;  %11832 = vmatmul.mubr.bf16.vlgmr.msra.gmra.mrb[40].mxu0 %v11632_v0 }
 0x842   : > { %14049 = vmatpush3.bf16.msra.mxu0 %v15912_v46  ;;  %12136 = vmatprep.mubr.bf16.mxu0 %v11635_v32 }
 0x843   : > { %14072 = vmatprep.subr.bf16.mxu1 %v15913_v59  ;;  %14050 = vmatprep.subr.bf16.mxu0 %v15915_v44  ;;  %v12327_v44 = vld [vmem:[#allocation17] sm:$0x1] }
 0x844   : > { %14073 = vmatpush3.bf16.msra.mxu1 %v15914_v6 }
 0x845   : > { %14074 = vmatprep.subr.bf16.mxu1 %v15917_v63 }
 0x846   : > { %14051 = vmatpush3.bf16.msra.mxu0 %v15916_v54 }
 0x847   : > { %14052 = vmatprep.subr.bf16.mxu0 %v15919_v56 }
 0x848   : > { %14075 = vmatpush3.bf16.msra.mxu1 %v15918_v24 }
 0x849   : > { %14076 = vmatprep.subr.bf16.mxu1 %v15921_v8 }
 0x84a   : > { %14053 = vmatpush3.bf16.msra.mxu0 %v15920_v35 }
 0x84b   : > { %14054 = vmatprep.subr.bf16.mxu0 %v15923_v37 }
 0x84c   : > { %14077 = vmatpush3.bf16.msra.mxu1 %v15922_v47 }
 0x84d   : > { %14078 = vmatprep.subr.bf16.mxu1 %v15925_v42 }
 0x84e   : > { %14055 = vmatpush3.bf16.msra.mxu0 %v15924_v60 }
 0x84f   : > { %14056 = vmatprep.subr.bf16.mxu0 %v15927_v5 }
 0x850   : > { %14079 = vmatpush3.bf16.msra.mxu1 %v15926_v62 }
 0x851   : > { %14080 = vmatprep.subr.bf16.mxu1 %v15929_v19 }
 0x852   : > { %14057 = vmatpush3.bf16.msra.mxu0 %v15928_v40 }
 0x853   : > { %14058 = vmatprep.subr.bf16.mxu0 %v15931_v26 }
 0x854   : > { %14081 = vmatpush3.bf16.msra.mxu1 %v15930_v55 }
 0x855   : > { %14082 = vmatprep.subr.bf16.mxu1 %v15933_v18 }
 0x856   : > { %14059 = vmatpush3.bf16.msra.mxu0 %v15932_v39 }
 0x857   : > { %14060 = vmatprep.subr.bf16.mxu0 %v15935_v13 }
 0x858   : > { %14083 = vmatpush3.bf16.msra.mxu1 %v15934_v22 }
 0x859   : > { %14084 = vmatprep.subr.bf16.mxu1 %v15937_v16 }
 0x85a   : > { %14061 = vmatpush3.bf16.msra.mxu0 %v15936_v43 }
 0x85b   : > { %14062 = vmatprep.subr.bf16.mxu0 %v15939_v41 }
 0x85c   : > { %14085 = vmatpush3.bf16.msra.mxu1 %v15938_v14 }
 0x85e   : > { %14063 = vmatpush3.bf16.msra.mxu0 %v15940_v15 }
 0x85f   : > { %12307 = vmatmul.mubr.bf16.vlgmr.msra.gmra.mrb[44].mxu1 %v11636_v10  ;;  %14097 = vmatprep.subr.bf16.mxu0 %v17481_v25 }
 0x861   : > { %12137 = vmatmul.mubr.bf16.vlgmr.msra.gmra.mrb[44].mxu0 %v11634_v33 }
 0x862   : > { %14098 = vmatpush3.bf16.msra.mxu0 %v15941_v7  ;;  %14105 = vmatprep.mubr.msk.bf16.mxu0 %vm16273_vm13, %v17481_v25 }
 0x863   : > { %14099 = vmatprep.subr.bf16.mxu0 %v17481_v25 }
 0x866   : > { %14100 = vmatpush3.bf16.msra.mxu0 %v15942_v12 }
 0x867   : > { %14101 = vmatprep.subr.bf16.mxu0 %v17481_v25 }
 0x86a   : > { %14102 = vmatpush3.bf16.msra.mxu0 %v15943_v31 }
 0x86b   : > { %14103 = vmatprep.subr.bf16.mxu0 %v17481_v25 }
 0x86e   : > { %14104 = vmatpush3.bf16.msra.mxu0 %v15944_v27 }
 0x912   : > { %v14042_v36 = vpop.f32.mrb[40].mxu1 }
 0x913   : > { %v14043_v17 = vpop.f32.mrb[41].mxu1 }
 0x914   : > { %v14044_v53 = vadd.f32 %v14043_v17, %v14042_v36  ;;  %v14020_v3 = vpop.f32.mrb[40].mxu0  ;;  %v14045_v57 = vpop.f32.mrb[42].mxu1 }
 0x915   : > { %v14021_v1 = vpop.f32.mrb[41].mxu0  ;;  %v14046_v28 = vpop.f32.mrb[43].mxu1 }
 0x916   : > { %v14022_v61 = vadd.f32 %v14021_v1, %v14020_v3  ;;  %v14023_v48 = vpop.f32.mrb[42].mxu0 }
 0x917   : > { %v14024_v23 = vpop.f32.mrb[43].mxu0 }
 0x918   : > { %v11970_v38 = vadd.f32 %v14044_v53, %v14022_v61 }
 0x932   : > { %v14086_v9 = vpop.f32.mrb[44].mxu1 }
 0x933   : > { %v14087_v49 = vpop.f32.mrb[45].mxu1 }
 0x934   : > { %v14088_v30 = vadd.f32 %v14087_v49, %v14086_v9  ;;  %v14064_v21 = vpop.f32.mrb[44].mxu0  ;;  %v14089_v58 = vpop.f32.mrb[46].mxu1 }
 0x935   : > { %v14065_v29 = vpop.f32.mrb[45].mxu0  ;;  %v14090_v34 = vpop.f32.mrb[47].mxu1 }
 0x936   : > { %v14066_v20 = vadd.f32 %v14065_v29, %v14064_v21  ;;  %v14067_v4 = vpop.f32.mrb[46].mxu0 }
 0x937   : > { %v14068_v11 = vpop.f32.mrb[47].mxu0 }
 0x938   : > { %v12144_v45 = vadd.f32 %v14066_v20, %v11970_v38 }
 0x93a   : > { %v12314_v2 = vadd.f32 %v14088_v30, %v12144_v45 }
 0x93c   : > { %v12316_v46 = vadd.f32 %v12315_v52, %v12314_v2 }
 0x93e   : > { %v12317_v0 = vmax.f32 %v12316_v46, 0.0 }
 0x940   : > { %v12318_v59 = vpack.c.bf16 %v12317_v0, %v12317_v0 }
 0x942   : > { %14106 = vmatmul.mubr.msk.bf16.vlgmr.msra.gmra.mrb[48].mxu0 %vm12352_vm14, %v12318_v59 }
 0xa15   : > { %v12390_v32 = vpop.f32.mrb[48].mxu0 }
 0xa16   : > { %v12391_v6 = vadd.f32 %v12390_v32, %v12327_v44  ;;  %v14107_v63 = vpop.f32.mrb[49].mxu0 }
 0xa17   : > { %v12393_v54 = vpop.f32.mrb[50].mxu0 }
 0xa18   : > { %v14108_v56 = vpop.f32.mrb[51].mxu0  ;;  %12397 = vst.msk [vmem:[%s485_s1] sm:$0x1] %vm12396_vm15, %v12391_v6 }
 0xa19   : > { %16187 = shalt.err (!%p16184_p9)
}
 0xa1a   : > { %s16188_s29 = scalar_lea.hbm %s17387_s16, 16  ;;  %s16192_s12 = scalar_lea.hbm %s17440_s11, 32 }
 0xa1b   : > { %p16189_p12 = scmp.ne.s32.totalorder %s17387_s16, %s16188_s29  ;;  %p16193_p3 = scmp.lt.u32.totalorder %s17387_s16, %s17440_s11 }
 0xa1c   : > { %p16194_p4 = scmp.lt.u32.totalorder %s16192_s12, %s16188_s29  ;;  %p16196_p8 = scmp.lt.u32.totalorder %s16188_s29, %s17387_s16 }
 0xa1d   : > { %p16190_p10 = pnand %p16189_p12, %p17482_p11 }
 0xa1e   : > { %p16195_p7 = por %p16194_p4, %p16193_p3 }
 0xa1f   : > { %p16191_p2 = pneg %p16190_p10 }
 0xa20   : > { %p16197_p13 = por %p16196_p8, %p16195_p7 }
 0xa22   : > { %p16198_p1 = pnand %p16197_p13, %p16191_p2 }
 0xa24   : > { %16201 = shalt.err (!%p16198_p1)
}
 0xa25   : > { %14341 = dma.vmem_to_hbm [thread:$0]  (%p17482_p11), %s17389_s6, 16, %s17387_s16, %s12399_s21  }
 0xa26 PF: > { %s17483_s19 = sld [smem:[#allocation26_spill]]  ;;  %s17484_s25 = sld [smem:[#allocation30_spill]] }
 0xa27   : > { %p14388_p0 = scmp.ge.s32.totalorder %s16256_s20, 2 }
 0xa2c   : > { %s12423_s2 = sand.u32 1, %s17483_s19   ;;  %p17485_p6 = scmp.ne.s32.totalorder %s17484_s25, 0 }
 0xa2d   : > { %s12424_s4 = scalar_lea.sflag [#allocation7], %s12423_s2 }
 0xa2e   : > { %p14369_p5 = pnand %p14388_p0, %p17485_p6 }
 0xa30   : > { %16239 = dma.done.wait (!%p14369_p5), %s12424_s4, 16  }
 0xa31   : > { %16241 = vsyncadd (!%p14369_p5), %s12424_s4, 4294967280  ;;  %s17486_s20 = sld [smem:[#allocation28_spill]]  ;;  %s17487_s1 = sld [smem:[#allocation27_spill]] }
 0xa32   : > { %s17488_s19 = sld [smem:[#allocation29_spill]]  ;;  %s17489_s17 = smov %s16248_s18 }
 0xa37   : > { %p26_p9 = scmp.ge.s32.totalorder %s17486_s20, 4   ;;  %s17490_s18 = smov %s17487_s1 }
 0xa39   :  { %28 = sbr.rel (!%p26_p9) target bundleno = 13 (0xd), region = 147 }
 0xa40   :  { %12428 = vsyncpa [#allocation6], 1 }
 0xa41   :  { %12430 = vsyncpa [#allocation6 + $0x1], 1 }
 0xa42   :  { %12431 = vsyncpa [#allocation9], 1 }
 0xa43   :  { %12432 = vsyncpa [#allocation12], 1 }
 0xa44   :  { %12433 = vsyncpa [#allocation15], 1 }
 0xa45   :  { %12434 = vsyncpa [#allocation18], 1 }
 0xa46   :  { %12435 = vsyncpa [#allocation7], 1 }
 0xa47   :  { %12437 = vsyncpa [#allocation7 + $0x1], 1 }

</bundles_post_ra>
